<compile_context>
chip_gen: v7x
topology: tpu7x:2x2x1
jax: 0.10.0
libtpu: 0.0.40
codegen_flags: <defaults>
</compile_context>

<pallas_src>
import functools

import numpy as np
import jax
import jax.numpy as jnp
from jax.experimental import pallas as pl
from jax.experimental.pallas import tpu as pltpu

BN_EPS = 1e-5


def _round_up(x, m):
    return (x + m - 1) // m * m


# ----------------------------------------------------------------------------
# Kernel 1: fused (adaptation 1x1 conv + BN + ReLU) -> (p5|p4|p3 1x1 convs).
#   grid = (M_pad // tm,); weights are VMEM-resident; feats stays in VMEM.
# ----------------------------------------------------------------------------
def _fused_head_kernel(x_ref, adw_ref, s_ref, b_ref, wcat_ref, bcat_ref,
                       o_ref, feats_ref):
    # x_ref: (tm, K1) bf16, adw_ref: (K1, N1) bf16, s/b: (1, N1) f32
    # wcat_ref: (N1, N2) bf16, bcat_ref: (1, N2) f32, o_ref: (tm, N2) bf16
    acc = jnp.dot(x_ref[...], adw_ref[...], preferred_element_type=jnp.float32)
    feats = jnp.maximum(acc * s_ref[...] + b_ref[...], 0.0)
    feats_ref[...] = feats.astype(jnp.bfloat16)

    heads = jnp.dot(feats_ref[...], wcat_ref[...],
                    preferred_element_type=jnp.float32)
    heads = heads + bcat_ref[...]
    o_ref[...] = heads.astype(o_ref.dtype)


def fused_head_conv(x2d, ad_w, scale, bias, w_cat, b_cat):
    """heads = (relu((x2d @ ad_w) * scale + bias)) @ w_cat + b_cat, in bf16."""
    M, K1 = x2d.shape
    N1 = ad_w.shape[1]
    N2 = w_cat.shape[1]

    # M tiling: keep tiles modest (VMEM), guarantee >=2 tiles when possible.
    if M >= 512:
        tm = 256
    elif M >= 16:
        tm = _round_up((M + 1) // 2, 8)
    else:
        tm = _round_up(max(M, 1), 8)
    m_pad = _round_up(M, tm)
    if m_pad != M:
        x2d = jnp.pad(x2d, ((0, m_pad - M), (0, 0)))

    out = pl.pallas_call(
        _fused_head_kernel,
        out_shape=jax.ShapeDtypeStruct((m_pad, N2), jnp.bfloat16),
        grid_spec=pltpu.PrefetchScalarGridSpec(
            num_scalar_prefetch=0,
            grid=(m_pad // tm,),
            in_specs=[
                pl.BlockSpec((tm, K1), lambda m: (m, 0)),      # x tile (streamed)
                pl.BlockSpec((K1, N1), lambda m: (0, 0)),      # ad_w (resident)
                pl.BlockSpec((1, N1), lambda m: (0, 0)),       # BN scale
                pl.BlockSpec((1, N1), lambda m: (0, 0)),       # BN-folded bias
                pl.BlockSpec((N1, N2), lambda m: (0, 0)),      # w_cat (resident)
                pl.BlockSpec((1, N2), lambda m: (0, 0)),       # b_cat
            ],
            out_specs=pl.BlockSpec((tm, N2), lambda m: (m, 0)),
            scratch_shapes=[pltpu.VMEM((tm, N1), jnp.bfloat16)],
        ),
        compiler_params=pltpu.CompilerParams(
            dimension_semantics=("parallel",),
            vmem_limit_bytes=48 * 1024 * 1024),
    )(x2d.astype(jnp.bfloat16),
      ad_w.astype(jnp.bfloat16),
      scale.reshape(1, N1).astype(jnp.float32),
      bias.reshape(1, N1).astype(jnp.float32),
      w_cat.astype(jnp.bfloat16),
      b_cat.reshape(1, N2).astype(jnp.float32))
    return out[:M]


# ----------------------------------------------------------------------------
# Kernel 2: bilinear upsampling (align_corners=False), channel-tiled.
#   * W direction: small matmul with contraction over the sublane (W) axis.
#   * H direction: static 2-tap stencil written per-phase from slices of t
#     (no materialized shifted copies).
# ----------------------------------------------------------------------------
def _bilinear_matrix(in_size, out_size):
    """PyTorch F.interpolate(mode='bilinear', align_corners=False) weights."""
    m = np.zeros((out_size, in_size), np.float32)
    scale = in_size / out_size
    for o in range(out_size):
        src = (o + 0.5) * scale - 0.5
        src = max(src, 0.0)
        i0 = min(int(np.floor(src)), in_size - 1)
        i1 = min(i0 + 1, in_size - 1)
        l1 = src - i0
        m[o, i0] += 1.0 - l1
        m[o, i1] += l1
    return m


def _upsample_kernel(x_ref, wc_ref, o_ref, *, factor):
    x = x_ref[0].astype(jnp.float32)            # (H, W, Ct)
    wc = wc_ref[...]                            # (sW, W)

    # W direction: t[h, p, c] = sum_w wc[p, w] * x[h, w, c]
    t = jnp.einsum('pw,hwc->hpc', wc, x, preferred_element_type=jnp.float32)
    h_in = t.shape[0]

    # H direction: per-phase 2-tap stencil over the major axis using static
    # slices of t (boundary rows handled separately; |d| < 0.5 so the clamp
    # collapses both taps onto the boundary row).
    for r in range(factor):
        d = (r + 0.5) / factor - 0.5
        if h_in == 1 or d == 0.0:
            o_ref[0, :, r, :, :] = t.astype(o_ref.dtype)
        elif d < 0.0:
            o_ref[0, 0, r, :, :] = t[0].astype(o_ref.dtype)
            o_ref[0, 1:, r, :, :] = ((-d) * t[:-1]
                                     + (1.0 + d) * t[1:]).astype(o_ref.dtype)
        else:
            o_ref[0, :-1, r, :, :] = ((1.0 - d) * t[:-1]
                                      + d * t[1:]).astype(o_ref.dtype)
            o_ref[0, h_in - 1, r, :, :] = t[h_in - 1].astype(o_ref.dtype)


def _pick_ctile(n_ch, batch):
    # Largest channel tile that still leaves >=2 grid units (v7x megacore).
    for c in (512, 256, 128):
        if n_ch % c == 0 and batch * (n_ch // c) >= 2:
            return c
    for c in (512, 256, 128):
        if n_ch % c == 0:
            return c
    return n_ch


def bilinear_upsample(x_bhwc, factor, *, ch_start=0, n_ch=None):
    """Upsample channels [ch_start, ch_start+n_ch) of x_bhwc by `factor`."""
    B, H, W, C = x_bhwc.shape
    if n_ch is None:
        n_ch = C - ch_start
    sH, sW = H * factor, W * factor

    c_tile = _pick_ctile(n_ch, B)
    if ch_start % c_tile != 0:              # fallback: slice outside the kernel
        x_bhwc = x_bhwc[..., ch_start:ch_start + n_ch]
        ch_start = 0
    c_off = ch_start // c_tile

    wc = jnp.asarray(_bilinear_matrix(W, sW))
    out = pl.pallas_call(
        functools.partial(_upsample_kernel, factor=factor),
        out_shape=jax.ShapeDtypeStruct((B, H, factor, sW, n_ch), jnp.float32),
        grid_spec=pltpu.PrefetchScalarGridSpec(
            num_scalar_prefetch=0,
            grid=(B, n_ch // c_tile),
            in_specs=[
                pl.BlockSpec((1, H, W, c_tile), lambda b, c: (b, 0, 0, c_off + c)),
                pl.BlockSpec((sW, W), lambda b, c: (0, 0)),
            ],
            out_specs=pl.BlockSpec((1, H, factor, sW, c_tile),
                                   lambda b, c: (b, 0, 0, 0, c)),
        ),
        compiler_params=pltpu.CompilerParams(
            dimension_semantics=("parallel", "parallel")),
    )(x_bhwc, wc)
    # (B, H, factor, sW, n_ch) -> (B, sH, sW, n_ch): merging adjacent dims is free.
    return out.reshape(B, sH, sW, n_ch)


# ----------------------------------------------------------------------------
# Forward pass of the DepthStreamResNet head
# ----------------------------------------------------------------------------
def depth_stream_resnet_head(x_nchw, params):
    B, C, H, W = x_nchw.shape
    x2d = jnp.transpose(x_nchw, (0, 2, 3, 1)).reshape(B * H * W, C)

    # adaptation = Conv2d(2048,1024,1) + BatchNorm2d (inference) + ReLU, folded.
    s = params['bn_gamma'] * jax.lax.rsqrt(params['bn_var'] + BN_EPS)
    b = (params['ad_b'] - params['bn_mean']) * s + params['bn_beta']

    # p5 / p4 / p3 heads concatenated (N = 1792), fused with the adaptation conv.
    w_cat = jnp.concatenate([params['p5_w'], params['p4_w'], params['p3_w']], axis=1)
    b_cat = jnp.concatenate([params['p5_b'], params['p4_b'], params['p3_b']])

    heads = fused_head_conv(x2d, params['ad_w'], s, b, w_cat, b_cat)   # (BHW,1792) bf16
    heads = heads.reshape(B, H, W, 1792)

    # The upsample kernels read their channel slice straight out of `heads`.
    p5 = jnp.transpose(heads[..., :1024].astype(jnp.float32), (0, 3, 1, 2))
    p4 = bilinear_upsample(heads, 2, ch_start=1024, n_ch=512)
    p3 = bilinear_upsample(heads, 4, ch_start=1536, n_ch=256)

    return (p5,
            jnp.transpose(p4, (0, 3, 1, 2)),
            jnp.transpose(p3, (0, 3, 1, 2)))


# ----------------------------------------------------------------------------
# Pure-JAX reference (same math / same bf16 rounding points) for a sanity check
# ----------------------------------------------------------------------------
def _ref_upsample(y, f):
    _, h, w, _ = y.shape
    wr = jnp.asarray(_bilinear_matrix(h, h * f))
    wc = jnp.asarray(_bilinear_matrix(w, w * f))
    t = jnp.einsum('oh,bhwc->bowc', wr, y)
    return jnp.einsum('pw,bowc->bopc', wc, t)


def _ref_forward(x_nchw, params):
    B, C, H, W = x_nchw.shape
    bf = lambda a: a.astype(jnp.bfloat16).astype(jnp.float32)
    x2d = bf(jnp.transpose(x_nchw, (0, 2, 3, 1)).reshape(B * H * W, C))
    s = params['bn_gamma'] * jax.lax.rsqrt(params['bn_var'] + BN_EPS)
    b = (params['ad_b'] - params['bn_mean']) * s + params['bn_beta']
    feats = bf(jnp.maximum(x2d @ bf(params['ad_w']) * s + b, 0.0))
    w_cat = jnp.concatenate([params['p5_w'], params['p4_w'], params['p3_w']], axis=1)
    b_cat = jnp.concatenate([params['p5_b'], params['p4_b'], params['p3_b']])
    heads = bf(feats @ bf(w_cat) + b_cat).reshape(B, H, W, 1792)
    p5 = heads[..., :1024]
    p4 = _ref_upsample(heads[..., 1024:1536], 2)
    p3 = _ref_upsample(heads[..., 1536:], 4)
    return (jnp.transpose(p5, (0, 3, 1, 2)),
            jnp.transpose(p4, (0, 3, 1, 2)),
            jnp.transpose(p3, (0, 3, 1, 2)))


def init_params(key):
    ks = jax.random.split(key, 12)
    return {
        'ad_w': 0.02 * jax.random.normal(ks[0], (2048, 1024), jnp.float32),
        'ad_b': 0.01 * jax.random.normal(ks[1], (1024,), jnp.float32),
        'bn_gamma': 1.0 + 0.1 * jax.random.normal(ks[2], (1024,), jnp.float32),
        'bn_beta': 0.1 * jax.random.normal(ks[3], (1024,), jnp.float32),
        'bn_mean': 0.1 * jax.random.normal(ks[4], (1024,), jnp.float32),
        'bn_var': jax.random.uniform(ks[5], (1024,), jnp.float32, 0.5, 1.5),
        'p5_w': 0.02 * jax.random.normal(ks[6], (1024, 1024), jnp.float32),
        'p5_b': 0.01 * jax.random.normal(ks[7], (1024,), jnp.float32),
        'p4_w': 0.02 * jax.random.normal(ks[8], (1024, 512), jnp.float32),
        'p4_b': 0.01 * jax.random.normal(ks[9], (512,), jnp.float32),
        'p3_w': 0.02 * jax.random.normal(ks[10], (1024, 256), jnp.float32),
        'p3_b': 0.01 * jax.random.normal(ks[11], (256,), jnp.float32),
    }


if __name__ == "__main__":
    key = jax.random.PRNGKey(0)
    kx, kp = jax.random.split(key)
    # Small backbone feature map: B=2, C=2048, H=W=4 (NCHW, matching PyTorch).
    x = jax.random.normal(kx, (2, 2048, 4, 4), jnp.float32)
    params = init_params(kp)

    p5, p4, p3 = depth_stream_resnet_head(x, params)
    jax.block_until_ready((p5, p4, p3))

    assert p5.shape == (2, 1024, 4, 4) and p5.dtype == jnp.float32
    assert p4.shape == (2, 512, 8, 8) and p4.dtype == jnp.float32
    assert p3.shape == (2, 256, 16, 16) and p3.dtype == jnp.float32

    r5, r4, r3 = _ref_forward(x, params)
    np.testing.assert_allclose(np.asarray(p5), np.asarray(r5), rtol=1e-2, atol=1e-2)
    np.testing.assert_allclose(np.asarray(p4), np.asarray(r4), rtol=1e-2, atol=1e-2)
    np.testing.assert_allclose(np.asarray(p3), np.asarray(r3), rtol=1e-2, atol=1e-2)

    print("KERNEL_OK")
</pallas_src>

<mosaic_0001>
module attributes {stable_mosaic.version = 11 : i64} {
  func.func @_fused_head_kernel(%arg0: i32, %arg1: memref<16x2048xbf16, #tpu.memory_space<vmem>>, %arg2: memref<2048x1024xbf16, #tpu.memory_space<vmem>>, %arg3: memref<1x1024xf32, #tpu.memory_space<vmem>>, %arg4: memref<1x1024xf32, #tpu.memory_space<vmem>>, %arg5: memref<1024x1792xbf16, #tpu.memory_space<vmem>>, %arg6: memref<1x1792xf32, #tpu.memory_space<vmem>>, %arg7: memref<16x1792xbf16, #tpu.memory_space<vmem>>, %arg8: memref<16x1024xbf16, #tpu.memory_space<vmem>>) attributes {dimension_semantics = [#tpu.dimension_semantics<parallel>], iteration_bounds = array<i64: 2>, scalar_prefetch = 0 : i64, scratch_operands = 1 : i64, tpu.core_type = #tpu.core_type<tc>, window_params = [{transform_indices = @transform_0, window_bounds = array<i64: 16, 2048>}, {pipeline_mode = #tpu.pipeline_mode<synchronous>, transform_indices = @transform_1, window_bounds = array<i64: 2048, 1024>}, {pipeline_mode = #tpu.pipeline_mode<synchronous>, transform_indices = @transform_2, window_bounds = array<i64: 1, 1024>}, {pipeline_mode = #tpu.pipeline_mode<synchronous>, transform_indices = @transform_3, window_bounds = array<i64: 1, 1024>}, {pipeline_mode = #tpu.pipeline_mode<synchronous>, transform_indices = @transform_4, window_bounds = array<i64: 1024, 1792>}, {pipeline_mode = #tpu.pipeline_mode<synchronous>, transform_indices = @transform_5, window_bounds = array<i64: 1, 1792>}, {transform_indices = @transform_6, window_bounds = array<i64: 16, 1792>}]} {
    %c0 = arith.constant 0 : index
    %c0_0 = arith.constant 0 : index
    %0 = vector.load %arg1[%c0, %c0_0] : memref<16x2048xbf16, #tpu.memory_space<vmem>>, vector<16x2048xbf16>
    %c0_1 = arith.constant 0 : index
    %c0_2 = arith.constant 0 : index
    %1 = vector.load %arg2[%c0_1, %c0_2] : memref<2048x1024xbf16, #tpu.memory_space<vmem>>, vector<2048x1024xbf16>
    %cst = arith.constant dense<0.000000e+00> : vector<16x1024xf32>
    %2 = tpu.matmul %0, %1, %cst {dimension_numbers = #tpu.dot_dimension_numbers<[1], [0], [0], [1], [0, 0, 1, 1], [], []>} : vector<16x2048xbf16>, vector<2048x1024xbf16>, vector<16x1024xf32> -> vector<16x1024xf32>
    %c0_3 = arith.constant 0 : index
    %c0_4 = arith.constant 0 : index
    %3 = vector.load %arg3[%c0_3, %c0_4] : memref<1x1024xf32, #tpu.memory_space<vmem>>, vector<1x1024xf32>
    %4 = vector.broadcast %3 : vector<1x1024xf32> to vector<16x1024xf32>
    %5 = arith.mulf %2, %4 : vector<16x1024xf32>
    %c0_5 = arith.constant 0 : index
    %c0_6 = arith.constant 0 : index
    %6 = vector.load %arg4[%c0_5, %c0_6] : memref<1x1024xf32, #tpu.memory_space<vmem>>, vector<1x1024xf32>
    %7 = vector.broadcast %6 : vector<1x1024xf32> to vector<16x1024xf32>
    %8 = arith.addf %5, %7 : vector<16x1024xf32>
    %cst_7 = arith.constant 0.000000e+00 : f32
    %9 = vector.broadcast %cst_7 : f32 to vector<16x1024xf32>
    %10 = arith.maximumf %8, %9 : vector<16x1024xf32>
    %11 = arith.truncf %10 : vector<16x1024xf32> to vector<16x1024xbf16>
    %c0_8 = arith.constant 0 : index
    %c0_9 = arith.constant 0 : index
    %12 = vector.load %arg8[%c0_8, %c0_9] : memref<16x1024xbf16, #tpu.memory_space<vmem>>, vector<16x1024xbf16>
    tpu.vector_store %arg8[%c0_8, %c0_9], %11 {strides = array<i32>} : memref<16x1024xbf16, #tpu.memory_space<vmem>>, vector<16x1024xbf16>,
    %c0_10 = arith.constant 0 : index
    %c0_11 = arith.constant 0 : index
    %13 = vector.load %arg8[%c0_10, %c0_11] : memref<16x1024xbf16, #tpu.memory_space<vmem>>, vector<16x1024xbf16>
    %c0_12 = arith.constant 0 : index
    %c0_13 = arith.constant 0 : index
    %14 = vector.load %arg5[%c0_12, %c0_13] : memref<1024x1792xbf16, #tpu.memory_space<vmem>>, vector<1024x1792xbf16>
    %cst_14 = arith.constant dense<0.000000e+00> : vector<16x1792xf32>
    %15 = tpu.matmul %13, %14, %cst_14 {dimension_numbers = #tpu.dot_dimension_numbers<[1], [0], [0], [1], [0, 0, 1, 1], [], []>} : vector<16x1024xbf16>, vector<1024x1792xbf16>, vector<16x1792xf32> -> vector<16x1792xf32>
    %c0_15 = arith.constant 0 : index
    %c0_16 = arith.constant 0 : index
    %16 = vector.load %arg6[%c0_15, %c0_16] : memref<1x1792xf32, #tpu.memory_space<vmem>>, vector<1x1792xf32>
    %17 = vector.broadcast %16 : vector<1x1792xf32> to vector<16x1792xf32>
    %18 = arith.addf %15, %17 : vector<16x1792xf32>
    %19 = arith.truncf %18 : vector<16x1792xf32> to vector<16x1792xbf16>
    %c0_17 = arith.constant 0 : index
    %c0_18 = arith.constant 0 : index
    %20 = vector.load %arg7[%c0_17, %c0_18] : memref<16x1792xbf16, #tpu.memory_space<vmem>>, vector<16x1792xbf16>
    tpu.vector_store %arg7[%c0_17, %c0_18], %19 {strides = array<i32>} : memref<16x1792xbf16, #tpu.memory_space<vmem>>, vector<16x1792xbf16>,
    return
  }
  func.func @transform_0(%arg0: i32) -> (i32, i32) {
    %c0_i32 = arith.constant 0 : i32
    %c0_i32_0 = arith.constant 0 : i32
    return %arg0, %c0_i32 : i32, i32
  }
  func.func @transform_1(%arg0: i32) -> (i32, i32) {
    %c0_i32 = arith.constant 0 : i32
    %c0_i32_0 = arith.constant 0 : i32
    %c0_i32_1 = arith.constant 0 : i32
    return %c0_i32, %c0_i32_0 : i32, i32
  }
  func.func @transform_2(%arg0: i32) -> (i32, i32) {
    %c0_i32 = arith.constant 0 : i32
    %c0_i32_0 = arith.constant 0 : i32
    %c0_i32_1 = arith.constant 0 : i32
    return %c0_i32, %c0_i32_0 : i32, i32
  }
  func.func @transform_3(%arg0: i32) -> (i32, i32) {
    %c0_i32 = arith.constant 0 : i32
    %c0_i32_0 = arith.constant 0 : i32
    %c0_i32_1 = arith.constant 0 : i32
    return %c0_i32, %c0_i32_0 : i32, i32
  }
  func.func @transform_4(%arg0: i32) -> (i32, i32) {
    %c0_i32 = arith.constant 0 : i32
    %c0_i32_0 = arith.constant 0 : i32
    %c0_i32_1 = arith.constant 0 : i32
    return %c0_i32, %c0_i32_0 : i32, i32
  }
  func.func @transform_5(%arg0: i32) -> (i32, i32) {
    %c0_i32 = arith.constant 0 : i32
    %c0_i32_0 = arith.constant 0 : i32
    %c0_i32_1 = arith.constant 0 : i32
    return %c0_i32, %c0_i32_0 : i32, i32
  }
  func.func @transform_6(%arg0: i32) -> (i32, i32) {
    %c0_i32 = arith.constant 0 : i32
    %c0_i32_0 = arith.constant 0 : i32
    return %arg0, %c0_i32 : i32, i32
  }
}

</mosaic_0001>

<bundles_post_ra>
// kernel: tpu_custom_call.1
= control target key start
LH: loop header
LB: loop body
LE: loop exit
PB: predicated region body
PF: predicated region fallthrough
CT: control target
= control target key end

     0   :  { %11 = vsyncpa [#allocation4], 0  ;;  %s19639_s0 = inlined_call_operand.hbm [shape: bf16[32,2048], index: 0, kind: input, shape index: {}]   ;;  %s19640_s1 = inlined_call_operand.hbm [shape: bf16[2048,1024], index: 1, kind: input, shape index: {}]   ;;  %s19641_s2 = inlined_call_operand.hbm [shape: f32[1,1024], index: 2, kind: input, shape index: {}]   ;;  %s19642_s3 = inlined_call_operand.hbm [shape: f32[1,1024], index: 3, kind: input, shape index: {}]   ;;  %s19643_s4 = inlined_call_operand.hbm [shape: bf16[1024,1792], index: 4, kind: input, shape index: {}]   ;;  %s19644_s5 = inlined_call_operand.hbm [shape: f32[1,1792], index: 5, kind: input, shape index: {}]   ;;  %s19645_s6 = inlined_call_operand.hbm [shape: bf16[32,1792], index: 6, kind: output, shape index: {}]  }
   0x1   :  { %13 = vsyncpa [#allocation4 + $0x1], 0 }
   0x2   :  { %14 = vsyncpa [#allocation7], 0 }
   0x3   :  { %15 = vsyncpa [#allocation10], 0 }
   0x4   :  { %16 = vsyncpa [#allocation13], 0 }
   0x5   :  { %17 = vsyncpa [#allocation5], 0 }
   0x6   :  { %19 = vsyncpa [#allocation5 + $0x1], 0  ;;  %s18970_s21 = smov 0   ;;  %s18972_s22 = smov 0  }
   0x7   :  { %s18974_s23 = smov 0   ;;  %s18976_s24 = smov 0  }
   0x8 LB: > { %s18920_s25 = smov [#allocation6]   ;;  %s18991_s27 = sadd.s32 4294967295, %s18918_s24   ;;  %s18918_s24 = sphi %s18976_s24, %s19670_s24   ;;  %s18914_s23 = sphi %s18974_s23, %s19669_s23   ;;  %s18910_s22 = sphi %s18972_s22, %s19668_s22   ;;  %s18906_s21 = sphi %s18970_s21, %s19667_s21  }
   0x9   : > { %s199_s26 = sshll.u32 %s18920_s25, 4  ;;  %p15001_p0 = scmp.ge.s32.totalorder %s18918_s24, 1  ;;  %s18996_s26 = int_to_ptr.vmem [resolvable:$true] %s199_s26 }
   0xa   : > { %p19646_p1 = scmp.eq.s32.totalorder %s18991_s27, 0  ;;  %p187_p2 = scmp.lt.s32.totalorder %s18918_s24, 3 }
   0xb   : > { %s18921_s29 = smov [#allocation9]   ;;  %s18922_s8 = smov [#allocation8]  }
   0xc   : > { %p18998_p3 = pnand %p15001_p0, %p187_p2  ;;  %s224_s30 = sshll.u32 %s18921_s29, 4  ;;  %s19011_s30 = int_to_ptr.vmem [resolvable:$true] %s224_s30 }
   0xd   : > { %s213_s9 = sshll.u32 %s18922_s8, 4  ;;  %s18670_s12 = scalar_lea.hbm %s19640_s1, 131072  ;;  %s19013_s9 = int_to_ptr.vmem [resolvable:$true] %s213_s9 }
   0xe   : > { %s19649_s28 = scalar_select %p18998_p3, 1, 0 }
   0xf   : > { %p17240_p5 = pneg %p18998_p3  ;;  %p18671_p7 = scmp.ne.s32.totalorder %s19640_s1, %s18670_s12 }
  0x10   : > { %p18677_p11 = scmp.lt.u32.totalorder %s18670_s12, %s19640_s1 }
  0x11   : > { %p19007_p6 = pnand %p17240_p5, %p19646_p1 }
  0x13   : > { %p19023_p8 = pneg %p19007_p6 }
  0x15   : > { %p18673_p9 = pnand %p19023_p8, %p18671_p7 }
  0x17   : > { %p18674_p10 = pneg %p18673_p9 }
  0x19   : > { %p18679_p12 = pnand %p18677_p11, %p18674_p10 }
  0x1b   : > { %18682 = shalt.err (!%p18679_p12)
}
  0x1c   : > { %s18683_s18 = scalar_lea.vmem %s18996_s26, 131072  ;;  %p18691_p5 = scmp.lt.s32.totalorder %s18996_s26, %s18996_s26 }
  0x1d   : > { %p18684_p13 = scmp.ne.s32.totalorder %s18996_s26, %s18683_s18  ;;  %p18692_p4 = scmp.lt.s32.totalorder %s18683_s18, %s18683_s18 }
  0x1f   : > { %p18686_p0 = pnand %p18684_p13, %p19023_p8  ;;  %p18693_p7 = por %p18692_p4, %p18691_p5 }
  0x21   : > { %p18687_p2 = pneg %p18686_p0 }
  0x23   : > { %p18694_p9 = pnand %p18693_p7, %p18687_p2 }
  0x25   : > { %18697 = shalt.err (!%p18694_p9)
}
  0x26   : > { %s18923_s19 = smov 512   ;;  %s18924_s20 = smov 32  }
  0x27   : > { %17243 = dma.hbm_to_vmem [thread:$0]  (!%p19007_p6), %s19640_s1, 131072, %s18996_s26, [#allocation7], %s18923_s19, %s18923_s19, %s18924_s20  }
  0x28   : > { %s18698_s11 = scalar_lea.hbm %s19642_s3, 128 }
  0x29   : > { %p18699_p4 = scmp.ne.s32.totalorder %s19642_s3, %s18698_s11  ;;  %p18705_p12 = scmp.lt.u32.totalorder %s18698_s11, %s19642_s3 }
  0x2b   : > { %p18701_p10 = pnand %p18699_p4, %p19023_p8 }
  0x2d   : > { %p18702_p11 = pneg %p18701_p10 }
  0x2f   : > { %p18707_p13 = pnand %p18705_p12, %p18702_p11 }
  0x31   : > { %18710 = shalt.err (!%p18707_p13)
}
  0x32   : > { %s18711_s26 = scalar_lea.vmem %s19011_s30, 128  ;;  %p18719_p7 = scmp.lt.s32.totalorder %s19011_s30, %s19011_s30 }
  0x33   : > { %p18712_p0 = scmp.ne.s32.totalorder %s19011_s30, %s18711_s26  ;;  %p18720_p9 = scmp.lt.s32.totalorder %s18711_s26, %s18711_s26 }
  0x35   : > { %p18714_p2 = pnand %p18712_p0, %p19023_p8  ;;  %p18721_p4 = por %p18720_p9, %p18719_p7 }
  0x37   : > { %p18715_p5 = pneg %p18714_p2 }
  0x39   : > { %p18722_p10 = pnand %p18721_p4, %p18715_p5 }
  0x3b   : > { %18725 = shalt.err (!%p18722_p10)
}
  0x3c   : > { %17249 = dma.hbm_to_vmem [thread:$0]  (!%p19007_p6), %s19642_s3, 128, %s19011_s30, [#allocation10]  }
  0x3d   : > { %s18726_s25 = scalar_lea.hbm %s19641_s2, 128 }
  0x3e   : > { %p18727_p11 = scmp.ne.s32.totalorder %s19641_s2, %s18726_s25  ;;  %p18733_p0 = scmp.lt.u32.totalorder %s18726_s25, %s19641_s2 }
  0x40   : > { %p18729_p12 = pnand %p18727_p11, %p19023_p8 }
  0x42   : > { %p18730_p13 = pneg %p18729_p12 }
  0x44   : > { %p18735_p2 = pnand %p18733_p0, %p18730_p13 }
  0x46   : > { %18738 = shalt.err (!%p18735_p2)
}
  0x47   : > { %s18739_s30 = scalar_lea.vmem %s19013_s9, 128  ;;  %p18747_p4 = scmp.lt.s32.totalorder %s19013_s9, %s19013_s9 }
  0x48   : > { %p18740_p5 = scmp.ne.s32.totalorder %s19013_s9, %s18739_s30  ;;  %p18748_p10 = scmp.lt.s32.totalorder %s18739_s30, %s18739_s30 }
  0x4a   : > { %p18742_p7 = pnand %p18740_p5, %p19023_p8  ;;  %p18749_p11 = por %p18748_p10, %p18747_p4 }
  0x4c   : > { %p18743_p9 = pneg %p18742_p7 }
  0x4e   : > { %p18750_p12 = pnand %p18749_p11, %p18743_p9 }
  0x50   : > { %18753 = shalt.err (!%p18750_p12)
}
  0x51   : > { %17246 = dma.hbm_to_vmem [thread:$0]  (!%p19007_p6), %s19641_s2, 128, %s19013_s9, [#allocation7]  }
  0x52   : > { %s18925_s14 = smov [#allocation11]   ;;  %s18754_s18 = scalar_lea.hbm %s19643_s4, 114688 }
  0x53   : > { %s234_s16 = sshll.u32 %s18925_s14, 4  ;;  %p18755_p13 = scmp.ne.s32.totalorder %s19643_s4, %s18754_s18  ;;  %s235_s16 = int_to_ptr.vmem [resolvable:$true] %s234_s16 }
  0x54   : > { %p18761_p5 = scmp.lt.u32.totalorder %s18754_s18, %s19643_s4 }
  0x55   : > { %p18757_p0 = pnand %p18755_p13, %p19023_p8 }
  0x57   : > { %p18758_p2 = pneg %p18757_p0 }
  0x59   : > { %p18763_p7 = pnand %p18761_p5, %p18758_p2 }
  0x5b   : > { %18766 = shalt.err (!%p18763_p7)
}
  0x5c   : > { %s18767_s9 = scalar_lea.vmem %s235_s16, 114688  ;;  %p18775_p11 = scmp.lt.s32.totalorder %s235_s16, %s235_s16 }
  0x5d   : > { %p18768_p9 = scmp.ne.s32.totalorder %s235_s16, %s18767_s9  ;;  %p18776_p12 = scmp.lt.s32.totalorder %s18767_s9, %s18767_s9 }
  0x5f   : > { %p18770_p4 = pnand %p18768_p9, %p19023_p8  ;;  %p18777_p1 = por %p18776_p12, %p18775_p11 }
  0x61   : > { %p18771_p10 = pneg %p18770_p4 }
  0x63   : > { %p18778_p3 = pnand %p18777_p1, %p18771_p10 }
  0x65   : > { %18781 = shalt.err (!%p18778_p3)
}
  0x66   : > { %s18926_s8 = smov 896   ;;  %s18927_s10 = smov 56  }
  0x67   : > { %17252 = dma.hbm_to_vmem [thread:$0]  (!%p19007_p6), %s19643_s4, 114688, %s235_s16, [#allocation10], %s18926_s8, %s18926_s8, %s18927_s10  }
  0x68   : > { %s18928_s12 = smov [#allocation12]   ;;  %s18782_s17 = scalar_lea.hbm %s19644_s5, 224 }
  0x69   : > { %s248_s13 = sshll.u32 %s18928_s12, 4  ;;  %p18783_p1 = scmp.ne.s32.totalorder %s19644_s5, %s18782_s17  ;;  %s249_s13 = int_to_ptr.vmem [resolvable:$true] %s248_s13 }
  0x6a   : > { %p18789_p0 = scmp.lt.u32.totalorder %s18782_s17, %s19644_s5 }
  0x6b   : > { %p18785_p3 = pnand %p18783_p1, %p19023_p8 }
  0x6d   : > { %p18786_p13 = pneg %p18785_p3 }
  0x6f   : > { %p18791_p2 = pnand %p18789_p0, %p18786_p13 }
  0x71   : > { %18794 = shalt.err (!%p18791_p2)
}
  0x72   : > { %s18795_s16 = scalar_lea.vmem %s249_s13, 224  ;;  %p18803_p4 = scmp.lt.s32.totalorder %s249_s13, %s249_s13 }
  0x73   : > { %p18796_p5 = scmp.ne.s32.totalorder %s249_s13, %s18795_s16  ;;  %p18804_p10 = scmp.lt.s32.totalorder %s18795_s16, %s18795_s16 }
  0x75   : > { %p18798_p7 = pnand %p18796_p5, %p19023_p8  ;;  %p18805_p11 = por %p18804_p10, %p18803_p4 }
  0x77   : > { %p18799_p9 = pneg %p18798_p7 }
  0x79   : > { %p18806_p12 = pnand %p18805_p11, %p18799_p9 }
  0x7b   : > { %18809 = shalt.err (!%p18806_p12)
}
  0x7c   : > { %17255 = dma.hbm_to_vmem [thread:$0]  (!%p19007_p6), %s19644_s5, 224, %s249_s13, [#allocation13]  }
  0x7d   : > { %s15000_s15 = sadd.s32 4294967294, %s18918_s24   ;;  %s19128_s7 = sadd.s32 1, %s18918_s24  }
  0x7e   : > { %s32_s8 = sadd.s32 1, %s18914_s23  ;;  %s29_s10 = ssub.s32 %s18918_s24, %s19128_s7 }
  0x7f   : > { %p39_p8 = scmp.ne.s32.totalorder %s18914_s23, %s18910_s22  ;;  %p30_p1 = scmp.eq.s32.totalorder %s29_s10, 0 }
  0x80   : > { %p40_p3 = scmp.eq.s32.totalorder %s18918_s24, 0  ;;  %p45_p13 = scmp.ne.s32.totalorder %s18910_s22, %s18906_s21 }
  0x81   : > { %p174_p0 = scmp.eq.s32.totalorder %s18991_s27, 1  ;;  %p19652_p5 = scmp.eq.s32.totalorder %s18991_s27, 0 }
  0x82   : > { %s19140_s11 = scalar_select %p30_p1, %s18914_s23, %s32_s8  }
  0x83   : > { %p41_p2 = por %p40_p3, %p39_p8  ;;  %p19144_p7 = por %p19652_p5, %p45_p13 }
  0x84   : > { %p19148_p6 = por %p174_p0, %p39_p8  ;;  %p180_p9 = scmp.eq.s32.totalorder %s15000_s15, 1 }
  0x85   : > { %p17269_p4 = scmp.lt.s32.totalorder %s18918_s24, 2  ;;  %s259_s13 = sand.u32 1, %s18914_s23  }
  0x86   : > { %s19654_s12 = scalar_select %p19148_p6, 1, 0 }
  0x87   : > { %p19154_p10 = por %p180_p9, %p45_p13  ;;  %s15008_s26 = sshll.u32 %s259_s13, 7 }
  0x88   : > { %s16975_s17 = sshll.u32 %s18918_s24, 11  ;;  %s263_s25 = scalar_lea.vmem [#allocation3], %s15008_s26 }
  0x89   : > { %s19655_s14 = scalar_select %p19154_p10, 1, 0 }
  0x8a   : > { %s19162_s20 = scalar_lea.hbm %s19639_s0, %s16975_s17  ;;  %s271_s16 = sshll.u32 %s263_s25, 4  ;;  %s19168_s16 = int_to_ptr.vmem [resolvable:$true] %s271_s16 }
  0x8b   : > { %p19164_p11 = pnand %p17269_p4, %p41_p2  ;;  %s19170_s9 = scalar_lea.sflag [#allocation4], %s259_s13 }
  0x8c   : > { %s18810_s15 = scalar_lea.hbm %s19162_s20, 2048  ;;  %s18815_s26 = scalar_lea.hbm %s19639_s0, 4096 }
  0x8d   : > { %p18811_p12 = scmp.ne.s32.totalorder %s19162_s20, %s18810_s15  ;;  %p18812_p8 = pneg %p19164_p11 }
  0x8e   : > { %p18816_p13 = scmp.lt.u32.totalorder %s19162_s20, %s19639_s0  ;;  %p18817_p0 = scmp.lt.u32.totalorder %s18815_s26, %s18810_s15 }
  0x8f   : > { %p18813_p1 = pnand %p18812_p8, %p18811_p12  ;;  %p18819_p5 = scmp.lt.u32.totalorder %s18810_s15, %s19162_s20 }
  0x90   : > { %p18818_p2 = por %p18817_p0, %p18816_p13 }
  0x91   : > { %p18814_p3 = pneg %p18813_p1 }
  0x92   : > { %p18820_p9 = por %p18819_p5, %p18818_p2 }
  0x94   : > { %p18821_p4 = pnand %p18820_p9, %p18814_p3 }
  0x96   : > { %18824 = shalt.err (!%p18821_p4)
}
  0x97   : > { %s18825_s13 = scalar_lea.vmem %s19168_s16, 2048  ;;  %s18929_s19 = smov [#allocation3]  }
  0x98   : > { %p18826_p12 = scmp.ne.s32.totalorder %s19168_s16, %s18825_s13  ;;  %s18830_s25 = sshll.u32 %s18929_s19, 4  ;;  %s18831_s25 = int_to_ptr.vmem [resolvable:$false] %s18830_s25 }
  0x99   : > { %s18832_s8 = scalar_lea.vmem %s18831_s25, 4096  ;;  %p18833_p6 = scmp.lt.s32.totalorder %s19168_s16, %s18831_s25 }
  0x9a   : > { %p18828_p1 = pnand %p18826_p12, %p18812_p8  ;;  %p18834_p13 = scmp.lt.s32.totalorder %s18832_s8, %s18825_s13 }
  0x9c   : > { %p18829_p10 = pneg %p18828_p1  ;;  %p18835_p0 = por %p18834_p13, %p18833_p6 }
  0x9e   : > { %p18836_p2 = pnand %p18835_p0, %p18829_p10 }
  0xa0   : > { %18839 = shalt.err (!%p18836_p2)
}
  0xa1   : > { %s18930_s15 = smov 1024   ;;  %s18931_s10 = smov 64  }
  0xa2   : > { %17259 = dma.hbm_to_vmem [thread:$0]  (!%p19164_p11), %s19162_s20, 2048, %s19168_s16, %s19170_s9, %s18930_s15, %s18930_s15, %s18931_s10  }
  0xa3   : > { %p19657_p8 = scmp.ne.s32.totalorder %s19649_s28, 0 }
  0xa4   : > { %s19201_s26 = sand.u32 (!%p19657_p8), 1, %s18910_s22  }
  0xa5   : > { %283 = sbr.rel (%p19657_p8) target bundleno = 2567 (0xa07), region = 44  ;;  %s15013_s17 = sshll.u32 (!%p19657_p8), %s19201_s26, 7 }
  0xa6   : > { %s286_s18 = scalar_lea.sflag (!%p19657_p8), [#allocation4], %s19201_s26  ;;  %s19205_s13 = scalar_lea.vmem (!%p19657_p8), [#allocation3], %s15013_s17 }
  0xac   : > { %18885 = dma.done.wait (%p19144_p7), %s286_s18, 2048  }
  0xad   : > { %18887 = vsyncadd (%p19144_p7), %s286_s18, 4294965248  ;;  %p19658_p6 = scmp.eq.s32.totalorder %s18991_s27, 0 }
  0xaf   : > { %18889 = dma.done.wait (%p19658_p6), [#allocation7], 131200   ;;  %p19659_p10 = pmov %p19658_p6 }
  0xb0   : > { %p19660_p11 = pmov %p19658_p6 }
  0xb1   : > { %18891 = vsyncadd (%p19659_p10), [#allocation7], 4294836096 }
  0xb2   : > { %18893 = dma.done.wait (%p19660_p11), [#allocation10], 114816   ;;  %p19661_p3 = pmov %p19658_p6 }
  0xb4   : > { %18895 = vsyncadd (%p19661_p3), [#allocation10], 4294852480  ;;  %p19662_p5 = pmov %p19661_p3 }
  0xb5   : > { %p19663_p9 = pmov %p19661_p3 }
  0xb6   : > { %18897 = dma.done.wait (%p19662_p5), [#allocation13], 224  }
  0xb7   : > { %18899 = vsyncadd (%p19663_p9), [#allocation13], 4294967072  ;;  %v356_v0 = vld [vmem:[#allocation6] sm:$0xff]  ;;  %v19234_v59 = vld [vmem:[%s19205_s13 + $0x10] sm:$0xff]  ;;  %s17214_s28 = smul.u32 112, %s19201_s26  ;;  %p19664_p4 = scmp.ne.s32.totalorder %s19654_s12, 0 }
  0xb8   : > { %v360_v1 = vld [vmem:[#allocation6 + $0x20] sm:$0xff]  ;;  %v19237_v62 = vld [vmem:[%s19205_s13 + $0x50] sm:$0xff]  ;;  %s17215_s20 = smul.u32 1792, %s18991_s27  ;;  %s14865_s27 = scalar_lea.sflag [#allocation5], %s19201_s26 }
  0xb9   : > { %v612_v2 = vld [vmem:[#allocation6 + $0x800] sm:$0xff]  ;;  %v15036_v3 = vcombine.high %v356_v0, %v360_v1  ;;  %v15035_v5 = vcombine.low %v356_v0, %v360_v1  ;;  %v19242_v0 = vcombine.high %v19234_v59, %v19237_v62  ;;  %s19516_s30 = scalar_lea.vmem [#allocation14], %s17214_s28  ;;  %s18932_s8 = smov [#allocation14]  }
  0xba   : > { %v616_v4 = vld [vmem:[#allocation6 + $0x820] sm:$0xff]  ;;  %s14879_s16 = sshll.u32 %s19516_s30, 4  ;;  %s19591_s19 = scalar_lea.hbm %s19645_s6, %s17215_s20  ;;  %s19593_s16 = int_to_ptr.vmem [resolvable:$true] %s14879_s16 }
  0xbb   : > { %v364_v6 = vld [vmem:[#allocation6 + $0x40] sm:$0xff]  ;;  %v15292_v8 = vcombine.high %v612_v2, %v616_v4  ;;  %v15291_v9 = vcombine.low %v612_v2, %v616_v4  ;;  %6580 = vmatprep.subr.bf16.mxu1 %v15036_v3  ;;  %6698 = vmatprep.mubr.bf16.mxu0 %v19242_v0  ;;  %s18840_s25 = scalar_lea.vmem %s19593_s16, 1792  ;;  %s18844_s15 = sshll.u32 %s18932_s8, 4  ;;  %s18845_s15 = int_to_ptr.vmem [resolvable:$false] %s18844_s15 }
  0xbc   : > { %v368_v7 = vld [vmem:[#allocation6 + $0x60] sm:$0xff]  ;;  %6581 = vmatpush1.bf16.msra.mxu1 %v15035_v5  ;;  %p18841_p7 = scmp.ne.s32.totalorder %s19593_s16, %s18840_s25  ;;  %s18846_s10 = scalar_lea.vmem %s18845_s15, 3584 }
  0xbd   : > { %v15044_v10 = vcombine.high %v364_v6, %v368_v7  ;;  %v620_v11 = vld [vmem:[#allocation6 + $0x840] sm:$0xff]  ;;  %6666 = vmatprep.subr.bf16.mxu0 %v15292_v8  ;;  %v15043_v18 = vcombine.low %v364_v6, %v368_v7  ;;  %p18847_p13 = scmp.lt.s32.totalorder %s19593_s16, %s18845_s15  ;;  %p18848_p0 = scmp.lt.s32.totalorder %s18846_s10, %s18840_s25 }
  0xbe   : > { %v624_v12 = vld [vmem:[#allocation6 + $0x860] sm:$0xff]  ;;  %6667 = vmatpush1.bf16.msra.mxu0 %v15291_v9  ;;  %p18842_p12 = pnand %p18841_p7, %p19664_p4 }
  0xbf   : > { %v372_v13 = vld [vmem:[#allocation6 + $0x80] sm:$0xff]  ;;  %v15300_v14 = vcombine.high %v620_v11, %v624_v12  ;;  %6582 = vmatprep.subr.bf16.mxu1 %v15044_v10  ;;  %v15299_v19 = vcombine.low %v620_v11, %v624_v12  ;;  %p18849_p2 = por %p18848_p0, %p18847_p13 }
  0xc0   : > { %v376_v15 = vld [vmem:[#allocation6 + $0xa0] sm:$0xff]  ;;  %6583 = vmatpush1.bf16.msra.mxu1 %v15043_v18  ;;  %p18843_p1 = pneg %p18842_p12 }
  0xc1   : > { %v628_v16 = vld [vmem:[#allocation6 + $0x880] sm:$0xff]  ;;  %v15052_v20 = vcombine.high %v372_v13, %v376_v15  ;;  %6668 = vmatprep.subr.bf16.mxu0 %v15300_v14  ;;  %v15051_v26 = vcombine.low %v372_v13, %v376_v15 }
  0xc2   : > { %v632_v17 = vld [vmem:[#allocation6 + $0x8a0] sm:$0xff]  ;;  %6669 = vmatpush1.bf16.msra.mxu0 %v15299_v19  ;;  %p18850_p8 = pnand %p18849_p2, %p18843_p1 }
  0xc3   : > { %v15308_v21 = vcombine.high %v628_v16, %v632_v17  ;;  %v380_v22 = vld [vmem:[#allocation6 + $0xc0] sm:$0xff]  ;;  %6584 = vmatprep.subr.bf16.mxu1 %v15052_v20  ;;  %v15307_v27 = vcombine.low %v628_v16, %v632_v17 }
  0xc4   : > { %v384_v23 = vld [vmem:[#allocation6 + $0xe0] sm:$0xff]  ;;  %6585 = vmatpush1.bf16.msra.mxu1 %v15051_v26 }
  0xc5   : > { %v636_v24 = vld [vmem:[#allocation6 + $0x8c0] sm:$0xff]  ;;  %v15060_v28 = vcombine.high %v380_v22, %v384_v23  ;;  %6670 = vmatprep.subr.bf16.mxu0 %v15308_v21  ;;  %v15059_v34 = vcombine.low %v380_v22, %v384_v23 }
  0xc6   : > { %v640_v25 = vld [vmem:[#allocation6 + $0x8e0] sm:$0xff]  ;;  %6671 = vmatpush1.bf16.msra.mxu0 %v15307_v27 }
  0xc7   : > { %v15316_v29 = vcombine.high %v636_v24, %v640_v25  ;;  %v388_v30 = vld [vmem:[#allocation6 + $0x100] sm:$0xff]  ;;  %6586 = vmatprep.subr.bf16.mxu1 %v15060_v28  ;;  %v15315_v35 = vcombine.low %v636_v24, %v640_v25 }
  0xc8   : > { %v392_v31 = vld [vmem:[#allocation6 + $0x120] sm:$0xff]  ;;  %6587 = vmatpush1.bf16.msra.mxu1 %v15059_v34 }
  0xc9   : > { %v644_v32 = vld [vmem:[#allocation6 + $0x900] sm:$0xff]  ;;  %v15068_v36 = vcombine.high %v388_v30, %v392_v31  ;;  %6672 = vmatprep.subr.bf16.mxu0 %v15316_v29  ;;  %v15067_v42 = vcombine.low %v388_v30, %v392_v31 }
  0xca   : > { %v648_v33 = vld [vmem:[#allocation6 + $0x920] sm:$0xff]  ;;  %6673 = vmatpush1.bf16.msra.mxu0 %v15315_v35 }
  0xcb   : > { %v15324_v37 = vcombine.high %v644_v32, %v648_v33  ;;  %v396_v38 = vld [vmem:[#allocation6 + $0x140] sm:$0xff]  ;;  %6588 = vmatprep.subr.bf16.mxu1 %v15068_v36  ;;  %v15323_v43 = vcombine.low %v644_v32, %v648_v33 }
  0xcc   : > { %v400_v39 = vld [vmem:[#allocation6 + $0x160] sm:$0xff]  ;;  %6589 = vmatpush1.bf16.msra.mxu1 %v15067_v42 }
  0xcd   : > { %v652_v40 = vld [vmem:[#allocation6 + $0x940] sm:$0xff]  ;;  %v15076_v44 = vcombine.high %v396_v38, %v400_v39  ;;  %6674 = vmatprep.subr.bf16.mxu0 %v15324_v37  ;;  %v15075_v50 = vcombine.low %v396_v38, %v400_v39 }
  0xce   : > { %v656_v41 = vld [vmem:[#allocation6 + $0x960] sm:$0xff]  ;;  %6675 = vmatpush1.bf16.msra.mxu0 %v15323_v43 }
  0xcf   : > { %v15332_v45 = vcombine.high %v652_v40, %v656_v41  ;;  %v404_v46 = vld [vmem:[#allocation6 + $0x180] sm:$0xff]  ;;  %6590 = vmatprep.subr.bf16.mxu1 %v15076_v44  ;;  %v15331_v51 = vcombine.low %v652_v40, %v656_v41 }
  0xd0   : > { %v408_v47 = vld [vmem:[#allocation6 + $0x1a0] sm:$0xff]  ;;  %6591 = vmatpush1.bf16.msra.mxu1 %v15075_v50 }
  0xd1   : > { %v660_v48 = vld [vmem:[#allocation6 + $0x980] sm:$0xff]  ;;  %v15084_v52 = vcombine.high %v404_v46, %v408_v47  ;;  %6676 = vmatprep.subr.bf16.mxu0 %v15332_v45  ;;  %v15083_v63 = vcombine.low %v404_v46, %v408_v47 }
  0xd2   : > { %v664_v49 = vld [vmem:[#allocation6 + $0x9a0] sm:$0xff]  ;;  %6677 = vmatpush1.bf16.msra.mxu0 %v15331_v51 }
  0xd3   : > { %v19224_v53 = vld [vmem:[%s19205_s13] sm:$0xff]  ;;  %v15340_v55 = vcombine.high %v660_v48, %v664_v49  ;;  %6592 = vmatprep.subr.bf16.mxu1 %v15084_v52  ;;  %v15339_v1 = vcombine.low %v660_v48, %v664_v49 }
  0xd4   : > { %v19227_v54 = vld [vmem:[%s19205_s13 + $0x40] sm:$0xff]  ;;  %6593 = vmatpush1.bf16.msra.mxu1 %v15083_v63 }
  0xd5   : > { %v412_v56 = vld [vmem:[#allocation6 + $0x1c0] sm:$0xff]  ;;  %v19231_v58 = vcombine.high %v19224_v53, %v19227_v54  ;;  %6678 = vmatprep.subr.bf16.mxu0 %v15340_v55 }
  0xd6   : > { %v416_v57 = vld [vmem:[#allocation6 + $0x1e0] sm:$0xff]  ;;  %6679 = vmatpush1.bf16.msra.mxu0 %v15339_v1 }
  0xd7   : > { %v668_v60 = vld [vmem:[#allocation6 + $0x9c0] sm:$0xff]  ;;  %6612 = vmatprep.mubr.bf16.mxu1 %v19231_v58  ;;  %v15092_v2 = vcombine.high %v412_v56, %v416_v57  ;;  %v15091_v8 = vcombine.low %v412_v56, %v416_v57 }
  0xd8   : > { %v672_v61 = vld [vmem:[#allocation6 + $0x9e0] sm:$0xff] }
  0xd9   : > { %v15348_v3 = vcombine.high %v668_v60, %v672_v61  ;;  %v420_v4 = vld [vmem:[#allocation6 + $0x200] sm:$0xff]  ;;  %6594 = vmatprep.subr.bf16.mxu1 %v15092_v2  ;;  %v15347_v9 = vcombine.low %v668_v60, %v672_v61 }
  0xda   : > { %v424_v5 = vld [vmem:[#allocation6 + $0x220] sm:$0xff]  ;;  %6595 = vmatpush1.bf16.msra.mxu1 %v15091_v8 }
  0xdb   : > { %v676_v6 = vld [vmem:[#allocation6 + $0xa00] sm:$0xff]  ;;  %v15100_v10 = vcombine.high %v420_v4, %v424_v5  ;;  %6680 = vmatprep.subr.bf16.mxu0 %v15348_v3  ;;  %v15099_v16 = vcombine.low %v420_v4, %v424_v5 }
  0xdc   : > { %v680_v7 = vld [vmem:[#allocation6 + $0xa20] sm:$0xff]  ;;  %6681 = vmatpush1.bf16.msra.mxu0 %v15347_v9 }
  0xdd   : > { %v15356_v11 = vcombine.high %v676_v6, %v680_v7  ;;  %v428_v12 = vld [vmem:[#allocation6 + $0x240] sm:$0xff]  ;;  %6596 = vmatprep.subr.bf16.mxu1 %v15100_v10  ;;  %v15355_v17 = vcombine.low %v676_v6, %v680_v7 }
  0xde   : > { %v432_v13 = vld [vmem:[#allocation6 + $0x260] sm:$0xff]  ;;  %6597 = vmatpush1.bf16.msra.mxu1 %v15099_v16 }
  0xdf   : > { %v684_v14 = vld [vmem:[#allocation6 + $0xa40] sm:$0xff]  ;;  %v15108_v18 = vcombine.high %v428_v12, %v432_v13  ;;  %6682 = vmatprep.subr.bf16.mxu0 %v15356_v11  ;;  %v15107_v24 = vcombine.low %v428_v12, %v432_v13 }
  0xe0   : > { %v688_v15 = vld [vmem:[#allocation6 + $0xa60] sm:$0xff]  ;;  %6683 = vmatpush1.bf16.msra.mxu0 %v15355_v17 }
  0xe1   : > { %v15364_v19 = vcombine.high %v684_v14, %v688_v15  ;;  %v436_v20 = vld [vmem:[#allocation6 + $0x280] sm:$0xff]  ;;  %6598 = vmatprep.subr.bf16.mxu1 %v15108_v18  ;;  %v15363_v25 = vcombine.low %v684_v14, %v688_v15 }
  0xe2   : > { %v440_v21 = vld [vmem:[#allocation6 + $0x2a0] sm:$0xff]  ;;  %6599 = vmatpush1.bf16.msra.mxu1 %v15107_v24  ;;  %v19253_v24 = vld [vmem:[%s19205_s13 + $0x48] sm:$0xff] }
  0xe3   : > { %v692_v22 = vld [vmem:[#allocation6 + $0xa80] sm:$0xff]  ;;  %v15116_v26 = vcombine.high %v436_v20, %v440_v21  ;;  %6684 = vmatprep.subr.bf16.mxu0 %v15364_v19  ;;  %v15115_v32 = vcombine.low %v436_v20, %v440_v21  ;;  %v19247_v21 = vcombine.low %v19224_v53, %v19227_v54 }
  0xe4   : > { %v696_v23 = vld [vmem:[#allocation6 + $0xaa0] sm:$0xff]  ;;  %6685 = vmatpush1.bf16.msra.mxu0 %v15363_v25 }
  0xe5   : > { %v15372_v27 = vcombine.high %v692_v22, %v696_v23  ;;  %v444_v28 = vld [vmem:[#allocation6 + $0x2c0] sm:$0xff]  ;;  %6600 = vmatprep.subr.bf16.mxu1 %v15116_v26  ;;  %v15371_v33 = vcombine.low %v692_v22, %v696_v23  ;;  %v19250_v23 = vld [vmem:[%s19205_s13 + $0x8] sm:$0xff]  ;;  %v19257_v26 = vcombine.low %v19234_v59, %v19237_v62 }
  0xe6   : > { %v448_v29 = vld [vmem:[#allocation6 + $0x2e0] sm:$0xff]  ;;  %6601 = vmatpush1.bf16.msra.mxu1 %v15115_v32  ;;  %v19267_v32 = vcombine.high %v19250_v23, %v19253_v24 }
  0xe7   : > { %v700_v30 = vld [vmem:[#allocation6 + $0xac0] sm:$0xff]  ;;  %v15124_v34 = vcombine.high %v444_v28, %v448_v29  ;;  %6686 = vmatprep.subr.bf16.mxu0 %v15372_v27  ;;  %v15123_v40 = vcombine.low %v444_v28, %v448_v29  ;;  %v19260_v27 = vld [vmem:[%s19205_s13 + $0x18] sm:$0xff] }
  0xe8   : > { %v704_v31 = vld [vmem:[#allocation6 + $0xae0] sm:$0xff]  ;;  %6687 = vmatpush1.bf16.msra.mxu0 %v15371_v33  ;;  %v19263_v28 = vld [vmem:[%s19205_s13 + $0x58] sm:$0xff] }
  0xe9   : > { %v15380_v35 = vcombine.high %v700_v30, %v704_v31  ;;  %v452_v36 = vld [vmem:[#allocation6 + $0x300] sm:$0xff]  ;;  %6602 = vmatprep.subr.bf16.mxu1 %v15124_v34  ;;  %v15379_v41 = vcombine.low %v700_v30, %v704_v31  ;;  %v19272_v33 = vcombine.high %v19260_v27, %v19263_v28 }
  0xea   : > { %v456_v37 = vld [vmem:[#allocation6 + $0x320] sm:$0xff]  ;;  %6603 = vmatpush1.bf16.msra.mxu1 %v15123_v40 }
  0xeb   : > { %v708_v38 = vld [vmem:[#allocation6 + $0xb00] sm:$0xff]  ;;  %v15132_v42 = vcombine.high %v452_v36, %v456_v37  ;;  %6688 = vmatprep.subr.bf16.mxu0 %v15380_v35  ;;  %v15131_v48 = vcombine.low %v452_v36, %v456_v37 }
  0xec   : > { %v712_v39 = vld [vmem:[#allocation6 + $0xb20] sm:$0xff]  ;;  %6689 = vmatpush1.bf16.msra.mxu0 %v15379_v41 }
  0xed   : > { %v15388_v43 = vcombine.high %v708_v38, %v712_v39  ;;  %v460_v44 = vld [vmem:[#allocation6 + $0x340] sm:$0xff]  ;;  %6604 = vmatprep.subr.bf16.mxu1 %v15132_v42  ;;  %v15387_v49 = vcombine.low %v708_v38, %v712_v39 }
  0xee   : > { %v464_v45 = vld [vmem:[#allocation6 + $0x360] sm:$0xff]  ;;  %6605 = vmatpush1.bf16.msra.mxu1 %v15131_v48 }
  0xef   : > { %v716_v46 = vld [vmem:[#allocation6 + $0xb40] sm:$0xff]  ;;  %v15140_v50 = vcombine.high %v460_v44, %v464_v45  ;;  %6690 = vmatprep.subr.bf16.mxu0 %v15388_v43  ;;  %v15139_v60 = vcombine.low %v460_v44, %v464_v45 }
  0xf0   : > { %v720_v47 = vld [vmem:[#allocation6 + $0xb60] sm:$0xff]  ;;  %6691 = vmatpush1.bf16.msra.mxu0 %v15387_v49 }
  0xf1   : > { %v15396_v51 = vcombine.high %v716_v46, %v720_v47  ;;  %v468_v52 = vld [vmem:[#allocation6 + $0x380] sm:$0xff]  ;;  %6606 = vmatprep.subr.bf16.mxu1 %v15140_v50  ;;  %v15395_v61 = vcombine.low %v716_v46, %v720_v47 }
  0xf2   : > { %v472_v55 = vld [vmem:[#allocation6 + $0x3a0] sm:$0xff]  ;;  %6607 = vmatpush1.bf16.msra.mxu1 %v15139_v60 }
  0xf3   : > { %v724_v56 = vld [vmem:[#allocation6 + $0xb80] sm:$0xff]  ;;  %v15148_v63 = vcombine.high %v468_v52, %v472_v55  ;;  %6692 = vmatprep.subr.bf16.mxu0 %v15396_v51  ;;  %v15147_v6 = vcombine.low %v468_v52, %v472_v55 }
  0xf4   : > { %v728_v57 = vld [vmem:[#allocation6 + $0xba0] sm:$0xff]  ;;  %6693 = vmatpush1.bf16.msra.mxu0 %v15395_v61 }
  0xf5   : > { %v15404_v1 = vcombine.high %v724_v56, %v728_v57  ;;  %v476_v2 = vld [vmem:[#allocation6 + $0x3c0] sm:$0xff]  ;;  %6608 = vmatprep.subr.bf16.mxu1 %v15148_v63  ;;  %v15403_v7 = vcombine.low %v724_v56, %v728_v57 }
  0xf6   : > { %v480_v3 = vld [vmem:[#allocation6 + $0x3e0] sm:$0xff]  ;;  %6609 = vmatpush1.bf16.msra.mxu1 %v15147_v6 }
  0xf7   : > { %v732_v4 = vld [vmem:[#allocation6 + $0xbc0] sm:$0xff]  ;;  %v15156_v8 = vcombine.high %v476_v2, %v480_v3  ;;  %6694 = vmatprep.subr.bf16.mxu0 %v15404_v1  ;;  %v15155_v14 = vcombine.low %v476_v2, %v480_v3 }
  0xf8   : > { %v736_v5 = vld [vmem:[#allocation6 + $0xbe0] sm:$0xff]  ;;  %6695 = vmatpush1.bf16.msra.mxu0 %v15403_v7 }
  0xf9   : > { %v15412_v9 = vcombine.high %v732_v4, %v736_v5  ;;  %v484_v10 = vld [vmem:[#allocation6 + $0x400] sm:$0xff]  ;;  %6610 = vmatprep.subr.bf16.mxu1 %v15156_v8  ;;  %v15411_v15 = vcombine.low %v732_v4, %v736_v5 }
  0xfa   : > { %v488_v11 = vld [vmem:[#allocation6 + $0x420] sm:$0xff]  ;;  %6611 = vmatpush1.bf16.msra.mxu1 %v15155_v14 }
  0xfb   : > { %v740_v12 = vld [vmem:[#allocation6 + $0xc00] sm:$0xff]  ;;  %v15164_v16 = vcombine.high %v484_v10, %v488_v11  ;;  %6696 = vmatprep.subr.bf16.mxu0 %v15412_v9  ;;  %v15163_v25 = vcombine.low %v484_v10, %v488_v11 }
  0xfc   : > { %v744_v13 = vld [vmem:[#allocation6 + $0xc20] sm:$0xff]  ;;  %6697 = vmatpush1.bf16.msra.mxu0 %v15411_v15 }
  0xfd   : > { %v15420_v17 = vcombine.high %v740_v12, %v744_v13  ;;  %v492_v18 = vld [vmem:[#allocation6 + $0x440] sm:$0xff]  ;;  %6623 = vmatprep.subr.bf16.mxu1 %v15164_v16  ;;  %v15419_v29 = vcombine.low %v740_v12, %v744_v13  ;;  %6613 = vmatmul.mubr.bf16.vlgmr.msra.gmra.mrb[0].mxu1 %v19247_v21 }
  0xfe   : > { %v496_v19 = vld [vmem:[#allocation6 + $0x460] sm:$0xff]  ;;  %6624 = vmatpush1.bf16.msra.mxu1 %v15163_v25  ;;  %6655 = vmatprep.mubr.bf16.mxu1 %v19267_v32 }
  0xff   : > { %v748_v20 = vld [vmem:[#allocation6 + $0xc40] sm:$0xff]  ;;  %v15172_v53 = vcombine.high %v492_v18, %v496_v19  ;;  %6709 = vmatprep.subr.bf16.mxu0 %v15420_v17  ;;  %6699 = vmatmul.mubr.bf16.vlgmr.msra.gmra.mrb[0].mxu0 %v19257_v26  ;;  %v15171_v34 = vcombine.low %v492_v18, %v496_v19 }
 0x100   : > { %v752_v22 = vld [vmem:[#allocation6 + $0xc60] sm:$0xff]  ;;  %6710 = vmatpush1.bf16.msra.mxu0 %v15419_v29  ;;  %6741 = vmatprep.mubr.bf16.mxu0 %v19272_v33 }
 0x101   : > { %v15428_v54 = vcombine.high %v748_v20, %v752_v22  ;;  %v500_v30 = vld [vmem:[#allocation6 + $0x480] sm:$0xff]  ;;  %6625 = vmatprep.subr.bf16.mxu1 %v15172_v53  ;;  %v15427_v35 = vcombine.low %v748_v20, %v752_v22 }
 0x102   : > { %v504_v31 = vld [vmem:[#allocation6 + $0x4a0] sm:$0xff]  ;;  %6626 = vmatpush1.bf16.msra.mxu1 %v15171_v34 }
 0x103   : > { %v756_v59 = vld [vmem:[#allocation6 + $0xc80] sm:$0xff]  ;;  %v15180_v36 = vcombine.high %v500_v30, %v504_v31  ;;  %6711 = vmatprep.subr.bf16.mxu0 %v15428_v54  ;;  %v15179_v42 = vcombine.low %v500_v30, %v504_v31 }
 0x104   : > { %v760_v62 = vld [vmem:[#allocation6 + $0xca0] sm:$0xff]  ;;  %6712 = vmatpush1.bf16.msra.mxu0 %v15427_v35 }
 0x105   : > { %v508_v37 = vld [vmem:[#allocation6 + $0x4c0] sm:$0xff]  ;;  %v15436_v40 = vcombine.high %v756_v59, %v760_v62  ;;  %6627 = vmatprep.subr.bf16.mxu1 %v15180_v36  ;;  %v15435_v43 = vcombine.low %v756_v59, %v760_v62 }
 0x106   : > { %v512_v38 = vld [vmem:[#allocation6 + $0x4e0] sm:$0xff]  ;;  %6628 = vmatpush1.bf16.msra.mxu1 %v15179_v42 }
 0x107   : > { %v764_v39 = vld [vmem:[#allocation6 + $0xcc0] sm:$0xff]  ;;  %v15188_v44 = vcombine.high %v508_v37, %v512_v38  ;;  %6713 = vmatprep.subr.bf16.mxu0 %v15436_v40  ;;  %v15187_v50 = vcombine.low %v508_v37, %v512_v38 }
 0x108   : > { %v768_v41 = vld [vmem:[#allocation6 + $0xce0] sm:$0xff]  ;;  %6714 = vmatpush1.bf16.msra.mxu0 %v15435_v43 }
 0x109   : > { %v516_v45 = vld [vmem:[#allocation6 + $0x500] sm:$0xff]  ;;  %v15444_v48 = vcombine.high %v764_v39, %v768_v41  ;;  %6629 = vmatprep.subr.bf16.mxu1 %v15188_v44  ;;  %v15443_v51 = vcombine.low %v764_v39, %v768_v41 }
 0x10a   : > { %v520_v46 = vld [vmem:[#allocation6 + $0x520] sm:$0xff]  ;;  %6630 = vmatpush1.bf16.msra.mxu1 %v15187_v50 }
 0x10b   : > { %v772_v47 = vld [vmem:[#allocation6 + $0xd00] sm:$0xff]  ;;  %v15196_v52 = vcombine.high %v516_v45, %v520_v46  ;;  %6715 = vmatprep.subr.bf16.mxu0 %v15444_v48  ;;  %v15195_v63 = vcombine.low %v516_v45, %v520_v46 }
 0x10c   : > { %v776_v49 = vld [vmem:[#allocation6 + $0xd20] sm:$0xff]  ;;  %6716 = vmatpush1.bf16.msra.mxu0 %v15443_v51 }
 0x10d   : > { %v524_v55 = vld [vmem:[#allocation6 + $0x540] sm:$0xff]  ;;  %v15452_v60 = vcombine.high %v772_v47, %v776_v49  ;;  %6631 = vmatprep.subr.bf16.mxu1 %v15196_v52  ;;  %v15451_v1 = vcombine.low %v772_v47, %v776_v49 }
 0x10e   : > { %v528_v56 = vld [vmem:[#allocation6 + $0x560] sm:$0xff]  ;;  %6632 = vmatpush1.bf16.msra.mxu1 %v15195_v63 }
 0x10f   : > { %v780_v57 = vld [vmem:[#allocation6 + $0xd40] sm:$0xff]  ;;  %v15204_v2 = vcombine.high %v524_v55, %v528_v56  ;;  %6717 = vmatprep.subr.bf16.mxu0 %v15452_v60  ;;  %v15203_v8 = vcombine.low %v524_v55, %v528_v56 }
 0x110   : > { %v784_v61 = vld [vmem:[#allocation6 + $0xd60] sm:$0xff]  ;;  %6718 = vmatpush1.bf16.msra.mxu0 %v15451_v1 }
 0x111   : > { %v532_v3 = vld [vmem:[#allocation6 + $0x580] sm:$0xff]  ;;  %v15460_v6 = vcombine.high %v780_v57, %v784_v61  ;;  %6633 = vmatprep.subr.bf16.mxu1 %v15204_v2  ;;  %v15459_v9 = vcombine.low %v780_v57, %v784_v61 }
 0x112   : > { %v536_v4 = vld [vmem:[#allocation6 + $0x5a0] sm:$0xff]  ;;  %6634 = vmatpush1.bf16.msra.mxu1 %v15203_v8 }
 0x113   : > { %v788_v5 = vld [vmem:[#allocation6 + $0xd80] sm:$0xff]  ;;  %v15212_v10 = vcombine.high %v532_v3, %v536_v4  ;;  %6719 = vmatprep.subr.bf16.mxu0 %v15460_v6  ;;  %v15211_v16 = vcombine.low %v532_v3, %v536_v4 }
 0x114   : > { %v792_v7 = vld [vmem:[#allocation6 + $0xda0] sm:$0xff]  ;;  %6720 = vmatpush1.bf16.msra.mxu0 %v15459_v9 }
 0x115   : > { %v540_v11 = vld [vmem:[#allocation6 + $0x5c0] sm:$0xff]  ;;  %v15468_v14 = vcombine.high %v788_v5, %v792_v7  ;;  %6635 = vmatprep.subr.bf16.mxu1 %v15212_v10  ;;  %v15467_v17 = vcombine.low %v788_v5, %v792_v7 }
 0x116   : > { %v544_v12 = vld [vmem:[#allocation6 + $0x5e0] sm:$0xff]  ;;  %6636 = vmatpush1.bf16.msra.mxu1 %v15211_v16 }
 0x117   : > { %v796_v13 = vld [vmem:[#allocation6 + $0xdc0] sm:$0xff]  ;;  %v15220_v18 = vcombine.high %v540_v11, %v544_v12  ;;  %6721 = vmatprep.subr.bf16.mxu0 %v15468_v14  ;;  %v15219_v53 = vcombine.low %v540_v11, %v544_v12 }
 0x118   : > { %v800_v15 = vld [vmem:[#allocation6 + $0xde0] sm:$0xff]  ;;  %6722 = vmatpush1.bf16.msra.mxu0 %v15467_v17 }
 0x119   : > { %v548_v19 = vld [vmem:[#allocation6 + $0x600] sm:$0xff]  ;;  %v15476_v25 = vcombine.high %v796_v13, %v800_v15  ;;  %6637 = vmatprep.subr.bf16.mxu1 %v15220_v18  ;;  %v15475_v54 = vcombine.low %v796_v13, %v800_v15 }
 0x11a   : > { %v552_v20 = vld [vmem:[#allocation6 + $0x620] sm:$0xff]  ;;  %6638 = vmatpush1.bf16.msra.mxu1 %v15219_v53 }
 0x11b   : > { %v804_v22 = vld [vmem:[#allocation6 + $0xe00] sm:$0xff]  ;;  %v15228_v30 = vcombine.high %v548_v19, %v552_v20  ;;  %6723 = vmatprep.subr.bf16.mxu0 %v15476_v25  ;;  %v15227_v36 = vcombine.low %v548_v19, %v552_v20 }
 0x11c   : > { %v808_v29 = vld [vmem:[#allocation6 + $0xe20] sm:$0xff]  ;;  %6724 = vmatpush1.bf16.msra.mxu0 %v15475_v54 }
 0x11d   : > { %v556_v31 = vld [vmem:[#allocation6 + $0x640] sm:$0xff]  ;;  %v15484_v34 = vcombine.high %v804_v22, %v808_v29  ;;  %6639 = vmatprep.subr.bf16.mxu1 %v15228_v30  ;;  %v15483_v37 = vcombine.low %v804_v22, %v808_v29 }
 0x11e   : > { %v560_v59 = vld [vmem:[#allocation6 + $0x660] sm:$0xff]  ;;  %6640 = vmatpush1.bf16.msra.mxu1 %v15227_v36 }
 0x11f   : > { %v812_v62 = vld [vmem:[#allocation6 + $0xe40] sm:$0xff]  ;;  %v15236_v38 = vcombine.high %v556_v31, %v560_v59  ;;  %6725 = vmatprep.subr.bf16.mxu0 %v15484_v34  ;;  %v15235_v44 = vcombine.low %v556_v31, %v560_v59 }
 0x120   : > { %v816_v35 = vld [vmem:[#allocation6 + $0xe60] sm:$0xff]  ;;  %6726 = vmatpush1.bf16.msra.mxu0 %v15483_v37  ;;  %v361_v37 = vld [vmem:[#allocation6 + $0x28] sm:$0xff] }
 0x121   : > { %v564_v39 = vld [vmem:[#allocation6 + $0x680] sm:$0xff]  ;;  %v15492_v42 = vcombine.high %v812_v62, %v816_v35  ;;  %6641 = vmatprep.subr.bf16.mxu1 %v15236_v38  ;;  %v15491_v45 = vcombine.low %v812_v62, %v816_v35  ;;  %v357_v35 = vld [vmem:[#allocation6 + $0x8] sm:$0xff] }
 0x122   : > { %v568_v40 = vld [vmem:[#allocation6 + $0x6a0] sm:$0xff]  ;;  %6642 = vmatpush1.bf16.msra.mxu1 %v15235_v44  ;;  %v369_v44 = vld [vmem:[#allocation6 + $0x68] sm:$0xff] }
 0x123   : > { %v820_v41 = vld [vmem:[#allocation6 + $0xe80] sm:$0xff]  ;;  %v15244_v46 = vcombine.high %v564_v39, %v568_v40  ;;  %6727 = vmatprep.subr.bf16.mxu0 %v15492_v42  ;;  %v15243_v52 = vcombine.low %v564_v39, %v568_v40  ;;  %v15038_v40 = vcombine.high %v357_v35, %v361_v37 }
 0x124   : > { %v824_v43 = vld [vmem:[#allocation6 + $0xea0] sm:$0xff]  ;;  %6728 = vmatpush1.bf16.msra.mxu0 %v15491_v45 }
 0x125   : > { %v572_v47 = vld [vmem:[#allocation6 + $0x6c0] sm:$0xff]  ;;  %v15500_v50 = vcombine.high %v820_v41, %v824_v43  ;;  %6643 = vmatprep.subr.bf16.mxu1 %v15244_v46  ;;  %v15499_v55 = vcombine.low %v820_v41, %v824_v43  ;;  %v365_v43 = vld [vmem:[#allocation6 + $0x48] sm:$0xff] }
 0x126   : > { %v576_v48 = vld [vmem:[#allocation6 + $0x6e0] sm:$0xff]  ;;  %6644 = vmatpush1.bf16.msra.mxu1 %v15243_v52  ;;  %v15046_v52 = vcombine.high %v365_v43, %v369_v44 }
 0x127   : > { %v828_v49 = vld [vmem:[#allocation6 + $0xec0] sm:$0xff]  ;;  %v15252_v56 = vcombine.high %v572_v47, %v576_v48  ;;  %6729 = vmatprep.subr.bf16.mxu0 %v15500_v50  ;;  %v15251_v2 = vcombine.low %v572_v47, %v576_v48  ;;  %v19285_v48 = vcombine.low %v19250_v23, %v19253_v24  ;;  %v19289_v50 = vcombine.low %v19260_v27, %v19263_v28 }
 0x128   : > { %v832_v51 = vld [vmem:[#allocation6 + $0xee0] sm:$0xff]  ;;  %6730 = vmatpush1.bf16.msra.mxu0 %v15499_v55  ;;  %v15045_v24 = vcombine.low %v365_v43, %v369_v44 }
 0x129   : > { %v580_v57 = vld [vmem:[#allocation6 + $0x700] sm:$0xff]  ;;  %v15508_v63 = vcombine.high %v828_v49, %v832_v51  ;;  %6645 = vmatprep.subr.bf16.mxu1 %v15252_v56  ;;  %v15507_v3 = vcombine.low %v828_v49, %v832_v51  ;;  %v15037_v49 = vcombine.low %v357_v35, %v361_v37 }
 0x12a   : > { %v584_v60 = vld [vmem:[#allocation6 + $0x720] sm:$0xff]  ;;  %6646 = vmatpush1.bf16.msra.mxu1 %v15251_v2  ;;  %v381_v2 = vld [vmem:[#allocation6 + $0xc8] sm:$0xff] }
 0x12b   : > { %v836_v61 = vld [vmem:[#allocation6 + $0xf00] sm:$0xff]  ;;  %v15260_v4 = vcombine.high %v580_v57, %v584_v60  ;;  %6731 = vmatprep.subr.bf16.mxu0 %v15508_v63  ;;  %v15259_v10 = vcombine.low %v580_v57, %v584_v60  ;;  %v373_v60 = vld [vmem:[#allocation6 + $0x88] sm:$0xff] }
 0x12c   : > { %v840_v1 = vld [vmem:[#allocation6 + $0xf20] sm:$0xff]  ;;  %6732 = vmatpush1.bf16.msra.mxu0 %v15507_v3 }
 0x12d   : > { %v588_v5 = vld [vmem:[#allocation6 + $0x740] sm:$0xff]  ;;  %v15516_v8 = vcombine.high %v836_v61, %v840_v1  ;;  %6647 = vmatprep.subr.bf16.mxu1 %v15260_v4  ;;  %v15515_v11 = vcombine.low %v836_v61, %v840_v1  ;;  %v377_v61 = vld [vmem:[#allocation6 + $0xa8] sm:$0xff] }
 0x12e   : > { %v592_v6 = vld [vmem:[#allocation6 + $0x760] sm:$0xff]  ;;  %6648 = vmatpush1.bf16.msra.mxu1 %v15259_v10  ;;  %v15054_v28 = vcombine.high %v373_v60, %v377_v61  ;;  %v385_v4 = vld [vmem:[#allocation6 + $0xe8] sm:$0xff] }
 0x12f   : > { %v844_v7 = vld [vmem:[#allocation6 + $0xf40] sm:$0xff]  ;;  %v15268_v12 = vcombine.high %v588_v5, %v592_v6  ;;  %6733 = vmatprep.subr.bf16.mxu0 %v15516_v8  ;;  %v15267_v18 = vcombine.low %v588_v5, %v592_v6  ;;  %v15053_v5 = vcombine.low %v373_v60, %v377_v61  ;;  %v389_v10 = vld [vmem:[#allocation6 + $0x108] sm:$0xff] }
 0x130   : > { %v848_v9 = vld [vmem:[#allocation6 + $0xf60] sm:$0xff]  ;;  %6734 = vmatpush1.bf16.msra.mxu0 %v15515_v11 }
 0x131   : > { %v596_v13 = vld [vmem:[#allocation6 + $0x780] sm:$0xff]  ;;  %v15524_v16 = vcombine.high %v844_v7, %v848_v9  ;;  %6649 = vmatprep.subr.bf16.mxu1 %v15268_v12  ;;  %v15523_v19 = vcombine.low %v844_v7, %v848_v9  ;;  %v15062_v7 = vcombine.high %v381_v2, %v385_v4  ;;  %v393_v12 = vld [vmem:[#allocation6 + $0x128] sm:$0xff] }
 0x132   : > { %v600_v14 = vld [vmem:[#allocation6 + $0x7a0] sm:$0xff]  ;;  %6650 = vmatpush1.bf16.msra.mxu1 %v15267_v18  ;;  %v397_v18 = vld [vmem:[#allocation6 + $0x148] sm:$0xff] }
 0x133   : > { %v852_v15 = vld [vmem:[#allocation6 + $0xf80] sm:$0xff]  ;;  %v15276_v20 = vcombine.high %v596_v13, %v600_v14  ;;  %6735 = vmatprep.subr.bf16.mxu0 %v15524_v16  ;;  %v15275_v30 = vcombine.low %v596_v13, %v600_v14  ;;  %v15061_v13 = vcombine.low %v381_v2, %v385_v4 }
 0x134   : > { %v856_v17 = vld [vmem:[#allocation6 + $0xfa0] sm:$0xff]  ;;  %6736 = vmatpush1.bf16.msra.mxu0 %v15523_v19 }
 0x135   : > { %v604_v22 = vld [vmem:[#allocation6 + $0x7c0] sm:$0xff]  ;;  %v15532_v53 = vcombine.high %v852_v15, %v856_v17  ;;  %6651 = vmatprep.subr.bf16.mxu1 %v15276_v20  ;;  %v15531_v31 = vcombine.low %v852_v15, %v856_v17  ;;  %v15070_v15 = vcombine.high %v389_v10, %v393_v12  ;;  %v401_v20 = vld [vmem:[#allocation6 + $0x168] sm:$0xff] }
 0x136   : > { %v608_v25 = vld [vmem:[#allocation6 + $0x7e0] sm:$0xff]  ;;  %6652 = vmatpush1.bf16.msra.mxu1 %v15275_v30  ;;  %v405_v30 = vld [vmem:[#allocation6 + $0x188] sm:$0xff] }
 0x137   : > { %v860_v29 = vld [vmem:[#allocation6 + $0xfc0] sm:$0xff]  ;;  %v15284_v59 = vcombine.high %v604_v22, %v608_v25  ;;  %6737 = vmatprep.subr.bf16.mxu0 %v15532_v53  ;;  %v15283_v38 = vcombine.low %v604_v22, %v608_v25  ;;  %v15069_v22 = vcombine.low %v389_v10, %v393_v12 }
 0x138   : > { %v864_v54 = vld [vmem:[#allocation6 + $0xfe0] sm:$0xff]  ;;  %6738 = vmatpush1.bf16.msra.mxu0 %v15531_v31 }
 0x139   : > { %v868_v62 = vld [vmem:[#allocation6 + $0x1000] sm:$0xff]  ;;  %v15540_v36 = vcombine.high %v860_v29, %v864_v54  ;;  %6653 = vmatprep.subr.bf16.mxu1 %v15284_v59  ;;  %v15539_v39 = vcombine.low %v860_v29, %v864_v54  ;;  %v15078_v29 = vcombine.high %v397_v18, %v401_v20  ;;  %v409_v59 = vld [vmem:[#allocation6 + $0x1a8] sm:$0xff] }
 0x13a   : > { %v872_v34 = vld [vmem:[#allocation6 + $0x1020] sm:$0xff]  ;;  %6654 = vmatpush1.bf16.msra.mxu1 %v15283_v38  ;;  %v15086_v35 = vcombine.high %v405_v30, %v409_v59  ;;  %v413_v38 = vld [vmem:[#allocation6 + $0x1c8] sm:$0xff] }
 0x13b   : > { %v876_v41 = vld [vmem:[#allocation6 + $0x1040] sm:$0xff]  ;;  %6739 = vmatprep.subr.bf16.mxu0 %v15540_v36  ;;  %v15548_v46 = vcombine.high %v868_v62, %v872_v34  ;;  %v15547_v51 = vcombine.low %v868_v62, %v872_v34  ;;  %6924 = vmatprep.subr.bf16.mxu1 %v15038_v40  ;;  %v15077_v62 = vcombine.low %v397_v18, %v401_v20  ;;  %v417_v40 = vld [vmem:[#allocation6 + $0x1e8] sm:$0xff] }
 0x13c   : > { %v880_v42 = vld [vmem:[#allocation6 + $0x1060] sm:$0xff]  ;;  %6740 = vmatpush1.bf16.msra.mxu0 %v15539_v39  ;;  %v15094_v43 = vcombine.high %v413_v38, %v417_v40 }
 0x13d   : > { %v19278_v45 = vld [vmem:[%s19205_s13 + $0x20] sm:$0xff]  ;;  %6752 = vmatprep.subr.bf16.mxu0 %v15548_v46  ;;  %v15556_v56 = vcombine.high %v876_v41, %v880_v42  ;;  %6656 = vmatmul.mubr.bf16.vlgmr.msra.gmra.mrb[0].mxu1 %v19285_v48  ;;  %v15555_v27 = vcombine.low %v876_v41, %v880_v42  ;;  %v15085_v41 = vcombine.low %v405_v30, %v409_v59 }
 0x13e   : > { %v19281_v47 = vld [vmem:[%s19205_s13 + $0x60] sm:$0xff]  ;;  %6925 = vmatpush1.bf16.msra.mxu1 %v15037_v49  ;;  %6956 = vmatprep.mubr.bf16.mxu1 %v19231_v58  ;;  %v421_v49 = vld [vmem:[#allocation6 + $0x208] sm:$0xff] }
 0x13f   : > { %v884_v55 = vld [vmem:[#allocation6 + $0x1080] sm:$0xff]  ;;  %v19293_v23 = vcombine.high %v19278_v45, %v19281_v47  ;;  %6742 = vmatmul.mubr.bf16.vlgmr.msra.gmra.mrb[0].mxu0 %v19289_v50  ;;  %6926 = vmatprep.subr.bf16.mxu1 %v15046_v52  ;;  %v425_v52 = vld [vmem:[#allocation6 + $0x228] sm:$0xff] }
 0x140   : > { %v888_v57 = vld [vmem:[#allocation6 + $0x10a0] sm:$0xff]  ;;  %6753 = vmatpush1.bf16.msra.mxu0 %v15547_v51 }
 0x141   : > { %v892_v63 = vld [vmem:[#allocation6 + $0x10c0] sm:$0xff]  ;;  %6754 = vmatprep.subr.bf16.mxu0 %v15556_v56  ;;  %v15564_v3 = vcombine.high %v884_v55, %v888_v57  ;;  %6784 = vmatprep.mubr.bf16.mxu0 %v19293_v23  ;;  %v15563_v6 = vcombine.low %v884_v55, %v888_v57  ;;  %v15093_v55 = vcombine.low %v413_v38, %v417_v40 }
 0x142   : > { %v896_v1 = vld [vmem:[#allocation6 + $0x10e0] sm:$0xff]  ;;  %6927 = vmatpush1.bf16.msra.mxu1 %v15045_v24  ;;  %v15102_v57 = vcombine.high %v421_v49, %v425_v52  ;;  %v429_v24 = vld [vmem:[#allocation6 + $0x248] sm:$0xff] }
 0x143   : > { %6928 = vmatprep.subr.bf16.mxu1 %v15054_v28  ;;  %v900_v8 = vld [vmem:[#allocation6 + $0x1100] sm:$0xff]  ;;  %v15572_v11 = vcombine.high %v892_v63, %v896_v1  ;;  %v15571_v14 = vcombine.low %v892_v63, %v896_v1  ;;  %v433_v28 = vld [vmem:[#allocation6 + $0x268] sm:$0xff]  ;;  %v15101_v63 = vcombine.low %v421_v49, %v425_v52 }
 0x144   : > { %6755 = vmatpush1.bf16.msra.mxu0 %v15555_v27  ;;  %v904_v9 = vld [vmem:[#allocation6 + $0x1120] sm:$0xff]  ;;  %v15110_v2 = vcombine.high %v429_v24, %v433_v28 }
 0x145   : > { %6756 = vmatprep.subr.bf16.mxu0 %v15564_v3  ;;  %v908_v16 = vld [vmem:[#allocation6 + $0x1140] sm:$0xff]  ;;  %v15580_v19 = vcombine.high %v900_v8, %v904_v9  ;;  %v15579_v25 = vcombine.low %v900_v8, %v904_v9  ;;  %v15109_v8 = vcombine.low %v429_v24, %v433_v28 }
 0x146   : > { %6929 = vmatpush1.bf16.msra.mxu1 %v15053_v5  ;;  %v912_v17 = vld [vmem:[#allocation6 + $0x1160] sm:$0xff]  ;;  %v437_v5 = vld [vmem:[#allocation6 + $0x288] sm:$0xff] }
 0x147   : > { %6930 = vmatprep.subr.bf16.mxu1 %v15062_v7  ;;  %v916_v53 = vld [vmem:[#allocation6 + $0x1180] sm:$0xff]  ;;  %v15588_v31 = vcombine.high %v908_v16, %v912_v17  ;;  %v15587_v34 = vcombine.low %v908_v16, %v912_v17  ;;  %v441_v7 = vld [vmem:[#allocation6 + $0x2a8] sm:$0xff] }
 0x148   : > { %6757 = vmatpush1.bf16.msra.mxu0 %v15563_v6  ;;  %v920_v54 = vld [vmem:[#allocation6 + $0x11a0] sm:$0xff]  ;;  %v15118_v10 = vcombine.high %v437_v5, %v441_v7  ;;  %v15117_v16 = vcombine.low %v437_v5, %v441_v7 }
 0x149   : > { %6758 = vmatprep.subr.bf16.mxu0 %v15572_v11  ;;  %v924_v36 = vld [vmem:[#allocation6 + $0x11c0] sm:$0xff]  ;;  %v15596_v39 = vcombine.high %v916_v53, %v920_v54  ;;  %v15595_v42 = vcombine.low %v916_v53, %v920_v54 }
 0x14a   : > { %6931 = vmatpush1.bf16.msra.mxu1 %v15061_v13  ;;  %v928_v37 = vld [vmem:[#allocation6 + $0x11e0] sm:$0xff]  ;;  %v445_v13 = vld [vmem:[#allocation6 + $0x2c8] sm:$0xff] }
 0x14b   : > { %6932 = vmatprep.subr.bf16.mxu1 %v15070_v15  ;;  %v932_v44 = vld [vmem:[#allocation6 + $0x1200] sm:$0xff]  ;;  %v15604_v51 = vcombine.high %v924_v36, %v928_v37  ;;  %v15603_v56 = vcombine.low %v924_v36, %v928_v37  ;;  %v449_v15 = vld [vmem:[#allocation6 + $0x2e8] sm:$0xff] }
 0x14c   : > { %6759 = vmatpush1.bf16.msra.mxu0 %v15571_v14  ;;  %v936_v46 = vld [vmem:[#allocation6 + $0x1220] sm:$0xff]  ;;  %v15126_v18 = vcombine.high %v445_v13, %v449_v15  ;;  %v15125_v53 = vcombine.low %v445_v13, %v449_v15 }
 0x14d   : > { %6760 = vmatprep.subr.bf16.mxu0 %v15580_v19  ;;  %v940_v60 = vld [vmem:[#allocation6 + $0x1240] sm:$0xff]  ;;  %v15612_v27 = vcombine.high %v932_v44, %v936_v46  ;;  %v15611_v1 = vcombine.low %v932_v44, %v936_v46 }
 0x14e   : > { %6933 = vmatpush1.bf16.msra.mxu1 %v15069_v22  ;;  %v944_v61 = vld [vmem:[#allocation6 + $0x1260] sm:$0xff]  ;;  %v453_v22 = vld [vmem:[#allocation6 + $0x308] sm:$0xff] }
 0x14f   : > { %6934 = vmatprep.subr.bf16.mxu1 %v15078_v29  ;;  %v948_v3 = vld [vmem:[#allocation6 + $0x1280] sm:$0xff]  ;;  %v15620_v6 = vcombine.high %v940_v60, %v944_v61  ;;  %v15619_v9 = vcombine.low %v940_v60, %v944_v61  ;;  %v457_v29 = vld [vmem:[#allocation6 + $0x328] sm:$0xff] }
 0x150   : > { %6761 = vmatpush1.bf16.msra.mxu0 %v15579_v25  ;;  %v952_v4 = vld [vmem:[#allocation6 + $0x12a0] sm:$0xff]  ;;  %v15134_v30 = vcombine.high %v453_v22, %v457_v29  ;;  %v15133_v36 = vcombine.low %v453_v22, %v457_v29  ;;  %v505_v22 = vld [vmem:[#allocation6 + $0x4a8] sm:$0xff] }
 0x151   : > { %6762 = vmatprep.subr.bf16.mxu0 %v15588_v31  ;;  %v956_v11 = vld [vmem:[#allocation6 + $0x12c0] sm:$0xff]  ;;  %v15628_v14 = vcombine.high %v948_v3, %v952_v4  ;;  %v15627_v17 = vcombine.low %v948_v3, %v952_v4 }
 0x152   : > { %6935 = vmatpush1.bf16.msra.mxu1 %v15077_v62  ;;  %v960_v12 = vld [vmem:[#allocation6 + $0x12e0] sm:$0xff]  ;;  %v461_v62 = vld [vmem:[#allocation6 + $0x348] sm:$0xff] }
 0x153   : > { %6936 = vmatprep.subr.bf16.mxu1 %v15086_v35  ;;  %v964_v19 = vld [vmem:[#allocation6 + $0x1300] sm:$0xff]  ;;  %v15636_v25 = vcombine.high %v956_v11, %v960_v12  ;;  %v15635_v54 = vcombine.low %v956_v11, %v960_v12  ;;  %v465_v35 = vld [vmem:[#allocation6 + $0x368] sm:$0xff] }
 0x154   : > { %6763 = vmatpush1.bf16.msra.mxu0 %v15587_v34  ;;  %v968_v20 = vld [vmem:[#allocation6 + $0x1320] sm:$0xff]  ;;  %v15142_v38 = vcombine.high %v461_v62, %v465_v35  ;;  %v15141_v44 = vcombine.low %v461_v62, %v465_v35  ;;  %v19303_v12 = vld [vmem:[%s19205_s13 + $0x68] sm:$0xff] }
 0x155   : > { %6764 = vmatprep.subr.bf16.mxu0 %v15596_v39  ;;  %v972_v31 = vld [vmem:[#allocation6 + $0x1340] sm:$0xff]  ;;  %v15644_v34 = vcombine.high %v964_v19, %v968_v20  ;;  %v15643_v37 = vcombine.low %v964_v19, %v968_v20  ;;  %v501_v20 = vld [vmem:[#allocation6 + $0x488] sm:$0xff] }
 0x156   : > { %6937 = vmatpush1.bf16.msra.mxu1 %v15085_v41  ;;  %v976_v59 = vld [vmem:[#allocation6 + $0x1360] sm:$0xff]  ;;  %v469_v41 = vld [vmem:[#allocation6 + $0x388] sm:$0xff]  ;;  %v15182_v29 = vcombine.high %v501_v20, %v505_v22  ;;  %v15181_v62 = vcombine.low %v501_v20, %v505_v22 }
 0x157   : > { %6938 = vmatprep.subr.bf16.mxu1 %v15094_v43  ;;  %v980_v39 = vld [vmem:[#allocation6 + $0x1380] sm:$0xff]  ;;  %v473_v43 = vld [vmem:[#allocation6 + $0x3a8] sm:$0xff]  ;;  %v15651_v46 = vcombine.low %v972_v31, %v976_v59 }
 0x158   : > { %6765 = vmatpush1.bf16.msra.mxu0 %v15595_v42  ;;  %v984_v40 = vld [vmem:[#allocation6 + $0x13a0] sm:$0xff]  ;;  %v15652_v42 = vcombine.high %v972_v31, %v976_v59  ;;  %v15150_v49 = vcombine.high %v469_v41, %v473_v43  ;;  %v15149_v60 = vcombine.low %v469_v41, %v473_v43  ;;  %v513_v59 = vld [vmem:[#allocation6 + $0x4e8] sm:$0xff] }
 0x159   : > { %6766 = vmatprep.subr.bf16.mxu0 %v15604_v51  ;;  %v988_v51 = vld [vmem:[#allocation6 + $0x13c0] sm:$0xff]  ;;  %v15659_v61 = vcombine.low %v980_v39, %v984_v40 }
 0x15a   : > { %6939 = vmatpush1.bf16.msra.mxu1 %v15093_v55  ;;  %v992_v52 = vld [vmem:[#allocation6 + $0x13e0] sm:$0xff]  ;;  %v477_v55 = vld [vmem:[#allocation6 + $0x3c8] sm:$0xff] }
 0x15b   : > { %6940 = vmatprep.subr.bf16.mxu1 %v15102_v57  ;;  %v481_v57 = vld [vmem:[#allocation6 + $0x3e8] sm:$0xff]  ;;  %v1000_v28 = vld [vmem:[#allocation6 + $0x1420] sm:$0xff]  ;;  %v15667_v4 = vcombine.low %v988_v51, %v992_v52 }
 0x15c   : > { %6767 = vmatpush1.bf16.msra.mxu0 %v15603_v56  ;;  %v15660_v56 = vcombine.high %v980_v39, %v984_v40  ;;  %v15158_v24 = vcombine.high %v477_v55, %v481_v57  ;;  %v15157_v3 = vcombine.low %v477_v55, %v481_v57  ;;  %v1008_v7 = vld [vmem:[#allocation6 + $0x1460] sm:$0xff]  ;;  %v521_v40 = vld [vmem:[#allocation6 + $0x528] sm:$0xff] }
 0x15d   : > { %6768 = vmatprep.subr.bf16.mxu0 %v15612_v27  ;;  %v996_v27 = vld [vmem:[#allocation6 + $0x1400] sm:$0xff] }
 0x15e   : > { %6941 = vmatpush1.bf16.msra.mxu1 %v15101_v63  ;;  %v485_v63 = vld [vmem:[#allocation6 + $0x408] sm:$0xff]  ;;  %v15676_v11 = vcombine.high %v996_v27, %v1000_v28  ;;  %v15675_v15 = vcombine.low %v996_v27, %v1000_v28  ;;  %v1016_v19 = vld [vmem:[#allocation6 + $0x14a0] sm:$0xff] }
 0x15f   : > { %6942 = vmatprep.subr.bf16.mxu1 %v15110_v2  ;;  %v489_v2 = vld [vmem:[#allocation6 + $0x428] sm:$0xff] }
 0x160   : > { %6769 = vmatpush1.bf16.msra.mxu0 %v15611_v1  ;;  %v15668_v1 = vcombine.high %v988_v51, %v992_v52  ;;  %v15166_v5 = vcombine.high %v485_v63, %v489_v2  ;;  %v15165_v13 = vcombine.low %v485_v63, %v489_v2  ;;  %v529_v52 = vld [vmem:[#allocation6 + $0x568] sm:$0xff] }
 0x161   : > { %6770 = vmatprep.subr.bf16.mxu0 %v15620_v6  ;;  %v1004_v6 = vld [vmem:[#allocation6 + $0x1440] sm:$0xff]  ;;  %v537_v28 = vld [vmem:[#allocation6 + $0x5a8] sm:$0xff] }
 0x162   : > { %6943 = vmatpush1.bf16.msra.mxu1 %v15109_v8  ;;  %v493_v8 = vld [vmem:[#allocation6 + $0x448] sm:$0xff] }
 0x163   : > { %6944 = vmatprep.subr.bf16.mxu1 %v15118_v10  ;;  %v19300_v10 = vld [vmem:[%s19205_s13 + $0x28] sm:$0xff] }
 0x164   : > { %6771 = vmatpush1.bf16.msra.mxu0 %v15619_v9  ;;  %v497_v9 = vld [vmem:[#allocation6 + $0x468] sm:$0xff] }
 0x165   : > { %6772 = vmatprep.subr.bf16.mxu0 %v15628_v14  ;;  %v19307_v14 = vcombine.low %v19278_v45, %v19281_v47  ;;  %v15173_v45 = vcombine.low %v493_v8, %v497_v9  ;;  %v15683_v47 = vcombine.low %v1004_v6, %v1008_v7 }
 0x166   : > { %6945 = vmatpush1.bf16.msra.mxu1 %v15117_v16  ;;  %v15174_v16 = vcombine.high %v493_v8, %v497_v9 }
 0x167   : > { %6946 = vmatprep.subr.bf16.mxu1 %v15126_v18  ;;  %v15684_v18 = vcombine.high %v1004_v6, %v1008_v7  ;;  %v545_v7 = vld [vmem:[#allocation6 + $0x5e8] sm:$0xff] }
 0x168   : > { %6773 = vmatpush1.bf16.msra.mxu0 %v15627_v17  ;;  %v1012_v17 = vld [vmem:[#allocation6 + $0x1480] sm:$0xff] }
 0x169   : > { %6774 = vmatprep.subr.bf16.mxu0 %v15636_v25  ;;  %v19311_v25 = vcombine.high %v19300_v10, %v19303_v12  ;;  %v15692_v31 = vcombine.high %v1012_v17, %v1016_v19 }
 0x16a   : > { %6947 = vmatpush1.bf16.msra.mxu1 %v15125_v53  ;;  %v1020_v53 = vld [vmem:[#allocation6 + $0x14c0] sm:$0xff] }
 0x16b   : > { %6948 = vmatprep.subr.bf16.mxu1 %v15134_v30  ;;  %v509_v30 = vld [vmem:[#allocation6 + $0x4c8] sm:$0xff] }
 0x16c   : > { %6775 = vmatpush1.bf16.msra.mxu0 %v15635_v54  ;;  %v1024_v54 = vld [vmem:[#allocation6 + $0x14e0] sm:$0xff]  ;;  %v15190_v35 = vcombine.high %v509_v30, %v513_v59  ;;  %v15189_v41 = vcombine.low %v509_v30, %v513_v59 }
 0x16d   : > { %6776 = vmatprep.subr.bf16.mxu0 %v15644_v34  ;;  %v15691_v34 = vcombine.low %v1012_v17, %v1016_v19  ;;  %v15700_v39 = vcombine.high %v1020_v53, %v1024_v54 }
 0x16e   : > { %6949 = vmatpush1.bf16.msra.mxu1 %v15133_v36  ;;  %v1028_v36 = vld [vmem:[#allocation6 + $0x1500] sm:$0xff] }
 0x16f   : > { %6950 = vmatprep.subr.bf16.mxu1 %v15142_v38  ;;  %v517_v38 = vld [vmem:[#allocation6 + $0x508] sm:$0xff] }
 0x170   : > { %6777 = vmatpush1.bf16.msra.mxu0 %v15643_v37  ;;  %v1032_v37 = vld [vmem:[#allocation6 + $0x1520] sm:$0xff]  ;;  %v15198_v43 = vcombine.high %v517_v38, %v521_v40  ;;  %v15197_v55 = vcombine.low %v517_v38, %v521_v40 }
 0x171   : > { %6778 = vmatprep.subr.bf16.mxu0 %v15652_v42  ;;  %v15699_v42 = vcombine.low %v1020_v53, %v1024_v54  ;;  %v15708_v51 = vcombine.high %v1028_v36, %v1032_v37  ;;  %v561_v54 = vld [vmem:[#allocation6 + $0x668] sm:$0xff] }
 0x172   : > { %6951 = vmatpush1.bf16.msra.mxu1 %v15141_v44  ;;  %v1036_v44 = vld [vmem:[#allocation6 + $0x1540] sm:$0xff] }
 0x173   : > { %6952 = vmatprep.subr.bf16.mxu1 %v15150_v49  ;;  %v525_v49 = vld [vmem:[#allocation6 + $0x548] sm:$0xff] }
 0x174   : > { %6779 = vmatpush1.bf16.msra.mxu0 %v15651_v46  ;;  %v1040_v46 = vld [vmem:[#allocation6 + $0x1560] sm:$0xff]  ;;  %v15206_v57 = vcombine.high %v525_v49, %v529_v52  ;;  %v15205_v63 = vcombine.low %v525_v49, %v529_v52 }
 0x175   : > { %6780 = vmatprep.subr.bf16.mxu0 %v15660_v56  ;;  %v15707_v56 = vcombine.low %v1028_v36, %v1032_v37  ;;  %v15716_v27 = vcombine.high %v1036_v44, %v1040_v46  ;;  %v569_v37 = vld [vmem:[#allocation6 + $0x6a8] sm:$0xff] }
 0x176   : > { %6953 = vmatpush1.bf16.msra.mxu1 %v15149_v60  ;;  %v1044_v60 = vld [vmem:[#allocation6 + $0x1580] sm:$0xff] }
 0x177   : > { %6954 = vmatprep.subr.bf16.mxu1 %v15158_v24  ;;  %v533_v24 = vld [vmem:[#allocation6 + $0x588] sm:$0xff] }
 0x178   : > { %6781 = vmatpush1.bf16.msra.mxu0 %v15659_v61  ;;  %v1048_v61 = vld [vmem:[#allocation6 + $0x15a0] sm:$0xff]  ;;  %v15214_v2 = vcombine.high %v533_v24, %v537_v28  ;;  %v15213_v8 = vcombine.low %v533_v24, %v537_v28 }
 0x179   : > { %6782 = vmatprep.subr.bf16.mxu0 %v15668_v1  ;;  %v15715_v1 = vcombine.low %v1036_v44, %v1040_v46  ;;  %v15724_v6 = vcombine.high %v1044_v60, %v1048_v61  ;;  %v15723_v9 = vcombine.low %v1044_v60, %v1048_v61  ;;  %v577_v46 = vld [vmem:[#allocation6 + $0x6e8] sm:$0xff] }
 0x17a   : > { %6955 = vmatpush1.bf16.msra.mxu1 %v15157_v3  ;;  %v1052_v3 = vld [vmem:[#allocation6 + $0x15c0] sm:$0xff]  ;;  %v585_v61 = vld [vmem:[#allocation6 + $0x728] sm:$0xff] }
 0x17b   : > { %6967 = vmatprep.subr.bf16.mxu1 %v15166_v5  ;;  %v541_v5 = vld [vmem:[#allocation6 + $0x5c8] sm:$0xff] }
 0x17c   : > { %6783 = vmatpush1.bf16.msra.mxu0 %v15667_v4  ;;  %v1056_v4 = vld [vmem:[#allocation6 + $0x15e0] sm:$0xff]  ;;  %v15221_v19 = vcombine.low %v541_v5, %v545_v7 }
 0x17d   : > { %6795 = vmatprep.subr.bf16.mxu0 %v15676_v11  ;;  %6957 = vmatmul.mubr.bf16.vlgmr.msra.gmra.mrb[4].mxu1 %v19247_v21  ;;  %v15222_v11 = vcombine.high %v541_v5, %v545_v7  ;;  %v15732_v17 = vcombine.high %v1052_v3, %v1056_v4  ;;  %v15731_v20 = vcombine.low %v1052_v3, %v1056_v4  ;;  %v593_v4 = vld [vmem:[#allocation6 + $0x768] sm:$0xff] }
 0x17e   : > { %6968 = vmatpush1.bf16.msra.mxu1 %v15165_v13  ;;  %6999 = vmatprep.mubr.bf16.mxu1 %v19267_v32  ;;  %v1060_v13 = vld [vmem:[#allocation6 + $0x1600] sm:$0xff] }
 0x17f   : > { %6785 = vmatmul.mubr.bf16.vlgmr.msra.gmra.mrb[0].mxu0 %v19307_v14  ;;  %6969 = vmatprep.subr.bf16.mxu1 %v15174_v16  ;;  %v549_v16 = vld [vmem:[#allocation6 + $0x608] sm:$0xff] }
 0x180   : > { %6796 = vmatpush1.bf16.msra.mxu0 %v15675_v15  ;;  %6827 = vmatprep.mubr.bf16.mxu0 %v19311_v25  ;;  %v1064_v15 = vld [vmem:[#allocation6 + $0x1620] sm:$0xff] }
 0x181   : > { %6797 = vmatprep.subr.bf16.mxu0 %v15684_v18  ;;  %v553_v18 = vld [vmem:[#allocation6 + $0x628] sm:$0xff]  ;;  %v15740_v53 = vcombine.high %v1060_v13, %v1064_v15 }
 0x182   : > { %6970 = vmatpush1.bf16.msra.mxu1 %v15173_v45  ;;  %v15230_v22 = vcombine.high %v549_v16, %v553_v18  ;;  %v1068_v45 = vld [vmem:[#allocation6 + $0x1640] sm:$0xff]  ;;  %v15229_v30 = vcombine.low %v549_v16, %v553_v18 }
 0x183   : > { %6971 = vmatprep.subr.bf16.mxu1 %v15182_v29  ;;  %v557_v29 = vld [vmem:[#allocation6 + $0x648] sm:$0xff] }
 0x184   : > { %6798 = vmatpush1.bf16.msra.mxu0 %v15683_v47  ;;  %v1072_v47 = vld [vmem:[#allocation6 + $0x1660] sm:$0xff]  ;;  %v15238_v59 = vcombine.high %v557_v29, %v561_v54  ;;  %v15237_v38 = vcombine.low %v557_v29, %v561_v54 }
 0x185   : > { %6799 = vmatprep.subr.bf16.mxu0 %v15692_v31  ;;  %v15739_v31 = vcombine.low %v1060_v13, %v1064_v15  ;;  %v15748_v36 = vcombine.high %v1068_v45, %v1072_v47  ;;  %v601_v15 = vld [vmem:[#allocation6 + $0x7a8] sm:$0xff] }
 0x186   : > { %6972 = vmatpush1.bf16.msra.mxu1 %v15181_v62  ;;  %v1076_v62 = vld [vmem:[#allocation6 + $0x1680] sm:$0xff] }
 0x187   : > { %6973 = vmatprep.subr.bf16.mxu1 %v15190_v35  ;;  %v565_v35 = vld [vmem:[#allocation6 + $0x688] sm:$0xff] }
 0x188   : > { %6800 = vmatpush1.bf16.msra.mxu0 %v15691_v34  ;;  %v1080_v34 = vld [vmem:[#allocation6 + $0x16a0] sm:$0xff]  ;;  %v15246_v40 = vcombine.high %v565_v35, %v569_v37  ;;  %v15245_v49 = vcombine.low %v565_v35, %v569_v37 }
 0x189   : > { %6801 = vmatprep.subr.bf16.mxu0 %v15700_v39  ;;  %v15747_v39 = vcombine.low %v1068_v45, %v1072_v47  ;;  %v15756_v44 = vcombine.high %v1076_v62, %v1080_v34  ;;  %v609_v47 = vld [vmem:[#allocation6 + $0x7e8] sm:$0xff] }
 0x18a   : > { %6974 = vmatpush1.bf16.msra.mxu1 %v15189_v41  ;;  %v1084_v41 = vld [vmem:[#allocation6 + $0x16c0] sm:$0xff] }
 0x18b   : > { %6975 = vmatprep.subr.bf16.mxu1 %v15198_v43  ;;  %v573_v43 = vld [vmem:[#allocation6 + $0x6c8] sm:$0xff] }
 0x18c   : > { %6802 = vmatpush1.bf16.msra.mxu0 %v15699_v42  ;;  %v1088_v42 = vld [vmem:[#allocation6 + $0x16e0] sm:$0xff]  ;;  %v15254_v52 = vcombine.high %v573_v43, %v577_v46  ;;  %v15253_v24 = vcombine.low %v573_v43, %v577_v46 }
 0x18d   : > { %6803 = vmatprep.subr.bf16.mxu0 %v15708_v51  ;;  %v15755_v51 = vcombine.low %v1076_v62, %v1080_v34  ;;  %v15764_v60 = vcombine.high %v1084_v41, %v1088_v42  ;;  %v617_v34 = vld [vmem:[#allocation6 + $0x828] sm:$0xff] }
 0x18e   : > { %6976 = vmatpush1.bf16.msra.mxu1 %v15197_v55  ;;  %v1092_v55 = vld [vmem:[#allocation6 + $0x1700] sm:$0xff] }
 0x18f   : > { %6977 = vmatprep.subr.bf16.mxu1 %v15206_v57  ;;  %v581_v57 = vld [vmem:[#allocation6 + $0x708] sm:$0xff] }
 0x190   : > { %6804 = vmatpush1.bf16.msra.mxu0 %v15707_v56  ;;  %v1096_v56 = vld [vmem:[#allocation6 + $0x1720] sm:$0xff]  ;;  %v15262_v28 = vcombine.high %v581_v57, %v585_v61  ;;  %v15261_v5 = vcombine.low %v581_v57, %v585_v61  ;;  %v629_v57 = vld [vmem:[#allocation6 + $0x888] sm:$0xff] }
 0x191   : > { %6805 = vmatprep.subr.bf16.mxu0 %v15716_v27  ;;  %v15763_v27 = vcombine.low %v1084_v41, %v1088_v42  ;;  %v15772_v3 = vcombine.high %v1092_v55, %v1096_v56  ;;  %v625_v41 = vld [vmem:[#allocation6 + $0x868] sm:$0xff]  ;;  %v19318_v42 = vld [vmem:[%s19205_s13 + $0x30] sm:$0xff] }
 0x192   : > { %6978 = vmatpush1.bf16.msra.mxu1 %v15205_v63  ;;  %v1100_v63 = vld [vmem:[#allocation6 + $0x1740] sm:$0xff]  ;;  %v633_v61 = vld [vmem:[#allocation6 + $0x8a8] sm:$0xff] }
 0x193   : > { %6979 = vmatprep.subr.bf16.mxu1 %v15214_v2  ;;  %v589_v2 = vld [vmem:[#allocation6 + $0x748] sm:$0xff] }
 0x194   : > { %6806 = vmatpush1.bf16.msra.mxu0 %v15715_v1  ;;  %v1104_v1 = vld [vmem:[#allocation6 + $0x1760] sm:$0xff]  ;;  %v15270_v7 = vcombine.high %v589_v2, %v593_v4  ;;  %v15269_v16 = vcombine.low %v589_v2, %v593_v4  ;;  %v15309_v4 = vcombine.low %v629_v57, %v633_v61 }
 0x195   : > { %6807 = vmatprep.subr.bf16.mxu0 %v15724_v6  ;;  %v15771_v6 = vcombine.low %v1092_v55, %v1096_v56  ;;  %v15780_v13 = vcombine.high %v1100_v63, %v1104_v1  ;;  %v1140_v55 = vld [vmem:[#allocation6 + $0x1880] sm:$0xff] }
 0x196   : > { %6980 = vmatpush1.bf16.msra.mxu1 %v15213_v8  ;;  %v1108_v8 = vld [vmem:[#allocation6 + $0x1780] sm:$0xff] }
 0x197   : > { %6981 = vmatprep.subr.bf16.mxu1 %v15222_v11  ;;  %v597_v11 = vld [vmem:[#allocation6 + $0x788] sm:$0xff]  ;;  %v1144_v56 = vld [vmem:[#allocation6 + $0x18a0] sm:$0xff] }
 0x198   : > { %6808 = vmatpush1.bf16.msra.mxu0 %v15723_v9  ;;  %v1112_v9 = vld [vmem:[#allocation6 + $0x17a0] sm:$0xff]  ;;  %v15278_v18 = vcombine.high %v597_v11, %v601_v15  ;;  %v15277_v29 = vcombine.low %v597_v11, %v601_v15  ;;  %v15820_v2 = vcombine.high %v1140_v55, %v1144_v56 }
 0x199   : > { %6809 = vmatprep.subr.bf16.mxu0 %v15732_v17  ;;  %v15779_v17 = vcombine.low %v1100_v63, %v1104_v1  ;;  %v15788_v45 = vcombine.high %v1108_v8, %v1112_v9  ;;  %v1152_v63 = vld [vmem:[#allocation6 + $0x18e0] sm:$0xff]  ;;  %v637_v1 = vld [vmem:[#allocation6 + $0x8c8] sm:$0xff] }
 0x19a   : > { %6982 = vmatpush1.bf16.msra.mxu1 %v15221_v19  ;;  %v1116_v19 = vld [vmem:[#allocation6 + $0x17c0] sm:$0xff] }
 0x19b   : > { %6983 = vmatprep.subr.bf16.mxu1 %v15230_v22  ;;  %v605_v22 = vld [vmem:[#allocation6 + $0x7c8] sm:$0xff] }
 0x19c   : > { %6810 = vmatpush1.bf16.msra.mxu0 %v15731_v20  ;;  %v1120_v20 = vld [vmem:[#allocation6 + $0x17e0] sm:$0xff]  ;;  %v15286_v54 = vcombine.high %v605_v22, %v609_v47  ;;  %v15285_v35 = vcombine.low %v605_v22, %v609_v47 }
 0x19d   : > { %6811 = vmatprep.subr.bf16.mxu0 %v15740_v53  ;;  %v15787_v53 = vcombine.low %v1108_v8, %v1112_v9  ;;  %v15796_v62 = vcombine.high %v1116_v19, %v1120_v20  ;;  %v1160_v8 = vld [vmem:[#allocation6 + $0x1920] sm:$0xff]  ;;  %v645_v9 = vld [vmem:[#allocation6 + $0x908] sm:$0xff] }
 0x19e   : > { %6984 = vmatpush1.bf16.msra.mxu1 %v15229_v30  ;;  %v1124_v30 = vld [vmem:[#allocation6 + $0x1800] sm:$0xff] }
 0x19f   : > { %6985 = vmatprep.subr.bf16.mxu1 %v15238_v59  ;;  %v613_v59 = vld [vmem:[#allocation6 + $0x808] sm:$0xff] }
 0x1a0   : > { %6812 = vmatpush1.bf16.msra.mxu0 %v15739_v31  ;;  %v1128_v31 = vld [vmem:[#allocation6 + $0x1820] sm:$0xff]  ;;  %v15294_v37 = vcombine.high %v613_v59, %v617_v34  ;;  %v15293_v46 = vcombine.low %v613_v59, %v617_v34 }
 0x1a1   : > { %6813 = vmatprep.subr.bf16.mxu0 %v15748_v36  ;;  %v15795_v36 = vcombine.low %v1116_v19, %v1120_v20  ;;  %v15804_v43 = vcombine.high %v1124_v30, %v1128_v31  ;;  %v1168_v19 = vld [vmem:[#allocation6 + $0x1960] sm:$0xff]  ;;  %v653_v20 = vld [vmem:[#allocation6 + $0x948] sm:$0xff] }
 0x1a2   : > { %6986 = vmatpush1.bf16.msra.mxu1 %v15237_v38  ;;  %v1132_v38 = vld [vmem:[#allocation6 + $0x1840] sm:$0xff] }
 0x1a3   : > { %6987 = vmatprep.subr.bf16.mxu1 %v15246_v40  ;;  %v621_v40 = vld [vmem:[#allocation6 + $0x848] sm:$0xff] }
 0x1a4   : > { %6814 = vmatpush1.bf16.msra.mxu0 %v15747_v39  ;;  %v1136_v39 = vld [vmem:[#allocation6 + $0x1860] sm:$0xff] }
 0x1a5   : > { %6815 = vmatprep.subr.bf16.mxu0 %v15756_v44  ;;  %v19321_v44 = vld [vmem:[%s19205_s13 + $0x70] sm:$0xff] }
 0x1a6   : > { %6988 = vmatpush1.bf16.msra.mxu1 %v15245_v49  ;;  %v19325_v49 = vcombine.low %v19300_v10, %v19303_v12  ;;  %v15301_v10 = vcombine.low %v621_v40, %v625_v41  ;;  %v15811_v12 = vcombine.low %v1132_v38, %v1136_v39 }
 0x1a7   : > { %6989 = vmatprep.subr.bf16.mxu1 %v15254_v52  ;;  %v15302_v52 = vcombine.high %v621_v40, %v625_v41  ;;  %v673_v41 = vld [vmem:[#allocation6 + $0x9e8] sm:$0xff] }
 0x1a8   : > { %6816 = vmatpush1.bf16.msra.mxu0 %v15755_v51  ;;  %v15803_v51 = vcombine.low %v1124_v30, %v1128_v31  ;;  %v1176_v30 = vld [vmem:[#allocation6 + $0x19a0] sm:$0xff]  ;;  %v661_v31 = vld [vmem:[#allocation6 + $0x988] sm:$0xff] }
 0x1a9   : > { %6817 = vmatprep.subr.bf16.mxu0 %v15764_v60  ;;  %v15812_v60 = vcombine.high %v1132_v38, %v1136_v39  ;;  %v1184_v38 = vld [vmem:[#allocation6 + $0x19e0] sm:$0xff]  ;;  %v669_v39 = vld [vmem:[#allocation6 + $0x9c8] sm:$0xff] }
 0x1aa   : > { %6990 = vmatpush1.bf16.msra.mxu1 %v15253_v24  ;;  %v19329_v24 = vcombine.high %v19318_v42, %v19321_v44 }
 0x1ab   : > { %6991 = vmatprep.subr.bf16.mxu1 %v15262_v28  ;;  %v1148_v28 = vld [vmem:[#allocation6 + $0x18c0] sm:$0xff] }
 0x1ac   : > { %6818 = vmatpush1.bf16.msra.mxu0 %v15763_v27  ;;  %v15310_v27 = vcombine.high %v629_v57, %v633_v61  ;;  %v15828_v11 = vcombine.high %v1148_v28, %v1152_v63  ;;  %v15349_v61 = vcombine.low %v669_v39, %v673_v41 }
 0x1ad   : > { %6819 = vmatprep.subr.bf16.mxu0 %v15772_v3  ;;  %v641_v3 = vld [vmem:[#allocation6 + $0x8e8] sm:$0xff] }
 0x1ae   : > { %6992 = vmatpush1.bf16.msra.mxu1 %v15261_v5  ;;  %v15819_v5 = vcombine.low %v1140_v55, %v1144_v56  ;;  %v15317_v15 = vcombine.low %v637_v1, %v641_v3  ;;  %v1192_v55 = vld [vmem:[#allocation6 + $0x1a20] sm:$0xff]  ;;  %v677_v56 = vld [vmem:[#allocation6 + $0xa08] sm:$0xff] }
 0x1af   : > { %6993 = vmatprep.subr.bf16.mxu1 %v15270_v7  ;;  %v1156_v7 = vld [vmem:[#allocation6 + $0x1900] sm:$0xff] }
 0x1b0   : > { %6820 = vmatpush1.bf16.msra.mxu0 %v15771_v6  ;;  %v15318_v6 = vcombine.high %v637_v1, %v641_v3  ;;  %v15836_v22 = vcombine.high %v1156_v7, %v1160_v8 }
 0x1b1   : > { %6821 = vmatprep.subr.bf16.mxu0 %v15780_v13  ;;  %v649_v13 = vld [vmem:[#allocation6 + $0x928] sm:$0xff] }
 0x1b2   : > { %6994 = vmatpush1.bf16.msra.mxu1 %v15269_v16  ;;  %v15827_v16 = vcombine.low %v1148_v28, %v1152_v63  ;;  %v15325_v47 = vcombine.low %v645_v9, %v649_v13  ;;  %v1200_v28 = vld [vmem:[#allocation6 + $0x1a60] sm:$0xff]  ;;  %v685_v63 = vld [vmem:[#allocation6 + $0xa48] sm:$0xff] }
 0x1b3   : > { %6995 = vmatprep.subr.bf16.mxu1 %v15278_v18  ;;  %v1164_v18 = vld [vmem:[#allocation6 + $0x1940] sm:$0xff] }
 0x1b4   : > { %6822 = vmatpush1.bf16.msra.mxu0 %v15779_v17  ;;  %v15326_v17 = vcombine.high %v645_v9, %v649_v13  ;;  %v15844_v59 = vcombine.high %v1164_v18, %v1168_v19 }
 0x1b5   : > { %6823 = vmatprep.subr.bf16.mxu0 %v15788_v45  ;;  %v657_v45 = vld [vmem:[#allocation6 + $0x968] sm:$0xff] }
 0x1b6   : > { %6996 = vmatpush1.bf16.msra.mxu1 %v15277_v29  ;;  %v15835_v29 = vcombine.low %v1156_v7, %v1160_v8  ;;  %v15333_v34 = vcombine.low %v653_v20, %v657_v45  ;;  %v1208_v7 = vld [vmem:[#allocation6 + $0x1aa0] sm:$0xff]  ;;  %v693_v8 = vld [vmem:[#allocation6 + $0xa88] sm:$0xff] }
 0x1b7   : > { %6997 = vmatprep.subr.bf16.mxu1 %v15286_v54  ;;  %v1172_v54 = vld [vmem:[#allocation6 + $0x1980] sm:$0xff] }
 0x1b8   : > { %6824 = vmatpush1.bf16.msra.mxu0 %v15787_v53  ;;  %v15334_v53 = vcombine.high %v653_v20, %v657_v45  ;;  %v15852_v40 = vcombine.high %v1172_v54, %v1176_v30 }
 0x1b9   : > { %6825 = vmatprep.subr.bf16.mxu0 %v15796_v62  ;;  %v665_v62 = vld [vmem:[#allocation6 + $0x9a8] sm:$0xff] }
 0x1ba   : > { %6998 = vmatpush1.bf16.msra.mxu1 %v15285_v35  ;;  %v15843_v35 = vcombine.low %v1164_v18, %v1168_v19  ;;  %v1216_v18 = vld [vmem:[#allocation6 + $0x1ae0] sm:$0xff]  ;;  %v701_v19 = vld [vmem:[#allocation6 + $0xac8] sm:$0xff] }
 0x1bb   : > { %7010 = vmatprep.subr.bf16.mxu1 %v15294_v37  ;;  %v1180_v37 = vld [vmem:[#allocation6 + $0x19c0] sm:$0xff] }
 0x1bc   : > { %6826 = vmatpush1.bf16.msra.mxu0 %v15795_v36  ;;  %v15342_v36 = vcombine.high %v661_v31, %v665_v62  ;;  %v15860_v57 = vcombine.high %v1180_v37, %v1184_v38 }
 0x1bd   : > { %6838 = vmatprep.subr.bf16.mxu0 %v15804_v43  ;;  %7000 = vmatmul.mubr.bf16.vlgmr.msra.gmra.mrb[4].mxu1 %v19285_v48  ;;  %v15341_v43 = vcombine.low %v661_v31, %v665_v62 }
 0x1be   : > { %7011 = vmatpush1.bf16.msra.mxu1 %v15293_v46  ;;  %7042 = vmatprep.mubr.bf16.mxu1 %v19242_v0  ;;  %v15851_v46 = vcombine.low %v1172_v54, %v1176_v30  ;;  %v1224_v54 = vld [vmem:[#allocation6 + $0x1b20] sm:$0xff]  ;;  %v709_v30 = vld [vmem:[#allocation6 + $0xb08] sm:$0xff] }
 0x1bf   : > { %6828 = vmatmul.mubr.bf16.vlgmr.msra.gmra.mrb[0].mxu0 %v19325_v49  ;;  %7012 = vmatprep.subr.bf16.mxu1 %v15302_v52  ;;  %v1188_v52 = vld [vmem:[#allocation6 + $0x1a00] sm:$0xff] }
 0x1c0   : > { %6839 = vmatpush1.bf16.msra.mxu0 %v15803_v51  ;;  %6870 = vmatprep.mubr.bf16.mxu0 %v19329_v24  ;;  %v15350_v51 = vcombine.high %v669_v39, %v673_v41  ;;  %v15868_v1 = vcombine.high %v1188_v52, %v1192_v55 }
 0x1c1   : > { %6840 = vmatprep.subr.bf16.mxu0 %v15812_v60  ;;  %v681_v60 = vld [vmem:[#allocation6 + $0xa28] sm:$0xff] }
 0x1c2   : > { %7013 = vmatpush1.bf16.msra.mxu1 %v15301_v10  ;;  %v15859_v10 = vcombine.low %v1180_v37, %v1184_v38  ;;  %v15357_v3 = vcombine.low %v677_v56, %v681_v60  ;;  %v1232_v37 = vld [vmem:[#allocation6 + $0x1b60] sm:$0xff]  ;;  %v717_v38 = vld [vmem:[#allocation6 + $0xb48] sm:$0xff] }
 0x1c3   : > { %7014 = vmatprep.subr.bf16.mxu1 %v15310_v27  ;;  %v1196_v27 = vld [vmem:[#allocation6 + $0x1a40] sm:$0xff] }
 0x1c4   : > { %6841 = vmatpush1.bf16.msra.mxu0 %v15811_v12  ;;  %v15358_v12 = vcombine.high %v677_v56, %v681_v60  ;;  %v15876_v9 = vcombine.high %v1196_v27, %v1200_v28 }
 0x1c5   : > { %6842 = vmatprep.subr.bf16.mxu0 %v15820_v2  ;;  %v689_v2 = vld [vmem:[#allocation6 + $0xa68] sm:$0xff] }
 0x1c6   : > { %7015 = vmatpush1.bf16.msra.mxu1 %v15309_v4  ;;  %v15867_v4 = vcombine.low %v1188_v52, %v1192_v55  ;;  %v15365_v13 = vcombine.low %v685_v63, %v689_v2  ;;  %v1240_v52 = vld [vmem:[#allocation6 + $0x1ba0] sm:$0xff]  ;;  %v725_v55 = vld [vmem:[#allocation6 + $0xb88] sm:$0xff] }
 0x1c7   : > { %7016 = vmatprep.subr.bf16.mxu1 %v15318_v6  ;;  %v1204_v6 = vld [vmem:[#allocation6 + $0x1a80] sm:$0xff] }
 0x1c8   : > { %6843 = vmatpush1.bf16.msra.mxu0 %v15819_v5  ;;  %v15366_v5 = vcombine.high %v685_v63, %v689_v2  ;;  %v15884_v20 = vcombine.high %v1204_v6, %v1208_v7 }
 0x1c9   : > { %6844 = vmatprep.subr.bf16.mxu0 %v15828_v11  ;;  %v697_v11 = vld [vmem:[#allocation6 + $0xaa8] sm:$0xff] }
 0x1ca   : > { %7017 = vmatpush1.bf16.msra.mxu1 %v15317_v15  ;;  %v15875_v15 = vcombine.low %v1196_v27, %v1200_v28  ;;  %v15373_v45 = vcombine.low %v693_v8, %v697_v11  ;;  %v1248_v27 = vld [vmem:[#allocation6 + $0x1be0] sm:$0xff]  ;;  %v733_v28 = vld [vmem:[#allocation6 + $0xbc8] sm:$0xff] }
 0x1cb   : > { %7018 = vmatprep.subr.bf16.mxu1 %v15326_v17  ;;  %v1212_v17 = vld [vmem:[#allocation6 + $0x1ac0] sm:$0xff] }
 0x1cc   : > { %6845 = vmatpush1.bf16.msra.mxu0 %v15827_v16  ;;  %v15374_v16 = vcombine.high %v693_v8, %v697_v11  ;;  %v15892_v31 = vcombine.high %v1212_v17, %v1216_v18 }
 0x1cd   : > { %6846 = vmatprep.subr.bf16.mxu0 %v15836_v22  ;;  %v705_v22 = vld [vmem:[#allocation6 + $0xae8] sm:$0xff] }
 0x1ce   : > { %7019 = vmatpush1.bf16.msra.mxu1 %v15325_v47  ;;  %v15883_v47 = vcombine.low %v1204_v6, %v1208_v7  ;;  %v15381_v62 = vcombine.low %v701_v19, %v705_v22  ;;  %v1256_v6 = vld [vmem:[#allocation6 + $0x1c20] sm:$0xff]  ;;  %v741_v7 = vld [vmem:[#allocation6 + $0xc08] sm:$0xff] }
 0x1cf   : > { %7020 = vmatprep.subr.bf16.mxu1 %v15334_v53  ;;  %v1220_v53 = vld [vmem:[#allocation6 + $0x1b00] sm:$0xff] }
 0x1d0   : > { %6847 = vmatpush1.bf16.msra.mxu0 %v15835_v29  ;;  %v15382_v29 = vcombine.high %v701_v19, %v705_v22  ;;  %v15900_v39 = vcombine.high %v1220_v53, %v1224_v54  ;;  %v753_v19 = vld [vmem:[#allocation6 + $0xc68] sm:$0xff] }
 0x1d1   : > { %6848 = vmatprep.subr.bf16.mxu0 %v15844_v59  ;;  %v713_v59 = vld [vmem:[#allocation6 + $0xb28] sm:$0xff] }
 0x1d2   : > { %7021 = vmatpush1.bf16.msra.mxu1 %v15333_v34  ;;  %v15891_v34 = vcombine.low %v1212_v17, %v1216_v18  ;;  %v15389_v41 = vcombine.low %v709_v30, %v713_v59  ;;  %v1264_v17 = vld [vmem:[#allocation6 + $0x1c60] sm:$0xff]  ;;  %v749_v18 = vld [vmem:[#allocation6 + $0xc48] sm:$0xff] }
 0x1d3   : > { %7022 = vmatprep.subr.bf16.mxu1 %v15342_v36  ;;  %v1228_v36 = vld [vmem:[#allocation6 + $0x1b40] sm:$0xff] }
 0x1d4   : > { %6849 = vmatpush1.bf16.msra.mxu0 %v15843_v35  ;;  %v15390_v35 = vcombine.high %v709_v30, %v713_v59  ;;  %v15908_v56 = vcombine.high %v1228_v36, %v1232_v37  ;;  %v1268_v30 = vld [vmem:[#allocation6 + $0x1c80] sm:$0xff]  ;;  %v757_v59 = vld [vmem:[#allocation6 + $0xc88] sm:$0xff] }
 0x1d5   : > { %6850 = vmatprep.subr.bf16.mxu0 %v15852_v40  ;;  %v721_v40 = vld [vmem:[#allocation6 + $0xb68] sm:$0xff] }
 0x1d6   : > { %7023 = vmatpush1.bf16.msra.mxu1 %v15341_v43  ;;  %v15899_v43 = vcombine.low %v1220_v53, %v1224_v54  ;;  %v15397_v60 = vcombine.low %v717_v38, %v721_v40  ;;  %v15430_v54 = vcombine.high %v749_v18, %v753_v19 }
 0x1d7   : > { %7024 = vmatprep.subr.bf16.mxu1 %v15350_v51  ;;  %v1236_v51 = vld [vmem:[#allocation6 + $0x1b80] sm:$0xff] }
 0x1d8   : > { %6851 = vmatpush1.bf16.msra.mxu0 %v15851_v46  ;;  %v15398_v46 = vcombine.high %v717_v38, %v721_v40  ;;  %v15916_v63 = vcombine.high %v1236_v51, %v1240_v52  ;;  %v1280_v38 = vld [vmem:[#allocation6 + $0x1ce0] sm:$0xff] }
 0x1d9   : > { %6852 = vmatprep.subr.bf16.mxu0 %v15860_v57  ;;  %v729_v57 = vld [vmem:[#allocation6 + $0xba8] sm:$0xff] }
 0x1da   : > { %7025 = vmatpush1.bf16.msra.mxu1 %v15349_v61  ;;  %v15907_v61 = vcombine.low %v1228_v36, %v1232_v37  ;;  %v15405_v2 = vcombine.low %v725_v55, %v729_v57  ;;  %v1276_v37 = vld [vmem:[#allocation6 + $0x1cc0] sm:$0xff] }
 0x1db   : > { %7026 = vmatprep.subr.bf16.mxu1 %v15358_v12  ;;  %v1244_v12 = vld [vmem:[#allocation6 + $0x1bc0] sm:$0xff] }
 0x1dc   : > { %6853 = vmatpush1.bf16.msra.mxu0 %v15859_v10  ;;  %v15406_v10 = vcombine.high %v725_v55, %v729_v57  ;;  %v15924_v8 = vcombine.high %v1244_v12, %v1248_v27  ;;  %v1288_v55 = vld [vmem:[#allocation6 + $0x1d20] sm:$0xff]  ;;  %v15956_v57 = vcombine.high %v1276_v37, %v1280_v38 }
 0x1dd   : > { %6854 = vmatprep.subr.bf16.mxu0 %v15868_v1  ;;  %v737_v1 = vld [vmem:[#allocation6 + $0xbe8] sm:$0xff] }
 0x1de   : > { %7027 = vmatpush1.bf16.msra.mxu1 %v15357_v3  ;;  %v15915_v3 = vcombine.low %v1236_v51, %v1240_v52  ;;  %v15413_v11 = vcombine.low %v733_v28, %v737_v1  ;;  %v1284_v52 = vld [vmem:[#allocation6 + $0x1d00] sm:$0xff] }
 0x1df   : > { %7028 = vmatprep.subr.bf16.mxu1 %v15366_v5  ;;  %v1252_v5 = vld [vmem:[#allocation6 + $0x1c00] sm:$0xff] }
 0x1e0   : > { %6855 = vmatpush1.bf16.msra.mxu0 %v15867_v4  ;;  %v15414_v4 = vcombine.high %v733_v28, %v737_v1  ;;  %v15932_v22 = vcombine.high %v1252_v5, %v1256_v6  ;;  %v15931_v53 = vcombine.low %v1252_v5, %v1256_v6  ;;  %v1296_v28 = vld [vmem:[#allocation6 + $0x1d60] sm:$0xff]  ;;  %v15964_v1 = vcombine.high %v1284_v52, %v1288_v55 }
 0x1e1   : > { %6856 = vmatprep.subr.bf16.mxu0 %v15876_v9  ;;  %v745_v9 = vld [vmem:[#allocation6 + $0xc28] sm:$0xff]  ;;  %v1300_v6 = vld [vmem:[#allocation6 + $0x1d80] sm:$0xff] }
 0x1e2   : > { %7029 = vmatpush1.bf16.msra.mxu1 %v15365_v13  ;;  %v15923_v13 = vcombine.low %v1244_v12, %v1248_v27  ;;  %v1292_v27 = vld [vmem:[#allocation6 + $0x1d40] sm:$0xff] }
 0x1e3   : > { %7030 = vmatprep.subr.bf16.mxu1 %v15374_v16  ;;  %v1260_v16 = vld [vmem:[#allocation6 + $0x1c40] sm:$0xff] }
 0x1e4   : > { %6857 = vmatpush1.bf16.msra.mxu0 %v15875_v15  ;;  %v15422_v15 = vcombine.high %v741_v7, %v745_v9 }
 0x1e5   : > { %6858 = vmatprep.subr.bf16.mxu0 %v15884_v20  ;;  %v19336_v20 = vld [vmem:[%s19205_s13 + $0x38] sm:$0xff] }
 0x1e6   : > { %7031 = vmatpush1.bf16.msra.mxu1 %v15373_v45  ;;  %v19339_v45 = vld [vmem:[%s19205_s13 + $0x78] sm:$0xff] }
 0x1e7   : > { %7032 = vmatprep.subr.bf16.mxu1 %v15382_v29  ;;  %v19343_v29 = vcombine.low %v19318_v42, %v19321_v44  ;;  %v15429_v42 = vcombine.low %v749_v18, %v753_v19  ;;  %v15939_v44 = vcombine.low %v1260_v16, %v1264_v17  ;;  %v1312_v18 = vld [vmem:[#allocation6 + $0x1de0] sm:$0xff]  ;;  %v797_v19 = vld [vmem:[#allocation6 + $0xdc8] sm:$0xff] }
 0x1e8   : > { %6859 = vmatpush1.bf16.msra.mxu0 %v15883_v47  ;;  %v15421_v47 = vcombine.low %v741_v7, %v745_v9  ;;  %v1304_v7 = vld [vmem:[#allocation6 + $0x1da0] sm:$0xff]  ;;  %v15972_v9 = vcombine.high %v1292_v27, %v1296_v28 }
 0x1e9   : > { %6860 = vmatprep.subr.bf16.mxu0 %v15892_v31  ;;  %v1272_v31 = vld [vmem:[#allocation6 + $0x1ca0] sm:$0xff] }
 0x1ea   : > { %7033 = vmatpush1.bf16.msra.mxu1 %v15381_v62  ;;  %v15940_v62 = vcombine.high %v1260_v16, %v1264_v17  ;;  %v15948_v40 = vcombine.high %v1268_v30, %v1272_v31  ;;  %v1308_v17 = vld [vmem:[#allocation6 + $0x1dc0] sm:$0xff] }
 0x1eb   : > { %7034 = vmatprep.subr.bf16.mxu1 %v15390_v35  ;;  %v19347_v35 = vcombine.high %v19336_v20, %v19339_v45 }
 0x1ec   : > { %6861 = vmatpush1.bf16.msra.mxu0 %v15891_v34  ;;  %v761_v34 = vld [vmem:[#allocation6 + $0xca8] sm:$0xff] }
 0x1ed   : > { %6862 = vmatprep.subr.bf16.mxu0 %v15900_v39  ;;  %v15438_v36 = vcombine.high %v757_v59, %v761_v34  ;;  %v765_v39 = vld [vmem:[#allocation6 + $0xcc8] sm:$0xff] }
 0x1ee   : > { %7035 = vmatpush1.bf16.msra.mxu1 %v15389_v41  ;;  %v769_v41 = vld [vmem:[#allocation6 + $0xce8] sm:$0xff] }
 0x1ef   : > { %7036 = vmatprep.subr.bf16.mxu1 %v15398_v46  ;;  %v15947_v46 = vcombine.low %v1268_v30, %v1272_v31  ;;  %v15446_v51 = vcombine.high %v765_v39, %v769_v41 }
 0x1f0   : > { %6863 = vmatpush1.bf16.msra.mxu0 %v15899_v43  ;;  %v15437_v43 = vcombine.low %v757_v59, %v761_v34 }
 0x1f1   : > { %6864 = vmatprep.subr.bf16.mxu0 %v15908_v56  ;;  %v773_v56 = vld [vmem:[#allocation6 + $0xd08] sm:$0xff] }
 0x1f2   : > { %7037 = vmatpush1.bf16.msra.mxu1 %v15397_v60  ;;  %v777_v60 = vld [vmem:[#allocation6 + $0xd28] sm:$0xff] }
 0x1f3   : > { %7038 = vmatprep.subr.bf16.mxu1 %v15406_v10  ;;  %v15955_v10 = vcombine.low %v1276_v37, %v1280_v38  ;;  %v15454_v12 = vcombine.high %v773_v56, %v777_v60  ;;  %v15988_v37 = vcombine.high %v1308_v17, %v1312_v18  ;;  %v809_v38 = vld [vmem:[#allocation6 + $0xe28] sm:$0xff] }
 0x1f4   : > { %6865 = vmatpush1.bf16.msra.mxu0 %v15907_v61  ;;  %v15445_v61 = vcombine.low %v765_v39, %v769_v41 }
 0x1f5   : > { %6866 = vmatprep.subr.bf16.mxu0 %v15916_v63  ;;  %v781_v63 = vld [vmem:[#allocation6 + $0xd48] sm:$0xff] }
 0x1f6   : > { %7039 = vmatpush1.bf16.msra.mxu1 %v15405_v2  ;;  %v785_v2 = vld [vmem:[#allocation6 + $0xd68] sm:$0xff] }
 0x1f7   : > { %7040 = vmatprep.subr.bf16.mxu1 %v15414_v4  ;;  %v15963_v4 = vcombine.low %v1284_v52, %v1288_v55  ;;  %v15462_v5 = vcombine.high %v781_v63, %v785_v2  ;;  %v817_v55 = vld [vmem:[#allocation6 + $0xe68] sm:$0xff] }
 0x1f8   : > { %6867 = vmatpush1.bf16.msra.mxu0 %v15915_v3  ;;  %v15453_v3 = vcombine.low %v773_v56, %v777_v60 }
 0x1f9   : > { %6868 = vmatprep.subr.bf16.mxu0 %v15924_v8  ;;  %v789_v8 = vld [vmem:[#allocation6 + $0xd88] sm:$0xff] }
 0x1fa   : > { %7041 = vmatpush1.bf16.msra.mxu1 %v15413_v11  ;;  %v793_v11 = vld [vmem:[#allocation6 + $0xda8] sm:$0xff] }
 0x1fb   : > { %7053 = vmatprep.subr.bf16.mxu1 %v15422_v15  ;;  %v15971_v15 = vcombine.low %v1292_v27, %v1296_v28  ;;  %v15470_v16 = vcombine.high %v789_v8, %v793_v11  ;;  %v15469_v31 = vcombine.low %v789_v8, %v793_v11  ;;  %v825_v28 = vld [vmem:[#allocation6 + $0xea8] sm:$0xff] }
 0x1fc   : > { %6869 = vmatpush1.bf16.msra.mxu0 %v15923_v13  ;;  %v15461_v13 = vcombine.low %v781_v63, %v785_v2 }
 0x1fd   : > { %6881 = vmatprep.subr.bf16.mxu0 %v15932_v22  ;;  %7043 = vmatmul.mubr.bf16.vlgmr.msra.gmra.mrb[4].mxu1 %v19257_v26 }
 0x1fe   : > { %7054 = vmatpush1.bf16.msra.mxu1 %v15421_v47  ;;  %7085 = vmatprep.mubr.bf16.mxu1 %v19272_v33  ;;  %v15980_v47 = vcombine.high %v1300_v6, %v1304_v7 }
 0x1ff   : > { %6871 = vmatmul.mubr.bf16.vlgmr.msra.gmra.mrb[0].mxu0 %v19343_v29  ;;  %7055 = vmatprep.subr.bf16.mxu1 %v15430_v54 }
 0x200   : > { %6882 = vmatpush1.bf16.msra.mxu0 %v15931_v53  ;;  %6913 = vmatprep.mubr.bf16.mxu0 %v19347_v35  ;;  %v801_v53 = vld [vmem:[#allocation6 + $0xde8] sm:$0xff] }
 0x201   : > { %6883 = vmatprep.subr.bf16.mxu0 %v15940_v62  ;;  %v15979_v62 = vcombine.low %v1300_v6, %v1304_v7  ;;  %v15478_v34 = vcombine.high %v797_v19, %v801_v53  ;;  %v15477_v39 = vcombine.low %v797_v19, %v801_v53  ;;  %v833_v7 = vld [vmem:[#allocation6 + $0xee8] sm:$0xff] }
 0x202   : > { %7056 = vmatpush1.bf16.msra.mxu1 %v15429_v42  ;;  %v1316_v42 = vld [vmem:[#allocation6 + $0x1e00] sm:$0xff] }
 0x203   : > { %7057 = vmatprep.subr.bf16.mxu1 %v15438_v36  ;;  %v805_v36 = vld [vmem:[#allocation6 + $0xe08] sm:$0xff] }
 0x204   : > { %6884 = vmatpush1.bf16.msra.mxu0 %v15939_v44  ;;  %v1320_v44 = vld [vmem:[#allocation6 + $0x1e20] sm:$0xff]  ;;  %v15486_v41 = vcombine.high %v805_v36, %v809_v38  ;;  %v15485_v56 = vcombine.low %v805_v36, %v809_v38 }
 0x205   : > { %6885 = vmatprep.subr.bf16.mxu0 %v15948_v40  ;;  %v15987_v40 = vcombine.low %v1308_v17, %v1312_v18  ;;  %v15996_v52 = vcombine.high %v1316_v42, %v1320_v44  ;;  %v841_v18 = vld [vmem:[#allocation6 + $0xf28] sm:$0xff] }
 0x206   : > { %7058 = vmatpush1.bf16.msra.mxu1 %v15437_v43  ;;  %v1324_v43 = vld [vmem:[#allocation6 + $0x1e40] sm:$0xff] }
 0x207   : > { %7059 = vmatprep.subr.bf16.mxu1 %v15446_v51  ;;  %v813_v51 = vld [vmem:[#allocation6 + $0xe48] sm:$0xff] }
 0x208   : > { %6886 = vmatpush1.bf16.msra.mxu0 %v15947_v46  ;;  %v1328_v46 = vld [vmem:[#allocation6 + $0x1e60] sm:$0xff]  ;;  %v15494_v60 = vcombine.high %v813_v51, %v817_v55  ;;  %v15493_v63 = vcombine.low %v813_v51, %v817_v55 }
 0x209   : > { %6887 = vmatprep.subr.bf16.mxu0 %v15956_v57  ;;  %v15995_v57 = vcombine.low %v1316_v42, %v1320_v44  ;;  %v16004_v27 = vcombine.high %v1324_v43, %v1328_v46  ;;  %v849_v44 = vld [vmem:[#allocation6 + $0xf68] sm:$0xff] }
 0x20a   : > { %7060 = vmatpush1.bf16.msra.mxu1 %v15445_v61  ;;  %v1332_v61 = vld [vmem:[#allocation6 + $0x1e80] sm:$0xff] }
 0x20b   : > { %7061 = vmatprep.subr.bf16.mxu1 %v15454_v12  ;;  %v821_v12 = vld [vmem:[#allocation6 + $0xe88] sm:$0xff] }
 0x20c   : > { %6888 = vmatpush1.bf16.msra.mxu0 %v15955_v10  ;;  %v1336_v10 = vld [vmem:[#allocation6 + $0x1ea0] sm:$0xff]  ;;  %v15502_v2 = vcombine.high %v821_v12, %v825_v28  ;;  %v15501_v8 = vcombine.low %v821_v12, %v825_v28 }
 0x20d   : > { %6889 = vmatprep.subr.bf16.mxu0 %v15964_v1  ;;  %v16003_v1 = vcombine.low %v1324_v43, %v1328_v46  ;;  %v16012_v6 = vcombine.high %v1332_v61, %v1336_v10  ;;  %v857_v46 = vld [vmem:[#allocation6 + $0xfa8] sm:$0xff] }
 0x20e   : > { %7062 = vmatpush1.bf16.msra.mxu1 %v15453_v3  ;;  %v1340_v3 = vld [vmem:[#allocation6 + $0x1ec0] sm:$0xff] }
 0x20f   : > { %7063 = vmatprep.subr.bf16.mxu1 %v15462_v5  ;;  %v829_v5 = vld [vmem:[#allocation6 + $0xec8] sm:$0xff] }
 0x210   : > { %6890 = vmatpush1.bf16.msra.mxu0 %v15963_v4  ;;  %v19353_v22 = vpop.f32.mrb[0].mxu1  ;;  %v1344_v4 = vld [vmem:[#allocation6 + $0x1ee0] sm:$0xff]  ;;  %v15510_v11 = vcombine.high %v829_v5, %v833_v7  ;;  %v15509_v19 = vcombine.low %v829_v5, %v833_v7 }
 0x211   : > { %6891 = vmatprep.subr.bf16.mxu0 %v15972_v9  ;;  %v19355_v54 = vpop.f32.mrb[1].mxu1  ;;  %v16011_v9 = vcombine.low %v1332_v61, %v1336_v10  ;;  %v16020_v17 = vcombine.high %v1340_v3, %v1344_v4  ;;  %v865_v10 = vld [vmem:[#allocation6 + $0xfe8] sm:$0xff] }
 0x212   : > { %v19357_v30 = vpop.f32.mrb[2].mxu1  ;;  %7064 = vmatpush1.bf16.msra.mxu1 %v15461_v13  ;;  %v1348_v13 = vld [vmem:[#allocation6 + $0x1f00] sm:$0xff] }
 0x213   : > { %v19359_v59 = vpop.f32.mrb[3].mxu1  ;;  %7065 = vmatprep.subr.bf16.mxu1 %v15470_v16  ;;  %v837_v16 = vld [vmem:[#allocation6 + $0xf08] sm:$0xff] }
 0x214   : > { %6892 = vmatpush1.bf16.msra.mxu0 %v15971_v15  ;;  %v1352_v15 = vld [vmem:[#allocation6 + $0x1f20] sm:$0xff]  ;;  %v15518_v53 = vcombine.high %v837_v16, %v841_v18  ;;  %v15517_v36 = vcombine.low %v837_v16, %v841_v18  ;;  %v19363_v16 = vcombine.low %v19336_v20, %v19339_v45 }
 0x215   : > { %6893 = vmatprep.subr.bf16.mxu0 %v15980_v47  ;;  %v16019_v47 = vcombine.low %v1340_v3, %v1344_v4  ;;  %v16028_v42 = vcombine.high %v1348_v13, %v1352_v15  ;;  %v362_v4 = vld [vmem:[#allocation6 + $0x30] sm:$0xff] }
 0x216   : > { %7066 = vmatpush1.bf16.msra.mxu1 %v15469_v31  ;;  %v1356_v31 = vld [vmem:[#allocation6 + $0x1f40] sm:$0xff] }
 0x217   : > { %7067 = vmatprep.subr.bf16.mxu1 %v15478_v34  ;;  %v845_v34 = vld [vmem:[#allocation6 + $0xf48] sm:$0xff] }
 0x218   : > { %6894 = vmatpush1.bf16.msra.mxu0 %v15979_v62  ;;  %v1360_v62 = vld [vmem:[#allocation6 + $0x1f60] sm:$0xff]  ;;  %v15526_v38 = vcombine.high %v845_v34, %v849_v44  ;;  %v15525_v51 = vcombine.low %v845_v34, %v849_v44  ;;  %v378_v34 = vld [vmem:[#allocation6 + $0xb0] sm:$0xff]  ;;  %v893_v44 = vld [vmem:[#allocation6 + $0x10c8] sm:$0xff] }
 0x219   : > { %6895 = vmatprep.subr.bf16.mxu0 %v15988_v37  ;;  %v16027_v37 = vcombine.low %v1348_v13, %v1352_v15  ;;  %v16036_v43 = vcombine.high %v1356_v31, %v1360_v62  ;;  %v370_v15 = vld [vmem:[#allocation6 + $0x70] sm:$0xff] }
 0x21a   : > { %7068 = vmatpush1.bf16.msra.mxu1 %v15477_v39  ;;  %v1364_v39 = vld [vmem:[#allocation6 + $0x1f80] sm:$0xff] }
 0x21b   : > { %7069 = vmatprep.subr.bf16.mxu1 %v15486_v41  ;;  %v853_v41 = vld [vmem:[#allocation6 + $0xf88] sm:$0xff] }
 0x21c   : > { %6896 = vmatpush1.bf16.msra.mxu0 %v15987_v40  ;;  %v1368_v40 = vld [vmem:[#allocation6 + $0x1fa0] sm:$0xff]  ;;  %v15534_v55 = vcombine.high %v853_v41, %v857_v46  ;;  %v15533_v12 = vcombine.low %v853_v41, %v857_v46  ;;  %v901_v46 = vld [vmem:[#allocation6 + $0x1108] sm:$0xff] }
 0x21d   : > { %6897 = vmatprep.subr.bf16.mxu0 %v15996_v52  ;;  %v16035_v52 = vcombine.low %v1356_v31, %v1360_v62  ;;  %v16044_v61 = vcombine.high %v1364_v39, %v1368_v40  ;;  %v374_v31 = vld [vmem:[#allocation6 + $0x90] sm:$0xff] }
 0x21e   : > { %7070 = vmatpush1.bf16.msra.mxu1 %v15485_v56  ;;  %v1372_v56 = vld [vmem:[#allocation6 + $0x1fc0] sm:$0xff]  ;;  %v15055_v41 = vcombine.low %v374_v31, %v378_v34 }
 0x21f   : > { %7071 = vmatprep.subr.bf16.mxu1 %v15494_v60  ;;  %v861_v60 = vld [vmem:[#allocation6 + $0xfc8] sm:$0xff] }
 0x220   : > { %6898 = vmatpush1.bf16.msra.mxu0 %v15995_v57  ;;  %v1376_v57 = vld [vmem:[#allocation6 + $0x1fe0] sm:$0xff]  ;;  %v15542_v28 = vcombine.high %v861_v60, %v865_v10  ;;  %v15541_v5 = vcombine.low %v861_v60, %v865_v10  ;;  %v909_v10 = vld [vmem:[#allocation6 + $0x1148] sm:$0xff] }
 0x221   : > { %6899 = vmatprep.subr.bf16.mxu0 %v16004_v27  ;;  %v16043_v27 = vcombine.low %v1364_v39, %v1368_v40  ;;  %v16052_v3 = vcombine.high %v1372_v56, %v1376_v57  ;;  %v386_v39 = vld [vmem:[#allocation6 + $0xf0] sm:$0xff] }
 0x222   : > { %7072 = vmatpush1.bf16.msra.mxu1 %v15493_v63  ;;  %v869_v63 = vld [vmem:[#allocation6 + $0x1008] sm:$0xff] }
 0x223   : > { %7073 = vmatprep.subr.bf16.mxu1 %v15502_v2  ;;  %v358_v2 = vld [vmem:[#allocation6 + $0x10] sm:$0xff] }
 0x224   : > { %6900 = vmatpush1.bf16.msra.mxu0 %v16003_v1  ;;  %v873_v1 = vld [vmem:[#allocation6 + $0x1028] sm:$0xff]  ;;  %v15040_v13 = vcombine.high %v358_v2, %v362_v4  ;;  %v15039_v18 = vcombine.low %v358_v2, %v362_v4 }
 0x225   : > { %6901 = vmatprep.subr.bf16.mxu0 %v16012_v6  ;;  %v16051_v6 = vcombine.low %v1372_v56, %v1376_v57  ;;  %v15550_v7 = vcombine.high %v869_v63, %v873_v1  ;;  %v394_v56 = vld [vmem:[#allocation6 + $0x130] sm:$0xff]  ;;  %v917_v4 = vld [vmem:[#allocation6 + $0x1188] sm:$0xff] }
 0x226   : > { %7074 = vmatpush1.bf16.msra.mxu1 %v15501_v8  ;;  %v877_v8 = vld [vmem:[#allocation6 + $0x1048] sm:$0xff] }
 0x227   : > { %7075 = vmatprep.subr.bf16.mxu1 %v15510_v11  ;;  %v366_v11 = vld [vmem:[#allocation6 + $0x50] sm:$0xff] }
 0x228   : > { %6902 = vmatpush1.bf16.msra.mxu0 %v16011_v9  ;;  %v881_v9 = vld [vmem:[#allocation6 + $0x1068] sm:$0xff]  ;;  %v15048_v62 = vcombine.high %v366_v11, %v370_v15  ;;  %v15047_v20 = vcombine.low %v366_v11, %v370_v15 }
 0x229   : > { %6903 = vmatprep.subr.bf16.mxu0 %v16020_v17  ;;  %v15549_v17 = vcombine.low %v869_v63, %v873_v1  ;;  %v402_v63 = vld [vmem:[#allocation6 + $0x170] sm:$0xff]  ;;  %v925_v15 = vld [vmem:[#allocation6 + $0x11c8] sm:$0xff] }
 0x22a   : > { %7076 = vmatpush1.bf16.msra.mxu1 %v15509_v19  ;;  %v15558_v19 = vcombine.high %v877_v8, %v881_v9 }
 0x22b   : > { %7077 = vmatprep.subr.bf16.mxu1 %v15518_v53  ;;  %v889_v53 = vld [vmem:[#allocation6 + $0x10a8] sm:$0xff] }
 0x22c   : > { %6904 = vmatpush1.bf16.msra.mxu0 %v16019_v47  ;;  %v885_v47 = vld [vmem:[#allocation6 + $0x1088] sm:$0xff] }
 0x22d   : > { %6905 = vmatprep.subr.bf16.mxu0 %v16028_v42  ;;  %v15557_v42 = vcombine.low %v877_v8, %v881_v9  ;;  %v15566_v45 = vcombine.high %v885_v47, %v889_v53  ;;  %v15565_v40 = vcombine.low %v885_v47, %v889_v53  ;;  %v410_v8 = vld [vmem:[#allocation6 + $0x1b0] sm:$0xff] }
 0x22e   : > { %7078 = vmatpush1.bf16.msra.mxu1 %v15517_v36  ;;  %v897_v36 = vld [vmem:[#allocation6 + $0x10e8] sm:$0xff]  ;;  %v418_v47 = vld [vmem:[#allocation6 + $0x1f0] sm:$0xff] }
 0x22f   : > { %7079 = vmatprep.subr.bf16.mxu1 %v15526_v38  ;;  %v15056_v38 = vcombine.high %v374_v31, %v378_v34  ;;  %v15573_v57 = vcombine.low %v893_v44, %v897_v36  ;;  %v933_v34 = vld [vmem:[#allocation6 + $0x1208] sm:$0xff] }
 0x230   : > { %6906 = vmatpush1.bf16.msra.mxu0 %v16027_v37  ;;  %v382_v37 = vld [vmem:[#allocation6 + $0xd0] sm:$0xff] }
 0x231   : > { %6907 = vmatprep.subr.bf16.mxu0 %v16036_v43  ;;  %v15574_v43 = vcombine.high %v893_v44, %v897_v36  ;;  %v15063_v60 = vcombine.low %v382_v37, %v386_v39  ;;  %v426_v44 = vld [vmem:[#allocation6 + $0x230] sm:$0xff] }
 0x232   : > { %7080 = vmatpush1.bf16.msra.mxu1 %v15525_v51  ;;  %v905_v51 = vld [vmem:[#allocation6 + $0x1128] sm:$0xff] }
 0x233   : > { %7081 = vmatprep.subr.bf16.mxu1 %v15534_v55  ;;  %v15064_v55 = vcombine.high %v382_v37, %v386_v39  ;;  %v15581_v1 = vcombine.low %v901_v46, %v905_v51  ;;  %v941_v39 = vld [vmem:[#allocation6 + $0x1248] sm:$0xff] }
 0x234   : > { %6908 = vmatpush1.bf16.msra.mxu0 %v16035_v52  ;;  %v390_v52 = vld [vmem:[#allocation6 + $0x110] sm:$0xff] }
 0x235   : > { %6909 = vmatprep.subr.bf16.mxu0 %v16044_v61  ;;  %v15582_v61 = vcombine.high %v901_v46, %v905_v51  ;;  %v15071_v2 = vcombine.low %v390_v52, %v394_v56  ;;  %v434_v46 = vld [vmem:[#allocation6 + $0x270] sm:$0xff] }
 0x236   : > { %7082 = vmatpush1.bf16.msra.mxu1 %v15533_v12  ;;  %v913_v12 = vld [vmem:[#allocation6 + $0x1168] sm:$0xff] }
 0x237   : > { %7083 = vmatprep.subr.bf16.mxu1 %v15542_v28  ;;  %v15072_v28 = vcombine.high %v390_v52, %v394_v56  ;;  %v15589_v9 = vcombine.low %v909_v10, %v913_v12  ;;  %v949_v56 = vld [vmem:[#allocation6 + $0x1288] sm:$0xff] }
 0x238   : > { %6910 = vmatpush1.bf16.msra.mxu0 %v16043_v27  ;;  %v398_v27 = vld [vmem:[#allocation6 + $0x150] sm:$0xff] }
 0x239   : > { %6911 = vmatprep.subr.bf16.mxu0 %v16052_v3  ;;  %v15590_v3 = vcombine.high %v909_v10, %v913_v12  ;;  %v15079_v11 = vcombine.low %v398_v27, %v402_v63  ;;  %v442_v10 = vld [vmem:[#allocation6 + $0x2b0] sm:$0xff] }
 0x23a   : > { %7084 = vmatpush1.bf16.msra.mxu1 %v15541_v5  ;;  %v921_v5 = vld [vmem:[#allocation6 + $0x11a8] sm:$0xff] }
 0x23b   : > { %7096 = vmatprep.subr.bf16.mxu1 %v15550_v7  ;;  %v15080_v7 = vcombine.high %v398_v27, %v402_v63  ;;  %v15597_v53 = vcombine.low %v917_v4, %v921_v5  ;;  %v957_v63 = vld [vmem:[#allocation6 + $0x12c8] sm:$0xff] }
 0x23c   : > { %6912 = vmatpush1.bf16.msra.mxu0 %v16051_v6  ;;  %v406_v6 = vld [vmem:[#allocation6 + $0x190] sm:$0xff] }
 0x23d   : > { %7268 = vmatprep.subr.bf16.mxu0 %v15040_v13  ;;  %7086 = vmatmul.mubr.bf16.vlgmr.msra.gmra.mrb[4].mxu1 %v19289_v50  ;;  %v15598_v13 = vcombine.high %v917_v4, %v921_v5  ;;  %v15087_v31 = vcombine.low %v406_v6, %v410_v8  ;;  %v450_v4 = vld [vmem:[#allocation6 + $0x2f0] sm:$0xff] }
 0x23e   : > { %7097 = vmatpush1.bf16.msra.mxu1 %v15549_v17  ;;  %7128 = vmatprep.mubr.bf16.mxu1 %v19293_v23  ;;  %v929_v17 = vld [vmem:[#allocation6 + $0x11e8] sm:$0xff] }
 0x23f   : > { %6914 = vmatmul.mubr.bf16.vlgmr.msra.gmra.mrb[0].mxu0 %v19363_v16  ;;  %7098 = vmatprep.subr.bf16.mxu1 %v15558_v19  ;;  %v15088_v19 = vcombine.high %v406_v6, %v410_v8  ;;  %v15605_v36 = vcombine.low %v925_v15, %v929_v17  ;;  %v965_v8 = vld [vmem:[#allocation6 + $0x1308] sm:$0xff] }
 0x240   : > { %7269 = vmatpush1.bf16.msra.mxu0 %v15039_v18  ;;  %7300 = vmatprep.mubr.bf16.mxu0 %v19231_v58  ;;  %v414_v18 = vld [vmem:[#allocation6 + $0x1d0] sm:$0xff] }
 0x241   : > { %7270 = vmatprep.subr.bf16.mxu0 %v15048_v62  ;;  %v15606_v62 = vcombine.high %v925_v15, %v929_v17  ;;  %v15095_v37 = vcombine.low %v414_v18, %v418_v47  ;;  %v458_v15 = vld [vmem:[#allocation6 + $0x330] sm:$0xff] }
 0x242   : > { %7099 = vmatpush1.bf16.msra.mxu1 %v15557_v42  ;;  %v937_v42 = vld [vmem:[#allocation6 + $0x1228] sm:$0xff] }
 0x243   : > { %7100 = vmatprep.subr.bf16.mxu1 %v15566_v45  ;;  %v15096_v45 = vcombine.high %v414_v18, %v418_v47  ;;  %v15613_v51 = vcombine.low %v933_v34, %v937_v42  ;;  %v973_v47 = vld [vmem:[#allocation6 + $0x1348] sm:$0xff] }
 0x244   : > { %7271 = vmatpush1.bf16.msra.mxu0 %v15047_v20  ;;  %v422_v20 = vld [vmem:[#allocation6 + $0x210] sm:$0xff] }
 0x245   : > { %7272 = vmatprep.subr.bf16.mxu0 %v15056_v38  ;;  %v15614_v38 = vcombine.high %v933_v34, %v937_v42  ;;  %v15103_v52 = vcombine.low %v422_v20, %v426_v44  ;;  %v466_v34 = vld [vmem:[#allocation6 + $0x370] sm:$0xff] }
 0x246   : > { %7101 = vmatpush1.bf16.msra.mxu1 %v15565_v40  ;;  %v945_v40 = vld [vmem:[#allocation6 + $0x1268] sm:$0xff] }
 0x247   : > { %7102 = vmatprep.subr.bf16.mxu1 %v15574_v43  ;;  %v15104_v43 = vcombine.high %v422_v20, %v426_v44  ;;  %v15621_v12 = vcombine.low %v941_v39, %v945_v40  ;;  %v981_v44 = vld [vmem:[#allocation6 + $0x1388] sm:$0xff] }
 0x248   : > { %7273 = vmatpush1.bf16.msra.mxu0 %v15055_v41  ;;  %v430_v41 = vld [vmem:[#allocation6 + $0x250] sm:$0xff] }
 0x249   : > { %7274 = vmatprep.subr.bf16.mxu0 %v15064_v55  ;;  %v15622_v55 = vcombine.high %v941_v39, %v945_v40  ;;  %v15111_v27 = vcombine.low %v430_v41, %v434_v46  ;;  %v474_v39 = vld [vmem:[#allocation6 + $0x3b0] sm:$0xff] }
 0x24a   : > { %7103 = vmatpush1.bf16.msra.mxu1 %v15573_v57  ;;  %v953_v57 = vld [vmem:[#allocation6 + $0x12a8] sm:$0xff] }
 0x24b   : > { %7104 = vmatprep.subr.bf16.mxu1 %v15582_v61  ;;  %v15112_v61 = vcombine.high %v430_v41, %v434_v46  ;;  %v15629_v5 = vcombine.low %v949_v56, %v953_v57  ;;  %v989_v46 = vld [vmem:[#allocation6 + $0x13c8] sm:$0xff] }
 0x24c   : > { %7275 = vmatpush1.bf16.msra.mxu0 %v15063_v60  ;;  %v438_v60 = vld [vmem:[#allocation6 + $0x290] sm:$0xff] }
 0x24d   : > { %7276 = vmatprep.subr.bf16.mxu0 %v15072_v28  ;;  %v15630_v28 = vcombine.high %v949_v56, %v953_v57  ;;  %v15119_v6 = vcombine.low %v438_v60, %v442_v10  ;;  %v482_v56 = vld [vmem:[#allocation6 + $0x3f0] sm:$0xff] }
 0x24e   : > { %7105 = vmatpush1.bf16.msra.mxu1 %v15581_v1  ;;  %v961_v1 = vld [vmem:[#allocation6 + $0x12e8] sm:$0xff] }
 0x24f   : > { %7106 = vmatprep.subr.bf16.mxu1 %v15590_v3  ;;  %v15120_v3 = vcombine.high %v438_v60, %v442_v10  ;;  %v15637_v17 = vcombine.low %v957_v63, %v961_v1  ;;  %v997_v10 = vld [vmem:[#allocation6 + $0x1408] sm:$0xff] }
 0x250   : > { %7277 = vmatpush1.bf16.msra.mxu0 %v15071_v2  ;;  %v446_v2 = vld [vmem:[#allocation6 + $0x2d0] sm:$0xff] }
 0x251   : > { %7278 = vmatprep.subr.bf16.mxu0 %v15080_v7  ;;  %v15638_v7 = vcombine.high %v957_v63, %v961_v1  ;;  %v15127_v18 = vcombine.low %v446_v2, %v450_v4  ;;  %v490_v63 = vld [vmem:[#allocation6 + $0x430] sm:$0xff] }
 0x252   : > { %7107 = vmatpush1.bf16.msra.mxu1 %v15589_v9  ;;  %v969_v9 = vld [vmem:[#allocation6 + $0x1328] sm:$0xff] }
 0x253   : > { %7108 = vmatprep.subr.bf16.mxu1 %v15598_v13  ;;  %v15128_v13 = vcombine.high %v446_v2, %v450_v4  ;;  %v15645_v42 = vcombine.low %v965_v8, %v969_v9  ;;  %v1005_v4 = vld [vmem:[#allocation6 + $0x1448] sm:$0xff] }
 0x254   : > { %7279 = vmatpush1.bf16.msra.mxu0 %v15079_v11  ;;  %v454_v11 = vld [vmem:[#allocation6 + $0x310] sm:$0xff] }
 0x255   : > { %7280 = vmatprep.subr.bf16.mxu0 %v15088_v19  ;;  %v15646_v19 = vcombine.high %v965_v8, %v969_v9  ;;  %v15135_v20 = vcombine.low %v454_v11, %v458_v15  ;;  %v498_v8 = vld [vmem:[#allocation6 + $0x470] sm:$0xff] }
 0x256   : > { %7109 = vmatpush1.bf16.msra.mxu1 %v15597_v53  ;;  %v977_v53 = vld [vmem:[#allocation6 + $0x1368] sm:$0xff] }
 0x257   : > { %7110 = vmatprep.subr.bf16.mxu1 %v15606_v62  ;;  %v15136_v62 = vcombine.high %v454_v11, %v458_v15  ;;  %v15653_v40 = vcombine.low %v973_v47, %v977_v53  ;;  %v1013_v15 = vld [vmem:[#allocation6 + $0x1488] sm:$0xff] }
 0x258   : > { %7281 = vmatpush1.bf16.msra.mxu0 %v15087_v31  ;;  %v462_v31 = vld [vmem:[#allocation6 + $0x350] sm:$0xff] }
 0x259   : > { %7282 = vmatprep.subr.bf16.mxu0 %v15096_v45  ;;  %v15654_v45 = vcombine.high %v973_v47, %v977_v53  ;;  %v15143_v41 = vcombine.low %v462_v31, %v466_v34  ;;  %v506_v47 = vld [vmem:[#allocation6 + $0x4b0] sm:$0xff] }
 0x25a   : > { %7111 = vmatpush1.bf16.msra.mxu1 %v15605_v36  ;;  %v985_v36 = vld [vmem:[#allocation6 + $0x13a8] sm:$0xff] }
 0x25b   : > { %7112 = vmatprep.subr.bf16.mxu1 %v15614_v38  ;;  %v15144_v38 = vcombine.high %v462_v31, %v466_v34  ;;  %v15661_v57 = vcombine.low %v981_v44, %v985_v36  ;;  %v1021_v34 = vld [vmem:[#allocation6 + $0x14c8] sm:$0xff] }
 0x25c   : > { %7283 = vmatpush1.bf16.msra.mxu0 %v15095_v37  ;;  %v470_v37 = vld [vmem:[#allocation6 + $0x390] sm:$0xff] }
 0x25d   : > { %7284 = vmatprep.subr.bf16.mxu0 %v15104_v43  ;;  %v15662_v43 = vcombine.high %v981_v44, %v985_v36  ;;  %v15151_v60 = vcombine.low %v470_v37, %v474_v39  ;;  %v514_v44 = vld [vmem:[#allocation6 + $0x4f0] sm:$0xff] }
 0x25e   : > { %7113 = vmatpush1.bf16.msra.mxu1 %v15613_v51  ;;  %v993_v51 = vld [vmem:[#allocation6 + $0x13e8] sm:$0xff] }
 0x25f   : > { %7114 = vmatprep.subr.bf16.mxu1 %v15622_v55  ;;  %v15152_v55 = vcombine.high %v470_v37, %v474_v39  ;;  %v15669_v1 = vcombine.low %v989_v46, %v993_v51  ;;  %v1029_v39 = vld [vmem:[#allocation6 + $0x1508] sm:$0xff] }
 0x260   : > { %7285 = vmatpush1.bf16.msra.mxu0 %v15103_v52  ;;  %v478_v52 = vld [vmem:[#allocation6 + $0x3d0] sm:$0xff] }
 0x261   : > { %7286 = vmatprep.subr.bf16.mxu0 %v15112_v61  ;;  %v15670_v61 = vcombine.high %v989_v46, %v993_v51  ;;  %v15159_v2 = vcombine.low %v478_v52, %v482_v56  ;;  %v522_v46 = vld [vmem:[#allocation6 + $0x530] sm:$0xff] }
 0x262   : > { %7115 = vmatpush1.bf16.msra.mxu1 %v15621_v12  ;;  %v1001_v12 = vld [vmem:[#allocation6 + $0x1428] sm:$0xff] }
 0x263   : > { %7116 = vmatprep.subr.bf16.mxu1 %v15630_v28  ;;  %v15160_v28 = vcombine.high %v478_v52, %v482_v56  ;;  %v15677_v9 = vcombine.low %v997_v10, %v1001_v12  ;;  %v1037_v56 = vld [vmem:[#allocation6 + $0x1548] sm:$0xff] }
 0x264   : > { %7287 = vmatpush1.bf16.msra.mxu0 %v15111_v27  ;;  %v486_v27 = vld [vmem:[#allocation6 + $0x410] sm:$0xff] }
 0x265   : > { %7288 = vmatprep.subr.bf16.mxu0 %v15120_v3  ;;  %v15678_v3 = vcombine.high %v997_v10, %v1001_v12  ;;  %v15167_v11 = vcombine.low %v486_v27, %v490_v63  ;;  %v530_v10 = vld [vmem:[#allocation6 + $0x570] sm:$0xff] }
 0x266   : > { %7117 = vmatpush1.bf16.msra.mxu1 %v15629_v5  ;;  %v1009_v5 = vld [vmem:[#allocation6 + $0x1468] sm:$0xff] }
 0x267   : > { %7118 = vmatprep.subr.bf16.mxu1 %v15638_v7  ;;  %v15168_v7 = vcombine.high %v486_v27, %v490_v63  ;;  %v15685_v53 = vcombine.low %v1005_v4, %v1009_v5  ;;  %v1045_v63 = vld [vmem:[#allocation6 + $0x1588] sm:$0xff] }
 0x268   : > { %7289 = vmatpush1.bf16.msra.mxu0 %v15119_v6  ;;  %v494_v6 = vld [vmem:[#allocation6 + $0x450] sm:$0xff] }
 0x269   : > { %7290 = vmatprep.subr.bf16.mxu0 %v15128_v13  ;;  %v15686_v13 = vcombine.high %v1005_v4, %v1009_v5  ;;  %v15175_v31 = vcombine.low %v494_v6, %v498_v8  ;;  %v538_v4 = vld [vmem:[#allocation6 + $0x5b0] sm:$0xff] }
 0x26a   : > { %7119 = vmatpush1.bf16.msra.mxu1 %v15637_v17  ;;  %v1017_v17 = vld [vmem:[#allocation6 + $0x14a8] sm:$0xff] }
 0x26b   : > { %7120 = vmatprep.subr.bf16.mxu1 %v15646_v19  ;;  %v15176_v19 = vcombine.high %v494_v6, %v498_v8  ;;  %v15693_v36 = vcombine.low %v1013_v15, %v1017_v17  ;;  %v1053_v8 = vld [vmem:[#allocation6 + $0x15c8] sm:$0xff] }
 0x26c   : > { %7291 = vmatpush1.bf16.msra.mxu0 %v15127_v18  ;;  %v502_v18 = vld [vmem:[#allocation6 + $0x490] sm:$0xff] }
 0x26d   : > { %7292 = vmatprep.subr.bf16.mxu0 %v15136_v62  ;;  %v15694_v62 = vcombine.high %v1013_v15, %v1017_v17  ;;  %v15183_v37 = vcombine.low %v502_v18, %v506_v47  ;;  %v546_v15 = vld [vmem:[#allocation6 + $0x5f0] sm:$0xff] }
 0x26e   : > { %7121 = vmatpush1.bf16.msra.mxu1 %v15645_v42  ;;  %v1025_v42 = vld [vmem:[#allocation6 + $0x14e8] sm:$0xff] }
 0x26f   : > { %7122 = vmatprep.subr.bf16.mxu1 %v15654_v45  ;;  %v15184_v45 = vcombine.high %v502_v18, %v506_v47  ;;  %v15701_v51 = vcombine.low %v1021_v34, %v1025_v42  ;;  %v1061_v47 = vld [vmem:[#allocation6 + $0x1608] sm:$0xff] }
 0x270   : > { %7293 = vmatpush1.bf16.msra.mxu0 %v15135_v20  ;;  %v510_v20 = vld [vmem:[#allocation6 + $0x4d0] sm:$0xff] }
 0x271   : > { %7294 = vmatprep.subr.bf16.mxu0 %v15144_v38  ;;  %v15702_v38 = vcombine.high %v1021_v34, %v1025_v42  ;;  %v15191_v52 = vcombine.low %v510_v20, %v514_v44  ;;  %v554_v34 = vld [vmem:[#allocation6 + $0x630] sm:$0xff] }
 0x272   : > { %7123 = vmatpush1.bf16.msra.mxu1 %v15653_v40  ;;  %v1033_v40 = vld [vmem:[#allocation6 + $0x1528] sm:$0xff] }
 0x273   : > { %7124 = vmatprep.subr.bf16.mxu1 %v15662_v43  ;;  %v15192_v43 = vcombine.high %v510_v20, %v514_v44  ;;  %v15709_v12 = vcombine.low %v1029_v39, %v1033_v40  ;;  %v1069_v44 = vld [vmem:[#allocation6 + $0x1648] sm:$0xff] }
 0x274   : > { %7295 = vmatpush1.bf16.msra.mxu0 %v15143_v41  ;;  %v518_v41 = vld [vmem:[#allocation6 + $0x510] sm:$0xff] }
 0x275   : > { %7296 = vmatprep.subr.bf16.mxu0 %v15152_v55  ;;  %v15710_v55 = vcombine.high %v1029_v39, %v1033_v40  ;;  %v15199_v27 = vcombine.low %v518_v41, %v522_v46  ;;  %v562_v39 = vld [vmem:[#allocation6 + $0x670] sm:$0xff] }
 0x276   : > { %7125 = vmatpush1.bf16.msra.mxu1 %v15661_v57  ;;  %v1041_v57 = vld [vmem:[#allocation6 + $0x1568] sm:$0xff] }
 0x277   : > { %7126 = vmatprep.subr.bf16.mxu1 %v15670_v61  ;;  %v15200_v61 = vcombine.high %v518_v41, %v522_v46  ;;  %v15717_v5 = vcombine.low %v1037_v56, %v1041_v57  ;;  %v1077_v46 = vld [vmem:[#allocation6 + $0x1688] sm:$0xff] }
 0x278   : > { %7297 = vmatpush1.bf16.msra.mxu0 %v15151_v60  ;;  %v526_v60 = vld [vmem:[#allocation6 + $0x550] sm:$0xff] }
 0x279   : > { %7298 = vmatprep.subr.bf16.mxu0 %v15160_v28  ;;  %v15718_v28 = vcombine.high %v1037_v56, %v1041_v57  ;;  %v15207_v6 = vcombine.low %v526_v60, %v530_v10  ;;  %v570_v56 = vld [vmem:[#allocation6 + $0x6b0] sm:$0xff] }
 0x27a   : > { %7127 = vmatpush1.bf16.msra.mxu1 %v15669_v1  ;;  %v1049_v1 = vld [vmem:[#allocation6 + $0x15a8] sm:$0xff] }
 0x27b   : > { %7139 = vmatprep.subr.bf16.mxu1 %v15678_v3  ;;  %v15208_v3 = vcombine.high %v526_v60, %v530_v10  ;;  %v15725_v17 = vcombine.low %v1045_v63, %v1049_v1  ;;  %v1085_v10 = vld [vmem:[#allocation6 + $0x16c8] sm:$0xff] }
 0x27c   : > { %7299 = vmatpush1.bf16.msra.mxu0 %v15159_v2  ;;  %v534_v2 = vld [vmem:[#allocation6 + $0x590] sm:$0xff] }
 0x27d   : > { %7311 = vmatprep.subr.bf16.mxu0 %v15168_v7  ;;  %7129 = vmatmul.mubr.bf16.vlgmr.msra.gmra.mrb[4].mxu1 %v19307_v14  ;;  %v15726_v7 = vcombine.high %v1045_v63, %v1049_v1  ;;  %v15215_v18 = vcombine.low %v534_v2, %v538_v4  ;;  %v578_v63 = vld [vmem:[#allocation6 + $0x6f0] sm:$0xff] }
 0x27e   : > { %7140 = vmatpush1.bf16.msra.mxu1 %v15677_v9  ;;  %7171 = vmatprep.mubr.bf16.mxu1 %v19311_v25  ;;  %v1057_v9 = vld [vmem:[#allocation6 + $0x15e8] sm:$0xff] }
 0x27f   : > { %7301 = vmatmul.mubr.bf16.vlgmr.msra.gmra.mrb[4].mxu0 %v19247_v21  ;;  %7141 = vmatprep.subr.bf16.mxu1 %v15686_v13  ;;  %v542_v13 = vld [vmem:[#allocation6 + $0x5d0] sm:$0xff]  ;;  %v15733_v42 = vcombine.low %v1053_v8, %v1057_v9 }
 0x280   : > { %7312 = vmatpush1.bf16.msra.mxu0 %v15167_v11  ;;  %7343 = vmatprep.mubr.bf16.mxu0 %v19267_v32  ;;  %v15216_v11 = vcombine.high %v534_v2, %v538_v4  ;;  %v15223_v20 = vcombine.low %v542_v13, %v546_v15  ;;  %v1093_v4 = vld [vmem:[#allocation6 + $0x1708] sm:$0xff] }
 0x281   : > { %7313 = vmatprep.subr.bf16.mxu0 %v15176_v19  ;;  %v15734_v19 = vcombine.high %v1053_v8, %v1057_v9  ;;  %v586_v8 = vld [vmem:[#allocation6 + $0x730] sm:$0xff] }
 0x282   : > { %7142 = vmatpush1.bf16.msra.mxu1 %v15685_v53  ;;  %v1065_v53 = vld [vmem:[#allocation6 + $0x1628] sm:$0xff] }
 0x283   : > { %7143 = vmatprep.subr.bf16.mxu1 %v15694_v62  ;;  %v550_v62 = vld [vmem:[#allocation6 + $0x610] sm:$0xff]  ;;  %v15741_v40 = vcombine.low %v1061_v47, %v1065_v53 }
 0x284   : > { %7314 = vmatpush1.bf16.msra.mxu0 %v15175_v31  ;;  %v15224_v31 = vcombine.high %v542_v13, %v546_v15  ;;  %v15231_v41 = vcombine.low %v550_v62, %v554_v34  ;;  %v1101_v15 = vld [vmem:[#allocation6 + $0x1748] sm:$0xff] }
 0x285   : > { %7315 = vmatprep.subr.bf16.mxu0 %v15184_v45  ;;  %v15742_v45 = vcombine.high %v1061_v47, %v1065_v53  ;;  %v594_v47 = vld [vmem:[#allocation6 + $0x770] sm:$0xff] }
 0x286   : > { %7144 = vmatpush1.bf16.msra.mxu1 %v15693_v36  ;;  %v1073_v36 = vld [vmem:[#allocation6 + $0x1668] sm:$0xff] }
 0x287   : > { %7145 = vmatprep.subr.bf16.mxu1 %v15702_v38  ;;  %v15232_v38 = vcombine.high %v550_v62, %v554_v34  ;;  %v15749_v57 = vcombine.low %v1069_v44, %v1073_v36  ;;  %v1109_v34 = vld [vmem:[#allocation6 + $0x1788] sm:$0xff] }
 0x288   : > { %7316 = vmatpush1.bf16.msra.mxu0 %v15183_v37  ;;  %v558_v37 = vld [vmem:[#allocation6 + $0x650] sm:$0xff] }
 0x289   : > { %7317 = vmatprep.subr.bf16.mxu0 %v15192_v43  ;;  %v15750_v43 = vcombine.high %v1069_v44, %v1073_v36  ;;  %v15239_v60 = vcombine.low %v558_v37, %v562_v39  ;;  %v602_v44 = vld [vmem:[#allocation6 + $0x7b0] sm:$0xff] }
 0x28a   : > { %7146 = vmatpush1.bf16.msra.mxu1 %v15701_v51  ;;  %v1081_v51 = vld [vmem:[#allocation6 + $0x16a8] sm:$0xff] }
 0x28b   : > { %7147 = vmatprep.subr.bf16.mxu1 %v15710_v55  ;;  %v15240_v55 = vcombine.high %v558_v37, %v562_v39  ;;  %v15757_v1 = vcombine.low %v1077_v46, %v1081_v51  ;;  %v1117_v39 = vld [vmem:[#allocation6 + $0x17c8] sm:$0xff] }
 0x28c   : > { %7318 = vmatpush1.bf16.msra.mxu0 %v15191_v52  ;;  %v566_v52 = vld [vmem:[#allocation6 + $0x690] sm:$0xff] }
 0x28d   : > { %7319 = vmatprep.subr.bf16.mxu0 %v15200_v61  ;;  %v15758_v61 = vcombine.high %v1077_v46, %v1081_v51  ;;  %v15247_v2 = vcombine.low %v566_v52, %v570_v56  ;;  %v610_v46 = vld [vmem:[#allocation6 + $0x7f0] sm:$0xff] }
 0x28e   : > { %7148 = vmatpush1.bf16.msra.mxu1 %v15709_v12  ;;  %v1089_v12 = vld [vmem:[#allocation6 + $0x16e8] sm:$0xff] }
 0x28f   : > { %7149 = vmatprep.subr.bf16.mxu1 %v15718_v28  ;;  %v15248_v28 = vcombine.high %v566_v52, %v570_v56  ;;  %v15765_v9 = vcombine.low %v1085_v10, %v1089_v12  ;;  %v1125_v56 = vld [vmem:[#allocation6 + $0x1808] sm:$0xff] }
 0x290   : > { %7320 = vmatpush1.bf16.msra.mxu0 %v15199_v27  ;;  %v574_v27 = vld [vmem:[#allocation6 + $0x6d0] sm:$0xff] }
 0x291   : > { %7321 = vmatprep.subr.bf16.mxu0 %v15208_v3  ;;  %v15766_v3 = vcombine.high %v1085_v10, %v1089_v12  ;;  %v618_v10 = vld [vmem:[#allocation6 + $0x830] sm:$0xff] }
 0x292   : > { %7150 = vmatpush1.bf16.msra.mxu1 %v15717_v5  ;;  %v1097_v5 = vld [vmem:[#allocation6 + $0x1728] sm:$0xff] }
 0x293   : > { %7151 = vmatprep.subr.bf16.mxu1 %v15726_v7  ;;  %v15256_v7 = vcombine.high %v574_v27, %v578_v63  ;;  %v15774_v13 = vcombine.high %v1093_v4, %v1097_v5  ;;  %v15773_v53 = vcombine.low %v1093_v4, %v1097_v5  ;;  %v626_v4 = vld [vmem:[#allocation6 + $0x870] sm:$0xff] }
 0x294   : > { %7322 = vmatpush1.bf16.msra.mxu0 %v15207_v6  ;;  %v582_v6 = vld [vmem:[#allocation6 + $0x710] sm:$0xff] }
 0x295   : > { %7323 = vmatprep.subr.bf16.mxu0 %v15216_v11  ;;  %v15255_v11 = vcombine.low %v574_v27, %v578_v63  ;;  %v1133_v63 = vld [vmem:[#allocation6 + $0x1848] sm:$0xff] }
 0x296   : > { %7152 = vmatpush1.bf16.msra.mxu1 %v15725_v17  ;;  %v1105_v17 = vld [vmem:[#allocation6 + $0x1768] sm:$0xff] }
 0x297   : > { %7153 = vmatprep.subr.bf16.mxu1 %v15734_v19  ;;  %v15264_v19 = vcombine.high %v582_v6, %v586_v8  ;;  %v15782_v62 = vcombine.high %v1101_v15, %v1105_v17  ;;  %v15781_v36 = vcombine.low %v1101_v15, %v1105_v17  ;;  %v634_v15 = vld [vmem:[#allocation6 + $0x8b0] sm:$0xff] }
 0x298   : > { %7324 = vmatpush1.bf16.msra.mxu0 %v15215_v18  ;;  %v590_v18 = vld [vmem:[#allocation6 + $0x750] sm:$0xff] }
 0x299   : > { %7325 = vmatprep.subr.bf16.mxu0 %v15224_v31  ;;  %v15263_v31 = vcombine.low %v582_v6, %v586_v8  ;;  %v15271_v37 = vcombine.low %v590_v18, %v594_v47  ;;  %v1141_v8 = vld [vmem:[#allocation6 + $0x1888] sm:$0xff] }
 0x29a   : > { %7154 = vmatpush1.bf16.msra.mxu1 %v15733_v42  ;;  %v1113_v42 = vld [vmem:[#allocation6 + $0x17a8] sm:$0xff] }
 0x29b   : > { %7155 = vmatprep.subr.bf16.mxu1 %v15742_v45  ;;  %v15272_v45 = vcombine.high %v590_v18, %v594_v47  ;;  %v15789_v51 = vcombine.low %v1109_v34, %v1113_v42  ;;  %v1149_v47 = vld [vmem:[#allocation6 + $0x18c8] sm:$0xff] }
 0x29c   : > { %7326 = vmatpush1.bf16.msra.mxu0 %v15223_v20  ;;  %v598_v20 = vld [vmem:[#allocation6 + $0x790] sm:$0xff] }
 0x29d   : > { %7327 = vmatprep.subr.bf16.mxu0 %v15232_v38  ;;  %v15790_v38 = vcombine.high %v1109_v34, %v1113_v42  ;;  %v15279_v52 = vcombine.low %v598_v20, %v602_v44  ;;  %v642_v34 = vld [vmem:[#allocation6 + $0x8f0] sm:$0xff] }
 0x29e   : > { %7156 = vmatpush1.bf16.msra.mxu1 %v15741_v40  ;;  %v1121_v40 = vld [vmem:[#allocation6 + $0x17e8] sm:$0xff] }
 0x29f   : > { %7157 = vmatprep.subr.bf16.mxu1 %v15750_v43  ;;  %v15280_v43 = vcombine.high %v598_v20, %v602_v44  ;;  %v15797_v12 = vcombine.low %v1117_v39, %v1121_v40 }
 0x2a0   : > { %7328 = vmatpush1.bf16.msra.mxu0 %v15231_v41  ;;  %v606_v41 = vld [vmem:[#allocation6 + $0x7d0] sm:$0xff] }
 0x2a1   : > { %7329 = vmatprep.subr.bf16.mxu0 %v15240_v55  ;;  %v15798_v55 = vcombine.high %v1117_v39, %v1121_v40  ;;  %v15287_v27 = vcombine.low %v606_v41, %v610_v46  ;;  %v650_v39 = vld [vmem:[#allocation6 + $0x930] sm:$0xff] }
 0x2a2   : > { %7158 = vmatpush1.bf16.msra.mxu1 %v15749_v57  ;;  %v1129_v57 = vld [vmem:[#allocation6 + $0x1828] sm:$0xff] }
 0x2a3   : > { %7159 = vmatprep.subr.bf16.mxu1 %v15758_v61  ;;  %v15288_v61 = vcombine.high %v606_v41, %v610_v46  ;;  %v15805_v5 = vcombine.low %v1125_v56, %v1129_v57 }
 0x2a4   : > { %7330 = vmatpush1.bf16.msra.mxu0 %v15239_v60  ;;  %v614_v60 = vld [vmem:[#allocation6 + $0x810] sm:$0xff] }
 0x2a5   : > { %7331 = vmatprep.subr.bf16.mxu0 %v15248_v28  ;;  %v15806_v28 = vcombine.high %v1125_v56, %v1129_v57  ;;  %v15295_v6 = vcombine.low %v614_v60, %v618_v10  ;;  %v658_v56 = vld [vmem:[#allocation6 + $0x970] sm:$0xff] }
 0x2a6   : > { %7160 = vmatpush1.bf16.msra.mxu1 %v15757_v1  ;;  %v1137_v1 = vld [vmem:[#allocation6 + $0x1868] sm:$0xff] }
 0x2a7   : > { %7161 = vmatprep.subr.bf16.mxu1 %v15766_v3  ;;  %v15296_v3 = vcombine.high %v614_v60, %v618_v10  ;;  %v15813_v17 = vcombine.low %v1133_v63, %v1137_v1 }
 0x2a8   : > { %7332 = vmatpush1.bf16.msra.mxu0 %v15247_v2  ;;  %v622_v2 = vld [vmem:[#allocation6 + $0x850] sm:$0xff] }
 0x2a9   : > { %7333 = vmatprep.subr.bf16.mxu0 %v15256_v7  ;;  %v15814_v7 = vcombine.high %v1133_v63, %v1137_v1  ;;  %v15303_v18 = vcombine.low %v622_v2, %v626_v4  ;;  %v666_v63 = vld [vmem:[#allocation6 + $0x9b0] sm:$0xff] }
 0x2aa   : > { %7162 = vmatpush1.bf16.msra.mxu1 %v15765_v9  ;;  %v1145_v9 = vld [vmem:[#allocation6 + $0x18a8] sm:$0xff] }
 0x2ab   : > { %7163 = vmatprep.subr.bf16.mxu1 %v15774_v13  ;;  %v15304_v13 = vcombine.high %v622_v2, %v626_v4  ;;  %v15821_v42 = vcombine.low %v1141_v8, %v1145_v9 }
 0x2ac   : > { %7334 = vmatpush1.bf16.msra.mxu0 %v15255_v11  ;;  %v630_v11 = vld [vmem:[#allocation6 + $0x890] sm:$0xff] }
 0x2ad   : > { %7335 = vmatprep.subr.bf16.mxu0 %v15264_v19  ;;  %v15822_v19 = vcombine.high %v1141_v8, %v1145_v9  ;;  %v15311_v20 = vcombine.low %v630_v11, %v634_v15  ;;  %v674_v8 = vld [vmem:[#allocation6 + $0x9f0] sm:$0xff] }
 0x2ae   : > { %7164 = vmatpush1.bf16.msra.mxu1 %v15773_v53  ;;  %v1153_v53 = vld [vmem:[#allocation6 + $0x18e8] sm:$0xff] }
 0x2af   : > { %7165 = vmatprep.subr.bf16.mxu1 %v15782_v62  ;;  %v15312_v62 = vcombine.high %v630_v11, %v634_v15  ;;  %v15829_v40 = vcombine.low %v1149_v47, %v1153_v53 }
 0x2b0   : > { %7336 = vmatpush1.bf16.msra.mxu0 %v15263_v31  ;;  %v638_v31 = vld [vmem:[#allocation6 + $0x8d0] sm:$0xff] }
 0x2b1   : > { %7337 = vmatprep.subr.bf16.mxu0 %v15272_v45  ;;  %v15830_v45 = vcombine.high %v1149_v47, %v1153_v53  ;;  %v15320_v44 = vcombine.high %v638_v31, %v642_v34  ;;  %v15319_v41 = vcombine.low %v638_v31, %v642_v34  ;;  %v682_v47 = vld [vmem:[#allocation6 + $0xa30] sm:$0xff] }
 0x2b2   : > { %7166 = vmatpush1.bf16.msra.mxu1 %v15781_v36  ;;  %v1157_v36 = vld [vmem:[#allocation6 + $0x1908] sm:$0xff] }
 0x2b3   : > { %7167 = vmatprep.subr.bf16.mxu1 %v15790_v38  ;;  %v646_v38 = vld [vmem:[#allocation6 + $0x910] sm:$0xff] }
 0x2b4   : > { %7338 = vmatpush1.bf16.msra.mxu0 %v15271_v37  ;;  %v1161_v37 = vld [vmem:[#allocation6 + $0x1928] sm:$0xff]  ;;  %v15328_v46 = vcombine.high %v646_v38, %v650_v39  ;;  %v15327_v60 = vcombine.low %v646_v38, %v650_v39 }
 0x2b5   : > { %7339 = vmatprep.subr.bf16.mxu0 %v15280_v43  ;;  %v15838_v43 = vcombine.high %v1157_v36, %v1161_v37  ;;  %v15837_v57 = vcombine.low %v1157_v36, %v1161_v37 }
 0x2b6   : > { %7168 = vmatpush1.bf16.msra.mxu1 %v15789_v51  ;;  %v1165_v51 = vld [vmem:[#allocation6 + $0x1948] sm:$0xff] }
 0x2b7   : > { %7169 = vmatprep.subr.bf16.mxu1 %v15798_v55  ;;  %v654_v55 = vld [vmem:[#allocation6 + $0x950] sm:$0xff] }
 0x2b8   : > { %7340 = vmatpush1.bf16.msra.mxu0 %v15279_v52  ;;  %v1169_v52 = vld [vmem:[#allocation6 + $0x1968] sm:$0xff]  ;;  %v15336_v10 = vcombine.high %v654_v55, %v658_v56  ;;  %v15335_v2 = vcombine.low %v654_v55, %v658_v56 }
 0x2b9   : > { %7341 = vmatprep.subr.bf16.mxu0 %v15288_v61  ;;  %v15846_v61 = vcombine.high %v1165_v51, %v1169_v52  ;;  %v15845_v1 = vcombine.low %v1165_v51, %v1169_v52 }
 0x2ba   : > { %7170 = vmatpush1.bf16.msra.mxu1 %v15797_v12  ;;  %v1173_v12 = vld [vmem:[#allocation6 + $0x1988] sm:$0xff] }
 0x2bb   : > { %7182 = vmatprep.subr.bf16.mxu1 %v15806_v28  ;;  %v662_v28 = vld [vmem:[#allocation6 + $0x990] sm:$0xff] }
 0x2bc   : > { %7342 = vmatpush1.bf16.msra.mxu0 %v15287_v27  ;;  %v1177_v27 = vld [vmem:[#allocation6 + $0x19a8] sm:$0xff]  ;;  %v15344_v4 = vcombine.high %v662_v28, %v666_v63  ;;  %v15343_v11 = vcombine.low %v662_v28, %v666_v63 }
 0x2bd   : > { %7354 = vmatprep.subr.bf16.mxu0 %v15296_v3  ;;  %7172 = vmatmul.mubr.bf16.vlgmr.msra.gmra.mrb[4].mxu1 %v19325_v49  ;;  %v15854_v3 = vcombine.high %v1173_v12, %v1177_v27  ;;  %v15853_v9 = vcombine.low %v1173_v12, %v1177_v27 }
 0x2be   : > { %7183 = vmatpush1.bf16.msra.mxu1 %v15805_v5  ;;  %7214 = vmatprep.mubr.bf16.mxu1 %v19329_v24  ;;  %v1181_v5 = vld [vmem:[#allocation6 + $0x19c8] sm:$0xff] }
 0x2bf   : > { %7344 = vmatmul.mubr.bf16.vlgmr.msra.gmra.mrb[4].mxu0 %v19285_v48  ;;  %7184 = vmatprep.subr.bf16.mxu1 %v15814_v7  ;;  %v670_v7 = vld [vmem:[#allocation6 + $0x9d0] sm:$0xff] }
 0x2c0   : > { %7355 = vmatpush1.bf16.msra.mxu0 %v15295_v6  ;;  %7386 = vmatprep.mubr.bf16.mxu0 %v19242_v0  ;;  %v1185_v6 = vld [vmem:[#allocation6 + $0x19e8] sm:$0xff]  ;;  %v15352_v15 = vcombine.high %v670_v7, %v674_v8  ;;  %v15351_v31 = vcombine.low %v670_v7, %v674_v8 }
 0x2c1   : > { %7356 = vmatprep.subr.bf16.mxu0 %v15304_v13  ;;  %v15862_v13 = vcombine.high %v1181_v5, %v1185_v6  ;;  %v15861_v53 = vcombine.low %v1181_v5, %v1185_v6 }
 0x2c2   : > { %7185 = vmatpush1.bf16.msra.mxu1 %v15813_v17  ;;  %v1189_v17 = vld [vmem:[#allocation6 + $0x1a08] sm:$0xff] }
 0x2c3   : > { %7186 = vmatprep.subr.bf16.mxu1 %v15822_v19  ;;  %v678_v19 = vld [vmem:[#allocation6 + $0xa10] sm:$0xff] }
 0x2c4   : > { %7357 = vmatpush1.bf16.msra.mxu0 %v15303_v18  ;;  %v1193_v18 = vld [vmem:[#allocation6 + $0x1a28] sm:$0xff]  ;;  %v15360_v34 = vcombine.high %v678_v19, %v682_v47  ;;  %v15359_v37 = vcombine.low %v678_v19, %v682_v47 }
 0x2c5   : > { %7358 = vmatprep.subr.bf16.mxu0 %v15312_v62  ;;  %v15870_v62 = vcombine.high %v1189_v17, %v1193_v18  ;;  %v15869_v36 = vcombine.low %v1189_v17, %v1193_v18 }
 0x2c6   : > { %7187 = vmatpush1.bf16.msra.mxu1 %v15821_v42  ;;  %v1197_v42 = vld [vmem:[#allocation6 + $0x1a48] sm:$0xff] }
 0x2c7   : > { %7188 = vmatprep.subr.bf16.mxu1 %v15830_v45  ;;  %v686_v45 = vld [vmem:[#allocation6 + $0xa50] sm:$0xff] }
 0x2c8   : > { %7359 = vmatpush1.bf16.msra.mxu0 %v15311_v20  ;;  %v1201_v20 = vld [vmem:[#allocation6 + $0x1a68] sm:$0xff] }
 0x2c9   : > { %7360 = vmatprep.subr.bf16.mxu0 %v15320_v44  ;;  %v690_v44 = vld [vmem:[#allocation6 + $0xa70] sm:$0xff]  ;;  %v15878_v38 = vcombine.high %v1197_v42, %v1201_v20  ;;  %v15877_v51 = vcombine.low %v1197_v42, %v1201_v20 }
 0x2ca   : > { %7189 = vmatpush1.bf16.msra.mxu1 %v15829_v40  ;;  %v15368_v39 = vcombine.high %v686_v45, %v690_v44  ;;  %v1205_v40 = vld [vmem:[#allocation6 + $0x1a88] sm:$0xff]  ;;  %v15367_v52 = vcombine.low %v686_v45, %v690_v44 }
 0x2cb   : > { %7190 = vmatprep.subr.bf16.mxu1 %v15838_v43  ;;  %v694_v43 = vld [vmem:[#allocation6 + $0xa90] sm:$0xff] }
 0x2cc   : > { %7361 = vmatpush1.bf16.msra.mxu0 %v15319_v41  ;;  %v1209_v41 = vld [vmem:[#allocation6 + $0x1aa8] sm:$0xff] }
 0x2cd   : > { %7362 = vmatprep.subr.bf16.mxu0 %v15328_v46  ;;  %v698_v46 = vld [vmem:[#allocation6 + $0xab0] sm:$0xff]  ;;  %v15886_v55 = vcombine.high %v1205_v40, %v1209_v41  ;;  %v15885_v12 = vcombine.low %v1205_v40, %v1209_v41 }
 0x2ce   : > { %7191 = vmatpush1.bf16.msra.mxu1 %v15837_v57  ;;  %v15376_v56 = vcombine.high %v694_v43, %v698_v46  ;;  %v1213_v57 = vld [vmem:[#allocation6 + $0x1ac8] sm:$0xff]  ;;  %v15375_v27 = vcombine.low %v694_v43, %v698_v46 }
 0x2cf   : > { %7192 = vmatprep.subr.bf16.mxu1 %v15846_v61  ;;  %v702_v61 = vld [vmem:[#allocation6 + $0xad0] sm:$0xff] }
 0x2d0   : > { %7363 = vmatpush1.bf16.msra.mxu0 %v15327_v60  ;;  %v1217_v60 = vld [vmem:[#allocation6 + $0x1ae8] sm:$0xff] }
 0x2d1   : > { %7364 = vmatprep.subr.bf16.mxu0 %v15336_v10  ;;  %v706_v10 = vld [vmem:[#allocation6 + $0xaf0] sm:$0xff]  ;;  %v15894_v28 = vcombine.high %v1213_v57, %v1217_v60  ;;  %v15893_v5 = vcombine.low %v1213_v57, %v1217_v60 }
 0x2d2   : > { %7193 = vmatpush1.bf16.msra.mxu1 %v15845_v1  ;;  %v15384_v63 = vcombine.high %v702_v61, %v706_v10  ;;  %v1221_v1 = vld [vmem:[#allocation6 + $0x1b08] sm:$0xff]  ;;  %v15383_v6 = vcombine.low %v702_v61, %v706_v10 }
 0x2d3   : > { %7194 = vmatprep.subr.bf16.mxu1 %v15854_v3  ;;  %v710_v3 = vld [vmem:[#allocation6 + $0xb10] sm:$0xff] }
 0x2d4   : > { %7365 = vmatpush1.bf16.msra.mxu0 %v15335_v2  ;;  %v1225_v2 = vld [vmem:[#allocation6 + $0x1b28] sm:$0xff] }
 0x2d5   : > { %7366 = vmatprep.subr.bf16.mxu0 %v15344_v4  ;;  %v714_v4 = vld [vmem:[#allocation6 + $0xb30] sm:$0xff]  ;;  %v15902_v7 = vcombine.high %v1221_v1, %v1225_v2  ;;  %v15901_v17 = vcombine.low %v1221_v1, %v1225_v2 }
 0x2d6   : > { %7195 = vmatpush1.bf16.msra.mxu1 %v15853_v9  ;;  %v15392_v8 = vcombine.high %v710_v3, %v714_v4  ;;  %v1229_v9 = vld [vmem:[#allocation6 + $0x1b48] sm:$0xff]  ;;  %v15391_v18 = vcombine.low %v710_v3, %v714_v4 }
 0x2d7   : > { %7196 = vmatprep.subr.bf16.mxu1 %v15862_v13  ;;  %v718_v13 = vld [vmem:[#allocation6 + $0xb50] sm:$0xff] }
 0x2d8   : > { %7367 = vmatpush1.bf16.msra.mxu0 %v15343_v11  ;;  %v1233_v11 = vld [vmem:[#allocation6 + $0x1b68] sm:$0xff] }
 0x2d9   : > { %7368 = vmatprep.subr.bf16.mxu0 %v15352_v15  ;;  %v722_v15 = vld [vmem:[#allocation6 + $0xb70] sm:$0xff]  ;;  %v15910_v19 = vcombine.high %v1229_v9, %v1233_v11  ;;  %v15909_v42 = vcombine.low %v1229_v9, %v1233_v11 }
 0x2da   : > { %7197 = vmatpush1.bf16.msra.mxu1 %v15861_v53  ;;  %v15400_v47 = vcombine.high %v718_v13, %v722_v15  ;;  %v1237_v53 = vld [vmem:[#allocation6 + $0x1b88] sm:$0xff]  ;;  %v15399_v20 = vcombine.low %v718_v13, %v722_v15 }
 0x2db   : > { %7198 = vmatprep.subr.bf16.mxu1 %v15870_v62  ;;  %v726_v62 = vld [vmem:[#allocation6 + $0xb90] sm:$0xff] }
 0x2dc   : > { %7369 = vmatpush1.bf16.msra.mxu0 %v15351_v31  ;;  %v1241_v31 = vld [vmem:[#allocation6 + $0x1ba8] sm:$0xff] }
 0x2dd   : > { %7370 = vmatprep.subr.bf16.mxu0 %v15360_v34  ;;  %v730_v34 = vld [vmem:[#allocation6 + $0xbb0] sm:$0xff]  ;;  %v15918_v45 = vcombine.high %v1237_v53, %v1241_v31  ;;  %v15917_v40 = vcombine.low %v1237_v53, %v1241_v31 }
 0x2de   : > { %7199 = vmatpush1.bf16.msra.mxu1 %v15869_v36  ;;  %v15408_v44 = vcombine.high %v726_v62, %v730_v34  ;;  %v1245_v36 = vld [vmem:[#allocation6 + $0x1bc8] sm:$0xff]  ;;  %v15407_v41 = vcombine.low %v726_v62, %v730_v34 }
 0x2df   : > { %7200 = vmatprep.subr.bf16.mxu1 %v15878_v38  ;;  %v734_v38 = vld [vmem:[#allocation6 + $0xbd0] sm:$0xff] }
 0x2e0   : > { %7371 = vmatpush1.bf16.msra.mxu0 %v15359_v37  ;;  %v1249_v37 = vld [vmem:[#allocation6 + $0x1be8] sm:$0xff] }
 0x2e1   : > { %7372 = vmatprep.subr.bf16.mxu0 %v15368_v39  ;;  %v738_v39 = vld [vmem:[#allocation6 + $0xbf0] sm:$0xff]  ;;  %v15926_v43 = vcombine.high %v1245_v36, %v1249_v37  ;;  %v15925_v57 = vcombine.low %v1245_v36, %v1249_v37 }
 0x2e2   : > { %7201 = vmatpush1.bf16.msra.mxu1 %v15877_v51  ;;  %v15416_v46 = vcombine.high %v734_v38, %v738_v39  ;;  %v1253_v51 = vld [vmem:[#allocation6 + $0x1c08] sm:$0xff]  ;;  %v15415_v60 = vcombine.low %v734_v38, %v738_v39  ;;  %v778_v36 = vld [vmem:[#allocation6 + $0xd30] sm:$0xff] }
 0x2e3   : > { %7202 = vmatprep.subr.bf16.mxu1 %v15886_v55  ;;  %v742_v55 = vld [vmem:[#allocation6 + $0xc10] sm:$0xff] }
 0x2e4   : > { %7373 = vmatpush1.bf16.msra.mxu0 %v15367_v52  ;;  %v1257_v52 = vld [vmem:[#allocation6 + $0x1c28] sm:$0xff] }
 0x2e5   : > { %7374 = vmatprep.subr.bf16.mxu0 %v15376_v56  ;;  %v746_v56 = vld [vmem:[#allocation6 + $0xc30] sm:$0xff]  ;;  %v15934_v61 = vcombine.high %v1253_v51, %v1257_v52  ;;  %v15933_v1 = vcombine.low %v1253_v51, %v1257_v52 }
 0x2e6   : > { %7203 = vmatpush1.bf16.msra.mxu1 %v15885_v12  ;;  %v15424_v10 = vcombine.high %v742_v55, %v746_v56  ;;  %v1261_v12 = vld [vmem:[#allocation6 + $0x1c48] sm:$0xff]  ;;  %v15423_v2 = vcombine.low %v742_v55, %v746_v56  ;;  %v782_v51 = vld [vmem:[#allocation6 + $0xd50] sm:$0xff] }
 0x2e7   : > { %7204 = vmatprep.subr.bf16.mxu1 %v15894_v28  ;;  %v750_v28 = vld [vmem:[#allocation6 + $0xc50] sm:$0xff] }
 0x2e8   : > { %7375 = vmatpush1.bf16.msra.mxu0 %v15375_v27  ;;  %v1265_v27 = vld [vmem:[#allocation6 + $0x1c68] sm:$0xff]  ;;  %v786_v52 = vld [vmem:[#allocation6 + $0xd70] sm:$0xff] }
 0x2e9   : > { %7376 = vmatprep.subr.bf16.mxu0 %v15384_v63  ;;  %v754_v63 = vld [vmem:[#allocation6 + $0xc70] sm:$0xff]  ;;  %v15942_v3 = vcombine.high %v1261_v12, %v1265_v27  ;;  %v15941_v9 = vcombine.low %v1261_v12, %v1265_v27  ;;  %v1305_v12 = vld [vmem:[#allocation6 + $0x1da8] sm:$0xff]  ;;  %v7956_v27 = vld [vmem:[#allocation8] sm:$0xff] }
 0x2ea   : > { %7205 = vmatpush1.bf16.msra.mxu1 %v15893_v5  ;;  %v15432_v4 = vcombine.high %v750_v28, %v754_v63  ;;  %v1269_v5 = vld [vmem:[#allocation6 + $0x1c88] sm:$0xff]  ;;  %v15431_v11 = vcombine.low %v750_v28, %v754_v63  ;;  %v790_v63 = vld [vmem:[#allocation6 + $0xd90] sm:$0xff] }
 0x2eb   : > { %7206 = vmatprep.subr.bf16.mxu1 %v15902_v7  ;;  %v758_v7 = vld [vmem:[#allocation6 + $0xc90] sm:$0xff] }
 0x2ec   : > { %7377 = vmatpush1.bf16.msra.mxu0 %v15383_v6  ;;  %v1273_v6 = vld [vmem:[#allocation6 + $0x1ca8] sm:$0xff] }
 0x2ed   : > { %7378 = vmatprep.subr.bf16.mxu0 %v15392_v8  ;;  %v762_v8 = vld [vmem:[#allocation6 + $0xcb0] sm:$0xff]  ;;  %v15950_v13 = vcombine.high %v1269_v5, %v1273_v6  ;;  %v15949_v53 = vcombine.low %v1269_v5, %v1273_v6 }
 0x2ee   : > { %7207 = vmatpush1.bf16.msra.mxu1 %v15901_v17  ;;  %v15440_v15 = vcombine.high %v758_v7, %v762_v8  ;;  %v1277_v17 = vld [vmem:[#allocation6 + $0x1cc8] sm:$0xff]  ;;  %v15439_v31 = vcombine.low %v758_v7, %v762_v8 }
 0x2ef   : > { %7208 = vmatprep.subr.bf16.mxu1 %v15910_v19  ;;  %v766_v19 = vld [vmem:[#allocation6 + $0xcd0] sm:$0xff]  ;;  %v1309_v8 = vld [vmem:[#allocation6 + $0x1dc8] sm:$0xff] }
 0x2f0   : > { %7379 = vmatpush1.bf16.msra.mxu0 %v15391_v18  ;;  %v1281_v18 = vld [vmem:[#allocation6 + $0x1ce8] sm:$0xff] }
 0x2f1   : > { %7380 = vmatprep.subr.bf16.mxu0 %v15400_v47  ;;  %v770_v47 = vld [vmem:[#allocation6 + $0xcf0] sm:$0xff]  ;;  %v15958_v62 = vcombine.high %v1277_v17, %v1281_v18  ;;  %v15957_v37 = vcombine.low %v1277_v17, %v1281_v18 }
 0x2f2   : > { %7209 = vmatpush1.bf16.msra.mxu1 %v15909_v42  ;;  %v15448_v34 = vcombine.high %v766_v19, %v770_v47  ;;  %v1285_v42 = vld [vmem:[#allocation6 + $0x1d08] sm:$0xff]  ;;  %v15447_v38 = vcombine.low %v766_v19, %v770_v47  ;;  %v802_v17 = vld [vmem:[#allocation6 + $0xdf0] sm:$0xff] }
 0x2f3   : > { %7210 = vmatprep.subr.bf16.mxu1 %v15918_v45  ;;  %v7958_v45 = vlaneseq }
 0x2f4   : > { %7381 = vmatpush1.bf16.msra.mxu0 %v15399_v20  ;;  %v1289_v20 = vld [vmem:[#allocation6 + $0x1d28] sm:$0xff] }
 0x2f5   : > { %7382 = vmatprep.subr.bf16.mxu0 %v15408_v44  ;;  %v774_v44 = vld [vmem:[#allocation6 + $0xd10] sm:$0xff]  ;;  %v15966_v39 = vcombine.high %v1285_v42, %v1289_v20  ;;  %v15965_v55 = vcombine.low %v1285_v42, %v1289_v20 }
 0x2f6   : > { %7211 = vmatpush1.bf16.msra.mxu1 %v15917_v40  ;;  %v15456_v40 = vcombine.high %v774_v44, %v778_v36  ;;  %v15455_v56 = vcombine.low %v774_v44, %v778_v36 }
 0x2f7   : > { %7212 = vmatprep.subr.bf16.mxu1 %v15926_v43  ;;  %v1293_v43 = vld [vmem:[#allocation6 + $0x1d48] sm:$0xff] }
 0x2f8   : > { %7383 = vmatpush1.bf16.msra.mxu0 %v15407_v41  ;;  %v19381_v41 = vshrl.u32 %v7958_v45, 7 }
 0x2f9   : > { %7384 = vmatprep.subr.bf16.mxu0 %v15416_v46  ;;  %v1297_v46 = vld [vmem:[#allocation6 + $0x1d68] sm:$0xff] }
 0x2fa   : > { %7213 = vmatpush1.bf16.msra.mxu1 %v15925_v57  ;;  %v15974_v57 = vcombine.high %v1293_v43, %v1297_v46  ;;  %v19387_v28 = vsub.s32 1, %v19381_v41 }
 0x2fb   : > { %7225 = vmatprep.subr.bf16.mxu1 %v15934_v61  ;;  %v15464_v61 = vcombine.high %v782_v51, %v786_v52 }
 0x2fc   : > { %7385 = vmatpush1.bf16.msra.mxu0 %v15415_v60  ;;  %v19384_v60 = vsub.s32 0, %v19381_v41 }
 0x2fd   : > { %7397 = vmatprep.subr.bf16.mxu0 %v15424_v10  ;;  %7215 = vmatmul.mubr.bf16.vlgmr.msra.gmra.mrb[4].mxu1 %v19343_v29  ;;  %v1301_v10 = vld [vmem:[#allocation6 + $0x1d88] sm:$0xff] }
 0x2fe   : > { %7226 = vmatpush1.bf16.msra.mxu1 %v15933_v1  ;;  %7257 = vmatprep.mubr.bf16.mxu1 %v19347_v35  ;;  %v794_v1 = vld [vmem:[#allocation6 + $0xdb0] sm:$0xff]  ;;  %v15982_v5 = vcombine.high %v1301_v10, %v1305_v12  ;;  %v7961_v6 = vrot.slane %v7956_v27, %v19384_v60 }
 0x2ff   : > { %7387 = vmatmul.mubr.bf16.vlgmr.msra.gmra.mrb[4].mxu0 %v19257_v26  ;;  %7227 = vmatprep.subr.bf16.mxu1 %v15942_v3  ;;  %v8014_v3 = vld [vmem:[#allocation9] sm:$0xff]  ;;  %v15472_v7 = vcombine.high %v790_v63, %v794_v1  ;;  %v15471_v42 = vcombine.low %v790_v63, %v794_v1  ;;  %v814_v1 = vld [vmem:[#allocation6 + $0xe50] sm:$0xff] }
 0x300   : > { %7398 = vmatpush1.bf16.msra.mxu0 %v15423_v2  ;;  %7429 = vmatprep.mubr.bf16.mxu0 %v19272_v33  ;;  %v15973_v2 = vcombine.low %v1293_v43, %v1297_v46  ;;  %v8019_v19 = vrot.slane %v8014_v3, %v19384_v60  ;;  %v806_v43 = vld [vmem:[#allocation6 + $0xe10] sm:$0xff] }
 0x301   : > { %7399 = vmatprep.subr.bf16.mxu0 %v15432_v4  ;;  %v15463_v4 = vcombine.low %v782_v51, %v786_v52  ;;  %v810_v46 = vld [vmem:[#allocation6 + $0xe30] sm:$0xff] }
 0x302   : > { %7228 = vmatpush1.bf16.msra.mxu1 %v15941_v9  ;;  %v1313_v9 = vld [vmem:[#allocation6 + $0x1de8] sm:$0xff] }
 0x303   : > { %7229 = vmatprep.subr.bf16.mxu1 %v15950_v13  ;;  %v7965_v13 = vrot.slane %v7956_v27, %v19387_v28  ;;  %v15990_v20 = vcombine.high %v1309_v8, %v1313_v9  ;;  %v15989_v52 = vcombine.low %v1309_v8, %v1313_v9  ;;  %v1329_v27 = vld [vmem:[#allocation6 + $0x1e68] sm:$0xff] }
 0x304   : > { %7400 = vmatpush1.bf16.msra.mxu0 %v15431_v11 }
 0x305   : > { %7401 = vmatprep.subr.bf16.mxu0 %v15440_v15  ;;  %v798_v15 = vld [vmem:[#allocation6 + $0xdd0] sm:$0xff] }
 0x306   : > { %7230 = vmatpush1.bf16.msra.mxu1 %v15949_v53  ;;  %v8023_v53 = vrot.slane %v8014_v3, %v19387_v28 }
 0x307   : > { %7231 = vmatprep.subr.bf16.mxu1 %v15958_v62 }
 0x308   : > { %7402 = vmatpush1.bf16.msra.mxu0 %v15439_v31  ;;  %v15981_v31 = vcombine.low %v1301_v10, %v1305_v12  ;;  %v15488_v10 = vcombine.high %v806_v43, %v810_v46  ;;  %v1325_v12 = vld [vmem:[#allocation6 + $0x1e48] sm:$0xff] }
 0x309   : > { %7403 = vmatprep.subr.bf16.mxu0 %v15448_v34  ;;  %v16006_v8 = vcombine.high %v1325_v12, %v1329_v27 }
 0x30a   : > { %7232 = vmatpush1.bf16.msra.mxu1 %v15957_v37  ;;  %v1317_v37 = vld [vmem:[#allocation6 + $0x1e08] sm:$0xff] }
 0x30b   : > { %7233 = vmatprep.subr.bf16.mxu1 %v15966_v39 }
 0x30c   : > { %7404 = vmatpush1.bf16.msra.mxu0 %v15447_v38  ;;  %v1321_v38 = vld [vmem:[#allocation6 + $0x1e28] sm:$0xff] }
 0x30d   : > { %7405 = vmatprep.subr.bf16.mxu0 %v15456_v40 }
 0x30e   : > { %7234 = vmatpush1.bf16.msra.mxu1 %v15965_v55  ;;  %v15479_v55 = vcombine.low %v798_v15, %v802_v17 }
 0x30f   : > { %7235 = vmatprep.subr.bf16.mxu1 %v15974_v57 }
 0x310   : > { %7406 = vmatpush1.bf16.msra.mxu0 %v15455_v56 }
 0x311   : > { %7407 = vmatprep.subr.bf16.mxu0 %v15464_v61 }
 0x312   : > { %v6915_v11 = vpop.f32.mrb[0].mxu0  ;;  %7236 = vmatpush1.bf16.msra.mxu1 %v15973_v2 }
 0x313   : > { %v16990_v18 = vadd.f32 %v6915_v11, %v19353_v22  ;;  %v6917_v47 = vpop.f32.mrb[1].mxu0  ;;  %7237 = vmatprep.subr.bf16.mxu1 %v15982_v5  ;;  %v15480_v22 = vcombine.high %v798_v15, %v802_v17  ;;  %v1337_v15 = vld [vmem:[#allocation6 + $0x1ea8] sm:$0xff] }
 0x314   : > { %v16991_v62 = vadd.f32 %v6917_v47, %v19355_v54  ;;  %v6919_v34 = vpop.f32.mrb[2].mxu0  ;;  %7408 = vmatpush1.bf16.msra.mxu0 %v15463_v4  ;;  %v15997_v4 = vcombine.low %v1317_v37, %v1321_v38  ;;  %v16005_v47 = vcombine.low %v1325_v12, %v1329_v27 }
 0x315   : > { %v7998_v45 = vmul.f32 %v16990_v18, %v7961_v6  ;;  %v16992_v44 = vadd.f32 %v6919_v34, %v19357_v30  ;;  %v6921_v36 = vpop.f32.mrb[3].mxu0  ;;  %7409 = vmatprep.subr.bf16.mxu0 %v15472_v7  ;;  %v15998_v30 = vcombine.high %v1317_v37, %v1321_v38  ;;  %v15487_v7 = vcombine.low %v806_v43, %v810_v46  ;;  %v822_v18 = vld [vmem:[#allocation6 + $0xe90] sm:$0xff]  ;;  %v1341_v34 = vld [vmem:[#allocation6 + $0x1ec8] sm:$0xff] }
 0x316   : > { %v7999_v39 = vmul.f32 %v16991_v62, %v7965_v13  ;;  %v16993_v40 = vadd.f32 %v6921_v36, %v19359_v59  ;;  %7238 = vmatpush1.bf16.msra.mxu1 %v15981_v31  ;;  %v818_v59 = vld [vmem:[#allocation6 + $0xe70] sm:$0xff]  ;;  %v1349_v38 = vld [vmem:[#allocation6 + $0x1f08] sm:$0xff] }
 0x317   : > { %v8056_v51 = vadd.f32 %v8019_v19, %v7998_v45  ;;  %v8006_v54 = vmul.f32 %v16992_v44, %v7961_v6  ;;  %7239 = vmatprep.subr.bf16.mxu1 %v15990_v20  ;;  %v15496_v11 = vcombine.high %v814_v1, %v818_v59  ;;  %v830_v20 = vld [vmem:[#allocation6 + $0xed0] sm:$0xff] }
 0x318   : > { %v8057_v56 = vadd.f32 %v8023_v53, %v7999_v39  ;;  %v8007_v57 = vmul.f32 %v16993_v40, %v7965_v13  ;;  %7410 = vmatpush1.bf16.msra.mxu0 %v15471_v42  ;;  %v1333_v13 = vld [vmem:[#allocation6 + $0x1e88] sm:$0xff]  ;;  %v834_v45 = vld [vmem:[#allocation6 + $0xef0] sm:$0xff] }
 0x319   : > { %v8064_v61 = vadd.f32 %v8019_v19, %v8006_v54  ;;  %7411 = vmatprep.subr.bf16.mxu0 %v15480_v22  ;;  %v8072_v2 = vmax.f32 %v8056_v51, 0.0  ;;  %v826_v19 = vld [vmem:[#allocation6 + $0xeb0] sm:$0xff]  ;;  %v16014_v31 = vcombine.high %v1333_v13, %v1337_v15  ;;  %v1345_v42 = vld [vmem:[#allocation6 + $0x1ee8] sm:$0xff]  ;;  %v16013_v44 = vcombine.low %v1333_v13, %v1337_v15 }
 0x31a   : > { %v8065_v63 = vadd.f32 %v8023_v53, %v8007_v57  ;;  %7240 = vmatpush1.bf16.msra.mxu1 %v15989_v52  ;;  %v8073_v5 = vmax.f32 %v8057_v56, 0.0  ;;  %v15495_v53 = vcombine.low %v814_v1, %v818_v59  ;;  %v15504_v62 = vcombine.high %v822_v18, %v826_v19  ;;  %v1353_v39 = vld [vmem:[#allocation6 + $0x1f28] sm:$0xff]  ;;  %v838_v40 = vld [vmem:[#allocation6 + $0xf10] sm:$0xff] }
 0x31b   : > { %v8080_v3 = vmax.f32 %v8064_v61, 0.0  ;;  %7241 = vmatprep.subr.bf16.mxu1 %v15998_v30  ;;  %v15503_v36 = vcombine.low %v822_v18, %v826_v19  ;;  %v16022_v22 = vcombine.high %v1341_v34, %v1345_v42  ;;  %v15512_v37 = vcombine.high %v830_v20, %v834_v45  ;;  %v842_v43 = vld [vmem:[#allocation6 + $0xf30] sm:$0xff]  ;;  %v1361_v56 = vld [vmem:[#allocation6 + $0x1f68] sm:$0xff] }
 0x31c   : > { %v8081_v6 = vmax.f32 %v8065_v63, 0.0  ;;  %7412 = vmatpush1.bf16.msra.mxu0 %v15479_v55  ;;  %v16021_v46 = vcombine.low %v1341_v34, %v1345_v42  ;;  %v15511_v51 = vcombine.low %v830_v20, %v834_v45  ;;  %v16030_v54 = vcombine.high %v1349_v38, %v1353_v39  ;;  %v1357_v55 = vld [vmem:[#allocation6 + $0x1f48] sm:$0xff]  ;;  %v846_v57 = vld [vmem:[#allocation6 + $0xf50] sm:$0xff] }
 0x31d   : > { %v19397_v9 = vpack.c.bf16 %v8080_v3, %v8072_v2  ;;  %7413 = vmatprep.subr.bf16.mxu0 %v15488_v10  ;;  %v15520_v52 = vcombine.high %v838_v40, %v842_v43  ;;  %v850_v30 = vld [vmem:[#allocation6 + $0xf70] sm:$0xff]  ;;  %v16029_v61 = vcombine.low %v1349_v38, %v1353_v39  ;;  %v15519_v10 = vcombine.low %v838_v40, %v842_v43  ;;  %v1365_v63 = vld [vmem:[#allocation6 + $0x1f88] sm:$0xff] }
 0x31e   : > { %v19399_v17 = vpack.c.bf16 %v8081_v6, %v8073_v5  ;;  %7242 = vmatpush1.bf16.msra.mxu1 %v15997_v4  ;;  %v16038_v12 = vcombine.high %v1357_v55, %v1361_v56  ;;  %v15528_v27 = vcombine.high %v846_v57, %v850_v30  ;;  %v1369_v1 = vld [vmem:[#allocation6 + $0x1fa8] sm:$0xff]  ;;  %v854_v59 = vld [vmem:[#allocation6 + $0xf90] sm:$0xff]  ;;  %v16037_v3 = vcombine.low %v1357_v55, %v1361_v56 }
 0x31f   : > { %7243 = vmatprep.subr.bf16.mxu1 %v16006_v8  ;;  %v858_v2 = vld [vmem:[#allocation6 + $0xfb0] sm:$0xff]  ;;  %v15527_v4 = vcombine.low %v846_v57, %v850_v30  ;;  %v16046_v5 = vcombine.high %v1365_v63, %v1369_v1  ;;  %v1377_v8 = vld [vmem:[#allocation6 + $0x1fe8] sm:$0xff]  ;;  %v16045_v15 = vcombine.low %v1365_v63, %v1369_v1 }
 0x320   : > { %7414 = vmatpush1.bf16.msra.mxu0 %v15487_v7  ;;  %v15536_v6 = vcombine.high %v854_v59, %v858_v2  ;;  %v1373_v7 = vld [vmem:[#allocation6 + $0x1fc8] sm:$0xff]  ;;  %v866_v13 = vld [vmem:[#allocation6 + $0xff0] sm:$0xff]  ;;  %v15535_v18 = vcombine.low %v854_v59, %v858_v2 }
 0x321   : > { %7415 = vmatprep.subr.bf16.mxu0 %v15496_v11  ;;  %v862_v11 = vld [vmem:[#allocation6 + $0xfd0] sm:$0xff]  ;;  %v16054_v19 = vcombine.high %v1373_v7, %v1377_v8  ;;  %v16053_v42 = vcombine.low %v1373_v7, %v1377_v8 }
 0x322   : > { %7244 = vmatpush1.bf16.msra.mxu1 %v16005_v47  ;;  %v15544_v47 = vcombine.high %v862_v11, %v866_v13  ;;  %v874_v34 = vld [vmem:[#allocation6 + $0x1030] sm:$0xff]  ;;  %v15543_v20 = vcombine.low %v862_v11, %v866_v13 }
 0x323   : > { %7245 = vmatprep.subr.bf16.mxu1 %v16014_v31  ;;  %v363_v31 = vld [vmem:[#allocation6 + $0x38] sm:$0xff]  ;;  %v882_v38 = vld [vmem:[#allocation6 + $0x1070] sm:$0xff] }
 0x324   : > { %7416 = vmatpush1.bf16.msra.mxu0 %v15495_v53  ;;  %v359_v53 = vld [vmem:[#allocation6 + $0x18] sm:$0xff]  ;;  %v890_v55 = vld [vmem:[#allocation6 + $0x10b0] sm:$0xff] }
 0x325   : > { %7417 = vmatprep.subr.bf16.mxu0 %v15504_v62  ;;  %v870_v62 = vld [vmem:[#allocation6 + $0x1010] sm:$0xff]  ;;  %v15042_v45 = vcombine.high %v359_v53, %v363_v31  ;;  %v15041_v39 = vcombine.low %v359_v53, %v363_v31 }
 0x326   : > { %7246 = vmatpush1.bf16.msra.mxu1 %v16013_v44  ;;  %v15552_v44 = vcombine.high %v870_v62, %v874_v34  ;;  %v15551_v40 = vcombine.low %v870_v62, %v874_v34  ;;  %v898_v63 = vld [vmem:[#allocation6 + $0x10f0] sm:$0xff] }
 0x327   : > { %7247 = vmatprep.subr.bf16.mxu1 %v16022_v22  ;;  %v371_v22 = vld [vmem:[#allocation6 + $0x78] sm:$0xff]  ;;  %v906_v7 = vld [vmem:[#allocation6 + $0x1130] sm:$0xff] }
 0x328   : > { %7418 = vmatpush1.bf16.msra.mxu0 %v15503_v36  ;;  %v367_v36 = vld [vmem:[#allocation6 + $0x58] sm:$0xff] }
 0x329   : > { %7419 = vmatprep.subr.bf16.mxu0 %v15512_v37  ;;  %v878_v37 = vld [vmem:[#allocation6 + $0x1050] sm:$0xff]  ;;  %v15050_v43 = vcombine.high %v367_v36, %v371_v22  ;;  %v15049_v56 = vcombine.low %v367_v36, %v371_v22 }
 0x32a   : > { %7248 = vmatpush1.bf16.msra.mxu1 %v16021_v46  ;;  %v15560_v46 = vcombine.high %v878_v37, %v882_v38  ;;  %v15559_v57 = vcombine.low %v878_v37, %v882_v38 }
 0x32b   : > { %7249 = vmatprep.subr.bf16.mxu1 %v16030_v54  ;;  %v379_v54 = vld [vmem:[#allocation6 + $0xb8] sm:$0xff] }
 0x32c   : > { %7420 = vmatpush1.bf16.msra.mxu0 %v15511_v51  ;;  %v375_v51 = vld [vmem:[#allocation6 + $0x98] sm:$0xff] }
 0x32d   : > { %7421 = vmatprep.subr.bf16.mxu0 %v15520_v52  ;;  %v886_v52 = vld [vmem:[#allocation6 + $0x1090] sm:$0xff]  ;;  %v15058_v30 = vcombine.high %v375_v51, %v379_v54  ;;  %v15057_v1 = vcombine.low %v375_v51, %v379_v54 }
 0x32e   : > { %7250 = vmatpush1.bf16.msra.mxu1 %v16029_v61  ;;  %v15568_v61 = vcombine.high %v886_v52, %v890_v55  ;;  %v15567_v59 = vcombine.low %v886_v52, %v890_v55 }
 0x32f   : > { %7251 = vmatprep.subr.bf16.mxu1 %v16038_v12  ;;  %v387_v12 = vld [vmem:[#allocation6 + $0xf8] sm:$0xff] }
 0x330   : > { %7422 = vmatpush1.bf16.msra.mxu0 %v15519_v10  ;;  %v383_v10 = vld [vmem:[#allocation6 + $0xd8] sm:$0xff] }
 0x331   : > { %7423 = vmatprep.subr.bf16.mxu0 %v15528_v27  ;;  %v894_v27 = vld [vmem:[#allocation6 + $0x10d0] sm:$0xff]  ;;  %v15066_v2 = vcombine.high %v383_v10, %v387_v12  ;;  %v15065_v8 = vcombine.low %v383_v10, %v387_v12 }
 0x332   : > { %7252 = vmatpush1.bf16.msra.mxu1 %v16037_v3  ;;  %v15576_v3 = vcombine.high %v894_v27, %v898_v63  ;;  %v15575_v11 = vcombine.low %v894_v27, %v898_v63 }
 0x333   : > { %7253 = vmatprep.subr.bf16.mxu1 %v16046_v5  ;;  %v395_v5 = vld [vmem:[#allocation6 + $0x138] sm:$0xff] }
 0x334   : > { %7424 = vmatpush1.bf16.msra.mxu0 %v15527_v4  ;;  %v391_v4 = vld [vmem:[#allocation6 + $0x118] sm:$0xff] }
 0x335   : > { %7425 = vmatprep.subr.bf16.mxu0 %v15536_v6  ;;  %v902_v6 = vld [vmem:[#allocation6 + $0x1110] sm:$0xff]  ;;  %v15074_v13 = vcombine.high %v391_v4, %v395_v5  ;;  %v15073_v53 = vcombine.low %v391_v4, %v395_v5 }
 0x336   : > { %7254 = vmatpush1.bf16.msra.mxu1 %v16045_v15  ;;  %v399_v15 = vld [vmem:[#allocation6 + $0x158] sm:$0xff]  ;;  %v15583_v31 = vcombine.low %v902_v6, %v906_v7 }
 0x337   : > { %7255 = vmatprep.subr.bf16.mxu1 %v16054_v19  ;;  %v910_v19 = vld [vmem:[#allocation6 + $0x1150] sm:$0xff] }
 0x338   : > { %7426 = vmatpush1.bf16.msra.mxu0 %v15535_v18  ;;  %v403_v18 = vld [vmem:[#allocation6 + $0x178] sm:$0xff] }
 0x339   : > { %7427 = vmatprep.subr.bf16.mxu0 %v15544_v47  ;;  %v914_v47 = vld [vmem:[#allocation6 + $0x1170] sm:$0xff]  ;;  %v15082_v62 = vcombine.high %v399_v15, %v403_v18  ;;  %v15081_v36 = vcombine.low %v399_v15, %v403_v18 }
 0x33a   : > { %7256 = vmatpush1.bf16.msra.mxu1 %v16053_v42  ;;  %v15592_v34 = vcombine.high %v910_v19, %v914_v47  ;;  %v407_v42 = vld [vmem:[#allocation6 + $0x198] sm:$0xff]  ;;  %v15591_v22 = vcombine.low %v910_v19, %v914_v47 }
 0x33b   : > { %7612 = vmatprep.subr.bf16.mxu1 %v15042_v45  ;;  %v918_v45 = vld [vmem:[#allocation6 + $0x1190] sm:$0xff] }
 0x33c   : > { %7428 = vmatpush1.bf16.msra.mxu0 %v15543_v20  ;;  %v411_v20 = vld [vmem:[#allocation6 + $0x1b8] sm:$0xff] }
 0x33d   : > { %7440 = vmatprep.subr.bf16.mxu0 %v15552_v44  ;;  %7258 = vmatmul.mubr.bf16.vlgmr.msra.gmra.mrb[4].mxu1 %v19363_v16  ;;  %v922_v44 = vld [vmem:[#allocation6 + $0x11b0] sm:$0xff]  ;;  %v15090_v37 = vcombine.high %v407_v42, %v411_v20  ;;  %v15089_v51 = vcombine.low %v407_v42, %v411_v20 }
 0x33e   : > { %7613 = vmatpush1.bf16.msra.mxu1 %v15041_v39  ;;  %7644 = vmatprep.mubr.bf16.mxu1 %v19231_v58  ;;  %v15584_v58 = vcombine.high %v902_v6, %v906_v7  ;;  %v15600_v38 = vcombine.high %v918_v45, %v922_v44  ;;  %v415_v39 = vld [vmem:[#allocation6 + $0x1d8] sm:$0xff]  ;;  %v15599_v54 = vcombine.low %v918_v45, %v922_v44 }
 0x33f   : > { %7430 = vmatmul.mubr.bf16.vlgmr.msra.gmra.mrb[4].mxu0 %v19289_v50  ;;  %7614 = vmatprep.subr.bf16.mxu1 %v15050_v43  ;;  %v926_v43 = vld [vmem:[#allocation6 + $0x11d0] sm:$0xff] }
 0x340   : > { %7441 = vmatpush1.bf16.msra.mxu0 %v15551_v40  ;;  %7472 = vmatprep.mubr.bf16.mxu0 %v19293_v23  ;;  %v419_v40 = vld [vmem:[#allocation6 + $0x1f8] sm:$0xff] }
 0x341   : > { %7442 = vmatprep.subr.bf16.mxu0 %v15560_v46  ;;  %v930_v46 = vld [vmem:[#allocation6 + $0x11f0] sm:$0xff]  ;;  %v15098_v52 = vcombine.high %v415_v39, %v419_v40  ;;  %v15097_v10 = vcombine.low %v415_v39, %v419_v40 }
 0x342   : > { %7615 = vmatpush1.bf16.msra.mxu1 %v15049_v56  ;;  %v15608_v55 = vcombine.high %v926_v43, %v930_v46  ;;  %v423_v56 = vld [vmem:[#allocation6 + $0x218] sm:$0xff]  ;;  %v15607_v12 = vcombine.low %v926_v43, %v930_v46 }
 0x343   : > { %7616 = vmatprep.subr.bf16.mxu1 %v15058_v30  ;;  %v934_v30 = vld [vmem:[#allocation6 + $0x1210] sm:$0xff] }
 0x344   : > { %7443 = vmatpush1.bf16.msra.mxu0 %v15559_v57  ;;  %v427_v57 = vld [vmem:[#allocation6 + $0x238] sm:$0xff] }
 0x345   : > { %7444 = vmatprep.subr.bf16.mxu0 %v15568_v61  ;;  %v938_v61 = vld [vmem:[#allocation6 + $0x1230] sm:$0xff]  ;;  %v15106_v27 = vcombine.high %v423_v56, %v427_v57  ;;  %v15105_v4 = vcombine.low %v423_v56, %v427_v57 }
 0x346   : > { %7617 = vmatpush1.bf16.msra.mxu1 %v15057_v1  ;;  %v15616_v63 = vcombine.high %v934_v30, %v938_v61  ;;  %v431_v1 = vld [vmem:[#allocation6 + $0x258] sm:$0xff]  ;;  %v15615_v5 = vcombine.low %v934_v30, %v938_v61 }
 0x347   : > { %7618 = vmatprep.subr.bf16.mxu1 %v15066_v2  ;;  %v942_v2 = vld [vmem:[#allocation6 + $0x1250] sm:$0xff] }
 0x348   : > { %7445 = vmatpush1.bf16.msra.mxu0 %v15567_v59  ;;  %v435_v59 = vld [vmem:[#allocation6 + $0x278] sm:$0xff] }
 0x349   : > { %7446 = vmatprep.subr.bf16.mxu0 %v15576_v3  ;;  %v946_v3 = vld [vmem:[#allocation6 + $0x1270] sm:$0xff]  ;;  %v15114_v6 = vcombine.high %v431_v1, %v435_v59  ;;  %v15113_v15 = vcombine.low %v431_v1, %v435_v59 }
 0x34a   : > { %7619 = vmatpush1.bf16.msra.mxu1 %v15065_v8  ;;  %v15624_v7 = vcombine.high %v942_v2, %v946_v3  ;;  %v439_v8 = vld [vmem:[#allocation6 + $0x298] sm:$0xff]  ;;  %v15623_v18 = vcombine.low %v942_v2, %v946_v3 }
 0x34b   : > { %7620 = vmatprep.subr.bf16.mxu1 %v15074_v13  ;;  %v950_v13 = vld [vmem:[#allocation6 + $0x1290] sm:$0xff] }
 0x34c   : > { %7447 = vmatpush1.bf16.msra.mxu0 %v15575_v11  ;;  %v443_v11 = vld [vmem:[#allocation6 + $0x2b8] sm:$0xff] }
 0x34d   : > { %7448 = vmatprep.subr.bf16.mxu0 %v15584_v58  ;;  %v954_v58 = vld [vmem:[#allocation6 + $0x12b0] sm:$0xff]  ;;  %v15122_v19 = vcombine.high %v439_v8, %v443_v11  ;;  %v15121_v42 = vcombine.low %v439_v8, %v443_v11 }
 0x34e   : > { %7621 = vmatpush1.bf16.msra.mxu1 %v15073_v53  ;;  %v15632_v47 = vcombine.high %v950_v13, %v954_v58  ;;  %v447_v53 = vld [vmem:[#allocation6 + $0x2d8] sm:$0xff]  ;;  %v15631_v20 = vcombine.low %v950_v13, %v954_v58 }
 0x34f   : > { %7622 = vmatprep.subr.bf16.mxu1 %v15082_v62  ;;  %v958_v62 = vld [vmem:[#allocation6 + $0x12d0] sm:$0xff] }
 0x350   : > { %7449 = vmatpush1.bf16.msra.mxu0 %v15583_v31  ;;  %v451_v31 = vld [vmem:[#allocation6 + $0x2f8] sm:$0xff] }
 0x351   : > { %7450 = vmatprep.subr.bf16.mxu0 %v15592_v34  ;;  %v962_v34 = vld [vmem:[#allocation6 + $0x12f0] sm:$0xff]  ;;  %v15130_v45 = vcombine.high %v447_v53, %v451_v31  ;;  %v15129_v39 = vcombine.low %v447_v53, %v451_v31 }
 0x352   : > { %7623 = vmatpush1.bf16.msra.mxu1 %v15081_v36  ;;  %v15640_v44 = vcombine.high %v958_v62, %v962_v34  ;;  %v455_v36 = vld [vmem:[#allocation6 + $0x318] sm:$0xff]  ;;  %v15639_v40 = vcombine.low %v958_v62, %v962_v34 }
 0x353   : > { %7624 = vmatprep.subr.bf16.mxu1 %v15090_v37  ;;  %v966_v37 = vld [vmem:[#allocation6 + $0x1310] sm:$0xff] }
 0x354   : > { %7451 = vmatpush1.bf16.msra.mxu0 %v15591_v22  ;;  %v459_v22 = vld [vmem:[#allocation6 + $0x338] sm:$0xff] }
 0x355   : > { %7452 = vmatprep.subr.bf16.mxu0 %v15600_v38  ;;  %v970_v38 = vld [vmem:[#allocation6 + $0x1330] sm:$0xff]  ;;  %v15138_v43 = vcombine.high %v455_v36, %v459_v22  ;;  %v15137_v56 = vcombine.low %v455_v36, %v459_v22 }
 0x356   : > { %7625 = vmatpush1.bf16.msra.mxu1 %v15089_v51  ;;  %v15648_v46 = vcombine.high %v966_v37, %v970_v38  ;;  %v463_v51 = vld [vmem:[#allocation6 + $0x358] sm:$0xff]  ;;  %v15647_v57 = vcombine.low %v966_v37, %v970_v38 }
 0x357   : > { %7626 = vmatprep.subr.bf16.mxu1 %v15098_v52  ;;  %v974_v52 = vld [vmem:[#allocation6 + $0x1350] sm:$0xff] }
 0x358   : > { %7453 = vmatpush1.bf16.msra.mxu0 %v15599_v54  ;;  %v467_v54 = vld [vmem:[#allocation6 + $0x378] sm:$0xff] }
 0x359   : > { %7454 = vmatprep.subr.bf16.mxu0 %v15608_v55  ;;  %v978_v55 = vld [vmem:[#allocation6 + $0x1370] sm:$0xff]  ;;  %v15146_v30 = vcombine.high %v463_v51, %v467_v54  ;;  %v15145_v1 = vcombine.low %v463_v51, %v467_v54 }
 0x35a   : > { %7627 = vmatpush1.bf16.msra.mxu1 %v15097_v10  ;;  %v15656_v61 = vcombine.high %v974_v52, %v978_v55  ;;  %v471_v10 = vld [vmem:[#allocation6 + $0x398] sm:$0xff]  ;;  %v15655_v59 = vcombine.low %v974_v52, %v978_v55 }
 0x35b   : > { %7628 = vmatprep.subr.bf16.mxu1 %v15106_v27  ;;  %v982_v27 = vld [vmem:[#allocation6 + $0x1390] sm:$0xff] }
 0x35c   : > { %7455 = vmatpush1.bf16.msra.mxu0 %v15607_v12  ;;  %v475_v12 = vld [vmem:[#allocation6 + $0x3b8] sm:$0xff] }
 0x35d   : > { %7456 = vmatprep.subr.bf16.mxu0 %v15616_v63  ;;  %v986_v63 = vld [vmem:[#allocation6 + $0x13b0] sm:$0xff]  ;;  %v15154_v2 = vcombine.high %v471_v10, %v475_v12  ;;  %v15153_v8 = vcombine.low %v471_v10, %v475_v12 }
 0x35e   : > { %7629 = vmatpush1.bf16.msra.mxu1 %v15105_v4  ;;  %v15664_v3 = vcombine.high %v982_v27, %v986_v63  ;;  %v479_v4 = vld [vmem:[#allocation6 + $0x3d8] sm:$0xff]  ;;  %v15663_v11 = vcombine.low %v982_v27, %v986_v63 }
 0x35f   : > { %7630 = vmatprep.subr.bf16.mxu1 %v15114_v6  ;;  %v990_v6 = vld [vmem:[#allocation6 + $0x13d0] sm:$0xff]  ;;  %v519_v63 = vld [vmem:[#allocation6 + $0x518] sm:$0xff] }
 0x360   : > { %7457 = vmatpush1.bf16.msra.mxu0 %v15615_v5  ;;  %v483_v5 = vld [vmem:[#allocation6 + $0x3f8] sm:$0xff] }
 0x361   : > { %7458 = vmatprep.subr.bf16.mxu0 %v15624_v7  ;;  %v994_v7 = vld [vmem:[#allocation6 + $0x13f0] sm:$0xff]  ;;  %v15162_v13 = vcombine.high %v479_v4, %v483_v5  ;;  %v15161_v53 = vcombine.low %v479_v4, %v483_v5 }
 0x362   : > { %7631 = vmatpush1.bf16.msra.mxu1 %v15113_v15  ;;  %v15672_v58 = vcombine.high %v990_v6, %v994_v7  ;;  %v487_v15 = vld [vmem:[#allocation6 + $0x418] sm:$0xff]  ;;  %v15671_v31 = vcombine.low %v990_v6, %v994_v7 }
 0x363   : > { %7632 = vmatprep.subr.bf16.mxu1 %v15122_v19  ;;  %v998_v19 = vld [vmem:[#allocation6 + $0x1410] sm:$0xff]  ;;  %v527_v6 = vld [vmem:[#allocation6 + $0x558] sm:$0xff] }
 0x364   : > { %7459 = vmatpush1.bf16.msra.mxu0 %v15623_v18  ;;  %v491_v18 = vld [vmem:[#allocation6 + $0x438] sm:$0xff] }
 0x365   : > { %7460 = vmatprep.subr.bf16.mxu0 %v15632_v47  ;;  %v1002_v47 = vld [vmem:[#allocation6 + $0x1430] sm:$0xff]  ;;  %v15170_v62 = vcombine.high %v487_v15, %v491_v18  ;;  %v15169_v36 = vcombine.low %v487_v15, %v491_v18  ;;  %v531_v7 = vld [vmem:[#allocation6 + $0x578] sm:$0xff] }
 0x366   : > { %7633 = vmatpush1.bf16.msra.mxu1 %v15121_v42  ;;  %v15680_v34 = vcombine.high %v998_v19, %v1002_v47  ;;  %v495_v42 = vld [vmem:[#allocation6 + $0x458] sm:$0xff]  ;;  %v15679_v22 = vcombine.low %v998_v19, %v1002_v47  ;;  %v15210_v15 = vcombine.high %v527_v6, %v531_v7 }
 0x367   : > { %7634 = vmatprep.subr.bf16.mxu1 %v15130_v45  ;;  %v1006_v45 = vld [vmem:[#allocation6 + $0x1450] sm:$0xff]  ;;  %v535_v19 = vld [vmem:[#allocation6 + $0x598] sm:$0xff] }
 0x368   : > { %7461 = vmatpush1.bf16.msra.mxu0 %v15631_v20  ;;  %v499_v20 = vld [vmem:[#allocation6 + $0x478] sm:$0xff] }
 0x369   : > { %7462 = vmatprep.subr.bf16.mxu0 %v15640_v44  ;;  %v1010_v44 = vld [vmem:[#allocation6 + $0x1470] sm:$0xff]  ;;  %v15178_v37 = vcombine.high %v495_v42, %v499_v20  ;;  %v15177_v51 = vcombine.low %v495_v42, %v499_v20  ;;  %v539_v47 = vld [vmem:[#allocation6 + $0x5b8] sm:$0xff] }
 0x36a   : > { %7635 = vmatpush1.bf16.msra.mxu1 %v15129_v39  ;;  %v15688_v38 = vcombine.high %v1006_v45, %v1010_v44  ;;  %v503_v39 = vld [vmem:[#allocation6 + $0x498] sm:$0xff]  ;;  %v15687_v54 = vcombine.low %v1006_v45, %v1010_v44  ;;  %v15218_v42 = vcombine.high %v535_v19, %v539_v47 }
 0x36b   : > { %7636 = vmatprep.subr.bf16.mxu1 %v15138_v43  ;;  %v1014_v43 = vld [vmem:[#allocation6 + $0x1490] sm:$0xff]  ;;  %v543_v45 = vld [vmem:[#allocation6 + $0x5d8] sm:$0xff] }
 0x36c   : > { %7463 = vmatpush1.bf16.msra.mxu0 %v15639_v40  ;;  %v507_v40 = vld [vmem:[#allocation6 + $0x4b8] sm:$0xff] }
 0x36d   : > { %7464 = vmatprep.subr.bf16.mxu0 %v15648_v46  ;;  %v1018_v46 = vld [vmem:[#allocation6 + $0x14b0] sm:$0xff]  ;;  %v15186_v52 = vcombine.high %v503_v39, %v507_v40  ;;  %v547_v44 = vld [vmem:[#allocation6 + $0x5f8] sm:$0xff] }
 0x36e   : > { %7637 = vmatpush1.bf16.msra.mxu1 %v15137_v56  ;;  %v15696_v55 = vcombine.high %v1014_v43, %v1018_v46  ;;  %v511_v56 = vld [vmem:[#allocation6 + $0x4d8] sm:$0xff]  ;;  %v15695_v10 = vcombine.low %v1014_v43, %v1018_v46 }
 0x36f   : > { %7638 = vmatprep.subr.bf16.mxu1 %v15146_v30  ;;  %v1022_v30 = vld [vmem:[#allocation6 + $0x14d0] sm:$0xff]  ;;  %v551_v43 = vld [vmem:[#allocation6 + $0x618] sm:$0xff] }
 0x370   : > { %7465 = vmatpush1.bf16.msra.mxu0 %v15647_v57  ;;  %v515_v57 = vld [vmem:[#allocation6 + $0x4f8] sm:$0xff] }
 0x371   : > { %7466 = vmatprep.subr.bf16.mxu0 %v15656_v61  ;;  %v1026_v61 = vld [vmem:[#allocation6 + $0x14f0] sm:$0xff]  ;;  %v15194_v12 = vcombine.high %v511_v56, %v515_v57  ;;  %v555_v46 = vld [vmem:[#allocation6 + $0x638] sm:$0xff] }
 0x372   : > { %7639 = vmatpush1.bf16.msra.mxu1 %v15145_v1  ;;  %v15704_v27 = vcombine.high %v1022_v30, %v1026_v61  ;;  %v523_v1 = vld [vmem:[#allocation6 + $0x538] sm:$0xff]  ;;  %v15703_v4 = vcombine.low %v1022_v30, %v1026_v61 }
 0x373   : > { %7640 = vmatprep.subr.bf16.mxu1 %v15154_v2  ;;  %v1034_v2 = vld [vmem:[#allocation6 + $0x1530] sm:$0xff]  ;;  %v15202_v5 = vcombine.high %v519_v63, %v523_v1  ;;  %v559_v30 = vld [vmem:[#allocation6 + $0x658] sm:$0xff] }
 0x374   : > { %7467 = vmatpush1.bf16.msra.mxu0 %v15655_v59  ;;  %v1030_v59 = vld [vmem:[#allocation6 + $0x1510] sm:$0xff]  ;;  %v563_v61 = vld [vmem:[#allocation6 + $0x678] sm:$0xff] }
 0x375   : > { %7468 = vmatprep.subr.bf16.mxu0 %v15664_v3  ;;  %v15193_v3 = vcombine.low %v511_v56, %v515_v57  ;;  %v15234_v56 = vcombine.high %v551_v43, %v555_v46 }
 0x376   : > { %7641 = vmatpush1.bf16.msra.mxu1 %v15153_v8  ;;  %v1038_v8 = vld [vmem:[#allocation6 + $0x1550] sm:$0xff] }
 0x377   : > { %7642 = vmatprep.subr.bf16.mxu1 %v15162_v13  ;;  %v15201_v13 = vcombine.low %v519_v63, %v523_v1  ;;  %v15242_v63 = vcombine.high %v559_v30, %v563_v61 }
 0x378   : > { %7469 = vmatpush1.bf16.msra.mxu0 %v15663_v11  ;;  %v1042_v11 = vld [vmem:[#allocation6 + $0x1570] sm:$0xff] }
 0x379   : > { %7470 = vmatprep.subr.bf16.mxu0 %v15672_v58  ;;  %v15711_v58 = vcombine.low %v1030_v59, %v1034_v2  ;;  %v15720_v18 = vcombine.high %v1038_v8, %v1042_v11 }
 0x37a   : > { %7643 = vmatpush1.bf16.msra.mxu1 %v15161_v53  ;;  %v1046_v53 = vld [vmem:[#allocation6 + $0x1590] sm:$0xff] }
 0x37b   : > { %7655 = vmatprep.subr.bf16.mxu1 %v15170_v62  ;;  %v15209_v62 = vcombine.low %v527_v6, %v531_v7 }
 0x37c   : > { %7471 = vmatpush1.bf16.msra.mxu0 %v15671_v31  ;;  %v1050_v31 = vld [vmem:[#allocation6 + $0x15b0] sm:$0xff] }
 0x37d   : > { %7483 = vmatprep.subr.bf16.mxu0 %v15680_v34  ;;  %7645 = vmatmul.mubr.bf16.vlgmr.msra.gmra.mrb[8].mxu1 %v19247_v21  ;;  %v15185_v21 = vcombine.low %v503_v39, %v507_v40  ;;  %v15719_v34 = vcombine.low %v1038_v8, %v1042_v11  ;;  %v15728_v20 = vcombine.high %v1046_v53, %v1050_v31  ;;  %v575_v8 = vld [vmem:[#allocation6 + $0x6d8] sm:$0xff] }
 0x37e   : > { %7656 = vmatpush1.bf16.msra.mxu1 %v15169_v36  ;;  %7687 = vmatprep.mubr.bf16.mxu1 %v19267_v32  ;;  %v15712_v32 = vcombine.high %v1030_v59, %v1034_v2  ;;  %v1054_v36 = vld [vmem:[#allocation6 + $0x15d0] sm:$0xff]  ;;  %v15226_v39 = vcombine.high %v543_v45, %v547_v44  ;;  %v567_v59 = vld [vmem:[#allocation6 + $0x698] sm:$0xff] }
 0x37f   : > { %7473 = vmatmul.mubr.bf16.vlgmr.msra.gmra.mrb[4].mxu0 %v19307_v14  ;;  %7657 = vmatprep.subr.bf16.mxu1 %v15178_v37  ;;  %v15217_v37 = vcombine.low %v535_v19, %v539_v47  ;;  %v571_v2 = vld [vmem:[#allocation6 + $0x6b8] sm:$0xff] }
 0x380   : > { %7484 = vmatpush1.bf16.msra.mxu0 %v15679_v22  ;;  %7515 = vmatprep.mubr.bf16.mxu0 %v19311_v25  ;;  %v1058_v22 = vld [vmem:[#allocation6 + $0x15f0] sm:$0xff]  ;;  %v15250_v6 = vcombine.high %v567_v59, %v571_v2  ;;  %v579_v11 = vld [vmem:[#allocation6 + $0x6f8] sm:$0xff] }
 0x381   : > { %7485 = vmatprep.subr.bf16.mxu0 %v15688_v38  ;;  %v15727_v38 = vcombine.low %v1046_v53, %v1050_v31  ;;  %v15736_v40 = vcombine.high %v1054_v36, %v1058_v22  ;;  %v15258_v19 = vcombine.high %v575_v8, %v579_v11  ;;  %v583_v53 = vld [vmem:[#allocation6 + $0x718] sm:$0xff] }
 0x382   : > { %7658 = vmatpush1.bf16.msra.mxu1 %v15177_v51  ;;  %v1062_v51 = vld [vmem:[#allocation6 + $0x1610] sm:$0xff]  ;;  %v587_v31 = vld [vmem:[#allocation6 + $0x738] sm:$0xff] }
 0x383   : > { %7659 = vmatprep.subr.bf16.mxu1 %v15186_v52  ;;  %v15225_v52 = vcombine.low %v543_v45, %v547_v44  ;;  %v15266_v45 = vcombine.high %v583_v53, %v587_v31 }
 0x384   : > { %7486 = vmatpush1.bf16.msra.mxu0 %v15687_v54  ;;  %v1066_v54 = vld [vmem:[#allocation6 + $0x1630] sm:$0xff] }
 0x385   : > { %7487 = vmatprep.subr.bf16.mxu0 %v15696_v55  ;;  %v15735_v55 = vcombine.low %v1054_v36, %v1058_v22  ;;  %v15744_v57 = vcombine.high %v1062_v51, %v1066_v54  ;;  %v591_v36 = vld [vmem:[#allocation6 + $0x758] sm:$0xff] }
 0x386   : > { %7660 = vmatpush1.bf16.msra.mxu1 %v15185_v21  ;;  %v1070_v21 = vld [vmem:[#allocation6 + $0x1650] sm:$0xff]  ;;  %v595_v22 = vld [vmem:[#allocation6 + $0x778] sm:$0xff] }
 0x387   : > { %7661 = vmatprep.subr.bf16.mxu1 %v15194_v12  ;;  %v15233_v12 = vcombine.low %v551_v43, %v555_v46  ;;  %v15274_v43 = vcombine.high %v591_v36, %v595_v22 }
 0x388   : > { %7488 = vmatpush1.bf16.msra.mxu0 %v15695_v10  ;;  %v1074_v10 = vld [vmem:[#allocation6 + $0x1670] sm:$0xff] }
 0x389   : > { %7489 = vmatprep.subr.bf16.mxu0 %v15704_v27  ;;  %v15743_v27 = vcombine.low %v1062_v51, %v1066_v54  ;;  %v15752_v1 = vcombine.high %v1070_v21, %v1074_v10  ;;  %v599_v51 = vld [vmem:[#allocation6 + $0x798] sm:$0xff] }
 0x38a   : > { %7662 = vmatpush1.bf16.msra.mxu1 %v15193_v3  ;;  %v1078_v3 = vld [vmem:[#allocation6 + $0x1690] sm:$0xff]  ;;  %v603_v54 = vld [vmem:[#allocation6 + $0x7b8] sm:$0xff] }
 0x38b   : > { %7663 = vmatprep.subr.bf16.mxu1 %v15202_v5  ;;  %v15241_v5 = vcombine.low %v559_v30, %v563_v61  ;;  %v15282_v30 = vcombine.high %v599_v51, %v603_v54 }
 0x38c   : > { %7490 = vmatpush1.bf16.msra.mxu0 %v15703_v4  ;;  %v1082_v4 = vld [vmem:[#allocation6 + $0x16b0] sm:$0xff] }
 0x38d   : > { %7491 = vmatprep.subr.bf16.mxu0 %v15712_v32  ;;  %v15751_v32 = vcombine.low %v1070_v21, %v1074_v10  ;;  %v15760_v7 = vcombine.high %v1078_v3, %v1082_v4  ;;  %v607_v21 = vld [vmem:[#allocation6 + $0x7d8] sm:$0xff] }
 0x38e   : > { %7664 = vmatpush1.bf16.msra.mxu1 %v15201_v13  ;;  %v1086_v13 = vld [vmem:[#allocation6 + $0x16d0] sm:$0xff]  ;;  %v611_v10 = vld [vmem:[#allocation6 + $0x7f8] sm:$0xff] }
 0x38f   : > { %7665 = vmatprep.subr.bf16.mxu1 %v15210_v15  ;;  %v15249_v15 = vcombine.low %v567_v59, %v571_v2  ;;  %v15290_v59 = vcombine.high %v607_v21, %v611_v10 }
 0x390   : > { %7492 = vmatpush1.bf16.msra.mxu0 %v15711_v58  ;;  %v1090_v58 = vld [vmem:[#allocation6 + $0x16f0] sm:$0xff] }
 0x391   : > { %7493 = vmatprep.subr.bf16.mxu0 %v15720_v18  ;;  %v15759_v18 = vcombine.low %v1078_v3, %v1082_v4  ;;  %v15768_v47 = vcombine.high %v1086_v13, %v1090_v58  ;;  %v615_v3 = vld [vmem:[#allocation6 + $0x818] sm:$0xff] }
 0x392   : > { %7666 = vmatpush1.bf16.msra.mxu1 %v15209_v62  ;;  %v1094_v62 = vld [vmem:[#allocation6 + $0x1710] sm:$0xff]  ;;  %v619_v4 = vld [vmem:[#allocation6 + $0x838] sm:$0xff] }
 0x393   : > { %7667 = vmatprep.subr.bf16.mxu1 %v15218_v42  ;;  %v15257_v42 = vcombine.low %v575_v8, %v579_v11  ;;  %v15298_v8 = vcombine.high %v615_v3, %v619_v4 }
 0x394   : > { %7494 = vmatpush1.bf16.msra.mxu0 %v15719_v34  ;;  %v1098_v34 = vld [vmem:[#allocation6 + $0x1730] sm:$0xff] }
 0x395   : > { %7495 = vmatprep.subr.bf16.mxu0 %v15728_v20  ;;  %v15767_v20 = vcombine.low %v1086_v13, %v1090_v58  ;;  %v15776_v44 = vcombine.high %v1094_v62, %v1098_v34  ;;  %v623_v13 = vld [vmem:[#allocation6 + $0x858] sm:$0xff] }
 0x396   : > { %7668 = vmatpush1.bf16.msra.mxu1 %v15217_v37  ;;  %v1102_v37 = vld [vmem:[#allocation6 + $0x1750] sm:$0xff]  ;;  %v627_v58 = vld [vmem:[#allocation6 + $0x878] sm:$0xff] }
 0x397   : > { %7669 = vmatprep.subr.bf16.mxu1 %v15226_v39  ;;  %v15265_v39 = vcombine.low %v583_v53, %v587_v31  ;;  %v15306_v53 = vcombine.high %v623_v13, %v627_v58 }
 0x398   : > { %7496 = vmatpush1.bf16.msra.mxu0 %v15727_v38  ;;  %v1106_v38 = vld [vmem:[#allocation6 + $0x1770] sm:$0xff] }
 0x399   : > { %7497 = vmatprep.subr.bf16.mxu0 %v15736_v40  ;;  %v15775_v40 = vcombine.low %v1094_v62, %v1098_v34  ;;  %v15784_v46 = vcombine.high %v1102_v37, %v1106_v38  ;;  %v631_v62 = vld [vmem:[#allocation6 + $0x898] sm:$0xff] }
 0x39a   : > { %7670 = vmatpush1.bf16.msra.mxu1 %v15225_v52  ;;  %v1110_v52 = vld [vmem:[#allocation6 + $0x1790] sm:$0xff]  ;;  %v635_v34 = vld [vmem:[#allocation6 + $0x8b8] sm:$0xff] }
 0x39b   : > { %7671 = vmatprep.subr.bf16.mxu1 %v15234_v56  ;;  %v15273_v56 = vcombine.low %v591_v36, %v595_v22  ;;  %v15314_v36 = vcombine.high %v631_v62, %v635_v34 }
 0x39c   : > { %7498 = vmatpush1.bf16.msra.mxu0 %v15735_v55  ;;  %v1114_v55 = vld [vmem:[#allocation6 + $0x17b0] sm:$0xff] }
 0x39d   : > { %7499 = vmatprep.subr.bf16.mxu0 %v15744_v57  ;;  %v15783_v57 = vcombine.low %v1102_v37, %v1106_v38  ;;  %v15792_v61 = vcombine.high %v1110_v52, %v1114_v55  ;;  %v639_v37 = vld [vmem:[#allocation6 + $0x8d8] sm:$0xff] }
 0x39e   : > { %7672 = vmatpush1.bf16.msra.mxu1 %v15233_v12  ;;  %v1118_v12 = vld [vmem:[#allocation6 + $0x17d0] sm:$0xff]  ;;  %v643_v38 = vld [vmem:[#allocation6 + $0x8f8] sm:$0xff] }
 0x39f   : > { %7673 = vmatprep.subr.bf16.mxu1 %v15242_v63  ;;  %v15281_v63 = vcombine.low %v599_v51, %v603_v54  ;;  %v647_v54 = vld [vmem:[#allocation6 + $0x918] sm:$0xff] }
 0x3a0   : > { %7500 = vmatpush1.bf16.msra.mxu0 %v15743_v27  ;;  %v1122_v27 = vld [vmem:[#allocation6 + $0x17f0] sm:$0xff] }
 0x3a1   : > { %7501 = vmatprep.subr.bf16.mxu0 %v15752_v1  ;;  %v15791_v1 = vcombine.low %v1110_v52, %v1114_v55  ;;  %v15800_v2 = vcombine.high %v1118_v12, %v1122_v27  ;;  %v651_v52 = vld [vmem:[#allocation6 + $0x938] sm:$0xff]  ;;  %v1158_v55 = vld [vmem:[#allocation6 + $0x1910] sm:$0xff] }
 0x3a2   : > { %7674 = vmatpush1.bf16.msra.mxu1 %v15241_v5  ;;  %v1126_v5 = vld [vmem:[#allocation6 + $0x1810] sm:$0xff] }
 0x3a3   : > { %7675 = vmatprep.subr.bf16.mxu1 %v15250_v6  ;;  %v15289_v6 = vcombine.low %v607_v21, %v611_v10  ;;  %v655_v21 = vld [vmem:[#allocation6 + $0x958] sm:$0xff] }
 0x3a4   : > { %7502 = vmatpush1.bf16.msra.mxu0 %v15751_v32  ;;  %v1130_v32 = vld [vmem:[#allocation6 + $0x1830] sm:$0xff]  ;;  %v659_v10 = vld [vmem:[#allocation6 + $0x978] sm:$0xff] }
 0x3a5   : > { %7503 = vmatprep.subr.bf16.mxu0 %v15760_v7  ;;  %v15799_v7 = vcombine.low %v1118_v12, %v1122_v27  ;;  %v15808_v11 = vcombine.high %v1126_v5, %v1130_v32  ;;  %v1166_v12 = vld [vmem:[#allocation6 + $0x1950] sm:$0xff] }
 0x3a6   : > { %7676 = vmatpush1.bf16.msra.mxu1 %v15249_v15  ;;  %v1134_v15 = vld [vmem:[#allocation6 + $0x1850] sm:$0xff] }
 0x3a7   : > { %7677 = vmatprep.subr.bf16.mxu1 %v15258_v19  ;;  %v15297_v19 = vcombine.low %v615_v3, %v619_v4  ;;  %v1170_v27 = vld [vmem:[#allocation6 + $0x1970] sm:$0xff]  ;;  %v663_v3 = vld [vmem:[#allocation6 + $0x998] sm:$0xff] }
 0x3a8   : > { %7504 = vmatpush1.bf16.msra.mxu0 %v15759_v18  ;;  %v1138_v18 = vld [vmem:[#allocation6 + $0x1870] sm:$0xff]  ;;  %v667_v4 = vld [vmem:[#allocation6 + $0x9b8] sm:$0xff] }
 0x3a9   : > { %7505 = vmatprep.subr.bf16.mxu0 %v15768_v47  ;;  %v15807_v47 = vcombine.low %v1126_v5, %v1130_v32  ;;  %v15816_v31 = vcombine.high %v1134_v15, %v1138_v18  ;;  %v1174_v5 = vld [vmem:[#allocation6 + $0x1990] sm:$0xff] }
 0x3aa   : > { %7678 = vmatpush1.bf16.msra.mxu1 %v15257_v42  ;;  %v1142_v42 = vld [vmem:[#allocation6 + $0x1890] sm:$0xff] }
 0x3ab   : > { %7679 = vmatprep.subr.bf16.mxu1 %v15266_v45  ;;  %v15305_v45 = vcombine.low %v623_v13, %v627_v58  ;;  %v1178_v32 = vld [vmem:[#allocation6 + $0x19b0] sm:$0xff]  ;;  %v671_v13 = vld [vmem:[#allocation6 + $0x9d8] sm:$0xff] }
 0x3ac   : > { %7506 = vmatpush1.bf16.msra.mxu0 %v15767_v20  ;;  %v1146_v20 = vld [vmem:[#allocation6 + $0x18b0] sm:$0xff]  ;;  %v675_v58 = vld [vmem:[#allocation6 + $0x9f8] sm:$0xff] }
 0x3ad   : > { %7507 = vmatprep.subr.bf16.mxu0 %v15776_v44  ;;  %v15815_v44 = vcombine.low %v1134_v15, %v1138_v18  ;;  %v15824_v22 = vcombine.high %v1142_v42, %v1146_v20  ;;  %v1182_v15 = vld [vmem:[#allocation6 + $0x19d0] sm:$0xff] }
 0x3ae   : > { %7680 = vmatpush1.bf16.msra.mxu1 %v15265_v39  ;;  %v1150_v39 = vld [vmem:[#allocation6 + $0x18d0] sm:$0xff] }
 0x3af   : > { %7681 = vmatprep.subr.bf16.mxu1 %v15274_v43  ;;  %v15823_v43 = vcombine.low %v1142_v42, %v1146_v20  ;;  %v1186_v18 = vld [vmem:[#allocation6 + $0x19f0] sm:$0xff] }
 0x3b0   : > { %7508 = vmatpush1.bf16.msra.mxu0 %v15775_v40  ;;  %v1154_v40 = vld [vmem:[#allocation6 + $0x18f0] sm:$0xff] }
 0x3b1   : > { %7509 = vmatprep.subr.bf16.mxu0 %v15784_v46  ;;  %v15322_v46 = vcombine.high %v639_v37, %v643_v38  ;;  %v15832_v51 = vcombine.high %v1150_v39, %v1154_v40  ;;  %v1190_v42 = vld [vmem:[#allocation6 + $0x1a10] sm:$0xff] }
 0x3b2   : > { %7682 = vmatpush1.bf16.msra.mxu1 %v15273_v56  ;;  %v1162_v56 = vld [vmem:[#allocation6 + $0x1930] sm:$0xff] }
 0x3b3   : > { %7683 = vmatprep.subr.bf16.mxu1 %v15282_v30  ;;  %v15831_v30 = vcombine.low %v1150_v39, %v1154_v40  ;;  %v1194_v20 = vld [vmem:[#allocation6 + $0x1a30] sm:$0xff] }
 0x3b4   : > { %7510 = vmatpush1.bf16.msra.mxu0 %v15783_v57  ;;  %v15321_v57 = vcombine.low %v639_v37, %v643_v38  ;;  %v687_v37 = vld [vmem:[#allocation6 + $0xa58] sm:$0xff]  ;;  %v1198_v39 = vld [vmem:[#allocation6 + $0x1a50] sm:$0xff] }
 0x3b5   : > { %7511 = vmatprep.subr.bf16.mxu0 %v15792_v61  ;;  %v15330_v61 = vcombine.high %v647_v54, %v651_v52  ;;  %v691_v38 = vld [vmem:[#allocation6 + $0xa78] sm:$0xff]  ;;  %v1202_v40 = vld [vmem:[#allocation6 + $0x1a70] sm:$0xff] }
 0x3b6   : > { %7684 = vmatpush1.bf16.msra.mxu1 %v15281_v63  ;;  %v15329_v63 = vcombine.low %v647_v54, %v651_v52  ;;  %v695_v54 = vld [vmem:[#allocation6 + $0xa98] sm:$0xff] }
 0x3b7   : > { %7685 = vmatprep.subr.bf16.mxu1 %v15290_v59  ;;  %v15338_v59 = vcombine.high %v655_v21, %v659_v10  ;;  %v699_v52 = vld [vmem:[#allocation6 + $0xab8] sm:$0xff] }
 0x3b8   : > { %7512 = vmatpush1.bf16.msra.mxu0 %v15791_v1  ;;  %v15839_v1 = vcombine.low %v1158_v55, %v1162_v56 }
 0x3b9   : > { %7513 = vmatprep.subr.bf16.mxu0 %v15800_v2  ;;  %v15848_v2 = vcombine.high %v1166_v12, %v1170_v27 }
 0x3ba   : > { %7686 = vmatpush1.bf16.msra.mxu1 %v15289_v6  ;;  %v15337_v6 = vcombine.low %v655_v21, %v659_v10  ;;  %v703_v21 = vld [vmem:[#allocation6 + $0xad8] sm:$0xff] }
 0x3bb   : > { %7698 = vmatprep.subr.bf16.mxu1 %v15298_v8  ;;  %v15346_v8 = vcombine.high %v663_v3, %v667_v4  ;;  %v707_v10 = vld [vmem:[#allocation6 + $0xaf8] sm:$0xff] }
 0x3bc   : > { %7514 = vmatpush1.bf16.msra.mxu0 %v15799_v7  ;;  %v15847_v7 = vcombine.low %v1166_v12, %v1170_v27  ;;  %v1214_v12 = vld [vmem:[#allocation6 + $0x1ad0] sm:$0xff] }
 0x3bd   : > { %7526 = vmatprep.subr.bf16.mxu0 %v15808_v11  ;;  %7688 = vmatmul.mubr.bf16.vlgmr.msra.gmra.mrb[8].mxu1 %v19285_v48  ;;  %v15313_v48 = vcombine.low %v631_v62, %v635_v34  ;;  %v15856_v11 = vcombine.high %v1174_v5, %v1178_v32  ;;  %v679_v62 = vld [vmem:[#allocation6 + $0xa18] sm:$0xff]  ;;  %v1218_v27 = vld [vmem:[#allocation6 + $0x1af0] sm:$0xff] }
 0x3be   : > { %7699 = vmatpush1.bf16.msra.mxu1 %v15297_v19  ;;  %7730 = vmatprep.mubr.bf16.mxu1 %v19242_v0  ;;  %v15840_v0 = vcombine.high %v1158_v55, %v1162_v56  ;;  %v15345_v19 = vcombine.low %v663_v3, %v667_v4  ;;  %v683_v34 = vld [vmem:[#allocation6 + $0xa38] sm:$0xff]  ;;  %v1206_v55 = vld [vmem:[#allocation6 + $0x1a90] sm:$0xff] }
 0x3bf   : > { %7516 = vmatmul.mubr.bf16.vlgmr.msra.gmra.mrb[4].mxu0 %v19325_v49  ;;  %7700 = vmatprep.subr.bf16.mxu1 %v15306_v53  ;;  %v15354_v53 = vcombine.high %v671_v13, %v675_v58  ;;  %v1210_v56 = vld [vmem:[#allocation6 + $0x1ab0] sm:$0xff]  ;;  %v711_v3 = vld [vmem:[#allocation6 + $0xb18] sm:$0xff] }
 0x3c0   : > { %7527 = vmatpush1.bf16.msra.mxu0 %v15807_v47  ;;  %7558 = vmatprep.mubr.bf16.mxu0 %v19329_v24  ;;  %v15855_v47 = vcombine.low %v1174_v5, %v1178_v32  ;;  %v715_v4 = vld [vmem:[#allocation6 + $0xb38] sm:$0xff]  ;;  %v1222_v5 = vld [vmem:[#allocation6 + $0x1b10] sm:$0xff] }
 0x3c1   : > { %7528 = vmatprep.subr.bf16.mxu0 %v15816_v31  ;;  %v15864_v31 = vcombine.high %v1182_v15, %v1186_v18  ;;  %v1226_v32 = vld [vmem:[#allocation6 + $0x1b30] sm:$0xff] }
 0x3c2   : > { %7701 = vmatpush1.bf16.msra.mxu1 %v15305_v45  ;;  %v15353_v45 = vcombine.low %v671_v13, %v675_v58  ;;  %v719_v13 = vld [vmem:[#allocation6 + $0xb58] sm:$0xff] }
 0x3c3   : > { %7702 = vmatprep.subr.bf16.mxu1 %v15314_v36  ;;  %v15362_v36 = vcombine.high %v679_v62, %v683_v34  ;;  %v723_v58 = vld [vmem:[#allocation6 + $0xb78] sm:$0xff] }
 0x3c4   : > { %7529 = vmatpush1.bf16.msra.mxu0 %v15815_v44  ;;  %v15863_v44 = vcombine.low %v1182_v15, %v1186_v18  ;;  %v1230_v15 = vld [vmem:[#allocation6 + $0x1b50] sm:$0xff] }
 0x3c5   : > { %7530 = vmatprep.subr.bf16.mxu0 %v15824_v22  ;;  %v15872_v22 = vcombine.high %v1190_v42, %v1194_v20  ;;  %v1234_v18 = vld [vmem:[#allocation6 + $0x1b70] sm:$0xff] }
 0x3c6   : > { %7703 = vmatpush1.bf16.msra.mxu1 %v15313_v48  ;;  %v15361_v48 = vcombine.low %v679_v62, %v683_v34  ;;  %v727_v62 = vld [vmem:[#allocation6 + $0xb98] sm:$0xff] }
 0x3c7   : > { %7704 = vmatprep.subr.bf16.mxu1 %v15322_v46  ;;  %v15370_v46 = vcombine.high %v687_v37, %v691_v38  ;;  %v731_v34 = vld [vmem:[#allocation6 + $0xbb8] sm:$0xff] }
 0x3c8   : > { %7531 = vmatpush1.bf16.msra.mxu0 %v15823_v43  ;;  %v15871_v43 = vcombine.low %v1190_v42, %v1194_v20  ;;  %v1238_v42 = vld [vmem:[#allocation6 + $0x1b90] sm:$0xff] }
 0x3c9   : > { %7532 = vmatprep.subr.bf16.mxu0 %v15832_v51  ;;  %v15880_v51 = vcombine.high %v1198_v39, %v1202_v40  ;;  %v1242_v20 = vld [vmem:[#allocation6 + $0x1bb0] sm:$0xff] }
 0x3ca   : > { %7705 = vmatpush1.bf16.msra.mxu1 %v15321_v57  ;;  %v15369_v57 = vcombine.low %v687_v37, %v691_v38  ;;  %v735_v37 = vld [vmem:[#allocation6 + $0xbd8] sm:$0xff] }
 0x3cb   : > { %7706 = vmatprep.subr.bf16.mxu1 %v15330_v61  ;;  %v15378_v61 = vcombine.high %v695_v54, %v699_v52  ;;  %v739_v38 = vld [vmem:[#allocation6 + $0xbf8] sm:$0xff] }
 0x3cc   : > { %7533 = vmatpush1.bf16.msra.mxu0 %v15831_v30  ;;  %v15879_v30 = vcombine.low %v1198_v39, %v1202_v40  ;;  %v1246_v39 = vld [vmem:[#allocation6 + $0x1bd0] sm:$0xff] }
 0x3cd   : > { %7534 = vmatprep.subr.bf16.mxu0 %v15840_v0  ;;  %v15888_v0 = vcombine.high %v1206_v55, %v1210_v56  ;;  %v1250_v40 = vld [vmem:[#allocation6 + $0x1bf0] sm:$0xff] }
 0x3ce   : > { %7707 = vmatpush1.bf16.msra.mxu1 %v15329_v63  ;;  %v15377_v63 = vcombine.low %v695_v54, %v699_v52  ;;  %v743_v54 = vld [vmem:[#allocation6 + $0xc18] sm:$0xff] }
 0x3cf   : > { %7708 = vmatprep.subr.bf16.mxu1 %v15338_v59  ;;  %v15386_v59 = vcombine.high %v703_v21, %v707_v10  ;;  %v747_v52 = vld [vmem:[#allocation6 + $0xc38] sm:$0xff] }
 0x3d0   : > { %7535 = vmatpush1.bf16.msra.mxu0 %v15839_v1  ;;  %v15887_v1 = vcombine.low %v1206_v55, %v1210_v56  ;;  %v1254_v55 = vld [vmem:[#allocation6 + $0x1c10] sm:$0xff] }
 0x3d1   : > { %7536 = vmatprep.subr.bf16.mxu0 %v15848_v2  ;;  %v15896_v2 = vcombine.high %v1214_v12, %v1218_v27  ;;  %v1258_v56 = vld [vmem:[#allocation6 + $0x1c30] sm:$0xff] }
 0x3d2   : > { %7709 = vmatpush1.bf16.msra.mxu1 %v15337_v6  ;;  %v15385_v6 = vcombine.low %v703_v21, %v707_v10  ;;  %v751_v21 = vld [vmem:[#allocation6 + $0xc58] sm:$0xff] }
 0x3d3   : > { %7710 = vmatprep.subr.bf16.mxu1 %v15346_v8  ;;  %v15394_v8 = vcombine.high %v711_v3, %v715_v4  ;;  %v755_v10 = vld [vmem:[#allocation6 + $0xc78] sm:$0xff] }
 0x3d4   : > { %7537 = vmatpush1.bf16.msra.mxu0 %v15847_v7  ;;  %v15895_v7 = vcombine.low %v1214_v12, %v1218_v27  ;;  %v1262_v12 = vld [vmem:[#allocation6 + $0x1c50] sm:$0xff] }
 0x3d5   : > { %7538 = vmatprep.subr.bf16.mxu0 %v15856_v11  ;;  %v15904_v11 = vcombine.high %v1222_v5, %v1226_v32  ;;  %v1266_v27 = vld [vmem:[#allocation6 + $0x1c70] sm:$0xff] }
 0x3d6   : > { %7711 = vmatpush1.bf16.msra.mxu1 %v15345_v19  ;;  %v15393_v19 = vcombine.low %v711_v3, %v715_v4  ;;  %v759_v3 = vld [vmem:[#allocation6 + $0xc98] sm:$0xff] }
 0x3d7   : > { %7712 = vmatprep.subr.bf16.mxu1 %v15354_v53  ;;  %v15402_v53 = vcombine.high %v719_v13, %v723_v58  ;;  %v763_v4 = vld [vmem:[#allocation6 + $0xcb8] sm:$0xff] }
 0x3d8   : > { %7539 = vmatpush1.bf16.msra.mxu0 %v15855_v47  ;;  %v15903_v47 = vcombine.low %v1222_v5, %v1226_v32  ;;  %v1270_v5 = vld [vmem:[#allocation6 + $0x1c90] sm:$0xff] }
 0x3d9   : > { %7540 = vmatprep.subr.bf16.mxu0 %v15864_v31  ;;  %v15912_v31 = vcombine.high %v1230_v15, %v1234_v18  ;;  %v1274_v32 = vld [vmem:[#allocation6 + $0x1cb0] sm:$0xff] }
 0x3da   : > { %7713 = vmatpush1.bf16.msra.mxu1 %v15353_v45  ;;  %v15401_v45 = vcombine.low %v719_v13, %v723_v58  ;;  %v767_v13 = vld [vmem:[#allocation6 + $0xcd8] sm:$0xff] }
 0x3db   : > { %7714 = vmatprep.subr.bf16.mxu1 %v15362_v36  ;;  %v15410_v36 = vcombine.high %v727_v62, %v731_v34  ;;  %v771_v58 = vld [vmem:[#allocation6 + $0xcf8] sm:$0xff] }
 0x3dc   : > { %7541 = vmatpush1.bf16.msra.mxu0 %v15863_v44  ;;  %v15911_v44 = vcombine.low %v1230_v15, %v1234_v18  ;;  %v1278_v15 = vld [vmem:[#allocation6 + $0x1cd0] sm:$0xff] }
 0x3dd   : > { %7542 = vmatprep.subr.bf16.mxu0 %v15872_v22  ;;  %v15920_v22 = vcombine.high %v1238_v42, %v1242_v20  ;;  %v1282_v18 = vld [vmem:[#allocation6 + $0x1cf0] sm:$0xff] }
 0x3de   : > { %7715 = vmatpush1.bf16.msra.mxu1 %v15361_v48  ;;  %v15409_v48 = vcombine.low %v727_v62, %v731_v34  ;;  %v779_v62 = vld [vmem:[#allocation6 + $0xd38] sm:$0xff]  ;;  %v1286_v34 = vld [vmem:[#allocation6 + $0x1d10] sm:$0xff] }
 0x3df   : > { %7716 = vmatprep.subr.bf16.mxu1 %v15370_v46  ;;  %v15418_v46 = vcombine.high %v735_v37, %v739_v38 }
 0x3e0   : > { %7543 = vmatpush1.bf16.msra.mxu0 %v15871_v43  ;;  %v15919_v43 = vcombine.low %v1238_v42, %v1242_v20  ;;  %v1290_v42 = vld [vmem:[#allocation6 + $0x1d30] sm:$0xff]  ;;  %v15449_v20 = vcombine.low %v767_v13, %v771_v58 }
 0x3e1   : > { %7544 = vmatprep.subr.bf16.mxu0 %v15880_v51  ;;  %v15928_v51 = vcombine.high %v1246_v39, %v1250_v40 }
 0x3e2   : > { %7717 = vmatpush1.bf16.msra.mxu1 %v15369_v57  ;;  %v15417_v57 = vcombine.low %v735_v37, %v739_v38  ;;  %v19418_v37 = vsub.s32 2, %v19381_v41  ;;  %v1294_v38 = vld [vmem:[#allocation6 + $0x1d50] sm:$0xff] }
 0x3e3   : > { %7718 = vmatprep.subr.bf16.mxu1 %v15378_v61  ;;  %v15426_v61 = vcombine.high %v743_v54, %v747_v52 }
 0x3e4   : > { %7545 = vmatpush1.bf16.msra.mxu0 %v15879_v30  ;;  %v15927_v30 = vcombine.low %v1246_v39, %v1250_v40  ;;  %v1298_v39 = vld [vmem:[#allocation6 + $0x1d70] sm:$0xff] }
 0x3e5   : > { %7546 = vmatprep.subr.bf16.mxu0 %v15888_v0  ;;  %v15936_v0 = vcombine.high %v1254_v55, %v1258_v56 }
 0x3e6   : > { %7719 = vmatpush1.bf16.msra.mxu1 %v15377_v63  ;;  %v15425_v63 = vcombine.low %v743_v54, %v747_v52  ;;  %v791_v54 = vld [vmem:[#allocation6 + $0xd98] sm:$0xff] }
 0x3e7   : > { %7720 = vmatprep.subr.bf16.mxu1 %v15386_v59  ;;  %v15434_v59 = vcombine.high %v751_v21, %v755_v10  ;;  %v795_v52 = vld [vmem:[#allocation6 + $0xdb8] sm:$0xff] }
 0x3e8   : > { %7547 = vmatpush1.bf16.msra.mxu0 %v15887_v1  ;;  %v15935_v1 = vcombine.low %v1254_v55, %v1258_v56  ;;  %v18665_v55 = vld [vmem:[#allocation8] sm:$0xff] }
 0x3e9   : > { %7548 = vmatprep.subr.bf16.mxu0 %v15896_v2  ;;  %v15944_v2 = vcombine.high %v1262_v12, %v1266_v27  ;;  %v7969_v56 = vrot.slane %v18665_v55, %v19418_v37 }
 0x3ea   : > { %7721 = vmatpush1.bf16.msra.mxu1 %v15385_v6  ;;  %v15433_v6 = vcombine.low %v751_v21, %v755_v10  ;;  %v18666_v21 = vld [vmem:[#allocation9] sm:$0xff] }
 0x3eb   : > { %7722 = vmatprep.subr.bf16.mxu1 %v15394_v8  ;;  %v15442_v8 = vcombine.high %v759_v3, %v763_v4  ;;  %v8027_v10 = vrot.slane %v18666_v21, %v19418_v37 }
 0x3ec   : > { %7549 = vmatpush1.bf16.msra.mxu0 %v15895_v7  ;;  %v15943_v7 = vcombine.low %v1262_v12, %v1266_v27  ;;  %v15975_v12 = vcombine.low %v1294_v38, %v1298_v39  ;;  %v15474_v27 = vcombine.high %v791_v54, %v795_v52 }
 0x3ed   : > { %7550 = vmatprep.subr.bf16.mxu0 %v15904_v11  ;;  %v15952_v11 = vcombine.high %v1270_v5, %v1274_v32 }
 0x3ee   : > { %7723 = vmatpush1.bf16.msra.mxu1 %v15393_v19  ;;  %v15951_v19 = vcombine.low %v1270_v5, %v1274_v32  ;;  %v1310_v32 = vld [vmem:[#allocation6 + $0x1dd0] sm:$0xff] }
 0x3ef   : > { %7724 = vmatprep.subr.bf16.mxu1 %v15402_v53  ;;  %v15960_v53 = vcombine.high %v1278_v15, %v1282_v18 }
 0x3f0   : > { %7551 = vmatpush1.bf16.msra.mxu0 %v15903_v47  ;;  %v15450_v47 = vcombine.high %v767_v13, %v771_v58  ;;  %v15473_v13 = vcombine.low %v791_v54, %v795_v52  ;;  %v1326_v52 = vld [vmem:[#allocation6 + $0x1e50] sm:$0xff] }
 0x3f1   : > { %7552 = vmatprep.subr.bf16.mxu0 %v15912_v31  ;;  %v775_v31 = vld [vmem:[#allocation6 + $0xd18] sm:$0xff] }
 0x3f2   : > { %7725 = vmatpush1.bf16.msra.mxu1 %v15401_v45  ;;  %v15959_v45 = vcombine.low %v1278_v15, %v1282_v18  ;;  %v15457_v40 = vcombine.low %v775_v31, %v779_v62 }
 0x3f3   : > { %7726 = vmatprep.subr.bf16.mxu1 %v15410_v36  ;;  %v783_v36 = vld [vmem:[#allocation6 + $0xd58] sm:$0xff] }
 0x3f4   : > { %7553 = vmatpush1.bf16.msra.mxu0 %v15911_v44  ;;  %v15458_v44 = vcombine.high %v775_v31, %v779_v62  ;;  %v807_v31 = vld [vmem:[#allocation6 + $0xe18] sm:$0xff] }
 0x3f5   : > { %7554 = vmatprep.subr.bf16.mxu0 %v15920_v22  ;;  %v787_v22 = vld [vmem:[#allocation6 + $0xd78] sm:$0xff] }
 0x3f6   : > { %7727 = vmatpush1.bf16.msra.mxu1 %v15409_v48  ;;  %v19421_v48 = vsub.s32 3, %v19381_v41  ;;  %v811_v62 = vld [vmem:[#allocation6 + $0xe38] sm:$0xff] }
 0x3f7   : > { %7728 = vmatprep.subr.bf16.mxu1 %v15418_v46  ;;  %v15466_v46 = vcombine.high %v783_v36, %v787_v22 }
 0x3f8   : > { %7555 = vmatpush1.bf16.msra.mxu0 %v15919_v43  ;;  %v15967_v43 = vcombine.low %v1286_v34, %v1290_v42 }
 0x3f9   : > { %7556 = vmatprep.subr.bf16.mxu0 %v15928_v51  ;;  %v15976_v51 = vcombine.high %v1294_v38, %v1298_v39  ;;  %v15490_v38 = vcombine.high %v807_v31, %v811_v62 }
 0x3fa   : > { %7729 = vmatpush1.bf16.msra.mxu1 %v15417_v57  ;;  %v1302_v57 = vld [vmem:[#allocation6 + $0x1d90] sm:$0xff] }
 0x3fb   : > { %7741 = vmatprep.subr.bf16.mxu1 %v15426_v61  ;;  %v7973_v61 = vrot.slane %v18665_v55, %v19421_v48  ;;  %v1330_v55 = vld [vmem:[#allocation6 + $0x1e70] sm:$0xff] }
 0x3fc   : > { %7557 = vmatpush1.bf16.msra.mxu0 %v15927_v30  ;;  %v1306_v30 = vld [vmem:[#allocation6 + $0x1db0] sm:$0xff] }
 0x3fd   : > { %7569 = vmatprep.subr.bf16.mxu0 %v15936_v0  ;;  %7731 = vmatmul.mubr.bf16.vlgmr.msra.gmra.mrb[8].mxu1 %v19257_v26  ;;  %v15441_v26 = vcombine.low %v759_v3, %v763_v4  ;;  %v15465_v0 = vcombine.low %v783_v36, %v787_v22  ;;  %v803_v3 = vld [vmem:[#allocation6 + $0xdf8] sm:$0xff] }
 0x3fe   : > { %7742 = vmatpush1.bf16.msra.mxu1 %v15425_v63  ;;  %7773 = vmatprep.mubr.bf16.mxu1 %v19272_v33  ;;  %v15968_v33 = vcombine.high %v1286_v34, %v1290_v42  ;;  %v1318_v42 = vld [vmem:[#allocation6 + $0x1e10] sm:$0xff] }
 0x3ff   : > { %7559 = vmatmul.mubr.bf16.vlgmr.msra.gmra.mrb[4].mxu0 %v19343_v29  ;;  %7743 = vmatprep.subr.bf16.mxu1 %v15434_v59  ;;  %v15984_v59 = vcombine.high %v1302_v57, %v1306_v30 }
 0x400   : > { %7570 = vmatpush1.bf16.msra.mxu0 %v15935_v1  ;;  %7601 = vmatprep.mubr.bf16.mxu0 %v19347_v35  ;;  %v8031_v1 = vrot.slane %v18666_v21, %v19421_v48  ;;  %v823_v21 = vld [vmem:[#allocation6 + $0xe98] sm:$0xff] }
 0x401   : > { %7571 = vmatprep.subr.bf16.mxu0 %v15944_v2  ;;  %v799_v2 = vld [vmem:[#allocation6 + $0xdd8] sm:$0xff] }
 0x402   : > { %7744 = vmatpush1.bf16.msra.mxu1 %v15433_v6  ;;  %v1314_v6 = vld [vmem:[#allocation6 + $0x1df0] sm:$0xff] }
 0x403   : > { %7745 = vmatprep.subr.bf16.mxu1 %v15442_v8  ;;  %v15991_v22 = vcombine.low %v1310_v32, %v1314_v6 }
 0x404   : > { %7572 = vmatpush1.bf16.msra.mxu0 %v15943_v7 }
 0x405   : > { %7573 = vmatprep.subr.bf16.mxu0 %v15952_v11  ;;  %v15983_v11 = vcombine.low %v1302_v57, %v1306_v30  ;;  %v15489_v57 = vcombine.low %v807_v31, %v811_v62  ;;  %v847_v31 = vld [vmem:[#allocation6 + $0xf58] sm:$0xff] }
 0x406   : > { %7746 = vmatpush1.bf16.msra.mxu1 %v15441_v26  ;;  %v15482_v26 = vcombine.high %v799_v2, %v803_v3  ;;  %v851_v62 = vld [vmem:[#allocation6 + $0xf78] sm:$0xff] }
 0x407   : > { %7747 = vmatprep.subr.bf16.mxu1 %v15450_v47 }
 0x408   : > { %7574 = vmatpush1.bf16.msra.mxu0 %v15951_v19 }
 0x409   : > { %7575 = vmatprep.subr.bf16.mxu0 %v15960_v53  ;;  %v15992_v53 = vcombine.high %v1310_v32, %v1314_v6  ;;  %v1346_v32 = vld [vmem:[#allocation6 + $0x1ef0] sm:$0xff] }
 0x40a   : > { %7748 = vmatpush1.bf16.msra.mxu1 %v15449_v20  ;;  %v1322_v20 = vld [vmem:[#allocation6 + $0x1e30] sm:$0xff] }
 0x40b   : > { %7749 = vmatprep.subr.bf16.mxu1 %v15458_v44  ;;  %v15481_v44 = vcombine.low %v799_v2, %v803_v3  ;;  %v15999_v30 = vcombine.low %v1318_v42, %v1322_v20  ;;  %v831_v3 = vld [vmem:[#allocation6 + $0xed8] sm:$0xff] }
 0x40c   : > { %7576 = vmatpush1.bf16.msra.mxu0 %v15959_v45 }
 0x40d   : > { %7577 = vmatprep.subr.bf16.mxu0 %v15968_v33 }
 0x40e   : > { %7750 = vmatpush1.bf16.msra.mxu1 %v15457_v40 }
 0x40f   : > { %7751 = vmatprep.subr.bf16.mxu1 %v15466_v46  ;;  %v815_v46 = vld [vmem:[#allocation6 + $0xe58] sm:$0xff] }
 0x410   : > { %7578 = vmatpush1.bf16.msra.mxu0 %v15967_v43  ;;  %v7259_v63 = vpop.f32.mrb[4].mxu1  ;;  %v16000_v43 = vcombine.high %v1318_v42, %v1322_v20  ;;  %v1362_v42 = vld [vmem:[#allocation6 + $0x1f70] sm:$0xff] }
 0x411   : > { %7579 = vmatprep.subr.bf16.mxu0 %v15976_v51  ;;  %v8000_v4 = vmul.f32 %v7969_v56, %v7259_v63  ;;  %v7261_v5 = vpop.f32.mrb[5].mxu1  ;;  %v819_v51 = vld [vmem:[#allocation6 + $0xe78] sm:$0xff] }
 0x412   : > { %v8001_v7 = vmul.f32 %v7973_v61, %v7261_v5  ;;  %v7263_v8 = vpop.f32.mrb[6].mxu1  ;;  %7752 = vmatpush1.bf16.msra.mxu1 %v15465_v0  ;;  %v16008_v0 = vcombine.high %v1326_v52, %v1330_v55  ;;  %v15497_v63 = vcombine.low %v815_v46, %v819_v51  ;;  %v1342_v5 = vld [vmem:[#allocation6 + $0x1ed0] sm:$0xff] }
 0x413   : > { %v8058_v58 = vadd.f32 %v8027_v10, %v8000_v4  ;;  %v8008_v15 = vmul.f32 %v7969_v56, %v7263_v8  ;;  %v7265_v18 = vpop.f32.mrb[7].mxu1  ;;  %7753 = vmatprep.subr.bf16.mxu1 %v15474_v27  ;;  %v1338_v27 = vld [vmem:[#allocation6 + $0x1eb0] sm:$0xff]  ;;  %v835_v4 = vld [vmem:[#allocation6 + $0xef8] sm:$0xff] }
 0x414   : > { %7580 = vmatpush1.bf16.msra.mxu0 %v15975_v12  ;;  %v8059_v19 = vadd.f32 %v8031_v1, %v8001_v7  ;;  %v8009_v47 = vmul.f32 %v7973_v61, %v7265_v18  ;;  %v15498_v61 = vcombine.high %v815_v46, %v819_v51  ;;  %v1334_v12 = vld [vmem:[#allocation6 + $0x1e90] sm:$0xff]  ;;  %v15514_v8 = vcombine.high %v831_v3, %v835_v4 }
 0x415   : > { %7581 = vmatprep.subr.bf16.mxu0 %v15984_v59  ;;  %v8066_v34 = vadd.f32 %v8027_v10, %v8008_v15  ;;  %v8074_v33 = vmax.f32 %v8058_v58, 0.0  ;;  %v827_v10 = vld [vmem:[#allocation6 + $0xeb8] sm:$0xff]  ;;  %v16016_v2 = vcombine.high %v1334_v12, %v1338_v27  ;;  %v16015_v7 = vcombine.low %v1334_v12, %v1338_v27  ;;  %v1350_v15 = vld [vmem:[#allocation6 + $0x1f10] sm:$0xff] }
 0x416   : > { %v8067_v45 = vadd.f32 %v8031_v1, %v8009_v47  ;;  %7754 = vmatpush1.bf16.msra.mxu1 %v15473_v13  ;;  %v8075_v39 = vmax.f32 %v8059_v19, 0.0  ;;  %v16007_v1 = vcombine.low %v1326_v52, %v1330_v55  ;;  %v15506_v59 = vcombine.high %v823_v21, %v827_v10  ;;  %v839_v13 = vld [vmem:[#allocation6 + $0xf18] sm:$0xff]  ;;  %v1354_v18 = vld [vmem:[#allocation6 + $0x1f30] sm:$0xff] }
 0x417   : > { %v8082_v36 = vmax.f32 %v8066_v34, 0.0  ;;  %7755 = vmatprep.subr.bf16.mxu1 %v15482_v26  ;;  %v15505_v6 = vcombine.low %v823_v21, %v827_v10  ;;  %v843_v58 = vld [vmem:[#allocation6 + $0xf38] sm:$0xff]  ;;  %v15513_v26 = vcombine.low %v831_v3, %v835_v4  ;;  %v16023_v19 = vcombine.low %v1342_v5, %v1346_v32  ;;  %v1358_v34 = vld [vmem:[#allocation6 + $0x1f50] sm:$0xff] }
 0x418   : > { %7582 = vmatpush1.bf16.msra.mxu0 %v15983_v11  ;;  %v8083_v40 = vmax.f32 %v8067_v45, 0.0  ;;  %v16024_v11 = vcombine.high %v1342_v5, %v1346_v32  ;;  %v15522_v47 = vcombine.high %v839_v13, %v843_v58  ;;  %v15521_v20 = vcombine.low %v839_v13, %v843_v58  ;;  %v863_v52 = vld [vmem:[#allocation6 + $0xfd8] sm:$0xff]  ;;  %v17321_v32 = vld [vmem:[#allocation11] ss:$56 sps:$4 sm:$0xff]  }
 0x419   : > { %7583 = vmatprep.subr.bf16.mxu0 %v15992_v53  ;;  %v19427_v54 = vpack.c.bf16 %v8082_v36, %v8074_v33  ;;  %v16032_v53 = vcombine.high %v1350_v15, %v1354_v18  ;;  %v16031_v45 = vcombine.low %v1350_v15, %v1354_v18  ;;  %v16040_v33 = vcombine.high %v1358_v34, %v1362_v42  ;;  %v855_v36 = vld [vmem:[#allocation6 + $0xf98] sm:$0xff]  ;;  %v17329_v18 = vld [vmem:[#allocation11 + $0xe4] ss:$56 sps:$4 sm:$0xff]  }
 0x41a   : > { %v19429_v56 = vpack.c.bf16 %v8083_v40, %v8075_v39  ;;  %7756 = vmatpush1.bf16.msra.mxu1 %v15481_v44  ;;  %v15530_v44 = vcombine.high %v847_v31, %v851_v62  ;;  %v1370_v39 = vld [vmem:[#allocation6 + $0x1fb0] sm:$0xff]  ;;  %v15529_v40 = vcombine.low %v847_v31, %v851_v62  ;;  %v867_v55 = vld [vmem:[#allocation6 + $0xff8] sm:$0xff] }
 0x41b   : > { %7757 = vmatprep.subr.bf16.mxu1 %v15490_v38  ;;  %v1366_v38 = vld [vmem:[#allocation6 + $0x1f90] sm:$0xff]  ;;  %v15546_v21 = vcombine.high %v863_v52, %v867_v55  ;;  %v871_v12 = vld [vmem:[#allocation6 + $0x1018] sm:$0xff] }
 0x41c   : > { %7584 = vmatpush1.bf16.msra.mxu0 %v15991_v22  ;;  %v859_v22 = vld [vmem:[#allocation6 + $0xfb8] sm:$0xff]  ;;  %v16048_v51 = vcombine.high %v1366_v38, %v1370_v39 }
 0x41d   : > { %7585 = vmatprep.subr.bf16.mxu0 %v16000_v43  ;;  %v16039_v43 = vcombine.low %v1358_v34, %v1362_v42  ;;  %v15538_v46 = vcombine.high %v855_v36, %v859_v22  ;;  %v875_v27 = vld [vmem:[#allocation6 + $0x1038] sm:$0xff] }
 0x41e   : > { %7758 = vmatpush1.bf16.msra.mxu1 %v15489_v57  ;;  %v1374_v57 = vld [vmem:[#allocation6 + $0x1fd0] sm:$0xff]  ;;  %v879_v3 = vld [vmem:[#allocation6 + $0x1058] sm:$0xff]  ;;  %v15553_v5 = vcombine.low %v871_v12, %v875_v27 }
 0x41f   : > { %7759 = vmatprep.subr.bf16.mxu1 %v15498_v61  ;;  %v15537_v61 = vcombine.low %v855_v36, %v859_v22  ;;  %v883_v4 = vld [vmem:[#allocation6 + $0x1078] sm:$0xff]  ;;  %v17333_v22 = vld [vmem:[#allocation11 + $0x1c0] ss:$56 sps:$4 sm:$0xff]  }
 0x420   : > { %7586 = vmatpush1.bf16.msra.mxu0 %v15999_v30  ;;  %v1378_v30 = vld [vmem:[#allocation6 + $0x1ff0] sm:$0xff]  ;;  %v15561_v13 = vcombine.low %v879_v3, %v883_v4  ;;  %v17324_v58 = vld [vmem:[#allocation11 + $0x70] ss:$56 sps:$4 sm:$0xff]   ;;  %v17332_v31 = vld [vmem:[#allocation11 + $0x154] ss:$56 sps:$4 sm:$0xff]  }
 0x421   : > { %7587 = vmatprep.subr.bf16.mxu0 %v16008_v0  ;;  %v16047_v0 = vcombine.low %v1366_v38, %v1370_v39  ;;  %v16056_v10 = vcombine.high %v1374_v57, %v1378_v30  ;;  %v903_v62 = vld [vmem:[#allocation6 + $0x1118] sm:$0xff] }
 0x422   : > { %7760 = vmatpush1.bf16.msra.mxu1 %v15497_v63  ;;  %v15545_v63 = vcombine.low %v863_v52, %v867_v55  ;;  %v907_v34 = vld [vmem:[#allocation6 + $0x1138] sm:$0xff]  ;;  %v17341_v55 = vld [vmem:[#allocation11 + $0x2a4] ss:$56 sps:$4 sm:$0xff]  }
 0x423   : > { %7761 = vmatprep.subr.bf16.mxu1 %v15506_v59  ;;  %v15554_v59 = vcombine.high %v871_v12, %v875_v27  ;;  %v15585_v36 = vcombine.low %v903_v62, %v907_v34  ;;  %v17338_v39 = vld [vmem:[#allocation11 + $0x234] ss:$56 sps:$4 sm:$0xff]  }
 0x424   : > { %7588 = vmatpush1.bf16.msra.mxu0 %v16007_v1  ;;  %v16055_v1 = vcombine.low %v1374_v57, %v1378_v30  ;;  %v927_v57 = vld [vmem:[#allocation6 + $0x11d8] sm:$0xff] }
 0x425   : > { %7589 = vmatprep.subr.bf16.mxu0 %v16016_v2  ;;  %v17323_v2 = vld [vmem:[#allocation11 + $0x4] ss:$56 sps:$4 sm:$0xff]   ;;  %v931_v30 = vld [vmem:[#allocation6 + $0x11f8] sm:$0xff] }
 0x426   : > { %7762 = vmatpush1.bf16.msra.mxu1 %v15505_v6  ;;  %v15562_v6 = vcombine.high %v879_v3, %v883_v4  ;;  %v935_v12 = vld [vmem:[#allocation6 + $0x1218] sm:$0xff] }
 0x427   : > { %7763 = vmatprep.subr.bf16.mxu1 %v15514_v8  ;;  %v887_v8 = vld [vmem:[#allocation6 + $0x1098] sm:$0xff] }
 0x428   : > { %7590 = vmatpush1.bf16.msra.mxu0 %v16015_v7  ;;  %v17326_v7 = vld [vmem:[#allocation11 + $0x74] ss:$56 sps:$4 sm:$0xff]  }
 0x429   : > { %7591 = vmatprep.subr.bf16.mxu0 %v16024_v11  ;;  %v891_v11 = vld [vmem:[#allocation6 + $0x10b8] sm:$0xff] }
 0x42a   : > { %7764 = vmatpush1.bf16.msra.mxu1 %v15513_v26  ;;  %v15570_v15 = vcombine.high %v887_v8, %v891_v11  ;;  %v895_v26 = vld [vmem:[#allocation6 + $0x10d8] sm:$0xff] }
 0x42b   : > { %7765 = vmatprep.subr.bf16.mxu1 %v15522_v47  ;;  %v15569_v47 = vcombine.low %v887_v8, %v891_v11  ;;  %v939_v27 = vld [vmem:[#allocation6 + $0x1238] sm:$0xff] }
 0x42c   : > { %7592 = vmatpush1.bf16.msra.mxu0 %v16023_v19  ;;  %v899_v19 = vld [vmem:[#allocation6 + $0x10f8] sm:$0xff] }
 0x42d   : > { %7593 = vmatprep.subr.bf16.mxu0 %v16032_v53  ;;  %v15578_v53 = vcombine.high %v895_v26, %v899_v19  ;;  %v15577_v42 = vcombine.low %v895_v26, %v899_v19  ;;  %v943_v3 = vld [vmem:[#allocation6 + $0x1258] sm:$0xff] }
 0x42e   : > { %7766 = vmatpush1.bf16.msra.mxu1 %v15521_v20  ;;  %v17330_v20 = vld [vmem:[#allocation11 + $0x150] ss:$56 sps:$4 sm:$0xff]  }
 0x42f   : > { %7767 = vmatprep.subr.bf16.mxu1 %v15530_v44  ;;  %v17335_v44 = vld [vmem:[#allocation11 + $0x1c4] ss:$56 sps:$4 sm:$0xff]   ;;  %v947_v4 = vld [vmem:[#allocation6 + $0x1278] sm:$0xff] }
 0x430   : > { %7594 = vmatpush1.bf16.msra.mxu0 %v16031_v45  ;;  %v15586_v45 = vcombine.high %v903_v62, %v907_v34  ;;  %v951_v8 = vld [vmem:[#allocation6 + $0x1298] sm:$0xff] }
 0x431   : > { %7595 = vmatprep.subr.bf16.mxu0 %v16040_v33  ;;  %v911_v33 = vld [vmem:[#allocation6 + $0x1158] sm:$0xff] }
 0x432   : > { %7768 = vmatpush1.bf16.msra.mxu1 %v15529_v40  ;;  %v919_v40 = vld [vmem:[#allocation6 + $0x1198] sm:$0xff] }
 0x433   : > { %7769 = vmatprep.subr.bf16.mxu1 %v15538_v46  ;;  %v955_v11 = vld [vmem:[#allocation6 + $0x12b8] sm:$0xff] }
 0x434   : > { %7596 = vmatpush1.bf16.msra.mxu0 %v16039_v43  ;;  %v923_v43 = vld [vmem:[#allocation6 + $0x11b8] sm:$0xff] }
 0x435   : > { %7597 = vmatprep.subr.bf16.mxu0 %v16048_v51  ;;  %v17336_v51 = vld [vmem:[#allocation11 + $0x230] ss:$56 sps:$4 sm:$0xff]   ;;  %v15602_v52 = vcombine.high %v919_v40, %v923_v43 }
 0x436   : > { %7770 = vmatpush1.bf16.msra.mxu1 %v15537_v61  ;;  %v15601_v61 = vcombine.low %v919_v40, %v923_v43  ;;  %v959_v26 = vld [vmem:[#allocation6 + $0x12d8] sm:$0xff] }
 0x437   : > { %7771 = vmatprep.subr.bf16.mxu1 %v15546_v21  ;;  %v15610_v21 = vcombine.high %v927_v57, %v931_v30  ;;  %v963_v19 = vld [vmem:[#allocation6 + $0x12f8] sm:$0xff] }
 0x438   : > { %7598 = vmatpush1.bf16.msra.mxu0 %v16047_v0  ;;  %v17339_v0 = vld [vmem:[#allocation11 + $0x2a0] ss:$56 sps:$4 sm:$0xff]   ;;  %v967_v62 = vld [vmem:[#allocation6 + $0x1318] sm:$0xff] }
 0x439   : > { %7599 = vmatprep.subr.bf16.mxu0 %v16056_v10  ;;  %v17344_v10 = vld [vmem:[#allocation11 + $0x314] ss:$56 sps:$4 sm:$0xff]  }
 0x43a   : > { %7772 = vmatpush1.bf16.msra.mxu1 %v15545_v63  ;;  %v15609_v63 = vcombine.low %v927_v57, %v931_v30  ;;  %v971_v34 = vld [vmem:[#allocation6 + $0x1338] sm:$0xff] }
 0x43b   : > { %7784 = vmatprep.subr.bf16.mxu1 %v15554_v59  ;;  %v15618_v59 = vcombine.high %v935_v12, %v939_v27  ;;  %v983_v40 = vld [vmem:[#allocation6 + $0x1398] sm:$0xff] }
 0x43c   : > { %7600 = vmatpush1.bf16.msra.mxu0 %v16055_v1  ;;  %v17342_v1 = vld [vmem:[#allocation11 + $0x310] ss:$56 sps:$4 sm:$0xff]  }
 0x43d   : > { %13562 = vmatprep.subr.bf16.mxu0 %v17323_v2  ;;  %7774 = vmatmul.mubr.bf16.vlgmr.msra.gmra.mrb[8].mxu1 %v19289_v50  ;;  %v17327_v50 = vld [vmem:[#allocation11 + $0xe0] ss:$56 sps:$4 sm:$0xff]   ;;  %v17347_v2 = vld [vmem:[#allocation11 + $0x384] ss:$56 sps:$4 sm:$0xff]   ;;  %v987_v43 = vld [vmem:[#allocation6 + $0x13b8] sm:$0xff] }
 0x43e   : > { %7785 = vmatpush1.bf16.msra.mxu1 %v15553_v5  ;;  %7816 = vmatprep.mubr.bf16.mxu1 %v19293_v23  ;;  %v915_v23 = vld [vmem:[#allocation6 + $0x1178] sm:$0xff]  ;;  %v15617_v5 = vcombine.low %v935_v12, %v939_v27 }
 0x43f   : > { %7602 = vmatmul.mubr.bf16.vlgmr.msra.gmra.mrb[4].mxu0 %v19363_v16  ;;  %7786 = vmatprep.subr.bf16.mxu1 %v15562_v6  ;;  %v15594_v38 = vcombine.high %v911_v33, %v915_v23  ;;  %v15593_v46 = vcombine.low %v911_v33, %v915_v23  ;;  %v15626_v6 = vcombine.high %v943_v3, %v947_v4  ;;  %v975_v33 = vld [vmem:[#allocation6 + $0x1358] sm:$0xff] }
 0x440   : > { %13563 = vmatpush1.bf16.msra.mxu0 %v17321_v32  ;;  %13594 = vmatprep.mubr.bf16.mxu0 %v19399_v17  ;;  %v17345_v32 = vld [vmem:[#allocation11 + $0x380] ss:$56 sps:$4 sm:$0xff]   ;;  %v979_v23 = vld [vmem:[#allocation6 + $0x1378] sm:$0xff] }
 0x441   : > { %13564 = vmatprep.subr.bf16.mxu0 %v17326_v7  ;;  %v17350_v7 = vld [vmem:[#allocation11 + $0x3f4] ss:$56 sps:$4 sm:$0xff]  }
 0x442   : > { %7787 = vmatpush1.bf16.msra.mxu1 %v15561_v13  ;;  %v15625_v13 = vcombine.low %v943_v3, %v947_v4  ;;  %v991_v57 = vld [vmem:[#allocation6 + $0x13d8] sm:$0xff] }
 0x443   : > { %7788 = vmatprep.subr.bf16.mxu1 %v15570_v15  ;;  %v15634_v15 = vcombine.high %v951_v8, %v955_v11  ;;  %v995_v30 = vld [vmem:[#allocation6 + $0x13f8] sm:$0xff] }
 0x444   : > { %13565 = vmatpush1.bf16.msra.mxu0 %v17324_v58  ;;  %v17348_v58 = vld [vmem:[#allocation11 + $0x3f0] ss:$56 sps:$4 sm:$0xff]  }
 0x445   : > { %13566 = vmatprep.subr.bf16.mxu0 %v17329_v18  ;;  %v17353_v18 = vld [vmem:[#allocation11 + $0x464] ss:$56 sps:$4 sm:$0xff]   ;;  %v999_v12 = vld [vmem:[#allocation6 + $0x1418] sm:$0xff] }
 0x446   : > { %7789 = vmatpush1.bf16.msra.mxu1 %v15569_v47  ;;  %v15633_v47 = vcombine.low %v951_v8, %v955_v11  ;;  %v1003_v27 = vld [vmem:[#allocation6 + $0x1438] sm:$0xff] }
 0x447   : > { %7790 = vmatprep.subr.bf16.mxu1 %v15578_v53  ;;  %v15642_v53 = vcombine.high %v959_v26, %v963_v19  ;;  %v1007_v3 = vld [vmem:[#allocation6 + $0x1458] sm:$0xff] }
 0x448   : > { %13567 = vmatpush1.bf16.msra.mxu0 %v17327_v50  ;;  %v17351_v50 = vld [vmem:[#allocation11 + $0x460] ss:$56 sps:$4 sm:$0xff]   ;;  %v1011_v4 = vld [vmem:[#allocation6 + $0x1478] sm:$0xff] }
 0x449   : > { %13568 = vmatprep.subr.bf16.mxu0 %v17332_v31  ;;  %v17356_v31 = vld [vmem:[#allocation11 + $0x4d4] ss:$56 sps:$4 sm:$0xff]  }
 0x44a   : > { %7791 = vmatpush1.bf16.msra.mxu1 %v15577_v42  ;;  %v15641_v42 = vcombine.low %v959_v26, %v963_v19  ;;  %v1015_v8 = vld [vmem:[#allocation6 + $0x1498] sm:$0xff] }
 0x44b   : > { %7792 = vmatprep.subr.bf16.mxu1 %v15586_v45  ;;  %v15650_v45 = vcombine.high %v967_v62, %v971_v34  ;;  %v1019_v11 = vld [vmem:[#allocation6 + $0x14b8] sm:$0xff] }
 0x44c   : > { %13569 = vmatpush1.bf16.msra.mxu0 %v17330_v20  ;;  %v17354_v20 = vld [vmem:[#allocation11 + $0x4d0] ss:$56 sps:$4 sm:$0xff]  }
 0x44d   : > { %13570 = vmatprep.subr.bf16.mxu0 %v17335_v44  ;;  %v17359_v44 = vld [vmem:[#allocation11 + $0x544] ss:$56 sps:$4 sm:$0xff]   ;;  %v1023_v26 = vld [vmem:[#allocation6 + $0x14d8] sm:$0xff] }
 0x44e   : > { %7793 = vmatpush1.bf16.msra.mxu1 %v15585_v36  ;;  %v15649_v36 = vcombine.low %v967_v62, %v971_v34  ;;  %v1027_v19 = vld [vmem:[#allocation6 + $0x14f8] sm:$0xff] }
 0x44f   : > { %7794 = vmatprep.subr.bf16.mxu1 %v15594_v38  ;;  %v15658_v38 = vcombine.high %v975_v33, %v979_v23  ;;  %v1035_v62 = vld [vmem:[#allocation6 + $0x1538] sm:$0xff]  ;;  %v15705_v34 = vcombine.low %v1023_v26, %v1027_v19 }
 0x450   : > { %13571 = vmatpush1.bf16.msra.mxu0 %v17333_v22  ;;  %v17357_v22 = vld [vmem:[#allocation11 + $0x540] ss:$56 sps:$4 sm:$0xff]  }
 0x451   : > { %13572 = vmatprep.subr.bf16.mxu0 %v17338_v39  ;;  %v17362_v39 = vld [vmem:[#allocation11 + $0x5b4] ss:$56 sps:$4 sm:$0xff]  }
 0x452   : > { %7795 = vmatpush1.bf16.msra.mxu1 %v15593_v46  ;;  %v15657_v46 = vcombine.low %v975_v33, %v979_v23  ;;  %v17381_v23 = vld [vmem:[#allocation11 + $0x8c0] ss:$56 sps:$4 sm:$0xff]  }
 0x453   : > { %7796 = vmatprep.subr.bf16.mxu1 %v15602_v52  ;;  %v15666_v52 = vcombine.high %v983_v40, %v987_v43 }
 0x454   : > { %13573 = vmatpush1.bf16.msra.mxu0 %v17336_v51  ;;  %v17360_v51 = vld [vmem:[#allocation11 + $0x5b0] ss:$56 sps:$4 sm:$0xff]  }
 0x455   : > { %13574 = vmatprep.subr.bf16.mxu0 %v17341_v55  ;;  %v17365_v55 = vld [vmem:[#allocation11 + $0x624] ss:$56 sps:$4 sm:$0xff]  }
 0x456   : > { %7797 = vmatpush1.bf16.msra.mxu1 %v15601_v61  ;;  %v15665_v61 = vcombine.low %v983_v40, %v987_v43  ;;  %v17384_v43 = vld [vmem:[#allocation11 + $0x930] ss:$56 sps:$4 sm:$0xff]  }
 0x457   : > { %7798 = vmatprep.subr.bf16.mxu1 %v15610_v21  ;;  %v15674_v21 = vcombine.high %v991_v57, %v995_v30 }
 0x458   : > { %13575 = vmatpush1.bf16.msra.mxu0 %v17339_v0  ;;  %v17363_v0 = vld [vmem:[#allocation11 + $0x620] ss:$56 sps:$4 sm:$0xff]  }
 0x459   : > { %13576 = vmatprep.subr.bf16.mxu0 %v17344_v10  ;;  %v17368_v10 = vld [vmem:[#allocation11 + $0x694] ss:$56 sps:$4 sm:$0xff]  }
 0x45a   : > { %7799 = vmatpush1.bf16.msra.mxu1 %v15609_v63  ;;  %v15673_v63 = vcombine.low %v991_v57, %v995_v30  ;;  %v17387_v30 = vld [vmem:[#allocation11 + $0x9a0] ss:$56 sps:$4 sm:$0xff]  }
 0x45b   : > { %7800 = vmatprep.subr.bf16.mxu1 %v15618_v59  ;;  %v15682_v59 = vcombine.high %v999_v12, %v1003_v27 }
 0x45c   : > { %13577 = vmatpush1.bf16.msra.mxu0 %v17342_v1  ;;  %v17366_v1 = vld [vmem:[#allocation11 + $0x690] ss:$56 sps:$4 sm:$0xff]  }
 0x45d   : > { %13578 = vmatprep.subr.bf16.mxu0 %v17347_v2  ;;  %v17371_v2 = vld [vmem:[#allocation11 + $0x704] ss:$56 sps:$4 sm:$0xff]  }
 0x45e   : > { %7801 = vmatpush1.bf16.msra.mxu1 %v15617_v5  ;;  %v15681_v5 = vcombine.low %v999_v12, %v1003_v27  ;;  %v17390_v27 = vld [vmem:[#allocation11 + $0xa10] ss:$56 sps:$4 sm:$0xff]  }
 0x45f   : > { %7802 = vmatprep.subr.bf16.mxu1 %v15626_v6  ;;  %v15690_v6 = vcombine.high %v1007_v3, %v1011_v4 }
 0x460   : > { %13579 = vmatpush1.bf16.msra.mxu0 %v17345_v32  ;;  %v17369_v32 = vld [vmem:[#allocation11 + $0x700] ss:$56 sps:$4 sm:$0xff]  }
 0x461   : > { %13580 = vmatprep.subr.bf16.mxu0 %v17350_v7  ;;  %v17374_v7 = vld [vmem:[#allocation11 + $0x774] ss:$56 sps:$4 sm:$0xff]  }
 0x462   : > { %7803 = vmatpush1.bf16.msra.mxu1 %v15625_v13  ;;  %v15689_v13 = vcombine.low %v1007_v3, %v1011_v4  ;;  %v17393_v4 = vld [vmem:[#allocation11 + $0xa80] ss:$56 sps:$4 sm:$0xff]  }
 0x463   : > { %7804 = vmatprep.subr.bf16.mxu1 %v15634_v15  ;;  %v15698_v15 = vcombine.high %v1015_v8, %v1019_v11 }
 0x464   : > { %13581 = vmatpush1.bf16.msra.mxu0 %v17348_v58  ;;  %v17372_v58 = vld [vmem:[#allocation11 + $0x770] ss:$56 sps:$4 sm:$0xff]  }
 0x465   : > { %13582 = vmatprep.subr.bf16.mxu0 %v17353_v18  ;;  %v17377_v18 = vld [vmem:[#allocation11 + $0x7e4] ss:$56 sps:$4 sm:$0xff]  }
 0x466   : > { %7805 = vmatpush1.bf16.msra.mxu1 %v15633_v47  ;;  %v15697_v47 = vcombine.low %v1015_v8, %v1019_v11  ;;  %v17396_v11 = vld [vmem:[#allocation11 + $0xaf0] ss:$56 sps:$4 sm:$0xff]  }
 0x467   : > { %7806 = vmatprep.subr.bf16.mxu1 %v15642_v53  ;;  %v17380_v53 = vld [vmem:[#allocation11 + $0x854] ss:$56 sps:$4 sm:$0xff]  }
 0x468   : > { %13583 = vmatpush1.bf16.msra.mxu0 %v17351_v50  ;;  %v15706_v50 = vcombine.high %v1023_v26, %v1027_v19  ;;  %v17399_v19 = vld [vmem:[#allocation11 + $0xb60] ss:$56 sps:$4 sm:$0xff]  }
 0x469   : > { %13584 = vmatprep.subr.bf16.mxu0 %v17356_v31  ;;  %v1031_v31 = vld [vmem:[#allocation6 + $0x1518] sm:$0xff] }
 0x46a   : > { %7807 = vmatpush1.bf16.msra.mxu1 %v15641_v42  ;;  %v17378_v42 = vld [vmem:[#allocation11 + $0x850] ss:$56 sps:$4 sm:$0xff]   ;;  %v15713_v33 = vcombine.low %v1031_v31, %v1035_v62 }
 0x46b   : > { %7808 = vmatprep.subr.bf16.mxu1 %v15650_v45  ;;  %v17383_v45 = vld [vmem:[#allocation11 + $0x8c4] ss:$56 sps:$4 sm:$0xff]  }
 0x46c   : > { %13585 = vmatpush1.bf16.msra.mxu0 %v17354_v20  ;;  %v15714_v20 = vcombine.high %v1031_v31, %v1035_v62  ;;  %v17402_v62 = vld [vmem:[#allocation11 + $0xbd0] ss:$56 sps:$4 sm:$0xff]  }
 0x46d   : > { %13586 = vmatprep.subr.bf16.mxu0 %v17359_v44  ;;  %v1039_v44 = vld [vmem:[#allocation6 + $0x1558] sm:$0xff] }
 0x46e   : > { %7809 = vmatpush1.bf16.msra.mxu1 %v15649_v36 }
 0x46f   : > { %7810 = vmatprep.subr.bf16.mxu1 %v15658_v38  ;;  %v1047_v38 = vld [vmem:[#allocation6 + $0x1598] sm:$0xff] }
 0x470   : > { %13587 = vmatpush1.bf16.msra.mxu0 %v17357_v22  ;;  %v17386_v22 = vld [vmem:[#allocation11 + $0x934] ss:$56 sps:$4 sm:$0xff]  }
 0x471   : > { %13588 = vmatprep.subr.bf16.mxu0 %v17362_v39  ;;  %v1051_v39 = vld [vmem:[#allocation6 + $0x15b8] sm:$0xff] }
 0x472   : > { %7811 = vmatpush1.bf16.msra.mxu1 %v15657_v46  ;;  %v15730_v46 = vcombine.high %v1047_v38, %v1051_v39  ;;  %v15729_v57 = vcombine.low %v1047_v38, %v1051_v39  ;;  %v17408_v39 = vld [vmem:[#allocation11 + $0xcb0] ss:$56 sps:$4 sm:$0xff]  }
 0x473   : > { %7812 = vmatprep.subr.bf16.mxu1 %v15666_v52  ;;  %v1055_v52 = vld [vmem:[#allocation6 + $0x15d8] sm:$0xff] }
 0x474   : > { %13589 = vmatpush1.bf16.msra.mxu0 %v17360_v51  ;;  %v17389_v51 = vld [vmem:[#allocation11 + $0x9a4] ss:$56 sps:$4 sm:$0xff]  }
 0x475   : > { %13590 = vmatprep.subr.bf16.mxu0 %v17365_v55  ;;  %v1059_v55 = vld [vmem:[#allocation6 + $0x15f8] sm:$0xff] }
 0x476   : > { %7813 = vmatpush1.bf16.msra.mxu1 %v15665_v61  ;;  %v15738_v61 = vcombine.high %v1055_v52, %v1059_v55  ;;  %v15737_v12 = vcombine.low %v1055_v52, %v1059_v55  ;;  %v17411_v55 = vld [vmem:[#allocation11 + $0xd20] ss:$56 sps:$4 sm:$0xff]  }
 0x477   : > { %7814 = vmatprep.subr.bf16.mxu1 %v15674_v21  ;;  %v1063_v21 = vld [vmem:[#allocation6 + $0x1618] sm:$0xff] }
 0x478   : > { %13591 = vmatpush1.bf16.msra.mxu0 %v17363_v0  ;;  %v17392_v0 = vld [vmem:[#allocation11 + $0xa14] ss:$56 sps:$4 sm:$0xff]  }
 0x479   : > { %13592 = vmatprep.subr.bf16.mxu0 %v17368_v10  ;;  %v1067_v10 = vld [vmem:[#allocation6 + $0x1638] sm:$0xff] }
 0x47a   : > { %7815 = vmatpush1.bf16.msra.mxu1 %v15673_v63  ;;  %v15746_v63 = vcombine.high %v1063_v21, %v1067_v10  ;;  %v15745_v3 = vcombine.low %v1063_v21, %v1067_v10  ;;  %v17414_v10 = vld [vmem:[#allocation11 + $0xd90] ss:$56 sps:$4 sm:$0xff]  }
 0x47b   : > { %7827 = vmatprep.subr.bf16.mxu1 %v15682_v59  ;;  %v1071_v59 = vld [vmem:[#allocation6 + $0x1658] sm:$0xff] }
 0x47c   : > { %13593 = vmatpush1.bf16.msra.mxu0 %v17366_v1  ;;  %v17395_v1 = vld [vmem:[#allocation11 + $0xa84] ss:$56 sps:$4 sm:$0xff]  }
 0x47d   : > { %13605 = vmatprep.subr.bf16.mxu0 %v17371_v2  ;;  %7817 = vmatmul.mubr.bf16.vlgmr.msra.gmra.mrb[8].mxu1 %v19307_v14  ;;  %v17375_v14 = vld [vmem:[#allocation11 + $0x7e0] ss:$56 sps:$4 sm:$0xff]   ;;  %v1075_v2 = vld [vmem:[#allocation6 + $0x1678] sm:$0xff] }
 0x47e   : > { %7828 = vmatpush1.bf16.msra.mxu1 %v15681_v5  ;;  %7859 = vmatprep.mubr.bf16.mxu1 %v19311_v25  ;;  %v1043_v25 = vld [vmem:[#allocation6 + $0x1578] sm:$0xff]  ;;  %v15754_v5 = vcombine.high %v1071_v59, %v1075_v2  ;;  %v15753_v8 = vcombine.low %v1071_v59, %v1075_v2 }
 0x47f   : > { %13595 = vmatmul.mubr.bf16.vlgmr.msra.gmra.mrb[8].mxu0 %v19397_v9  ;;  %7829 = vmatprep.subr.bf16.mxu1 %v15690_v6  ;;  %v15722_v36 = vcombine.high %v1039_v44, %v1043_v25  ;;  %v15721_v40 = vcombine.low %v1039_v44, %v1043_v25  ;;  %v1079_v6 = vld [vmem:[#allocation6 + $0x1698] sm:$0xff]  ;;  %v17405_v25 = vld [vmem:[#allocation11 + $0xc40] ss:$56 sps:$4 sm:$0xff]  }
 0x480   : > { %13606 = vmatpush1.bf16.msra.mxu0 %v17369_v32  ;;  %13637 = vmatprep.mubr.bf16.mxu0 %v19429_v56  ;;  %v17398_v32 = vld [vmem:[#allocation11 + $0xaf4] ss:$56 sps:$4 sm:$0xff]  }
 0x481   : > { %13607 = vmatprep.subr.bf16.mxu0 %v17374_v7  ;;  %v1083_v7 = vld [vmem:[#allocation6 + $0x16b8] sm:$0xff] }
 0x482   : > { %7830 = vmatpush1.bf16.msra.mxu1 %v15689_v13  ;;  %v15762_v13 = vcombine.high %v1079_v6, %v1083_v7  ;;  %v15761_v26 = vcombine.low %v1079_v6, %v1083_v7 }
 0x483   : > { %7831 = vmatprep.subr.bf16.mxu1 %v15698_v15  ;;  %v1087_v15 = vld [vmem:[#allocation6 + $0x16d8] sm:$0xff] }
 0x484   : > { %13608 = vmatpush1.bf16.msra.mxu0 %v17372_v58  ;;  %v17401_v58 = vld [vmem:[#allocation11 + $0xb64] ss:$56 sps:$4 sm:$0xff]  }
 0x485   : > { %13609 = vmatprep.subr.bf16.mxu0 %v17377_v18  ;;  %v1091_v18 = vld [vmem:[#allocation6 + $0x16f8] sm:$0xff] }
 0x486   : > { %7832 = vmatpush1.bf16.msra.mxu1 %v15697_v47  ;;  %v15770_v47 = vcombine.high %v1087_v15, %v1091_v18  ;;  %v15769_v31 = vcombine.low %v1087_v15, %v1091_v18 }
 0x487   : > { %7833 = vmatprep.subr.bf16.mxu1 %v15706_v50  ;;  %v1095_v50 = vld [vmem:[#allocation6 + $0x1718] sm:$0xff] }
 0x488   : > { %13610 = vmatpush1.bf16.msra.mxu0 %v17375_v14  ;;  %v17404_v14 = vld [vmem:[#allocation11 + $0xbd4] ss:$56 sps:$4 sm:$0xff]  }
 0x489   : > { %13611 = vmatprep.subr.bf16.mxu0 %v17380_v53  ;;  %v1099_v53 = vld [vmem:[#allocation6 + $0x1738] sm:$0xff] }
 0x48a   : > { %7834 = vmatpush1.bf16.msra.mxu1 %v15705_v34  ;;  %v15778_v34 = vcombine.high %v1095_v50, %v1099_v53  ;;  %v15777_v44 = vcombine.low %v1095_v50, %v1099_v53  ;;  %v17426_v53 = vld [vmem:[#allocation11 + $0xf50] ss:$56 sps:$4 sm:$0xff]  }
 0x48b   : > { %7835 = vmatprep.subr.bf16.mxu1 %v15714_v20  ;;  %v1103_v20 = vld [vmem:[#allocation6 + $0x1758] sm:$0xff] }
 0x48c   : > { %13612 = vmatpush1.bf16.msra.mxu0 %v17378_v42  ;;  %v17407_v42 = vld [vmem:[#allocation11 + $0xc44] ss:$56 sps:$4 sm:$0xff]  }
 0x48d   : > { %13613 = vmatprep.subr.bf16.mxu0 %v17383_v45  ;;  %v1107_v45 = vld [vmem:[#allocation6 + $0x1778] sm:$0xff] }
 0x48e   : > { %7836 = vmatpush1.bf16.msra.mxu1 %v15713_v33  ;;  %v15786_v33 = vcombine.high %v1103_v20, %v1107_v45  ;;  %v15785_v38 = vcombine.low %v1103_v20, %v1107_v45  ;;  %v17429_v20 = vld [vmem:[#allocation11 + $0xfc0] ss:$56 sps:$4 sm:$0xff]   ;;  %v1175_v45 = vld [vmem:[#allocation6 + $0x1998] sm:$0xff] }
 0x48f   : > { %7837 = vmatprep.subr.bf16.mxu1 %v15722_v36  ;;  %v1111_v36 = vld [vmem:[#allocation6 + $0x1798] sm:$0xff] }
 0x490   : > { %13614 = vmatpush1.bf16.msra.mxu0 %v17381_v23  ;;  %v17410_v23 = vld [vmem:[#allocation11 + $0xcb4] ss:$56 sps:$4 sm:$0xff]  }
 0x491   : > { %13615 = vmatprep.subr.bf16.mxu0 %v17386_v22  ;;  %v1115_v22 = vld [vmem:[#allocation6 + $0x17b8] sm:$0xff] }
 0x492   : > { %7838 = vmatpush1.bf16.msra.mxu1 %v15721_v40  ;;  %v15794_v40 = vcombine.high %v1111_v36, %v1115_v22  ;;  %v15793_v52 = vcombine.low %v1111_v36, %v1115_v22  ;;  %v17432_v36 = vld [vmem:[#allocation11 + $0x1030] ss:$56 sps:$4 sm:$0xff]  }
 0x493   : > { %7839 = vmatprep.subr.bf16.mxu1 %v15730_v46  ;;  %v1119_v46 = vld [vmem:[#allocation6 + $0x17d8] sm:$0xff] }
 0x494   : > { %13616 = vmatpush1.bf16.msra.mxu0 %v17384_v43  ;;  %v17413_v43 = vld [vmem:[#allocation11 + $0xd24] ss:$56 sps:$4 sm:$0xff]   ;;  %v1183_v22 = vld [vmem:[#allocation6 + $0x19d8] sm:$0xff] }
 0x495   : > { %13617 = vmatprep.subr.bf16.mxu0 %v17389_v51  ;;  %v1123_v51 = vld [vmem:[#allocation6 + $0x17f8] sm:$0xff] }
 0x496   : > { %7840 = vmatpush1.bf16.msra.mxu1 %v15729_v57  ;;  %v15802_v57 = vcombine.high %v1119_v46, %v1123_v51  ;;  %v15801_v21 = vcombine.low %v1119_v46, %v1123_v51  ;;  %v17435_v46 = vld [vmem:[#allocation11 + $0x10a0] ss:$56 sps:$4 sm:$0xff]   ;;  %v1191_v51 = vld [vmem:[#allocation6 + $0x1a18] sm:$0xff] }
 0x497   : > { %7841 = vmatprep.subr.bf16.mxu1 %v15738_v61  ;;  %v1127_v61 = vld [vmem:[#allocation6 + $0x1818] sm:$0xff] }
 0x498   : > { %13618 = vmatpush1.bf16.msra.mxu0 %v17387_v30  ;;  %v17416_v30 = vld [vmem:[#allocation11 + $0xd94] ss:$56 sps:$4 sm:$0xff]  }
 0x499   : > { %13619 = vmatprep.subr.bf16.mxu0 %v17392_v0  ;;  %v1131_v0 = vld [vmem:[#allocation6 + $0x1838] sm:$0xff] }
 0x49a   : > { %7842 = vmatpush1.bf16.msra.mxu1 %v15737_v12  ;;  %v15810_v12 = vcombine.high %v1127_v61, %v1131_v0  ;;  %v15809_v59 = vcombine.low %v1127_v61, %v1131_v0  ;;  %v17438_v61 = vld [vmem:[#allocation11 + $0x1110] ss:$56 sps:$4 sm:$0xff]  }
 0x49b   : > { %7843 = vmatprep.subr.bf16.mxu1 %v15746_v63  ;;  %v1139_v63 = vld [vmem:[#allocation6 + $0x1878] sm:$0xff] }
 0x49c   : > { %13620 = vmatpush1.bf16.msra.mxu0 %v17390_v27  ;;  %v1135_v27 = vld [vmem:[#allocation6 + $0x1858] sm:$0xff] }
 0x49d   : > { %13621 = vmatprep.subr.bf16.mxu0 %v17395_v1  ;;  %v17419_v1 = vld [vmem:[#allocation11 + $0xe04] ss:$56 sps:$4 sm:$0xff]   ;;  %v15818_v2 = vcombine.high %v1135_v27, %v1139_v63  ;;  %v15817_v6 = vcombine.low %v1135_v27, %v1139_v63  ;;  %v1199_v0 = vld [vmem:[#allocation6 + $0x1a58] sm:$0xff]  ;;  %v17441_v63 = vld [vmem:[#allocation11 + $0x1180] ss:$56 sps:$4 sm:$0xff]  }
 0x49e   : > { %7844 = vmatpush1.bf16.msra.mxu1 %v15745_v3  ;;  %v17417_v3 = vld [vmem:[#allocation11 + $0xe00] ss:$56 sps:$4 sm:$0xff]  }
 0x49f   : > { %7845 = vmatprep.subr.bf16.mxu1 %v15754_v5  ;;  %v1147_v5 = vld [vmem:[#allocation6 + $0x18b8] sm:$0xff] }
 0x4a0   : > { %13622 = vmatpush1.bf16.msra.mxu0 %v17393_v4  ;;  %v1143_v4 = vld [vmem:[#allocation6 + $0x1898] sm:$0xff] }
 0x4a1   : > { %13623 = vmatprep.subr.bf16.mxu0 %v17398_v32  ;;  %v17422_v32 = vld [vmem:[#allocation11 + $0xe74] ss:$56 sps:$4 sm:$0xff]   ;;  %v15826_v7 = vcombine.high %v1143_v4, %v1147_v5  ;;  %v15825_v15 = vcombine.low %v1143_v4, %v1147_v5  ;;  %v17444_v5 = vld [vmem:[#allocation11 + $0x11f0] ss:$56 sps:$4 sm:$0xff]  }
 0x4a2   : > { %7846 = vmatpush1.bf16.msra.mxu1 %v15753_v8  ;;  %v17420_v8 = vld [vmem:[#allocation11 + $0xe70] ss:$56 sps:$4 sm:$0xff]  }
 0x4a3   : > { %7847 = vmatprep.subr.bf16.mxu1 %v15762_v13  ;;  %v1155_v13 = vld [vmem:[#allocation6 + $0x18f8] sm:$0xff] }
 0x4a4   : > { %13624 = vmatpush1.bf16.msra.mxu0 %v17396_v11  ;;  %v1151_v11 = vld [vmem:[#allocation6 + $0x18d8] sm:$0xff] }
 0x4a5   : > { %13625 = vmatprep.subr.bf16.mxu0 %v17401_v58  ;;  %v17425_v58 = vld [vmem:[#allocation11 + $0xee4] ss:$56 sps:$4 sm:$0xff]   ;;  %v15834_v18 = vcombine.high %v1151_v11, %v1155_v13 }
 0x4a6   : > { %7848 = vmatpush1.bf16.msra.mxu1 %v15761_v26  ;;  %v1159_v26 = vld [vmem:[#allocation6 + $0x1918] sm:$0xff] }
 0x4a7   : > { %7849 = vmatprep.subr.bf16.mxu1 %v15770_v47  ;;  %v17428_v47 = vld [vmem:[#allocation11 + $0xf54] ss:$56 sps:$4 sm:$0xff]  }
 0x4a8   : > { %13626 = vmatpush1.bf16.msra.mxu0 %v17399_v19  ;;  %v1163_v19 = vld [vmem:[#allocation6 + $0x1938] sm:$0xff] }
 0x4a9   : > { %13627 = vmatprep.subr.bf16.mxu0 %v17404_v14  ;;  %v15833_v14 = vcombine.low %v1151_v11, %v1155_v13  ;;  %v15842_v50 = vcombine.high %v1159_v26, %v1163_v19  ;;  %v17447_v13 = vld [vmem:[#allocation11 + $0x1260] ss:$56 sps:$4 sm:$0xff]  }
 0x4aa   : > { %7850 = vmatpush1.bf16.msra.mxu1 %v15769_v31  ;;  %v1167_v31 = vld [vmem:[#allocation6 + $0x1958] sm:$0xff] }
 0x4ab   : > { %7851 = vmatprep.subr.bf16.mxu1 %v15778_v34  ;;  %v15841_v34 = vcombine.low %v1159_v26, %v1163_v19  ;;  %v17450_v19 = vld [vmem:[#allocation11 + $0x12d0] ss:$56 sps:$4 sm:$0xff]  }
 0x4ac   : > { %13628 = vmatpush1.bf16.msra.mxu0 %v17402_v62  ;;  %v1171_v62 = vld [vmem:[#allocation6 + $0x1978] sm:$0xff] }
 0x4ad   : > { %13629 = vmatprep.subr.bf16.mxu0 %v17407_v42  ;;  %v15850_v42 = vcombine.high %v1167_v31, %v1171_v62 }
 0x4ae   : > { %7852 = vmatpush1.bf16.msra.mxu1 %v15777_v44  ;;  %v1179_v44 = vld [vmem:[#allocation6 + $0x19b8] sm:$0xff] }
 0x4af   : > { %7853 = vmatprep.subr.bf16.mxu1 %v15786_v33  ;;  %v15849_v33 = vcombine.low %v1167_v31, %v1171_v62  ;;  %v17453_v62 = vld [vmem:[#allocation11 + $0x1340] ss:$56 sps:$4 sm:$0xff]  }
 0x4b0   : > { %13630 = vmatpush1.bf16.msra.mxu0 %v17405_v25  ;;  %v17434_v25 = vld [vmem:[#allocation11 + $0x1034] ss:$56 sps:$4 sm:$0xff]  }
 0x4b1   : > { %13631 = vmatprep.subr.bf16.mxu0 %v17410_v23  ;;  %v15858_v23 = vcombine.high %v1175_v45, %v1179_v44 }
 0x4b2   : > { %7854 = vmatpush1.bf16.msra.mxu1 %v15785_v38  ;;  %v1187_v38 = vld [vmem:[#allocation6 + $0x19f8] sm:$0xff] }
 0x4b3   : > { %7855 = vmatprep.subr.bf16.mxu1 %v15794_v40  ;;  %v15857_v40 = vcombine.low %v1175_v45, %v1179_v44  ;;  %v17456_v44 = vld [vmem:[#allocation11 + $0x13b0] ss:$56 sps:$4 sm:$0xff]  }
 0x4b4   : > { %13632 = vmatpush1.bf16.msra.mxu0 %v17408_v39  ;;  %v17437_v39 = vld [vmem:[#allocation11 + $0x10a4] ss:$56 sps:$4 sm:$0xff]  }
 0x4b5   : > { %13633 = vmatprep.subr.bf16.mxu0 %v17413_v43  ;;  %v15866_v43 = vcombine.high %v1183_v22, %v1187_v38 }
 0x4b6   : > { %7856 = vmatpush1.bf16.msra.mxu1 %v15793_v52  ;;  %v1195_v52 = vld [vmem:[#allocation6 + $0x1a38] sm:$0xff] }
 0x4b7   : > { %7857 = vmatprep.subr.bf16.mxu1 %v15802_v57  ;;  %v15865_v57 = vcombine.low %v1183_v22, %v1187_v38  ;;  %v17459_v38 = vld [vmem:[#allocation11 + $0x1420] ss:$56 sps:$4 sm:$0xff]  }
 0x4b8   : > { %13634 = vmatpush1.bf16.msra.mxu0 %v17411_v55  ;;  %v17440_v55 = vld [vmem:[#allocation11 + $0x1114] ss:$56 sps:$4 sm:$0xff]  }
 0x4b9   : > { %13635 = vmatprep.subr.bf16.mxu0 %v17416_v30  ;;  %v15874_v30 = vcombine.high %v1191_v51, %v1195_v52 }
 0x4ba   : > { %7858 = vmatpush1.bf16.msra.mxu1 %v15801_v21  ;;  %v1203_v21 = vld [vmem:[#allocation6 + $0x1a78] sm:$0xff] }
 0x4bb   : > { %7870 = vmatprep.subr.bf16.mxu1 %v15810_v12  ;;  %v15873_v12 = vcombine.low %v1191_v51, %v1195_v52  ;;  %v15882_v27 = vcombine.high %v1199_v0, %v1203_v21  ;;  %v17462_v52 = vld [vmem:[#allocation11 + $0x1490] ss:$56 sps:$4 sm:$0xff]  }
 0x4bc   : > { %13636 = vmatpush1.bf16.msra.mxu0 %v17414_v10  ;;  %v17443_v10 = vld [vmem:[#allocation11 + $0x1184] ss:$56 sps:$4 sm:$0xff]  }
 0x4bd   : > { %13648 = vmatprep.subr.bf16.mxu0 %v17419_v1  ;;  %7860 = vmatmul.mubr.bf16.vlgmr.msra.gmra.mrb[8].mxu1 %v19325_v49  ;;  %v17423_v49 = vld [vmem:[#allocation11 + $0xee0] ss:$56 sps:$4 sm:$0xff]   ;;  %v1207_v1 = vld [vmem:[#allocation6 + $0x1a98] sm:$0xff] }
 0x4be   : > { %7871 = vmatpush1.bf16.msra.mxu1 %v15809_v59  ;;  %7902 = vmatprep.mubr.bf16.mxu1 %v19329_v24  ;;  %v17431_v24 = vld [vmem:[#allocation11 + $0xfc4] ss:$56 sps:$4 sm:$0xff]   ;;  %v1211_v59 = vld [vmem:[#allocation6 + $0x1ab8] sm:$0xff] }
 0x4bf   : > { %13638 = vmatmul.mubr.bf16.vlgmr.msra.gmra.mrb[8].mxu0 %v19427_v54  ;;  %7872 = vmatprep.subr.bf16.mxu1 %v15818_v2  ;;  %v17446_v2 = vld [vmem:[#allocation11 + $0x11f4] ss:$56 sps:$4 sm:$0xff]   ;;  %v15890_v4 = vcombine.high %v1207_v1, %v1211_v59 }
 0x4c0   : > { %13649 = vmatpush1.bf16.msra.mxu0 %v17417_v3  ;;  %v15881_v3 = vcombine.low %v1199_v0, %v1203_v21  ;;  %v1271_v0 = vld [vmem:[#allocation6 + $0x1c98] sm:$0xff] }
 0x4c1   : > { %13650 = vmatprep.subr.bf16.mxu0 %v17422_v32  ;;  %v1215_v32 = vld [vmem:[#allocation6 + $0x1ad8] sm:$0xff] }
 0x4c2   : > { %7873 = vmatpush1.bf16.msra.mxu1 %v15817_v6  ;;  %v1219_v6 = vld [vmem:[#allocation6 + $0x1af8] sm:$0xff] }
 0x4c3   : > { %7874 = vmatprep.subr.bf16.mxu1 %v15826_v7  ;;  %v17449_v7 = vld [vmem:[#allocation11 + $0x1264] ss:$56 sps:$4 sm:$0xff]   ;;  %v15898_v11 = vcombine.high %v1215_v32, %v1219_v6  ;;  %v1275_v21 = vld [vmem:[#allocation6 + $0x1cb8] sm:$0xff] }
 0x4c4   : > { %13651 = vmatpush1.bf16.msra.mxu0 %v17420_v8  ;;  %v15889_v8 = vcombine.low %v1207_v1, %v1211_v59  ;;  %v15953_v1 = vcombine.low %v1271_v0, %v1275_v21 }
 0x4c5   : > { %13652 = vmatprep.subr.bf16.mxu0 %v17425_v58  ;;  %v1223_v58 = vld [vmem:[#allocation6 + $0x1b18] sm:$0xff] }
 0x4c6   : > { %7875 = vmatpush1.bf16.msra.mxu1 %v15825_v15  ;;  %v1227_v15 = vld [vmem:[#allocation6 + $0x1b38] sm:$0xff] }
 0x4c7   : > { %7876 = vmatprep.subr.bf16.mxu1 %v15834_v18  ;;  %v17452_v18 = vld [vmem:[#allocation11 + $0x12d4] ss:$56 sps:$4 sm:$0xff]   ;;  %v15906_v26 = vcombine.high %v1223_v58, %v1227_v15 }
 0x4c8   : > { %13653 = vmatpush1.bf16.msra.mxu0 %v17423_v49  ;;  %v15897_v49 = vcombine.low %v1215_v32, %v1219_v6  ;;  %v1295_v32 = vld [vmem:[#allocation6 + $0x1d58] sm:$0xff] }
 0x4c9   : > { %13654 = vmatprep.subr.bf16.mxu0 %v17428_v47  ;;  %v1231_v47 = vld [vmem:[#allocation6 + $0x1b58] sm:$0xff] }
 0x4ca   : > { %7877 = vmatpush1.bf16.msra.mxu1 %v15833_v14  ;;  %v1235_v14 = vld [vmem:[#allocation6 + $0x1b78] sm:$0xff] }
 0x4cb   : > { %7878 = vmatprep.subr.bf16.mxu1 %v15842_v50  ;;  %v17455_v50 = vld [vmem:[#allocation11 + $0x1344] ss:$56 sps:$4 sm:$0xff]   ;;  %v15914_v31 = vcombine.high %v1231_v47, %v1235_v14 }
 0x4cc   : > { %13655 = vmatpush1.bf16.msra.mxu0 %v17426_v53  ;;  %v15905_v53 = vcombine.low %v1223_v58, %v1227_v15  ;;  %v19450_v58 = vld [vmem:[#allocation8] sm:$0xff] }
 0x4cd   : > { %13656 = vmatprep.subr.bf16.mxu0 %v17431_v24  ;;  %v1239_v24 = vld [vmem:[#allocation6 + $0x1b98] sm:$0xff] }
 0x4ce   : > { %7879 = vmatpush1.bf16.msra.mxu1 %v15841_v34  ;;  %v1243_v34 = vld [vmem:[#allocation6 + $0x1bb8] sm:$0xff] }
 0x4cf   : > { %7880 = vmatprep.subr.bf16.mxu1 %v15850_v42  ;;  %v17458_v42 = vld [vmem:[#allocation11 + $0x13b4] ss:$56 sps:$4 sm:$0xff]   ;;  %v15922_v45 = vcombine.high %v1239_v24, %v1243_v34 }
 0x4d0   : > { %13657 = vmatpush1.bf16.msra.mxu0 %v17429_v20  ;;  %v15913_v20 = vcombine.low %v1231_v47, %v1235_v14  ;;  %v1311_v14 = vld [vmem:[#allocation6 + $0x1dd8] sm:$0xff] }
 0x4d1   : > { %13658 = vmatprep.subr.bf16.mxu0 %v17434_v25  ;;  %v1247_v25 = vld [vmem:[#allocation6 + $0x1bd8] sm:$0xff] }
 0x4d2   : > { %7881 = vmatpush1.bf16.msra.mxu1 %v15849_v33  ;;  %v1251_v33 = vld [vmem:[#allocation6 + $0x1bf8] sm:$0xff] }
 0x4d3   : > { %7882 = vmatprep.subr.bf16.mxu1 %v15858_v23  ;;  %v17461_v23 = vld [vmem:[#allocation11 + $0x1424] ss:$56 sps:$4 sm:$0xff]   ;;  %v15930_v22 = vcombine.high %v1247_v25, %v1251_v33 }
 0x4d4   : > { %13659 = vmatpush1.bf16.msra.mxu0 %v17432_v36  ;;  %v15921_v36 = vcombine.low %v1239_v24, %v1243_v34 }
 0x4d5   : > { %13660 = vmatprep.subr.bf16.mxu0 %v17437_v39  ;;  %v1255_v39 = vld [vmem:[#allocation6 + $0x1c18] sm:$0xff] }
 0x4d6   : > { %7883 = vmatpush1.bf16.msra.mxu1 %v15857_v40  ;;  %v1259_v40 = vld [vmem:[#allocation6 + $0x1c38] sm:$0xff] }
 0x4d7   : > { %7884 = vmatprep.subr.bf16.mxu1 %v15866_v43  ;;  %v17464_v43 = vld [vmem:[#allocation11 + $0x1494] ss:$56 sps:$4 sm:$0xff]   ;;  %v15938_v51 = vcombine.high %v1255_v39, %v1259_v40 }
 0x4d8   : > { %13661 = vmatpush1.bf16.msra.mxu0 %v17435_v46  ;;  %v15929_v46 = vcombine.low %v1247_v25, %v1251_v33 }
 0x4d9   : > { %13662 = vmatprep.subr.bf16.mxu0 %v17440_v55  ;;  %v1263_v55 = vld [vmem:[#allocation6 + $0x1c58] sm:$0xff] }
 0x4da   : > { %7885 = vmatpush1.bf16.msra.mxu1 %v15865_v57  ;;  %v1267_v57 = vld [vmem:[#allocation6 + $0x1c78] sm:$0xff] }
 0x4db   : > { %7886 = vmatprep.subr.bf16.mxu1 %v15874_v30  ;;  %v15937_v30 = vcombine.low %v1255_v39, %v1259_v40 }
 0x4dc   : > { %13663 = vmatpush1.bf16.msra.mxu0 %v17438_v61  ;;  %v15946_v61 = vcombine.high %v1263_v55, %v1267_v57 }
 0x4dd   : > { %13664 = vmatprep.subr.bf16.mxu0 %v17443_v10  ;;  %v15945_v10 = vcombine.low %v1263_v55, %v1267_v57  ;;  %v1327_v55 = vld [vmem:[#allocation6 + $0x1e58] sm:$0xff] }
 0x4de   : > { %7887 = vmatpush1.bf16.msra.mxu1 %v15873_v12  ;;  %v15954_v12 = vcombine.high %v1271_v0, %v1275_v21  ;;  %v1331_v57 = vld [vmem:[#allocation6 + $0x1e78] sm:$0xff] }
 0x4df   : > { %7888 = vmatprep.subr.bf16.mxu1 %v15882_v27  ;;  %v1279_v27 = vld [vmem:[#allocation6 + $0x1cd8] sm:$0xff] }
 0x4e0   : > { %13665 = vmatpush1.bf16.msra.mxu0 %v17441_v63  ;;  %v1283_v63 = vld [vmem:[#allocation6 + $0x1cf8] sm:$0xff] }
 0x4e1   : > { %13666 = vmatprep.subr.bf16.mxu0 %v17446_v2  ;;  %v15962_v59 = vcombine.high %v1279_v27, %v1283_v63  ;;  %v1287_v2 = vld [vmem:[#allocation6 + $0x1d18] sm:$0xff] }
 0x4e2   : > { %7889 = vmatpush1.bf16.msra.mxu1 %v15881_v3  ;;  %v1291_v3 = vld [vmem:[#allocation6 + $0x1d38] sm:$0xff] }
 0x4e3   : > { %7890 = vmatprep.subr.bf16.mxu1 %v15890_v4  ;;  %v15961_v4 = vcombine.low %v1279_v27, %v1283_v63  ;;  %v15969_v6 = vcombine.low %v1287_v2, %v1291_v3  ;;  %v1335_v27 = vld [vmem:[#allocation6 + $0x1e98] sm:$0xff] }
 0x4e4   : > { %13667 = vmatpush1.bf16.msra.mxu0 %v17444_v5  ;;  %v15970_v5 = vcombine.high %v1287_v2, %v1291_v3  ;;  %v1339_v63 = vld [vmem:[#allocation6 + $0x1eb8] sm:$0xff] }
 0x4e5   : > { %13668 = vmatprep.subr.bf16.mxu0 %v17449_v7  ;;  %v19448_v7 = vsub.s32 5, %v19381_v41  ;;  %v1343_v2 = vld [vmem:[#allocation6 + $0x1ed8] sm:$0xff] }
 0x4e6   : > { %7891 = vmatpush1.bf16.msra.mxu1 %v15889_v8  ;;  %v1347_v3 = vld [vmem:[#allocation6 + $0x1ef8] sm:$0xff] }
 0x4e7   : > { %7892 = vmatprep.subr.bf16.mxu1 %v15898_v11  ;;  %v1303_v11 = vld [vmem:[#allocation6 + $0x1d98] sm:$0xff] }
 0x4e8   : > { %13669 = vmatpush1.bf16.msra.mxu0 %v17447_v13  ;;  %v1307_v13 = vld [vmem:[#allocation6 + $0x1db8] sm:$0xff] }
 0x4e9   : > { %13670 = vmatprep.subr.bf16.mxu0 %v17452_v18  ;;  %v15985_v34 = vcombine.low %v1303_v11, %v1307_v13 }
 0x4ea   : > { %7893 = vmatpush1.bf16.msra.mxu1 %v15897_v49  ;;  %v7981_v49 = vrot.slane %v19450_v58, %v19448_v7 }
 0x4eb   : > { %7894 = vmatprep.subr.bf16.mxu1 %v15906_v26  ;;  %v15986_v26 = vcombine.high %v1303_v11, %v1307_v13  ;;  %v1359_v11 = vld [vmem:[#allocation6 + $0x1f58] sm:$0xff] }
 0x4ec   : > { %13671 = vmatpush1.bf16.msra.mxu0 %v17450_v19  ;;  %v19456_v19 = vld [vmem:[#allocation9] sm:$0xff]  ;;  %v1363_v13 = vld [vmem:[#allocation6 + $0x1f78] sm:$0xff] }
 0x4ed   : > { %13672 = vmatprep.subr.bf16.mxu0 %v17455_v50  ;;  %v1315_v50 = vld [vmem:[#allocation6 + $0x1df8] sm:$0xff] }
 0x4ee   : > { %7895 = vmatpush1.bf16.msra.mxu1 %v15905_v53  ;;  %v15993_v40 = vcombine.low %v1311_v14, %v1315_v50 }
 0x4ef   : > { %7896 = vmatprep.subr.bf16.mxu1 %v15914_v31  ;;  %v8039_v31 = vrot.slane %v19456_v19, %v19448_v7 }
 0x4f0   : > { %13673 = vmatpush1.bf16.msra.mxu0 %v17453_v62 }
 0x4f1   : > { %13674 = vmatprep.subr.bf16.mxu0 %v17458_v42 }
 0x4f2   : > { %7897 = vmatpush1.bf16.msra.mxu1 %v15913_v20 }
 0x4f3   : > { %7898 = vmatprep.subr.bf16.mxu1 %v15922_v45  ;;  %v15994_v45 = vcombine.high %v1311_v14, %v1315_v50  ;;  %v1375_v50 = vld [vmem:[#allocation6 + $0x1fd8] sm:$0xff] }
 0x4f4   : > { %13675 = vmatpush1.bf16.msra.mxu0 %v17456_v44 }
 0x4f5   : > { %13676 = vmatprep.subr.bf16.mxu0 %v17461_v23  ;;  %v1319_v23 = vld [vmem:[#allocation6 + $0x1e18] sm:$0xff] }
 0x4f6   : > { %7899 = vmatpush1.bf16.msra.mxu1 %v15921_v36  ;;  %v1323_v36 = vld [vmem:[#allocation6 + $0x1e38] sm:$0xff] }
 0x4f7   : > { %7900 = vmatprep.subr.bf16.mxu1 %v15930_v22  ;;  %v16001_v21 = vcombine.low %v1319_v23, %v1323_v36 }
 0x4f8   : > { %13677 = vmatpush1.bf16.msra.mxu0 %v17459_v38 }
 0x4f9   : > { %13678 = vmatprep.subr.bf16.mxu0 %v17464_v43 }
 0x4fa   : > { %7901 = vmatpush1.bf16.msra.mxu1 %v15929_v46  ;;  %v16002_v46 = vcombine.high %v1319_v23, %v1323_v36  ;;  %v17474_v23 = vld [vmem:[#allocation11 + $0x158] ss:$56 sps:$4 sm:$0xff]   ;;  %v17479_v36 = vld [vmem:[#allocation11 + $0x1cc] ss:$56 sps:$4 sm:$0xff]  }
 0x4fb   : > { %7913 = vmatprep.subr.bf16.mxu1 %v15938_v51 }
 0x4fc   : > { %13679 = vmatpush1.bf16.msra.mxu0 %v17462_v52 }
 0x4fd   : > { %7903 = vmatmul.mubr.bf16.vlgmr.msra.gmra.mrb[8].mxu1 %v19343_v29  ;;  %v1299_v29 = vld [vmem:[#allocation6 + $0x1d78] sm:$0xff] }
 0x4fe   : > { %7914 = vmatpush1.bf16.msra.mxu1 %v15937_v30  ;;  %7945 = vmatprep.mubr.bf16.mxu1 %v19347_v35  ;;  %v19445_v35 = vsub.s32 4, %v19381_v41  ;;  %v15978_v8 = vcombine.high %v1295_v32, %v1299_v29  ;;  %v15977_v18 = vcombine.low %v1295_v32, %v1299_v29  ;;  %v1351_v32 = vld [vmem:[#allocation6 + $0x1f18] sm:$0xff] }
 0x4ff   : > { %7915 = vmatprep.subr.bf16.mxu1 %v15946_v61  ;;  %v1355_v29 = vld [vmem:[#allocation6 + $0x1f38] sm:$0xff] }
 0x500   : > { %v7977_v15 = vrot.slane %v19450_v58, %v19445_v35  ;;  %v8035_v47 = vrot.slane %v19456_v19, %v19445_v35 }
 0x502   : > { %7916 = vmatpush1.bf16.msra.mxu1 %v15945_v10 }
 0x503   : > { %7917 = vmatprep.subr.bf16.mxu1 %v15954_v12  ;;  %v16010_v12 = vcombine.high %v1327_v55, %v1331_v57 }
 0x506   : > { %7918 = vmatpush1.bf16.msra.mxu1 %v15953_v1  ;;  %v16009_v1 = vcombine.low %v1327_v55, %v1331_v57  ;;  %v17585_v55 = vld [vmem:[#allocation11 + $0x1500] ss:$56 sps:$4 sm:$0xff]   ;;  %v17587_v57 = vld [vmem:[#allocation11 + $0x1504] ss:$56 sps:$4 sm:$0xff]  }
 0x507   : > { %7919 = vmatprep.subr.bf16.mxu1 %v15962_v59  ;;  %v16018_v59 = vcombine.high %v1335_v27, %v1339_v63  ;;  %13691 = vmatprep.subr.bf16.mxu0 %v17587_v57  ;;  %v17530_v57 = vld [vmem:[#allocation11 + $0x93c] ss:$56 sps:$4 sm:$0xff]  }
 0x50a   : > { %7920 = vmatpush1.bf16.msra.mxu1 %v15961_v4  ;;  %v16017_v4 = vcombine.low %v1335_v27, %v1339_v63  ;;  %v17497_v27 = vld [vmem:[#allocation11 + $0x46c] ss:$56 sps:$4 sm:$0xff]   ;;  %v17495_v63 = vld [vmem:[#allocation11 + $0x468] ss:$56 sps:$4 sm:$0xff]  }
 0x50b   : > { %7921 = vmatprep.subr.bf16.mxu1 %v15970_v5  ;;  %v16026_v5 = vcombine.high %v1343_v2, %v1347_v3 }
 0x50e   : > { %7922 = vmatpush1.bf16.msra.mxu1 %v15969_v6  ;;  %v16025_v6 = vcombine.low %v1343_v2, %v1347_v3  ;;  %v17500_v2 = vld [vmem:[#allocation11 + $0x4dc] ss:$56 sps:$4 sm:$0xff]   ;;  %v17498_v3 = vld [vmem:[#allocation11 + $0x4d8] ss:$56 sps:$4 sm:$0xff]  }
 0x50f   : > { %7923 = vmatprep.subr.bf16.mxu1 %v15978_v8  ;;  %v16034_v8 = vcombine.high %v1351_v32, %v1355_v29 }
 0x512   : > { %v7603_v53 = vpop.f32.mrb[4].mxu0  ;;  %7924 = vmatpush1.bf16.msra.mxu1 %v15977_v18  ;;  %v16042_v18 = vcombine.high %v1359_v11, %v1363_v13 }
 0x513   : > { %v8002_v62 = vmul.f32 %v7977_v15, %v7603_v53  ;;  %v7605_v24 = vpop.f32.mrb[5].mxu0  ;;  %7925 = vmatprep.subr.bf16.mxu1 %v15986_v26  ;;  %v1371_v26 = vld [vmem:[#allocation6 + $0x1fb8] sm:$0xff] }
 0x514   : > { %v8003_v42 = vmul.f32 %v7981_v49, %v7605_v24  ;;  %v7607_v20 = vpop.f32.mrb[6].mxu0  ;;  %v1379_v53 = vld [vmem:[#allocation6 + $0x1ff8] sm:$0xff] }
 0x515   : > { %v8060_v44 = vadd.f32 %v8035_v47, %v8002_v62  ;;  %v8010_v25 = vmul.f32 %v7977_v15, %v7607_v20  ;;  %v7609_v33 = vpop.f32.mrb[7].mxu0  ;;  %v16033_v15 = vcombine.low %v1351_v32, %v1355_v29  ;;  %v16058_v62 = vcombine.high %v1375_v50, %v1379_v53  ;;  %v17470_v20 = vld [vmem:[#allocation11 + $0x7c] ss:$56 sps:$4 sm:$0xff]   ;;  %v17503_v32 = vld [vmem:[#allocation11 + $0x54c] ss:$56 sps:$4 sm:$0xff]  }
 0x516   : > { %v8061_v22 = vadd.f32 %v8039_v31, %v8003_v42  ;;  %v8011_v38 = vmul.f32 %v7981_v49, %v7609_v33  ;;  %7926 = vmatpush1.bf16.msra.mxu1 %v15985_v34  ;;  %v1367_v49 = vld [vmem:[#allocation6 + $0x1f98] sm:$0xff]  ;;  %v16057_v24 = vcombine.low %v1375_v50, %v1379_v53  ;;  %v17476_v33 = vld [vmem:[#allocation11 + $0x15c] ss:$56 sps:$4 sm:$0xff]   ;;  %v17510_v53 = vld [vmem:[#allocation11 + $0x698] ss:$56 sps:$4 sm:$0xff]  }
 0x517   : > { %v8068_v39 = vadd.f32 %v8035_v47, %v8010_v25  ;;  %7927 = vmatprep.subr.bf16.mxu1 %v15994_v45  ;;  %v8076_v51 = vmax.f32 %v8060_v44, 0.0  ;;  %v16041_v47 = vcombine.low %v1359_v11, %v1363_v13  ;;  %v16050_v14 = vcombine.high %v1367_v49, %v1371_v26  ;;  %v17467_v34 = vld [vmem:[#allocation11 + $0xc] ss:$56 sps:$4 sm:$0xff]   ;;  %v17465_v42 = vld [vmem:[#allocation11 + $0x8] ss:$56 sps:$4 sm:$0xff]  }
 0x518   : > { %v8069_v43 = vadd.f32 %v8039_v31, %v8011_v38  ;;  %v8077_v30 = vmax.f32 %v8061_v22, 0.0  ;;  %v16049_v31 = vcombine.low %v1367_v49, %v1371_v26  ;;  %v17468_v45 = vld [vmem:[#allocation11 + $0x78] ss:$56 sps:$4 sm:$0xff]   ;;  %v17473_v44 = vld [vmem:[#allocation11 + $0xec] ss:$56 sps:$4 sm:$0xff]  }
 0x519   : > { %v8084_v52 = vmax.f32 %v8068_v39, 0.0  ;;  %v17471_v25 = vld [vmem:[#allocation11 + $0xe8] ss:$56 sps:$4 sm:$0xff]   ;;  %v17482_v38 = vld [vmem:[#allocation11 + $0x23c] ss:$56 sps:$4 sm:$0xff]  }
 0x51a   : > { %v8085_v61 = vmax.f32 %v8069_v43, 0.0  ;;  %7928 = vmatpush1.bf16.msra.mxu1 %v15993_v40  ;;  %v17477_v22 = vld [vmem:[#allocation11 + $0x1c8] ss:$56 sps:$4 sm:$0xff]   ;;  %v17485_v39 = vld [vmem:[#allocation11 + $0x2ac] ss:$56 sps:$4 sm:$0xff]  }
 0x51b   : > { %v19462_v0 = vpack.c.bf16 %v8084_v52, %v8076_v51  ;;  %7929 = vmatprep.subr.bf16.mxu1 %v16002_v46  ;;  %v17483_v40 = vld [vmem:[#allocation11 + $0x2a8] ss:$56 sps:$4 sm:$0xff]   ;;  %v17488_v43 = vld [vmem:[#allocation11 + $0x31c] ss:$56 sps:$4 sm:$0xff]   ;;  %v17486_v46 = vld [vmem:[#allocation11 + $0x318] ss:$56 sps:$4 sm:$0xff]  }
 0x51c   : > { %v19464_v10 = vpack.c.bf16 %v8085_v61, %v8077_v30  ;;  %v17491_v51 = vld [vmem:[#allocation11 + $0x38c] ss:$56 sps:$4 sm:$0xff]   ;;  %v17489_v52 = vld [vmem:[#allocation11 + $0x388] ss:$56 sps:$4 sm:$0xff]   ;;  %v17494_v30 = vld [vmem:[#allocation11 + $0x3fc] ss:$56 sps:$4 sm:$0xff]  }
 0x51d   : > { %v17492_v61 = vld [vmem:[#allocation11 + $0x3f8] ss:$56 sps:$4 sm:$0xff]   ;;  %v17501_v29 = vld [vmem:[#allocation11 + $0x548] ss:$56 sps:$4 sm:$0xff]   ;;  %v17506_v11 = vld [vmem:[#allocation11 + $0x5bc] ss:$56 sps:$4 sm:$0xff]  }
 0x51e   : > { %13680 = vmatprep.mubr.bf16.mxu0 %v19464_v10  ;;  %7930 = vmatpush1.bf16.msra.mxu1 %v16001_v21  ;;  %v17591_v21 = vld [vmem:[#allocation11 + $0x1570] ss:$56 sps:$4 sm:$0xff]   ;;  %v17509_v49 = vld [vmem:[#allocation11 + $0x62c] ss:$56 sps:$4 sm:$0xff]   ;;  %v17512_v50 = vld [vmem:[#allocation11 + $0x69c] ss:$56 sps:$4 sm:$0xff]  }
 0x51f   : > { %13681 = vmatmul.mubr.bf16.vlgmr.msra.gmra.mrb[8].mxu0 %v19462_v0  ;;  %7931 = vmatprep.subr.bf16.mxu1 %v16010_v12  ;;  %v17593_v12 = vld [vmem:[#allocation11 + $0x1574] ss:$56 sps:$4 sm:$0xff]   ;;  %v17504_v13 = vld [vmem:[#allocation11 + $0x5b8] ss:$56 sps:$4 sm:$0xff]   ;;  %v17507_v26 = vld [vmem:[#allocation11 + $0x628] ss:$56 sps:$4 sm:$0xff]  }
 0x520   : > { %13692 = vmatpush1.bf16.msra.mxu0 %v17585_v55  ;;  %v17659_v55 = vld [vmem:[#allocation11 + $0x1a44] ss:$56 sps:$4 sm:$0xff]  }
 0x521   : > { %13693 = vmatprep.subr.bf16.mxu0 %v17593_v12  ;;  %v17663_v12 = vld [vmem:[#allocation11 + $0x1ab0] ss:$56 sps:$4 sm:$0xff]  }
 0x522   : > { %7932 = vmatpush1.bf16.msra.mxu1 %v16009_v1  ;;  %v17597_v1 = vld [vmem:[#allocation11 + $0x15e0] ss:$56 sps:$4 sm:$0xff]  }
 0x523   : > { %7933 = vmatprep.subr.bf16.mxu1 %v16018_v59  ;;  %v17599_v59 = vld [vmem:[#allocation11 + $0x15e4] ss:$56 sps:$4 sm:$0xff]  }
 0x524   : > { %13694 = vmatpush1.bf16.msra.mxu0 %v17591_v21  ;;  %v17665_v21 = vld [vmem:[#allocation11 + $0x1ab4] ss:$56 sps:$4 sm:$0xff]  }
 0x525   : > { %13695 = vmatprep.subr.bf16.mxu0 %v17599_v59  ;;  %v17669_v59 = vld [vmem:[#allocation11 + $0x1b20] ss:$56 sps:$4 sm:$0xff]  }
 0x526   : > { %7934 = vmatpush1.bf16.msra.mxu1 %v16017_v4  ;;  %v17603_v4 = vld [vmem:[#allocation11 + $0x1650] ss:$56 sps:$4 sm:$0xff]  }
 0x527   : > { %7935 = vmatprep.subr.bf16.mxu1 %v16026_v5  ;;  %v17605_v5 = vld [vmem:[#allocation11 + $0x1654] ss:$56 sps:$4 sm:$0xff]  }
 0x528   : > { %13696 = vmatpush1.bf16.msra.mxu0 %v17597_v1  ;;  %v17671_v1 = vld [vmem:[#allocation11 + $0x1b24] ss:$56 sps:$4 sm:$0xff]  }
 0x529   : > { %13697 = vmatprep.subr.bf16.mxu0 %v17605_v5  ;;  %v17675_v5 = vld [vmem:[#allocation11 + $0x1b90] ss:$56 sps:$4 sm:$0xff]  }
 0x52a   : > { %7936 = vmatpush1.bf16.msra.mxu1 %v16025_v6  ;;  %v17609_v6 = vld [vmem:[#allocation11 + $0x16c0] ss:$56 sps:$4 sm:$0xff]  }
 0x52b   : > { %7937 = vmatprep.subr.bf16.mxu1 %v16034_v8  ;;  %v17611_v8 = vld [vmem:[#allocation11 + $0x16c4] ss:$56 sps:$4 sm:$0xff]  }
 0x52c   : > { %13698 = vmatpush1.bf16.msra.mxu0 %v17603_v4  ;;  %v17677_v4 = vld [vmem:[#allocation11 + $0x1b94] ss:$56 sps:$4 sm:$0xff]  }
 0x52d   : > { %13699 = vmatprep.subr.bf16.mxu0 %v17611_v8  ;;  %v17540_v8 = vld [vmem:[#allocation11 + $0xaf8] ss:$56 sps:$4 sm:$0xff]  }
 0x52e   : > { %7938 = vmatpush1.bf16.msra.mxu1 %v16033_v15  ;;  %v17615_v15 = vld [vmem:[#allocation11 + $0x1730] ss:$56 sps:$4 sm:$0xff]  }
 0x52f   : > { %7939 = vmatprep.subr.bf16.mxu1 %v16042_v18  ;;  %v17617_v18 = vld [vmem:[#allocation11 + $0x1734] ss:$56 sps:$4 sm:$0xff]  }
 0x530   : > { %13700 = vmatpush1.bf16.msra.mxu0 %v17609_v6  ;;  %v17683_v6 = vld [vmem:[#allocation11 + $0x14] ss:$56 sps:$4 sm:$0xff]  }
 0x531   : > { %13701 = vmatprep.subr.bf16.mxu0 %v17617_v18  ;;  %v17546_v18 = vld [vmem:[#allocation11 + $0xbd8] ss:$56 sps:$4 sm:$0xff]  }
 0x532   : > { %7940 = vmatpush1.bf16.msra.mxu1 %v16041_v47  ;;  %v17621_v47 = vld [vmem:[#allocation11 + $0x17a0] ss:$56 sps:$4 sm:$0xff]  }
 0x533   : > { %7941 = vmatprep.subr.bf16.mxu1 %v16050_v14  ;;  %v17623_v14 = vld [vmem:[#allocation11 + $0x17a4] ss:$56 sps:$4 sm:$0xff]  }
 0x534   : > { %13702 = vmatpush1.bf16.msra.mxu0 %v17615_v15  ;;  %v17548_v15 = vld [vmem:[#allocation11 + $0xbdc] ss:$56 sps:$4 sm:$0xff]  }
 0x535   : > { %13703 = vmatprep.subr.bf16.mxu0 %v17623_v14  ;;  %v17552_v14 = vld [vmem:[#allocation11 + $0xcb8] ss:$56 sps:$4 sm:$0xff]  }
 0x536   : > { %7942 = vmatpush1.bf16.msra.mxu1 %v16049_v31  ;;  %v17627_v31 = vld [vmem:[#allocation11 + $0x1810] ss:$56 sps:$4 sm:$0xff]  }
 0x537   : > { %7943 = vmatprep.subr.bf16.mxu1 %v16058_v62  ;;  %v17629_v62 = vld [vmem:[#allocation11 + $0x1814] ss:$56 sps:$4 sm:$0xff]  }
 0x538   : > { %13704 = vmatpush1.bf16.msra.mxu0 %v17621_v47  ;;  %v17554_v47 = vld [vmem:[#allocation11 + $0xcbc] ss:$56 sps:$4 sm:$0xff]  }
 0x539   : > { %13705 = vmatprep.subr.bf16.mxu0 %v17629_v62  ;;  %v17558_v62 = vld [vmem:[#allocation11 + $0xd98] ss:$56 sps:$4 sm:$0xff]  }
 0x53a   : > { %7944 = vmatpush1.bf16.msra.mxu1 %v16057_v24  ;;  %v17515_v24 = vld [vmem:[#allocation11 + $0x70c] ss:$56 sps:$4 sm:$0xff]  }
 0x53b   : > { %13734 = vmatprep.subr.bf16.mxu1 %v17467_v34  ;;  %v17513_v34 = vld [vmem:[#allocation11 + $0x708] ss:$56 sps:$4 sm:$0xff]  }
 0x53c   : > { %13706 = vmatpush1.bf16.msra.mxu0 %v17627_v31  ;;  %v17560_v31 = vld [vmem:[#allocation11 + $0xd9c] ss:$56 sps:$4 sm:$0xff]  }
 0x53d   : > { %7946 = vmatmul.mubr.bf16.vlgmr.msra.gmra.mrb[8].mxu1 %v19363_v16  ;;  %v17480_v16 = vld [vmem:[#allocation11 + $0x238] ss:$56 sps:$4 sm:$0xff]  }
 0x53e   : > { %13735 = vmatpush1.bf16.msra.mxu1 %v17465_v42  ;;  %13766 = vmatprep.mubr.bf16.mxu1 %v19399_v17  ;;  %v17633_v42 = vld [vmem:[#allocation11 + $0x1880] ss:$56 sps:$4 sm:$0xff]  }
 0x53f   : > { %13736 = vmatprep.subr.bf16.mxu1 %v17470_v20  ;;  %v17635_v20 = vld [vmem:[#allocation11 + $0x1884] ss:$56 sps:$4 sm:$0xff]  }
 0x540   : > { %13707 = vmatprep.subr.bf16.mxu0 %v17635_v20  ;;  %v17564_v20 = vld [vmem:[#allocation11 + $0xe78] ss:$56 sps:$4 sm:$0xff]  }
 0x541   : > { %13708 = vmatpush1.bf16.msra.mxu0 %v17633_v42  ;;  %v17566_v42 = vld [vmem:[#allocation11 + $0xe7c] ss:$56 sps:$4 sm:$0xff]  }
 0x542   : > { %13737 = vmatpush1.bf16.msra.mxu1 %v17468_v45  ;;  %v17518_v45 = vld [vmem:[#allocation11 + $0x77c] ss:$56 sps:$4 sm:$0xff]  }
 0x543   : > { %13738 = vmatprep.subr.bf16.mxu1 %v17473_v44  ;;  %v17516_v44 = vld [vmem:[#allocation11 + $0x778] ss:$56 sps:$4 sm:$0xff]  }
 0x546   : > { %13739 = vmatpush1.bf16.msra.mxu1 %v17471_v25  ;;  %v17639_v25 = vld [vmem:[#allocation11 + $0x18f0] ss:$56 sps:$4 sm:$0xff]  }
 0x547   : > { %13740 = vmatprep.subr.bf16.mxu1 %v17476_v33  ;;  %v17641_v33 = vld [vmem:[#allocation11 + $0x18f4] ss:$56 sps:$4 sm:$0xff]  }
 0x548   : > { %13709 = vmatprep.subr.bf16.mxu0 %v17641_v33  ;;  %v17570_v33 = vld [vmem:[#allocation11 + $0xf58] ss:$56 sps:$4 sm:$0xff]  }
 0x549   : > { %13710 = vmatpush1.bf16.msra.mxu0 %v17639_v25  ;;  %v17572_v25 = vld [vmem:[#allocation11 + $0xf5c] ss:$56 sps:$4 sm:$0xff]  }
 0x54a   : > { %13741 = vmatpush1.bf16.msra.mxu1 %v17474_v23  ;;  %v17521_v23 = vld [vmem:[#allocation11 + $0x7ec] ss:$56 sps:$4 sm:$0xff]  }
 0x54b   : > { %13742 = vmatprep.subr.bf16.mxu1 %v17479_v36  ;;  %v17519_v36 = vld [vmem:[#allocation11 + $0x7e8] ss:$56 sps:$4 sm:$0xff]  }
 0x54e   : > { %13743 = vmatpush1.bf16.msra.mxu1 %v17477_v22  ;;  %v17645_v22 = vld [vmem:[#allocation11 + $0x1960] ss:$56 sps:$4 sm:$0xff]  }
 0x54f   : > { %13744 = vmatprep.subr.bf16.mxu1 %v17482_v38  ;;  %v17647_v38 = vld [vmem:[#allocation11 + $0x1964] ss:$56 sps:$4 sm:$0xff]  }
 0x550   : > { %13711 = vmatprep.subr.bf16.mxu0 %v17647_v38  ;;  %v17576_v38 = vld [vmem:[#allocation11 + $0x1038] ss:$56 sps:$4 sm:$0xff]  }
 0x551   : > { %13712 = vmatpush1.bf16.msra.mxu0 %v17645_v22  ;;  %v17578_v22 = vld [vmem:[#allocation11 + $0x103c] ss:$56 sps:$4 sm:$0xff]  }
 0x552   : > { %13745 = vmatpush1.bf16.msra.mxu1 %v17480_v16  ;;  %v17524_v16 = vld [vmem:[#allocation11 + $0x85c] ss:$56 sps:$4 sm:$0xff]  }
 0x553   : > { %13746 = vmatprep.subr.bf16.mxu1 %v17485_v39  ;;  %v17522_v39 = vld [vmem:[#allocation11 + $0x858] ss:$56 sps:$4 sm:$0xff]  }
 0x556   : > { %13747 = vmatpush1.bf16.msra.mxu1 %v17483_v40  ;;  %v17651_v40 = vld [vmem:[#allocation11 + $0x19d0] ss:$56 sps:$4 sm:$0xff]  }
 0x557   : > { %13748 = vmatprep.subr.bf16.mxu1 %v17488_v43  ;;  %v17653_v43 = vld [vmem:[#allocation11 + $0x19d4] ss:$56 sps:$4 sm:$0xff]  }
 0x558   : > { %13713 = vmatprep.subr.bf16.mxu0 %v17653_v43  ;;  %v17582_v43 = vld [vmem:[#allocation11 + $0x1118] ss:$56 sps:$4 sm:$0xff]  }
 0x559   : > { %13714 = vmatpush1.bf16.msra.mxu0 %v17651_v40  ;;  %v17584_v40 = vld [vmem:[#allocation11 + $0x111c] ss:$56 sps:$4 sm:$0xff]  }
 0x55a   : > { %13749 = vmatpush1.bf16.msra.mxu1 %v17486_v46  ;;  %v17527_v46 = vld [vmem:[#allocation11 + $0x8cc] ss:$56 sps:$4 sm:$0xff]   ;;  %13715 = vmatprep.subr.bf16.mxu0 %v17659_v55  ;;  %v17594_v55 = vld [vmem:[#allocation11 + $0x11f8] ss:$56 sps:$4 sm:$0xff]  }
 0x55b   : > { %13750 = vmatprep.subr.bf16.mxu1 %v17491_v51  ;;  %v17525_v51 = vld [vmem:[#allocation11 + $0x8c8] ss:$56 sps:$4 sm:$0xff]  }
 0x55e   : > { %13751 = vmatpush1.bf16.msra.mxu1 %v17489_v52  ;;  %v17657_v52 = vld [vmem:[#allocation11 + $0x1a40] ss:$56 sps:$4 sm:$0xff]  }
 0x55f   : > { %13752 = vmatprep.subr.bf16.mxu1 %v17494_v30  ;;  %13716 = vmatpush1.bf16.msra.mxu0 %v17657_v52  ;;  %v17528_v30 = vld [vmem:[#allocation11 + $0x938] ss:$56 sps:$4 sm:$0xff]   ;;  %v17596_v52 = vld [vmem:[#allocation11 + $0x11fc] ss:$56 sps:$4 sm:$0xff]  }
 0x560   : > { %13717 = vmatprep.subr.bf16.mxu0 %v17665_v21  ;;  %v17606_v21 = vld [vmem:[#allocation11 + $0x12d8] ss:$56 sps:$4 sm:$0xff]  }
 0x562   : > { %13753 = vmatpush1.bf16.msra.mxu1 %v17492_v61  ;;  %v17533_v61 = vld [vmem:[#allocation11 + $0x9ac] ss:$56 sps:$4 sm:$0xff]  }
 0x563   : > { %13754 = vmatprep.subr.bf16.mxu1 %v17497_v27  ;;  %v17531_v27 = vld [vmem:[#allocation11 + $0x9a8] ss:$56 sps:$4 sm:$0xff]   ;;  %13718 = vmatpush1.bf16.msra.mxu0 %v17663_v12  ;;  %v17614_v12 = vld [vmem:[#allocation11 + $0x134c] ss:$56 sps:$4 sm:$0xff]  }
 0x564   : > { %13719 = vmatprep.subr.bf16.mxu0 %v17671_v1  ;;  %v17618_v1 = vld [vmem:[#allocation11 + $0x13b8] ss:$56 sps:$4 sm:$0xff]  }
 0x566   : > { %13755 = vmatpush1.bf16.msra.mxu1 %v17495_v63  ;;  %v17536_v63 = vld [vmem:[#allocation11 + $0xa1c] ss:$56 sps:$4 sm:$0xff]  }
 0x567   : > { %13756 = vmatprep.subr.bf16.mxu1 %v17500_v2  ;;  %v17534_v2 = vld [vmem:[#allocation11 + $0xa18] ss:$56 sps:$4 sm:$0xff]   ;;  %13720 = vmatpush1.bf16.msra.mxu0 %v17669_v59  ;;  %v17626_v59 = vld [vmem:[#allocation11 + $0x142c] ss:$56 sps:$4 sm:$0xff]  }
 0x568   : > { %13721 = vmatprep.subr.bf16.mxu0 %v17677_v4  ;;  %v17630_v4 = vld [vmem:[#allocation11 + $0x1498] ss:$56 sps:$4 sm:$0xff]  }
 0x56a   : > { %13757 = vmatpush1.bf16.msra.mxu1 %v17498_v3  ;;  %v17539_v3 = vld [vmem:[#allocation11 + $0xa8c] ss:$56 sps:$4 sm:$0xff]  }
 0x56b   : > { %13758 = vmatprep.subr.bf16.mxu1 %v17503_v32  ;;  %v17537_v32 = vld [vmem:[#allocation11 + $0xa88] ss:$56 sps:$4 sm:$0xff]   ;;  %13722 = vmatpush1.bf16.msra.mxu0 %v17675_v5  ;;  %v17638_v5 = vld [vmem:[#allocation11 + $0x150c] ss:$56 sps:$4 sm:$0xff]  }
 0x56c   : > { %13906 = vmatprep.subr.bf16.mxu0 %v17683_v6  ;;  %v17642_v6 = vld [vmem:[#allocation11 + $0x1578] ss:$56 sps:$4 sm:$0xff]  }
 0x56e   : > { %13759 = vmatpush1.bf16.msra.mxu1 %v17501_v29  ;;  %v17542_v29 = vld [vmem:[#allocation11 + $0xafc] ss:$56 sps:$4 sm:$0xff]  }
 0x56f   : > { %13760 = vmatprep.subr.bf16.mxu1 %v17506_v11  ;;  %v17545_v11 = vld [vmem:[#allocation11 + $0xb6c] ss:$56 sps:$4 sm:$0xff]  }
 0x572   : > { %13761 = vmatpush1.bf16.msra.mxu1 %v17504_v13  ;;  %v17543_v13 = vld [vmem:[#allocation11 + $0xb68] ss:$56 sps:$4 sm:$0xff]  }
 0x573   : > { %13762 = vmatprep.subr.bf16.mxu1 %v17509_v49  ;;  %v17551_v49 = vld [vmem:[#allocation11 + $0xc4c] ss:$56 sps:$4 sm:$0xff]  }
 0x576   : > { %13763 = vmatpush1.bf16.msra.mxu1 %v17507_v26  ;;  %v17549_v26 = vld [vmem:[#allocation11 + $0xc48] ss:$56 sps:$4 sm:$0xff]  }
 0x577   : > { %13764 = vmatprep.subr.bf16.mxu1 %v17512_v50  ;;  %v17557_v50 = vld [vmem:[#allocation11 + $0xd2c] ss:$56 sps:$4 sm:$0xff]  }
 0x57a   : > { %13765 = vmatpush1.bf16.msra.mxu1 %v17510_v53  ;;  %v17555_v53 = vld [vmem:[#allocation11 + $0xd28] ss:$56 sps:$4 sm:$0xff]  }
 0x57b   : > { %13777 = vmatprep.subr.bf16.mxu1 %v17515_v24  ;;  %v17563_v24 = vld [vmem:[#allocation11 + $0xe0c] ss:$56 sps:$4 sm:$0xff]  }
 0x57d   : > { %13767 = vmatmul.mubr.bf16.vlgmr.msra.gmra.mrb[12].mxu1 %v19397_v9 }
 0x57e   : > { %13778 = vmatpush1.bf16.msra.mxu1 %v17513_v34  ;;  %13809 = vmatprep.mubr.bf16.mxu1 %v19429_v56  ;;  %v17561_v34 = vld [vmem:[#allocation11 + $0xe08] ss:$56 sps:$4 sm:$0xff]  }
 0x57f   : > { %13779 = vmatprep.subr.bf16.mxu1 %v17518_v45  ;;  %v17569_v45 = vld [vmem:[#allocation11 + $0xeec] ss:$56 sps:$4 sm:$0xff]  }
 0x582   : > { %13780 = vmatpush1.bf16.msra.mxu1 %v17516_v44  ;;  %v17567_v44 = vld [vmem:[#allocation11 + $0xee8] ss:$56 sps:$4 sm:$0xff]  }
 0x583   : > { %13781 = vmatprep.subr.bf16.mxu1 %v17521_v23  ;;  %v17575_v23 = vld [vmem:[#allocation11 + $0xfcc] ss:$56 sps:$4 sm:$0xff]  }
 0x586   : > { %13782 = vmatpush1.bf16.msra.mxu1 %v17519_v36  ;;  %v17573_v36 = vld [vmem:[#allocation11 + $0xfc8] ss:$56 sps:$4 sm:$0xff]  }
 0x587   : > { %13783 = vmatprep.subr.bf16.mxu1 %v17524_v16  ;;  %v17581_v16 = vld [vmem:[#allocation11 + $0x10ac] ss:$56 sps:$4 sm:$0xff]  }
 0x58a   : > { %13784 = vmatpush1.bf16.msra.mxu1 %v17522_v39  ;;  %v17579_v39 = vld [vmem:[#allocation11 + $0x10a8] ss:$56 sps:$4 sm:$0xff]  }
 0x58b   : > { %13785 = vmatprep.subr.bf16.mxu1 %v17527_v46  ;;  %v17590_v46 = vld [vmem:[#allocation11 + $0x118c] ss:$56 sps:$4 sm:$0xff]  }
 0x58e   : > { %13786 = vmatpush1.bf16.msra.mxu1 %v17525_v51  ;;  %v17588_v51 = vld [vmem:[#allocation11 + $0x1188] ss:$56 sps:$4 sm:$0xff]  }
 0x58f   : > { %13787 = vmatprep.subr.bf16.mxu1 %v17530_v57  ;;  %v17602_v57 = vld [vmem:[#allocation11 + $0x126c] ss:$56 sps:$4 sm:$0xff]  }
 0x592   : > { %13788 = vmatpush1.bf16.msra.mxu1 %v17528_v30  ;;  %v17600_v30 = vld [vmem:[#allocation11 + $0x1268] ss:$56 sps:$4 sm:$0xff]  }
 0x593   : > { %13789 = vmatprep.subr.bf16.mxu1 %v17533_v61  ;;  %v17608_v61 = vld [vmem:[#allocation11 + $0x12dc] ss:$56 sps:$4 sm:$0xff]  }
 0x596   : > { %13790 = vmatpush1.bf16.msra.mxu1 %v17531_v27  ;;  %v17612_v27 = vld [vmem:[#allocation11 + $0x1348] ss:$56 sps:$4 sm:$0xff]  }
 0x597   : > { %13791 = vmatprep.subr.bf16.mxu1 %v17536_v63  ;;  %v17620_v63 = vld [vmem:[#allocation11 + $0x13bc] ss:$56 sps:$4 sm:$0xff]  }
 0x59a   : > { %13792 = vmatpush1.bf16.msra.mxu1 %v17534_v2  ;;  %v17624_v2 = vld [vmem:[#allocation11 + $0x1428] ss:$56 sps:$4 sm:$0xff]  }
 0x59b   : > { %13793 = vmatprep.subr.bf16.mxu1 %v17539_v3  ;;  %v17632_v3 = vld [vmem:[#allocation11 + $0x149c] ss:$56 sps:$4 sm:$0xff]  }
 0x59e   : > { %13794 = vmatpush1.bf16.msra.mxu1 %v17537_v32  ;;  %v17636_v32 = vld [vmem:[#allocation11 + $0x1508] ss:$56 sps:$4 sm:$0xff]  }
 0x59f   : > { %13795 = vmatprep.subr.bf16.mxu1 %v17542_v29  ;;  %v17644_v29 = vld [vmem:[#allocation11 + $0x157c] ss:$56 sps:$4 sm:$0xff]  }
 0x5a2   : > { %13796 = vmatpush1.bf16.msra.mxu1 %v17540_v8  ;;  %v17650_v8 = vld [vmem:[#allocation11 + $0x15ec] ss:$56 sps:$4 sm:$0xff]  }
 0x5a3   : > { %13797 = vmatprep.subr.bf16.mxu1 %v17545_v11  ;;  %v17648_v11 = vld [vmem:[#allocation11 + $0x15e8] ss:$56 sps:$4 sm:$0xff]  }
 0x5a6   : > { %13798 = vmatpush1.bf16.msra.mxu1 %v17543_v13  ;;  %v17656_v13 = vld [vmem:[#allocation11 + $0x165c] ss:$56 sps:$4 sm:$0xff]  }
 0x5a7   : > { %13799 = vmatprep.subr.bf16.mxu1 %v17548_v15  ;;  %v17654_v15 = vld [vmem:[#allocation11 + $0x1658] ss:$56 sps:$4 sm:$0xff]  }
 0x5aa   : > { %13800 = vmatpush1.bf16.msra.mxu1 %v17546_v18  ;;  %v17662_v18 = vld [vmem:[#allocation11 + $0x16cc] ss:$56 sps:$4 sm:$0xff]  }
 0x5ab   : > { %13801 = vmatprep.subr.bf16.mxu1 %v17551_v49  ;;  %v19476_v49 = vsub.s32 6, %v19381_v41 }
 0x5ae   : > { %13802 = vmatpush1.bf16.msra.mxu1 %v17549_v26  ;;  %v17660_v26 = vld [vmem:[#allocation11 + $0x16c8] ss:$56 sps:$4 sm:$0xff]  }
 0x5af   : > { %13803 = vmatprep.subr.bf16.mxu1 %v17554_v47  ;;  %v19479_v47 = vsub.s32 7, %v19381_v41 }
 0x5b1   : > { %v8047_v41 = vrot.slane %v19456_v19, %v19479_v47 }
 0x5b2   : > { %13804 = vmatpush1.bf16.msra.mxu1 %v17552_v14  ;;  %v17668_v14 = vld [vmem:[#allocation11 + $0x173c] ss:$56 sps:$4 sm:$0xff]  }
 0x5b3   : > { %13805 = vmatprep.subr.bf16.mxu1 %v17557_v50  ;;  %v7985_v50 = vrot.slane %v19450_v58, %v19476_v49 }
 0x5b6   : > { %13806 = vmatpush1.bf16.msra.mxu1 %v17555_v53  ;;  %v7989_v53 = vrot.slane %v19450_v58, %v19479_v47  ;;  %v17680_v58 = vld [vmem:[#allocation11 + $0x181c] ss:$56 sps:$4 sm:$0xff]  }
 0x5b7   : > { %13807 = vmatprep.subr.bf16.mxu1 %v17560_v31  ;;  %v17666_v31 = vld [vmem:[#allocation11 + $0x1738] ss:$56 sps:$4 sm:$0xff]  }
 0x5ba   : > { %13808 = vmatpush1.bf16.msra.mxu1 %v17558_v62  ;;  %v8043_v62 = vrot.slane %v19456_v19, %v19476_v49  ;;  %v17686_v19 = vld [vmem:[#allocation11 + $0x188c] ss:$56 sps:$4 sm:$0xff]  }
 0x5bb   : > { %13820 = vmatprep.subr.bf16.mxu1 %v17563_v24  ;;  %v17674_v24 = vld [vmem:[#allocation11 + $0x17ac] ss:$56 sps:$4 sm:$0xff]  }
 0x5bd   : > { %13810 = vmatmul.mubr.bf16.vlgmr.msra.gmra.mrb[12].mxu1 %v19427_v54 }
 0x5be   : > { %13821 = vmatpush1.bf16.msra.mxu1 %v17561_v34  ;;  %13852 = vmatprep.mubr.bf16.mxu1 %v19464_v10 }
 0x5bf   : > { %13822 = vmatprep.subr.bf16.mxu1 %v17566_v42 }
 0x5c2   : > { %13823 = vmatpush1.bf16.msra.mxu1 %v17564_v20 }
 0x5c3   : > { %13824 = vmatprep.subr.bf16.mxu1 %v17569_v45 }
 0x5c6   : > { %13825 = vmatpush1.bf16.msra.mxu1 %v17567_v44 }
 0x5c7   : > { %13826 = vmatprep.subr.bf16.mxu1 %v17572_v25  ;;  %v17672_v25 = vld [vmem:[#allocation11 + $0x17a8] ss:$56 sps:$4 sm:$0xff]  }
 0x5ca   : > { %13827 = vmatpush1.bf16.msra.mxu1 %v17570_v33 }
 0x5cb   : > { %13828 = vmatprep.subr.bf16.mxu1 %v17575_v23 }
 0x5ce   : > { %13829 = vmatpush1.bf16.msra.mxu1 %v17573_v36 }
 0x5cf   : > { %13830 = vmatprep.subr.bf16.mxu1 %v17578_v22 }
 0x5d2   : > { %13831 = vmatpush1.bf16.msra.mxu1 %v17576_v38 }
 0x5d3   : > { %13832 = vmatprep.subr.bf16.mxu1 %v17581_v16 }
 0x5d6   : > { %13833 = vmatpush1.bf16.msra.mxu1 %v17579_v39 }
 0x5d7   : > { %13834 = vmatprep.subr.bf16.mxu1 %v17584_v40  ;;  %v17678_v40 = vld [vmem:[#allocation11 + $0x1818] ss:$56 sps:$4 sm:$0xff]  }
 0x5da   : > { %13835 = vmatpush1.bf16.msra.mxu1 %v17582_v43 }
 0x5db   : > { %13836 = vmatprep.subr.bf16.mxu1 %v17590_v46 }
 0x5de   : > { %13837 = vmatpush1.bf16.msra.mxu1 %v17588_v51 }
 0x5df   : > { %13838 = vmatprep.subr.bf16.mxu1 %v17596_v52 }
 0x5e2   : > { %13839 = vmatpush1.bf16.msra.mxu1 %v17594_v55 }
 0x5e3   : > { %13840 = vmatprep.subr.bf16.mxu1 %v17602_v57 }
 0x5e6   : > { %13841 = vmatpush1.bf16.msra.mxu1 %v17600_v30  ;;  %v17681_v30 = vld [vmem:[#allocation11 + $0x10] ss:$56 sps:$4 sm:$0xff]  }
 0x5e7   : > { %13842 = vmatprep.subr.bf16.mxu1 %v17608_v61  ;;  %v17684_v61 = vld [vmem:[#allocation11 + $0x1888] ss:$56 sps:$4 sm:$0xff]  }
 0x5ea   : > { %13843 = vmatpush1.bf16.msra.mxu1 %v17606_v21  ;;  %v17689_v21 = vld [vmem:[#allocation11 + $0x84] ss:$56 sps:$4 sm:$0xff]  }
 0x5eb   : > { %13844 = vmatprep.subr.bf16.mxu1 %v17614_v12  ;;  %v17692_v12 = vld [vmem:[#allocation11 + $0x18fc] ss:$56 sps:$4 sm:$0xff]  }
 0x5ee   : > { %13845 = vmatpush1.bf16.msra.mxu1 %v17612_v27  ;;  %v17687_v27 = vld [vmem:[#allocation11 + $0x80] ss:$56 sps:$4 sm:$0xff]  }
 0x5ef   : > { %13846 = vmatprep.subr.bf16.mxu1 %v17620_v63  ;;  %v17690_v63 = vld [vmem:[#allocation11 + $0x18f8] ss:$56 sps:$4 sm:$0xff]  }
 0x5f2   : > { %13847 = vmatpush1.bf16.msra.mxu1 %v17618_v1  ;;  %v17695_v1 = vld [vmem:[#allocation11 + $0xf4] ss:$56 sps:$4 sm:$0xff]  }
 0x5f3   : > { %13848 = vmatprep.subr.bf16.mxu1 %v17626_v59  ;;  %v17698_v59 = vld [vmem:[#allocation11 + $0x196c] ss:$56 sps:$4 sm:$0xff]  }
 0x5f6   : > { %13849 = vmatpush1.bf16.msra.mxu1 %v17624_v2  ;;  %v17693_v2 = vld [vmem:[#allocation11 + $0xf0] ss:$56 sps:$4 sm:$0xff]  }
 0x5f7   : > { %13850 = vmatprep.subr.bf16.mxu1 %v17632_v3  ;;  %v17696_v3 = vld [vmem:[#allocation11 + $0x1968] ss:$56 sps:$4 sm:$0xff]  }
 0x5fa   : > { %13851 = vmatpush1.bf16.msra.mxu1 %v17630_v4  ;;  %v17701_v4 = vld [vmem:[#allocation11 + $0x164] ss:$56 sps:$4 sm:$0xff]  }
 0x5fb   : > { %13863 = vmatprep.subr.bf16.mxu1 %v17638_v5  ;;  %v17704_v5 = vld [vmem:[#allocation11 + $0x19dc] ss:$56 sps:$4 sm:$0xff]  }
 0x5fd   : > { %13853 = vmatmul.mubr.bf16.vlgmr.msra.gmra.mrb[12].mxu1 %v19462_v0 }
 0x5fe   : > { %13864 = vmatpush1.bf16.msra.mxu1 %v17636_v32  ;;  %v17699_v32 = vld [vmem:[#allocation11 + $0x160] ss:$56 sps:$4 sm:$0xff]  }
 0x5ff   : > { %13865 = vmatprep.subr.bf16.mxu1 %v17644_v29  ;;  %v17702_v29 = vld [vmem:[#allocation11 + $0x19d8] ss:$56 sps:$4 sm:$0xff]  }
 0x602   : > { %13866 = vmatpush1.bf16.msra.mxu1 %v17642_v6  ;;  %v17707_v6 = vld [vmem:[#allocation11 + $0x1d4] ss:$56 sps:$4 sm:$0xff]  }
 0x603   : > { %13867 = vmatprep.subr.bf16.mxu1 %v17650_v8  ;;  %v17710_v8 = vld [vmem:[#allocation11 + $0x1a4c] ss:$56 sps:$4 sm:$0xff]  }
 0x606   : > { %13868 = vmatpush1.bf16.msra.mxu1 %v17648_v11  ;;  %v17705_v11 = vld [vmem:[#allocation11 + $0x1d0] ss:$56 sps:$4 sm:$0xff]  }
 0x607   : > { %13869 = vmatprep.subr.bf16.mxu1 %v17656_v13  ;;  %v17708_v13 = vld [vmem:[#allocation11 + $0x1a48] ss:$56 sps:$4 sm:$0xff]  }
 0x60a   : > { %13870 = vmatpush1.bf16.msra.mxu1 %v17654_v15  ;;  %v17713_v15 = vld [vmem:[#allocation11 + $0x244] ss:$56 sps:$4 sm:$0xff]  }
 0x60b   : > { %13871 = vmatprep.subr.bf16.mxu1 %v17662_v18  ;;  %v17716_v18 = vld [vmem:[#allocation11 + $0x1abc] ss:$56 sps:$4 sm:$0xff]  }
 0x60e   : > { %13872 = vmatpush1.bf16.msra.mxu1 %v17660_v26  ;;  %v17711_v26 = vld [vmem:[#allocation11 + $0x240] ss:$56 sps:$4 sm:$0xff]  }
 0x60f   : > { %13873 = vmatprep.subr.bf16.mxu1 %v17668_v14  ;;  %v17714_v14 = vld [vmem:[#allocation11 + $0x1ab8] ss:$56 sps:$4 sm:$0xff]  }
 0x610   : > { %v7947_v34 = vpop.f32.mrb[8].mxu1 }
 0x611   : > { %v8004_v42 = vmul.f32 %v7985_v50, %v7947_v34  ;;  %v7949_v20 = vpop.f32.mrb[9].mxu1  ;;  %v17728_v34 = vld [vmem:[#allocation11 + $0x1b9c] ss:$56 sps:$4 sm:$0xff]  }
 0x612   : > { %v8005_v45 = vmul.f32 %v7989_v53, %v7949_v20  ;;  %v7951_v44 = vpop.f32.mrb[10].mxu1  ;;  %13874 = vmatpush1.bf16.msra.mxu1 %v17666_v31  ;;  %v17717_v31 = vld [vmem:[#allocation11 + $0x2b0] ss:$56 sps:$4 sm:$0xff]   ;;  %v17731_v20 = vld [vmem:[#allocation11 + $0x394] ss:$56 sps:$4 sm:$0xff]  }
 0x613   : > { %v8062_v33 = vadd.f32 %v8043_v62, %v8004_v42  ;;  %v8012_v23 = vmul.f32 %v7985_v50, %v7951_v44  ;;  %v7953_v36 = vpop.f32.mrb[11].mxu1  ;;  %13875 = vmatprep.subr.bf16.mxu1 %v17674_v24  ;;  %v17719_v50 = vld [vmem:[#allocation11 + $0x2b4] ss:$56 sps:$4 sm:$0xff]   ;;  %v17725_v24 = vld [vmem:[#allocation11 + $0x324] ss:$56 sps:$4 sm:$0xff]  }
 0x614   : > { %v8063_v22 = vadd.f32 %v8047_v41, %v8005_v45  ;;  %v8013_v38 = vmul.f32 %v7989_v53, %v7953_v36  ;;  %v17722_v53 = vld [vmem:[#allocation11 + $0x1b2c] ss:$56 sps:$4 sm:$0xff]   ;;  %v17726_v42 = vld [vmem:[#allocation11 + $0x1b98] ss:$56 sps:$4 sm:$0xff]   ;;  %v17734_v45 = vld [vmem:[#allocation11 + $0x1c] ss:$56 sps:$4 sm:$0xff]  }
 0x615   : > { %v8070_v16 = vadd.f32 %v8043_v62, %v8012_v23  ;;  %v8078_v43 = vmax.f32 %v8062_v33, 0.0  ;;  %v17720_v62 = vld [vmem:[#allocation11 + $0x1b28] ss:$56 sps:$4 sm:$0xff]   ;;  %v17737_v33 = vld [vmem:[#allocation11 + $0x404] ss:$56 sps:$4 sm:$0xff]  }
 0x616   : > { %v8071_v39 = vadd.f32 %v8047_v41, %v8013_v38  ;;  %13876 = vmatpush1.bf16.msra.mxu1 %v17672_v25  ;;  %v8079_v51 = vmax.f32 %v8063_v22, 0.0  ;;  %v17723_v41 = vld [vmem:[#allocation11 + $0x320] ss:$56 sps:$4 sm:$0xff]   ;;  %v17729_v44 = vld [vmem:[#allocation11 + $0x390] ss:$56 sps:$4 sm:$0xff]  }
 0x617   : > { %v8086_v46 = vmax.f32 %v8070_v16, 0.0  ;;  %13877 = vmatprep.subr.bf16.mxu1 %v17680_v58  ;;  %v17732_v25 = vld [vmem:[#allocation11 + $0x18] ss:$56 sps:$4 sm:$0xff]   ;;  %v17740_v23 = vld [vmem:[#allocation11 + $0x8c] ss:$56 sps:$4 sm:$0xff]  }
 0x618   : > { %v8087_v52 = vmax.f32 %v8071_v39, 0.0  ;;  %v17735_v36 = vld [vmem:[#allocation11 + $0x400] ss:$56 sps:$4 sm:$0xff]   ;;  %v17743_v22 = vld [vmem:[#allocation11 + $0x474] ss:$56 sps:$4 sm:$0xff]  }
 0x619   : > { %v19489_v55 = vpack.c.bf16 %v8086_v46, %v8078_v43  ;;  %v17738_v58 = vld [vmem:[#allocation11 + $0x88] ss:$56 sps:$4 sm:$0xff]   ;;  %v17746_v38 = vld [vmem:[#allocation11 + $0xfc] ss:$56 sps:$4 sm:$0xff]   ;;  %v17744_v39 = vld [vmem:[#allocation11 + $0xf8] ss:$56 sps:$4 sm:$0xff]  }
 0x61a   : > { %v19491_v57 = vpack.c.bf16 %v8087_v52, %v8079_v51  ;;  %13878 = vmatpush1.bf16.msra.mxu1 %v17678_v40  ;;  %v17741_v16 = vld [vmem:[#allocation11 + $0x470] ss:$56 sps:$4 sm:$0xff]   ;;  %v17749_v40 = vld [vmem:[#allocation11 + $0x4e4] ss:$56 sps:$4 sm:$0xff]   ;;  %v17747_v46 = vld [vmem:[#allocation11 + $0x4e0] ss:$56 sps:$4 sm:$0xff]  }
 0x61b   : > { %13879 = vmatprep.subr.bf16.mxu1 %v17686_v19  ;;  %v17752_v43 = vld [vmem:[#allocation11 + $0x16c] ss:$56 sps:$4 sm:$0xff]   ;;  %v17750_v19 = vld [vmem:[#allocation11 + $0x168] ss:$56 sps:$4 sm:$0xff]   ;;  %v17758_v52 = vld [vmem:[#allocation11 + $0x1dc] ss:$56 sps:$4 sm:$0xff]  }
 0x61c   : > { %13723 = vmatprep.mubr.bf16.mxu0 %v19491_v57  ;;  %13895 = vmatprep.mubr.bf16.mxu1 %v19491_v57  ;;  %v17755_v51 = vld [vmem:[#allocation11 + $0x554] ss:$56 sps:$4 sm:$0xff]  }
 0x61d   : > { %13724 = vmatmul.mubr.bf16.vlgmr.msra.gmra.mrb[8].mxu0 %v19489_v55 }
 0x61e   : > { %13907 = vmatpush1.bf16.msra.mxu0 %v17681_v30  ;;  %13880 = vmatpush1.bf16.msra.mxu1 %v17684_v61  ;;  %v17753_v30 = vld [vmem:[#allocation11 + $0x550] ss:$56 sps:$4 sm:$0xff]  }
 0x61f   : > { %13938 = vmatprep.mubr.bf16.mxu0 %v19399_v17  ;;  %13908 = vmatprep.subr.bf16.mxu0 %v17689_v21  ;;  %v17756_v61 = vld [vmem:[#allocation11 + $0x1d8] ss:$56 sps:$4 sm:$0xff]   ;;  %v17761_v21 = vld [vmem:[#allocation11 + $0x5c4] ss:$56 sps:$4 sm:$0xff]  }
 0x620   : > { %13881 = vmatprep.subr.bf16.mxu1 %v17692_v12  ;;  %v17764_v12 = vld [vmem:[#allocation11 + $0x24c] ss:$56 sps:$4 sm:$0xff]  }
 0x622   : > { %13909 = vmatpush1.bf16.msra.mxu0 %v17687_v27  ;;  %13882 = vmatpush1.bf16.msra.mxu1 %v17690_v63  ;;  %v17759_v27 = vld [vmem:[#allocation11 + $0x5c0] ss:$56 sps:$4 sm:$0xff]  }
 0x623   : > { %13910 = vmatprep.subr.bf16.mxu0 %v17695_v1  ;;  %13883 = vmatprep.subr.bf16.mxu1 %v17698_v59  ;;  %v17762_v63 = vld [vmem:[#allocation11 + $0x248] ss:$56 sps:$4 sm:$0xff]   ;;  %v17767_v1 = vld [vmem:[#allocation11 + $0x634] ss:$56 sps:$4 sm:$0xff]  }
 0x624   : > { %v17770_v59 = vld [vmem:[#allocation11 + $0x2bc] ss:$56 sps:$4 sm:$0xff]  }
 0x626   : > { %13911 = vmatpush1.bf16.msra.mxu0 %v17693_v2  ;;  %13884 = vmatpush1.bf16.msra.mxu1 %v17696_v3  ;;  %v17765_v2 = vld [vmem:[#allocation11 + $0x630] ss:$56 sps:$4 sm:$0xff]  }
 0x627   : > { %13912 = vmatprep.subr.bf16.mxu0 %v17701_v4  ;;  %13885 = vmatprep.subr.bf16.mxu1 %v17704_v5  ;;  %v17768_v3 = vld [vmem:[#allocation11 + $0x2b8] ss:$56 sps:$4 sm:$0xff]   ;;  %v17773_v4 = vld [vmem:[#allocation11 + $0x6a4] ss:$56 sps:$4 sm:$0xff]  }
 0x628   : > { %v17776_v5 = vld [vmem:[#allocation11 + $0x32c] ss:$56 sps:$4 sm:$0xff]  }
 0x62a   : > { %13913 = vmatpush1.bf16.msra.mxu0 %v17699_v32  ;;  %13886 = vmatpush1.bf16.msra.mxu1 %v17702_v29  ;;  %v17771_v32 = vld [vmem:[#allocation11 + $0x6a0] ss:$56 sps:$4 sm:$0xff]  }
 0x62b   : > { %13914 = vmatprep.subr.bf16.mxu0 %v17707_v6  ;;  %13887 = vmatprep.subr.bf16.mxu1 %v17710_v8  ;;  %v17774_v29 = vld [vmem:[#allocation11 + $0x328] ss:$56 sps:$4 sm:$0xff]   ;;  %v17779_v6 = vld [vmem:[#allocation11 + $0x714] ss:$56 sps:$4 sm:$0xff]  }
 0x62c   : > { %v17782_v8 = vld [vmem:[#allocation11 + $0x39c] ss:$56 sps:$4 sm:$0xff]  }
 0x62e   : > { %13915 = vmatpush1.bf16.msra.mxu0 %v17705_v11  ;;  %13888 = vmatpush1.bf16.msra.mxu1 %v17708_v13  ;;  %v17777_v11 = vld [vmem:[#allocation11 + $0x710] ss:$56 sps:$4 sm:$0xff]  }
 0x62f   : > { %13916 = vmatprep.subr.bf16.mxu0 %v17713_v15  ;;  %13889 = vmatprep.subr.bf16.mxu1 %v17716_v18  ;;  %v17780_v13 = vld [vmem:[#allocation11 + $0x398] ss:$56 sps:$4 sm:$0xff]   ;;  %v17785_v15 = vld [vmem:[#allocation11 + $0x784] ss:$56 sps:$4 sm:$0xff]  }
 0x630   : > { %v17788_v18 = vld [vmem:[#allocation11 + $0x40c] ss:$56 sps:$4 sm:$0xff]  }
 0x632   : > { %13917 = vmatpush1.bf16.msra.mxu0 %v17711_v26  ;;  %13890 = vmatpush1.bf16.msra.mxu1 %v17714_v14  ;;  %v17783_v26 = vld [vmem:[#allocation11 + $0x780] ss:$56 sps:$4 sm:$0xff]  }
 0x633   : > { %13918 = vmatprep.subr.bf16.mxu0 %v17719_v50  ;;  %13891 = vmatprep.subr.bf16.mxu1 %v17722_v53  ;;  %v17786_v14 = vld [vmem:[#allocation11 + $0x408] ss:$56 sps:$4 sm:$0xff]   ;;  %v17791_v50 = vld [vmem:[#allocation11 + $0x7f4] ss:$56 sps:$4 sm:$0xff]  }
 0x634   : > { %v17794_v53 = vld [vmem:[#allocation11 + $0x47c] ss:$56 sps:$4 sm:$0xff]  }
 0x636   : > { %13919 = vmatpush1.bf16.msra.mxu0 %v17717_v31  ;;  %13892 = vmatpush1.bf16.msra.mxu1 %v17720_v62  ;;  %v17789_v31 = vld [vmem:[#allocation11 + $0x7f0] ss:$56 sps:$4 sm:$0xff]  }
 0x637   : > { %13920 = vmatprep.subr.bf16.mxu0 %v17725_v24  ;;  %13893 = vmatprep.subr.bf16.mxu1 %v17728_v34  ;;  %v17792_v62 = vld [vmem:[#allocation11 + $0x478] ss:$56 sps:$4 sm:$0xff]   ;;  %v17797_v24 = vld [vmem:[#allocation11 + $0x864] ss:$56 sps:$4 sm:$0xff]  }
 0x638   : > { %v17800_v34 = vld [vmem:[#allocation11 + $0x4ec] ss:$56 sps:$4 sm:$0xff]  }
 0x63a   : > { %13921 = vmatpush1.bf16.msra.mxu0 %v17723_v41  ;;  %13894 = vmatpush1.bf16.msra.mxu1 %v17726_v42  ;;  %v17795_v41 = vld [vmem:[#allocation11 + $0x860] ss:$56 sps:$4 sm:$0xff]  }
 0x63b   : > { %13922 = vmatprep.subr.bf16.mxu0 %v17731_v20  ;;  %14078 = vmatprep.subr.bf16.mxu1 %v17734_v45  ;;  %v17798_v42 = vld [vmem:[#allocation11 + $0x4e8] ss:$56 sps:$4 sm:$0xff]   ;;  %v17803_v20 = vld [vmem:[#allocation11 + $0x8d4] ss:$56 sps:$4 sm:$0xff]  }
 0x63c   : > { %v17806_v45 = vld [vmem:[#allocation11 + $0x55c] ss:$56 sps:$4 sm:$0xff]  }
 0x63d   : > { %13896 = vmatmul.mubr.bf16.vlgmr.msra.gmra.mrb[12].mxu1 %v19489_v55 }
 0x63e   : > { %13923 = vmatpush1.bf16.msra.mxu0 %v17729_v44  ;;  %14079 = vmatpush1.bf16.msra.mxu1 %v17732_v25  ;;  %v17801_v44 = vld [vmem:[#allocation11 + $0x8d0] ss:$56 sps:$4 sm:$0xff]  }
 0x63f   : > { %14110 = vmatprep.mubr.bf16.mxu1 %v19399_v17  ;;  %13924 = vmatprep.subr.bf16.mxu0 %v17737_v33  ;;  %v17804_v25 = vld [vmem:[#allocation11 + $0x558] ss:$56 sps:$4 sm:$0xff]   ;;  %v17809_v33 = vld [vmem:[#allocation11 + $0x944] ss:$56 sps:$4 sm:$0xff]  }
 0x640   : > { %14080 = vmatprep.subr.bf16.mxu1 %v17740_v23  ;;  %v17812_v23 = vld [vmem:[#allocation11 + $0x5cc] ss:$56 sps:$4 sm:$0xff]  }
 0x642   : > { %13925 = vmatpush1.bf16.msra.mxu0 %v17735_v36  ;;  %14081 = vmatpush1.bf16.msra.mxu1 %v17738_v58  ;;  %v17807_v36 = vld [vmem:[#allocation11 + $0x940] ss:$56 sps:$4 sm:$0xff]  }
 0x643   : > { %13926 = vmatprep.subr.bf16.mxu0 %v17743_v22  ;;  %14082 = vmatprep.subr.bf16.mxu1 %v17746_v38  ;;  %v17810_v58 = vld [vmem:[#allocation11 + $0x5c8] ss:$56 sps:$4 sm:$0xff]   ;;  %v17815_v22 = vld [vmem:[#allocation11 + $0x9b4] ss:$56 sps:$4 sm:$0xff]  }
 0x644   : > { %v17818_v38 = vld [vmem:[#allocation11 + $0x63c] ss:$56 sps:$4 sm:$0xff]  }
 0x646   : > { %13927 = vmatpush1.bf16.msra.mxu0 %v17741_v16  ;;  %14083 = vmatpush1.bf16.msra.mxu1 %v17744_v39  ;;  %v17813_v16 = vld [vmem:[#allocation11 + $0x9b0] ss:$56 sps:$4 sm:$0xff]  }
 0x647   : > { %13928 = vmatprep.subr.bf16.mxu0 %v17749_v40  ;;  %14084 = vmatprep.subr.bf16.mxu1 %v17752_v43  ;;  %v17816_v39 = vld [vmem:[#allocation11 + $0x638] ss:$56 sps:$4 sm:$0xff]   ;;  %v17821_v40 = vld [vmem:[#allocation11 + $0xa24] ss:$56 sps:$4 sm:$0xff]  }
 0x648   : > { %v17824_v43 = vld [vmem:[#allocation11 + $0x6ac] ss:$56 sps:$4 sm:$0xff]  }
 0x64a   : > { %13929 = vmatpush1.bf16.msra.mxu0 %v17747_v46  ;;  %14085 = vmatpush1.bf16.msra.mxu1 %v17750_v19  ;;  %v17819_v46 = vld [vmem:[#allocation11 + $0xa20] ss:$56 sps:$4 sm:$0xff]  }
 0x64b   : > { %13930 = vmatprep.subr.bf16.mxu0 %v17755_v51  ;;  %14086 = vmatprep.subr.bf16.mxu1 %v17758_v52  ;;  %v17822_v19 = vld [vmem:[#allocation11 + $0x6a8] ss:$56 sps:$4 sm:$0xff]   ;;  %v17827_v51 = vld [vmem:[#allocation11 + $0xa94] ss:$56 sps:$4 sm:$0xff]  }
 0x64c   : > { %v17830_v52 = vld [vmem:[#allocation11 + $0x71c] ss:$56 sps:$4 sm:$0xff]  }
 0x64e   : > { %13931 = vmatpush1.bf16.msra.mxu0 %v17753_v30  ;;  %14087 = vmatpush1.bf16.msra.mxu1 %v17756_v61  ;;  %v17825_v30 = vld [vmem:[#allocation11 + $0xa90] ss:$56 sps:$4 sm:$0xff]  }
 0x64f   : > { %13932 = vmatprep.subr.bf16.mxu0 %v17761_v21  ;;  %14088 = vmatprep.subr.bf16.mxu1 %v17764_v12  ;;  %v17828_v61 = vld [vmem:[#allocation11 + $0x718] ss:$56 sps:$4 sm:$0xff]   ;;  %v17833_v21 = vld [vmem:[#allocation11 + $0xb04] ss:$56 sps:$4 sm:$0xff]  }
 0x650   : > { %v17836_v12 = vld [vmem:[#allocation11 + $0x78c] ss:$56 sps:$4 sm:$0xff]  }
 0x652   : > { %13933 = vmatpush1.bf16.msra.mxu0 %v17759_v27  ;;  %14089 = vmatpush1.bf16.msra.mxu1 %v17762_v63  ;;  %v17831_v27 = vld [vmem:[#allocation11 + $0xb00] ss:$56 sps:$4 sm:$0xff]  }
 0x653   : > { %13934 = vmatprep.subr.bf16.mxu0 %v17767_v1  ;;  %14090 = vmatprep.subr.bf16.mxu1 %v17770_v59  ;;  %v17834_v63 = vld [vmem:[#allocation11 + $0x788] ss:$56 sps:$4 sm:$0xff]   ;;  %v17839_v1 = vld [vmem:[#allocation11 + $0xb74] ss:$56 sps:$4 sm:$0xff]  }
 0x654   : > { %v17842_v59 = vld [vmem:[#allocation11 + $0x7fc] ss:$56 sps:$4 sm:$0xff]  }
 0x656   : > { %13935 = vmatpush1.bf16.msra.mxu0 %v17765_v2  ;;  %14091 = vmatpush1.bf16.msra.mxu1 %v17768_v3  ;;  %v17837_v2 = vld [vmem:[#allocation11 + $0xb70] ss:$56 sps:$4 sm:$0xff]  }
 0x657   : > { %13936 = vmatprep.subr.bf16.mxu0 %v17773_v4  ;;  %14092 = vmatprep.subr.bf16.mxu1 %v17776_v5  ;;  %v17840_v3 = vld [vmem:[#allocation11 + $0x7f8] ss:$56 sps:$4 sm:$0xff]   ;;  %v17845_v4 = vld [vmem:[#allocation11 + $0xbe4] ss:$56 sps:$4 sm:$0xff]  }
 0x658   : > { %v17848_v5 = vld [vmem:[#allocation11 + $0x86c] ss:$56 sps:$4 sm:$0xff]  }
 0x65a   : > { %13937 = vmatpush1.bf16.msra.mxu0 %v17771_v32  ;;  %14093 = vmatpush1.bf16.msra.mxu1 %v17774_v29  ;;  %v17843_v32 = vld [vmem:[#allocation11 + $0xbe0] ss:$56 sps:$4 sm:$0xff]  }
 0x65b   : > { %13949 = vmatprep.subr.bf16.mxu0 %v17779_v6  ;;  %14094 = vmatprep.subr.bf16.mxu1 %v17782_v8  ;;  %v17846_v29 = vld [vmem:[#allocation11 + $0x868] ss:$56 sps:$4 sm:$0xff]   ;;  %v17851_v6 = vld [vmem:[#allocation11 + $0xc54] ss:$56 sps:$4 sm:$0xff]  }
 0x65c   : > { %v17854_v8 = vld [vmem:[#allocation11 + $0x8dc] ss:$56 sps:$4 sm:$0xff]  }
 0x65d   : > { %13939 = vmatmul.mubr.bf16.vlgmr.msra.gmra.mrb[12].mxu0 %v19397_v9 }
 0x65e   : > { %13950 = vmatpush1.bf16.msra.mxu0 %v17777_v11  ;;  %13981 = vmatprep.mubr.bf16.mxu0 %v19429_v56  ;;  %v17849_v11 = vld [vmem:[#allocation11 + $0xc50] ss:$56 sps:$4 sm:$0xff]  }
 0x65f   : > { %14095 = vmatpush1.bf16.msra.mxu1 %v17780_v13  ;;  %13951 = vmatprep.subr.bf16.mxu0 %v17785_v15  ;;  %v17852_v13 = vld [vmem:[#allocation11 + $0x8d8] ss:$56 sps:$4 sm:$0xff]   ;;  %v17857_v15 = vld [vmem:[#allocation11 + $0xcc4] ss:$56 sps:$4 sm:$0xff]  }
 0x660   : > { %14096 = vmatprep.subr.bf16.mxu1 %v17788_v18  ;;  %v17860_v18 = vld [vmem:[#allocation11 + $0x94c] ss:$56 sps:$4 sm:$0xff]  }
 0x662   : > { %13952 = vmatpush1.bf16.msra.mxu0 %v17783_v26  ;;  %v17855_v26 = vld [vmem:[#allocation11 + $0xcc0] ss:$56 sps:$4 sm:$0xff]  }
 0x663   : > { %14097 = vmatpush1.bf16.msra.mxu1 %v17786_v14  ;;  %13953 = vmatprep.subr.bf16.mxu0 %v17791_v50  ;;  %v17858_v14 = vld [vmem:[#allocation11 + $0x948] ss:$56 sps:$4 sm:$0xff]   ;;  %v17863_v50 = vld [vmem:[#allocation11 + $0xd34] ss:$56 sps:$4 sm:$0xff]  }
 0x664   : > { %14098 = vmatprep.subr.bf16.mxu1 %v17794_v53  ;;  %v17866_v53 = vld [vmem:[#allocation11 + $0x9bc] ss:$56 sps:$4 sm:$0xff]  }
 0x666   : > { %13954 = vmatpush1.bf16.msra.mxu0 %v17789_v31  ;;  %v17861_v31 = vld [vmem:[#allocation11 + $0xd30] ss:$56 sps:$4 sm:$0xff]  }
 0x667   : > { %14099 = vmatpush1.bf16.msra.mxu1 %v17792_v62  ;;  %13955 = vmatprep.subr.bf16.mxu0 %v17797_v24  ;;  %v17864_v62 = vld [vmem:[#allocation11 + $0x9b8] ss:$56 sps:$4 sm:$0xff]   ;;  %v17869_v24 = vld [vmem:[#allocation11 + $0xda4] ss:$56 sps:$4 sm:$0xff]  }
 0x668   : > { %14100 = vmatprep.subr.bf16.mxu1 %v17800_v34  ;;  %v17872_v34 = vld [vmem:[#allocation11 + $0xa2c] ss:$56 sps:$4 sm:$0xff]  }
 0x66a   : > { %13956 = vmatpush1.bf16.msra.mxu0 %v17795_v41  ;;  %v17867_v41 = vld [vmem:[#allocation11 + $0xda0] ss:$56 sps:$4 sm:$0xff]  }
 0x66b   : > { %14101 = vmatpush1.bf16.msra.mxu1 %v17798_v42  ;;  %13957 = vmatprep.subr.bf16.mxu0 %v17803_v20  ;;  %v17870_v42 = vld [vmem:[#allocation11 + $0xa28] ss:$56 sps:$4 sm:$0xff]   ;;  %v17875_v20 = vld [vmem:[#allocation11 + $0xe14] ss:$56 sps:$4 sm:$0xff]  }
 0x66c   : > { %14102 = vmatprep.subr.bf16.mxu1 %v17806_v45  ;;  %v17878_v45 = vld [vmem:[#allocation11 + $0xa9c] ss:$56 sps:$4 sm:$0xff]  }
 0x66e   : > { %13958 = vmatpush1.bf16.msra.mxu0 %v17801_v44  ;;  %v17873_v44 = vld [vmem:[#allocation11 + $0xe10] ss:$56 sps:$4 sm:$0xff]  }
 0x66f   : > { %14103 = vmatpush1.bf16.msra.mxu1 %v17804_v25  ;;  %13959 = vmatprep.subr.bf16.mxu0 %v17809_v33  ;;  %v17876_v25 = vld [vmem:[#allocation11 + $0xa98] ss:$56 sps:$4 sm:$0xff]   ;;  %v17881_v33 = vld [vmem:[#allocation11 + $0xe84] ss:$56 sps:$4 sm:$0xff]  }
 0x670   : > { %14104 = vmatprep.subr.bf16.mxu1 %v17812_v23  ;;  %v17884_v23 = vld [vmem:[#allocation11 + $0xb0c] ss:$56 sps:$4 sm:$0xff]  }
 0x672   : > { %13960 = vmatpush1.bf16.msra.mxu0 %v17807_v36  ;;  %v17879_v36 = vld [vmem:[#allocation11 + $0xe80] ss:$56 sps:$4 sm:$0xff]  }
 0x673   : > { %14105 = vmatpush1.bf16.msra.mxu1 %v17810_v58  ;;  %13961 = vmatprep.subr.bf16.mxu0 %v17815_v22  ;;  %v17882_v58 = vld [vmem:[#allocation11 + $0xb08] ss:$56 sps:$4 sm:$0xff]   ;;  %v17887_v22 = vld [vmem:[#allocation11 + $0xef4] ss:$56 sps:$4 sm:$0xff]  }
 0x674   : > { %14106 = vmatprep.subr.bf16.mxu1 %v17818_v38  ;;  %v17890_v38 = vld [vmem:[#allocation11 + $0xb7c] ss:$56 sps:$4 sm:$0xff]  }
 0x676   : > { %13962 = vmatpush1.bf16.msra.mxu0 %v17813_v16  ;;  %v17885_v16 = vld [vmem:[#allocation11 + $0xef0] ss:$56 sps:$4 sm:$0xff]  }
 0x677   : > { %14107 = vmatpush1.bf16.msra.mxu1 %v17816_v39  ;;  %13963 = vmatprep.subr.bf16.mxu0 %v17821_v40  ;;  %v17888_v39 = vld [vmem:[#allocation11 + $0xb78] ss:$56 sps:$4 sm:$0xff]   ;;  %v17893_v40 = vld [vmem:[#allocation11 + $0xf64] ss:$56 sps:$4 sm:$0xff]  }
 0x678   : > { %14108 = vmatprep.subr.bf16.mxu1 %v17824_v43  ;;  %v17896_v43 = vld [vmem:[#allocation11 + $0xbec] ss:$56 sps:$4 sm:$0xff]  }
 0x67a   : > { %13964 = vmatpush1.bf16.msra.mxu0 %v17819_v46  ;;  %v17891_v46 = vld [vmem:[#allocation11 + $0xf60] ss:$56 sps:$4 sm:$0xff]  }
 0x67b   : > { %14109 = vmatpush1.bf16.msra.mxu1 %v17822_v19  ;;  %13965 = vmatprep.subr.bf16.mxu0 %v17827_v51  ;;  %v17894_v19 = vld [vmem:[#allocation11 + $0xbe8] ss:$56 sps:$4 sm:$0xff]   ;;  %v17899_v51 = vld [vmem:[#allocation11 + $0xfd4] ss:$56 sps:$4 sm:$0xff]  }
 0x67c   : > { %14121 = vmatprep.subr.bf16.mxu1 %v17830_v52  ;;  %v17902_v52 = vld [vmem:[#allocation11 + $0xc5c] ss:$56 sps:$4 sm:$0xff]  }
 0x67e   : > { %13966 = vmatpush1.bf16.msra.mxu0 %v17825_v30  ;;  %14111 = vmatmul.mubr.bf16.vlgmr.msra.gmra.mrb[16].mxu1 %v19397_v9  ;;  %v17897_v30 = vld [vmem:[#allocation11 + $0xfd0] ss:$56 sps:$4 sm:$0xff]  }
 0x67f   : > { %14122 = vmatpush1.bf16.msra.mxu1 %v17828_v61  ;;  %14153 = vmatprep.mubr.bf16.mxu1 %v19429_v56  ;;  %v17900_v61 = vld [vmem:[#allocation11 + $0xc58] ss:$56 sps:$4 sm:$0xff]  }
 0x680   : > { %13967 = vmatprep.subr.bf16.mxu0 %v17833_v21  ;;  %14123 = vmatprep.subr.bf16.mxu1 %v17836_v12  ;;  %v17905_v21 = vld [vmem:[#allocation11 + $0x1044] ss:$56 sps:$4 sm:$0xff]  }
 0x681   : > { %v17908_v12 = vld [vmem:[#allocation11 + $0xccc] ss:$56 sps:$4 sm:$0xff]  }
 0x682   : > { %13968 = vmatpush1.bf16.msra.mxu0 %v17831_v27  ;;  %v17903_v27 = vld [vmem:[#allocation11 + $0x1040] ss:$56 sps:$4 sm:$0xff]  }
 0x683   : > { %14124 = vmatpush1.bf16.msra.mxu1 %v17834_v63  ;;  %13969 = vmatprep.subr.bf16.mxu0 %v17839_v1  ;;  %v17906_v63 = vld [vmem:[#allocation11 + $0xcc8] ss:$56 sps:$4 sm:$0xff]   ;;  %v17911_v1 = vld [vmem:[#allocation11 + $0x10b4] ss:$56 sps:$4 sm:$0xff]  }
 0x684   : > { %14125 = vmatprep.subr.bf16.mxu1 %v17842_v59  ;;  %v17914_v59 = vld [vmem:[#allocation11 + $0xd3c] ss:$56 sps:$4 sm:$0xff]  }
 0x686   : > { %13970 = vmatpush1.bf16.msra.mxu0 %v17837_v2  ;;  %v17909_v2 = vld [vmem:[#allocation11 + $0x10b0] ss:$56 sps:$4 sm:$0xff]  }
 0x687   : > { %14126 = vmatpush1.bf16.msra.mxu1 %v17840_v3  ;;  %13971 = vmatprep.subr.bf16.mxu0 %v17845_v4  ;;  %v17912_v3 = vld [vmem:[#allocation11 + $0xd38] ss:$56 sps:$4 sm:$0xff]   ;;  %v17917_v4 = vld [vmem:[#allocation11 + $0x1124] ss:$56 sps:$4 sm:$0xff]  }
 0x688   : > { %14127 = vmatprep.subr.bf16.mxu1 %v17848_v5  ;;  %v17920_v5 = vld [vmem:[#allocation11 + $0xdac] ss:$56 sps:$4 sm:$0xff]  }
 0x68a   : > { %13972 = vmatpush1.bf16.msra.mxu0 %v17843_v32  ;;  %v17915_v32 = vld [vmem:[#allocation11 + $0x1120] ss:$56 sps:$4 sm:$0xff]  }
 0x68b   : > { %14128 = vmatpush1.bf16.msra.mxu1 %v17846_v29  ;;  %13973 = vmatprep.subr.bf16.mxu0 %v17851_v6  ;;  %v17918_v29 = vld [vmem:[#allocation11 + $0xda8] ss:$56 sps:$4 sm:$0xff]   ;;  %v17923_v6 = vld [vmem:[#allocation11 + $0x1194] ss:$56 sps:$4 sm:$0xff]  }
 0x68c   : > { %14129 = vmatprep.subr.bf16.mxu1 %v17854_v8  ;;  %v17926_v8 = vld [vmem:[#allocation11 + $0xe1c] ss:$56 sps:$4 sm:$0xff]  }
 0x68e   : > { %13974 = vmatpush1.bf16.msra.mxu0 %v17849_v11  ;;  %v17921_v11 = vld [vmem:[#allocation11 + $0x1190] ss:$56 sps:$4 sm:$0xff]  }
 0x68f   : > { %14130 = vmatpush1.bf16.msra.mxu1 %v17852_v13  ;;  %13975 = vmatprep.subr.bf16.mxu0 %v17857_v15  ;;  %v17924_v13 = vld [vmem:[#allocation11 + $0xe18] ss:$56 sps:$4 sm:$0xff]   ;;  %v17929_v15 = vld [vmem:[#allocation11 + $0x1204] ss:$56 sps:$4 sm:$0xff]  }
 0x690   : > { %14131 = vmatprep.subr.bf16.mxu1 %v17860_v18  ;;  %v17932_v18 = vld [vmem:[#allocation11 + $0xe8c] ss:$56 sps:$4 sm:$0xff]  }
 0x692   : > { %13976 = vmatpush1.bf16.msra.mxu0 %v17855_v26  ;;  %v17927_v26 = vld [vmem:[#allocation11 + $0x1200] ss:$56 sps:$4 sm:$0xff]  }
 0x693   : > { %14132 = vmatpush1.bf16.msra.mxu1 %v17858_v14  ;;  %13977 = vmatprep.subr.bf16.mxu0 %v17863_v50  ;;  %v17930_v14 = vld [vmem:[#allocation11 + $0xe88] ss:$56 sps:$4 sm:$0xff]   ;;  %v17935_v50 = vld [vmem:[#allocation11 + $0x1274] ss:$56 sps:$4 sm:$0xff]  }
 0x694   : > { %14133 = vmatprep.subr.bf16.mxu1 %v17866_v53  ;;  %v17938_v53 = vld [vmem:[#allocation11 + $0xefc] ss:$56 sps:$4 sm:$0xff]  }
 0x696   : > { %13978 = vmatpush1.bf16.msra.mxu0 %v17861_v31  ;;  %v17933_v31 = vld [vmem:[#allocation11 + $0x1270] ss:$56 sps:$4 sm:$0xff]  }
 0x697   : > { %14134 = vmatpush1.bf16.msra.mxu1 %v17864_v62  ;;  %13979 = vmatprep.subr.bf16.mxu0 %v17869_v24  ;;  %v17936_v62 = vld [vmem:[#allocation11 + $0xef8] ss:$56 sps:$4 sm:$0xff]   ;;  %v17941_v24 = vld [vmem:[#allocation11 + $0x12e4] ss:$56 sps:$4 sm:$0xff]  }
 0x698   : > { %14135 = vmatprep.subr.bf16.mxu1 %v17872_v34  ;;  %v17944_v34 = vld [vmem:[#allocation11 + $0xf6c] ss:$56 sps:$4 sm:$0xff]  }
 0x69a   : > { %13980 = vmatpush1.bf16.msra.mxu0 %v17867_v41  ;;  %v17939_v41 = vld [vmem:[#allocation11 + $0x12e0] ss:$56 sps:$4 sm:$0xff]  }
 0x69b   : > { %14136 = vmatpush1.bf16.msra.mxu1 %v17870_v42  ;;  %13992 = vmatprep.subr.bf16.mxu0 %v17875_v20  ;;  %v17942_v42 = vld [vmem:[#allocation11 + $0xf68] ss:$56 sps:$4 sm:$0xff]   ;;  %v17947_v20 = vld [vmem:[#allocation11 + $0x1354] ss:$56 sps:$4 sm:$0xff]  }
 0x69c   : > { %14137 = vmatprep.subr.bf16.mxu1 %v17878_v45  ;;  %v17950_v45 = vld [vmem:[#allocation11 + $0xfdc] ss:$56 sps:$4 sm:$0xff]  }
 0x69d   : > { %13982 = vmatmul.mubr.bf16.vlgmr.msra.gmra.mrb[12].mxu0 %v19427_v54 }
 0x69e   : > { %13993 = vmatpush1.bf16.msra.mxu0 %v17873_v44  ;;  %14024 = vmatprep.mubr.bf16.mxu0 %v19464_v10  ;;  %v17945_v44 = vld [vmem:[#allocation11 + $0x1350] ss:$56 sps:$4 sm:$0xff]  }
 0x69f   : > { %14138 = vmatpush1.bf16.msra.mxu1 %v17876_v25  ;;  %13994 = vmatprep.subr.bf16.mxu0 %v17881_v33  ;;  %v17948_v25 = vld [vmem:[#allocation11 + $0xfd8] ss:$56 sps:$4 sm:$0xff]   ;;  %v17953_v33 = vld [vmem:[#allocation11 + $0x13c4] ss:$56 sps:$4 sm:$0xff]  }
 0x6a0   : > { %14139 = vmatprep.subr.bf16.mxu1 %v17884_v23  ;;  %v17956_v23 = vld [vmem:[#allocation11 + $0x104c] ss:$56 sps:$4 sm:$0xff]  }
 0x6a2   : > { %13995 = vmatpush1.bf16.msra.mxu0 %v17879_v36  ;;  %v17951_v36 = vld [vmem:[#allocation11 + $0x13c0] ss:$56 sps:$4 sm:$0xff]  }
 0x6a3   : > { %14140 = vmatpush1.bf16.msra.mxu1 %v17882_v58  ;;  %13996 = vmatprep.subr.bf16.mxu0 %v17887_v22  ;;  %v17954_v58 = vld [vmem:[#allocation11 + $0x1048] ss:$56 sps:$4 sm:$0xff]   ;;  %v17959_v22 = vld [vmem:[#allocation11 + $0x1434] ss:$56 sps:$4 sm:$0xff]  }
 0x6a4   : > { %14141 = vmatprep.subr.bf16.mxu1 %v17890_v38  ;;  %v17962_v38 = vld [vmem:[#allocation11 + $0x10bc] ss:$56 sps:$4 sm:$0xff]  }
 0x6a6   : > { %13997 = vmatpush1.bf16.msra.mxu0 %v17885_v16  ;;  %v17957_v16 = vld [vmem:[#allocation11 + $0x1430] ss:$56 sps:$4 sm:$0xff]  }
 0x6a7   : > { %14142 = vmatpush1.bf16.msra.mxu1 %v17888_v39  ;;  %13998 = vmatprep.subr.bf16.mxu0 %v17893_v40  ;;  %v17960_v39 = vld [vmem:[#allocation11 + $0x10b8] ss:$56 sps:$4 sm:$0xff]   ;;  %v17965_v40 = vld [vmem:[#allocation11 + $0x14a4] ss:$56 sps:$4 sm:$0xff]  }
 0x6a8   : > { %14143 = vmatprep.subr.bf16.mxu1 %v17896_v43  ;;  %v17968_v43 = vld [vmem:[#allocation11 + $0x112c] ss:$56 sps:$4 sm:$0xff]  }
 0x6aa   : > { %13999 = vmatpush1.bf16.msra.mxu0 %v17891_v46  ;;  %v17963_v46 = vld [vmem:[#allocation11 + $0x14a0] ss:$56 sps:$4 sm:$0xff]  }
 0x6ab   : > { %14144 = vmatpush1.bf16.msra.mxu1 %v17894_v19  ;;  %14000 = vmatprep.subr.bf16.mxu0 %v17899_v51  ;;  %v17966_v19 = vld [vmem:[#allocation11 + $0x1128] ss:$56 sps:$4 sm:$0xff]   ;;  %v17971_v51 = vld [vmem:[#allocation11 + $0x1514] ss:$56 sps:$4 sm:$0xff]  }
 0x6ac   : > { %14145 = vmatprep.subr.bf16.mxu1 %v17902_v52  ;;  %v17974_v52 = vld [vmem:[#allocation11 + $0x119c] ss:$56 sps:$4 sm:$0xff]  }
 0x6ae   : > { %14001 = vmatpush1.bf16.msra.mxu0 %v17897_v30  ;;  %v17969_v30 = vld [vmem:[#allocation11 + $0x1510] ss:$56 sps:$4 sm:$0xff]  }
 0x6af   : > { %14146 = vmatpush1.bf16.msra.mxu1 %v17900_v61  ;;  %14002 = vmatprep.subr.bf16.mxu0 %v17905_v21  ;;  %v17972_v61 = vld [vmem:[#allocation11 + $0x1198] ss:$56 sps:$4 sm:$0xff]   ;;  %v17977_v21 = vld [vmem:[#allocation11 + $0x1584] ss:$56 sps:$4 sm:$0xff]  }
 0x6b0   : > { %14147 = vmatprep.subr.bf16.mxu1 %v17908_v12  ;;  %v17980_v12 = vld [vmem:[#allocation11 + $0x120c] ss:$56 sps:$4 sm:$0xff]  }
 0x6b2   : > { %14003 = vmatpush1.bf16.msra.mxu0 %v17903_v27  ;;  %v17975_v27 = vld [vmem:[#allocation11 + $0x1580] ss:$56 sps:$4 sm:$0xff]  }
 0x6b3   : > { %14148 = vmatpush1.bf16.msra.mxu1 %v17906_v63  ;;  %14004 = vmatprep.subr.bf16.mxu0 %v17911_v1  ;;  %v17978_v63 = vld [vmem:[#allocation11 + $0x1208] ss:$56 sps:$4 sm:$0xff]   ;;  %v17983_v1 = vld [vmem:[#allocation11 + $0x15f4] ss:$56 sps:$4 sm:$0xff]  }
 0x6b4   : > { %14149 = vmatprep.subr.bf16.mxu1 %v17914_v59  ;;  %v17986_v59 = vld [vmem:[#allocation11 + $0x127c] ss:$56 sps:$4 sm:$0xff]  }
 0x6b6   : > { %14005 = vmatpush1.bf16.msra.mxu0 %v17909_v2  ;;  %v17981_v2 = vld [vmem:[#allocation11 + $0x15f0] ss:$56 sps:$4 sm:$0xff]  }
 0x6b7   : > { %14150 = vmatpush1.bf16.msra.mxu1 %v17912_v3  ;;  %14006 = vmatprep.subr.bf16.mxu0 %v17917_v4  ;;  %v17984_v3 = vld [vmem:[#allocation11 + $0x1278] ss:$56 sps:$4 sm:$0xff]   ;;  %v17989_v4 = vld [vmem:[#allocation11 + $0x1664] ss:$56 sps:$4 sm:$0xff]  }
 0x6b8   : > { %14151 = vmatprep.subr.bf16.mxu1 %v17920_v5  ;;  %v17992_v5 = vld [vmem:[#allocation11 + $0x12ec] ss:$56 sps:$4 sm:$0xff]  }
 0x6ba   : > { %14007 = vmatpush1.bf16.msra.mxu0 %v17915_v32  ;;  %v17987_v32 = vld [vmem:[#allocation11 + $0x1660] ss:$56 sps:$4 sm:$0xff]  }
 0x6bb   : > { %14152 = vmatpush1.bf16.msra.mxu1 %v17918_v29  ;;  %14008 = vmatprep.subr.bf16.mxu0 %v17923_v6  ;;  %v17990_v29 = vld [vmem:[#allocation11 + $0x12e8] ss:$56 sps:$4 sm:$0xff]   ;;  %v17995_v6 = vld [vmem:[#allocation11 + $0x16d4] ss:$56 sps:$4 sm:$0xff]  }
 0x6bc   : > { %14164 = vmatprep.subr.bf16.mxu1 %v17926_v8  ;;  %v17998_v8 = vld [vmem:[#allocation11 + $0x135c] ss:$56 sps:$4 sm:$0xff]  }
 0x6be   : > { %14009 = vmatpush1.bf16.msra.mxu0 %v17921_v11  ;;  %14154 = vmatmul.mubr.bf16.vlgmr.msra.gmra.mrb[16].mxu1 %v19427_v54  ;;  %v17993_v11 = vld [vmem:[#allocation11 + $0x16d0] ss:$56 sps:$4 sm:$0xff]  }
 0x6bf   : > { %14165 = vmatpush1.bf16.msra.mxu1 %v17924_v13  ;;  %14196 = vmatprep.mubr.bf16.mxu1 %v19464_v10  ;;  %v19509_v13 = vld [vmem:[#allocation12] sm:$0xff] }
 0x6c0   : > { %14010 = vmatprep.subr.bf16.mxu0 %v17929_v15  ;;  %14166 = vmatprep.subr.bf16.mxu1 %v17932_v18  ;;  %v17996_v15 = vld [vmem:[#allocation11 + $0x1358] ss:$56 sps:$4 sm:$0xff]   ;;  %v18001_v18 = vld [vmem:[#allocation11 + $0x1744] ss:$56 sps:$4 sm:$0xff]  }
 0x6c2   : > { %14011 = vmatpush1.bf16.msra.mxu0 %v17927_v26  ;;  %v18004_v26 = vld [vmem:[#allocation11 + $0x13cc] ss:$56 sps:$4 sm:$0xff]  }
 0x6c3   : > { %14167 = vmatpush1.bf16.msra.mxu1 %v17930_v14  ;;  %14012 = vmatprep.subr.bf16.mxu0 %v17935_v50  ;;  %v9015_v14 = vrot.slane %v19509_v13, %v19384_v60  ;;  %v17999_v50 = vld [vmem:[#allocation11 + $0x1740] ss:$56 sps:$4 sm:$0xff]  }
 0x6c4   : > { %14168 = vmatprep.subr.bf16.mxu1 %v17938_v53  ;;  %v9019_v53 = vrot.slane %v19509_v13, %v19387_v28 }
 0x6c6   : > { %14013 = vmatpush1.bf16.msra.mxu0 %v17933_v31  ;;  %v18002_v31 = vld [vmem:[#allocation11 + $0x13c8] ss:$56 sps:$4 sm:$0xff]  }
 0x6c7   : > { %14169 = vmatpush1.bf16.msra.mxu1 %v17936_v62  ;;  %14014 = vmatprep.subr.bf16.mxu0 %v17941_v24  ;;  %v18007_v62 = vld [vmem:[#allocation11 + $0x17b4] ss:$56 sps:$4 sm:$0xff]  }
 0x6c8   : > { %14170 = vmatprep.subr.bf16.mxu1 %v17944_v34  ;;  %v18010_v34 = vld [vmem:[#allocation11 + $0x143c] ss:$56 sps:$4 sm:$0xff]  }
 0x6ca   : > { %14015 = vmatpush1.bf16.msra.mxu0 %v17939_v41 }
 0x6cb   : > { %14171 = vmatpush1.bf16.msra.mxu1 %v17942_v42  ;;  %14016 = vmatprep.subr.bf16.mxu0 %v17947_v20 }
 0x6cc   : > { %14172 = vmatprep.subr.bf16.mxu1 %v17950_v45 }
 0x6ce   : > { %14017 = vmatpush1.bf16.msra.mxu0 %v17945_v44  ;;  %v18005_v44 = vld [vmem:[#allocation11 + $0x17b0] ss:$56 sps:$4 sm:$0xff]  }
 0x6cf   : > { %14173 = vmatpush1.bf16.msra.mxu1 %v17948_v25  ;;  %14018 = vmatprep.subr.bf16.mxu0 %v17953_v33 }
 0x6d0   : > { %14174 = vmatprep.subr.bf16.mxu1 %v17956_v23  ;;  %v18008_v23 = vld [vmem:[#allocation11 + $0x1438] ss:$56 sps:$4 sm:$0xff]  }
 0x6d2   : > { %14019 = vmatpush1.bf16.msra.mxu0 %v17951_v36  ;;  %v18013_v36 = vld [vmem:[#allocation11 + $0x1824] ss:$56 sps:$4 sm:$0xff]  }
 0x6d3   : > { %14175 = vmatpush1.bf16.msra.mxu1 %v17954_v58  ;;  %14020 = vmatprep.subr.bf16.mxu0 %v17959_v22 }
 0x6d4   : > { %14176 = vmatprep.subr.bf16.mxu1 %v17962_v38  ;;  %v18016_v38 = vld [vmem:[#allocation11 + $0x14ac] ss:$56 sps:$4 sm:$0xff]  }
 0x6d6   : > { %14021 = vmatpush1.bf16.msra.mxu0 %v17957_v16 }
 0x6d7   : > { %14177 = vmatpush1.bf16.msra.mxu1 %v17960_v39  ;;  %14022 = vmatprep.subr.bf16.mxu0 %v17965_v40  ;;  %v18011_v39 = vld [vmem:[#allocation11 + $0x1820] ss:$56 sps:$4 sm:$0xff]  }
 0x6d8   : > { %14178 = vmatprep.subr.bf16.mxu1 %v17968_v43  ;;  %v18014_v40 = vld [vmem:[#allocation11 + $0x14a8] ss:$56 sps:$4 sm:$0xff]   ;;  %v18019_v43 = vld [vmem:[#allocation11 + $0x1894] ss:$56 sps:$4 sm:$0xff]  }
 0x6da   : > { %14023 = vmatpush1.bf16.msra.mxu0 %v17963_v46  ;;  %v18022_v46 = vld [vmem:[#allocation11 + $0x151c] ss:$56 sps:$4 sm:$0xff]  }
 0x6db   : > { %14179 = vmatpush1.bf16.msra.mxu1 %v17966_v19  ;;  %14035 = vmatprep.subr.bf16.mxu0 %v17971_v51  ;;  %v18017_v19 = vld [vmem:[#allocation11 + $0x1890] ss:$56 sps:$4 sm:$0xff]  }
 0x6dc   : > { %14180 = vmatprep.subr.bf16.mxu1 %v17974_v52  ;;  %v18020_v51 = vld [vmem:[#allocation11 + $0x1518] ss:$56 sps:$4 sm:$0xff]   ;;  %v18025_v52 = vld [vmem:[#allocation11 + $0x1904] ss:$56 sps:$4 sm:$0xff]  }
 0x6dd   : > { %14025 = vmatmul.mubr.bf16.vlgmr.msra.gmra.mrb[12].mxu0 %v19462_v0 }
 0x6de   : > { %14036 = vmatpush1.bf16.msra.mxu0 %v17969_v30  ;;  %14067 = vmatprep.mubr.bf16.mxu0 %v19491_v57  ;;  %v18028_v30 = vld [vmem:[#allocation11 + $0x158c] ss:$56 sps:$4 sm:$0xff]  }
 0x6df   : > { %14181 = vmatpush1.bf16.msra.mxu1 %v17972_v61  ;;  %14037 = vmatprep.subr.bf16.mxu0 %v17977_v21  ;;  %v18023_v61 = vld [vmem:[#allocation11 + $0x1900] ss:$56 sps:$4 sm:$0xff]  }
 0x6e0   : > { %14182 = vmatprep.subr.bf16.mxu1 %v17980_v12  ;;  %v18026_v21 = vld [vmem:[#allocation11 + $0x1588] ss:$56 sps:$4 sm:$0xff]   ;;  %v18031_v12 = vld [vmem:[#allocation11 + $0x1974] ss:$56 sps:$4 sm:$0xff]  }
 0x6e2   : > { %14038 = vmatpush1.bf16.msra.mxu0 %v17975_v27  ;;  %v18034_v27 = vld [vmem:[#allocation11 + $0x15fc] ss:$56 sps:$4 sm:$0xff]  }
 0x6e3   : > { %14183 = vmatpush1.bf16.msra.mxu1 %v17978_v63  ;;  %14039 = vmatprep.subr.bf16.mxu0 %v17983_v1  ;;  %v18029_v63 = vld [vmem:[#allocation11 + $0x1970] ss:$56 sps:$4 sm:$0xff]  }
 0x6e4   : > { %14184 = vmatprep.subr.bf16.mxu1 %v17986_v59  ;;  %v18032_v1 = vld [vmem:[#allocation11 + $0x15f8] ss:$56 sps:$4 sm:$0xff]   ;;  %v18037_v59 = vld [vmem:[#allocation11 + $0x19e4] ss:$56 sps:$4 sm:$0xff]  }
 0x6e6   : > { %14040 = vmatpush1.bf16.msra.mxu0 %v17981_v2  ;;  %v18040_v2 = vld [vmem:[#allocation11 + $0x166c] ss:$56 sps:$4 sm:$0xff]  }
 0x6e7   : > { %14185 = vmatpush1.bf16.msra.mxu1 %v17984_v3  ;;  %14041 = vmatprep.subr.bf16.mxu0 %v17989_v4  ;;  %v18035_v3 = vld [vmem:[#allocation11 + $0x19e0] ss:$56 sps:$4 sm:$0xff]  }
 0x6e8   : > { %14186 = vmatprep.subr.bf16.mxu1 %v17992_v5  ;;  %v18038_v4 = vld [vmem:[#allocation11 + $0x1668] ss:$56 sps:$4 sm:$0xff]   ;;  %v18043_v5 = vld [vmem:[#allocation11 + $0x1a54] ss:$56 sps:$4 sm:$0xff]  }
 0x6ea   : > { %14042 = vmatpush1.bf16.msra.mxu0 %v17987_v32  ;;  %v18046_v32 = vld [vmem:[#allocation11 + $0x16dc] ss:$56 sps:$4 sm:$0xff]  }
 0x6eb   : > { %14187 = vmatpush1.bf16.msra.mxu1 %v17990_v29  ;;  %14043 = vmatprep.subr.bf16.mxu0 %v17995_v6  ;;  %v18041_v29 = vld [vmem:[#allocation11 + $0x1a50] ss:$56 sps:$4 sm:$0xff]  }
 0x6ec   : > { %14188 = vmatprep.subr.bf16.mxu1 %v17998_v8  ;;  %v18044_v6 = vld [vmem:[#allocation11 + $0x16d8] ss:$56 sps:$4 sm:$0xff]   ;;  %v18049_v8 = vld [vmem:[#allocation11 + $0x1ac4] ss:$56 sps:$4 sm:$0xff]  }
 0x6ee   : > { %14044 = vmatpush1.bf16.msra.mxu0 %v17993_v11  ;;  %v18052_v11 = vld [vmem:[#allocation11 + $0x174c] ss:$56 sps:$4 sm:$0xff]  }
 0x6ef   : > { %14189 = vmatpush1.bf16.msra.mxu1 %v17996_v15  ;;  %14045 = vmatprep.subr.bf16.mxu0 %v18001_v18  ;;  %v9023_v15 = vrot.slane %v19509_v13, %v19418_v37  ;;  %v18047_v18 = vld [vmem:[#allocation11 + $0x1ac0] ss:$56 sps:$4 sm:$0xff]  }
 0x6f0   : > { %v13725_v24 = vpop.f32.mrb[8].mxu0  ;;  %14190 = vmatprep.subr.bf16.mxu1 %v18004_v26  ;;  %v9027_v26 = vrot.slane %v19509_v13, %v19421_v48  ;;  %v18056_v13 = vld [vmem:[#allocation11 + $0x17b8] ss:$56 sps:$4 sm:$0xff]  }
 0x6f1   : > { %v16994_v41 = vadd.f32 %v13725_v24, %v9015_v14  ;;  %v13727_v42 = vpop.f32.mrb[9].mxu0 }
 0x6f2   : > { %v16995_v20 = vadd.f32 %v13727_v42, %v9019_v53  ;;  %14046 = vmatpush1.bf16.msra.mxu0 %v17999_v50  ;;  %v13729_v45 = vpop.f32.mrb[10].mxu0  ;;  %v18055_v50 = vld [vmem:[#allocation11 + $0x1b34] ss:$56 sps:$4 sm:$0xff]   ;;  %v18053_v42 = vld [vmem:[#allocation11 + $0x1b30] ss:$56 sps:$4 sm:$0xff]  }
 0x6f3   : > { %v16996_v25 = vadd.f32 %v13729_v45, %v9015_v14  ;;  %14191 = vmatpush1.bf16.msra.mxu1 %v18002_v31  ;;  %v13731_v33 = vpop.f32.mrb[11].mxu0  ;;  %14047 = vmatprep.subr.bf16.mxu0 %v18007_v62  ;;  %v18050_v14 = vld [vmem:[#allocation11 + $0x1748] ss:$56 sps:$4 sm:$0xff]   ;;  %v18058_v31 = vld [vmem:[#allocation11 + $0x17bc] ss:$56 sps:$4 sm:$0xff]  }
 0x6f4   : > { %v16976_v58 = vpack.c.bf16 %v16995_v20, %v16994_v41  ;;  %v16997_v22 = vadd.f32 %v13731_v33, %v9019_v53  ;;  %14192 = vmatprep.subr.bf16.mxu1 %v18010_v34 }
 0x6f6   : > { %14850 = vst [vmem:[%s19516_s30] sm:$0xff] %v16976_v58  ;;  %v16983_v16 = vpack.c.bf16 %v16997_v22, %v16996_v25  ;;  %14048 = vmatpush1.bf16.msra.mxu0 %v18005_v44  ;;  %v18061_v44 = vld [vmem:[#allocation11 + $0x1ba4] ss:$56 sps:$4 sm:$0xff]   ;;  %v18059_v58 = vld [vmem:[#allocation11 + $0x1ba0] ss:$56 sps:$4 sm:$0xff]  }
 0x6f7   : > { %14193 = vmatpush1.bf16.msra.mxu1 %v18008_v23  ;;  %14049 = vmatprep.subr.bf16.mxu0 %v18013_v36  ;;  %v18064_v23 = vld [vmem:[#allocation11 + $0x182c] ss:$56 sps:$4 sm:$0xff]   ;;  %v18062_v22 = vld [vmem:[#allocation11 + $0x1828] ss:$56 sps:$4 sm:$0xff]  }
 0x6f8   : > { %14857 = vst [vmem:[%s19516_s30 + $0x38] sm:$0xff] %v16983_v16  ;;  %14194 = vmatprep.subr.bf16.mxu1 %v18016_v38  ;;  %v18067_v38 = vld [vmem:[#allocation11 + $0x24] ss:$56 sps:$4 sm:$0xff]  }
 0x6f9   : > { %v18070_v16 = vld [vmem:[#allocation11 + $0x189c] ss:$56 sps:$4 sm:$0xff]  }
 0x6fa   : > { %14050 = vmatpush1.bf16.msra.mxu0 %v18011_v39  ;;  %v18065_v39 = vld [vmem:[#allocation11 + $0x20] ss:$56 sps:$4 sm:$0xff]  }
 0x6fb   : > { %14195 = vmatpush1.bf16.msra.mxu1 %v18014_v40  ;;  %14051 = vmatprep.subr.bf16.mxu0 %v18019_v43  ;;  %v18068_v40 = vld [vmem:[#allocation11 + $0x1898] ss:$56 sps:$4 sm:$0xff]   ;;  %v18073_v43 = vld [vmem:[#allocation11 + $0x94] ss:$56 sps:$4 sm:$0xff]  }
 0x6fc   : > { %14207 = vmatprep.subr.bf16.mxu1 %v18022_v46  ;;  %v18076_v46 = vld [vmem:[#allocation11 + $0x190c] ss:$56 sps:$4 sm:$0xff]  }
 0x6fe   : > { %14052 = vmatpush1.bf16.msra.mxu0 %v18017_v19  ;;  %14197 = vmatmul.mubr.bf16.vlgmr.msra.gmra.mrb[16].mxu1 %v19462_v0  ;;  %v18071_v19 = vld [vmem:[#allocation11 + $0x90] ss:$56 sps:$4 sm:$0xff]  }
 0x6ff   : > { %14208 = vmatpush1.bf16.msra.mxu1 %v18020_v51  ;;  %14239 = vmatprep.mubr.bf16.mxu1 %v19491_v57  ;;  %v18074_v51 = vld [vmem:[#allocation11 + $0x1908] ss:$56 sps:$4 sm:$0xff]  }
 0x700   : > { %14053 = vmatprep.subr.bf16.mxu0 %v18025_v52  ;;  %14209 = vmatprep.subr.bf16.mxu1 %v18028_v30  ;;  %v18079_v52 = vld [vmem:[#allocation11 + $0x104] ss:$56 sps:$4 sm:$0xff]  }
 0x701   : > { %v18082_v30 = vld [vmem:[#allocation11 + $0x197c] ss:$56 sps:$4 sm:$0xff]  }
 0x702   : > { %14054 = vmatpush1.bf16.msra.mxu0 %v18023_v61  ;;  %v18077_v61 = vld [vmem:[#allocation11 + $0x100] ss:$56 sps:$4 sm:$0xff]  }
 0x703   : > { %14210 = vmatpush1.bf16.msra.mxu1 %v18026_v21  ;;  %14055 = vmatprep.subr.bf16.mxu0 %v18031_v12  ;;  %v18080_v21 = vld [vmem:[#allocation11 + $0x1978] ss:$56 sps:$4 sm:$0xff]   ;;  %v18085_v12 = vld [vmem:[#allocation11 + $0x174] ss:$56 sps:$4 sm:$0xff]  }
 0x704   : > { %14211 = vmatprep.subr.bf16.mxu1 %v18034_v27  ;;  %v18088_v27 = vld [vmem:[#allocation11 + $0x19ec] ss:$56 sps:$4 sm:$0xff]  }
 0x706   : > { %14056 = vmatpush1.bf16.msra.mxu0 %v18029_v63  ;;  %v18083_v63 = vld [vmem:[#allocation11 + $0x170] ss:$56 sps:$4 sm:$0xff]  }
 0x707   : > { %14212 = vmatpush1.bf16.msra.mxu1 %v18032_v1  ;;  %14057 = vmatprep.subr.bf16.mxu0 %v18037_v59  ;;  %v18086_v1 = vld [vmem:[#allocation11 + $0x19e8] ss:$56 sps:$4 sm:$0xff]   ;;  %v18091_v59 = vld [vmem:[#allocation11 + $0x1e4] ss:$56 sps:$4 sm:$0xff]  }
 0x708   : > { %14213 = vmatprep.subr.bf16.mxu1 %v18040_v2  ;;  %v18094_v2 = vld [vmem:[#allocation11 + $0x1a5c] ss:$56 sps:$4 sm:$0xff]  }
 0x70a   : > { %14058 = vmatpush1.bf16.msra.mxu0 %v18035_v3  ;;  %v18089_v3 = vld [vmem:[#allocation11 + $0x1e0] ss:$56 sps:$4 sm:$0xff]  }
 0x70b   : > { %14214 = vmatpush1.bf16.msra.mxu1 %v18038_v4  ;;  %14059 = vmatprep.subr.bf16.mxu0 %v18043_v5  ;;  %v18092_v4 = vld [vmem:[#allocation11 + $0x1a58] ss:$56 sps:$4 sm:$0xff]   ;;  %v18097_v5 = vld [vmem:[#allocation11 + $0x254] ss:$56 sps:$4 sm:$0xff]  }
 0x70c   : > { %14215 = vmatprep.subr.bf16.mxu1 %v18046_v32  ;;  %v18100_v32 = vld [vmem:[#allocation11 + $0x1acc] ss:$56 sps:$4 sm:$0xff]  }
 0x70e   : > { %14060 = vmatpush1.bf16.msra.mxu0 %v18041_v29  ;;  %v18095_v29 = vld [vmem:[#allocation11 + $0x250] ss:$56 sps:$4 sm:$0xff]  }
 0x70f   : > { %14216 = vmatpush1.bf16.msra.mxu1 %v18044_v6  ;;  %14061 = vmatprep.subr.bf16.mxu0 %v18049_v8  ;;  %v18098_v6 = vld [vmem:[#allocation11 + $0x1ac8] ss:$56 sps:$4 sm:$0xff]   ;;  %v18103_v8 = vld [vmem:[#allocation11 + $0x2c4] ss:$56 sps:$4 sm:$0xff]  }
 0x710   : > { %v13897_v53 = vpop.f32.mrb[12].mxu1  ;;  %14217 = vmatprep.subr.bf16.mxu1 %v18052_v11  ;;  %v18106_v11 = vld [vmem:[#allocation11 + $0x1b3c] ss:$56 sps:$4 sm:$0xff]  }
 0x711   : > { %v16998_v62 = vadd.f32 %v13897_v53, %v9023_v15  ;;  %v13899_v24 = vpop.f32.mrb[13].mxu1  ;;  %v18110_v53 = vld [vmem:[#allocation11 + $0x1ba8] ss:$56 sps:$4 sm:$0xff]  }
 0x712   : > { %v16999_v34 = vadd.f32 %v13899_v24, %v9027_v26  ;;  %14062 = vmatpush1.bf16.msra.mxu0 %v18047_v18  ;;  %v13901_v41 = vpop.f32.mrb[14].mxu1  ;;  %v18104_v18 = vld [vmem:[#allocation11 + $0x1b38] ss:$56 sps:$4 sm:$0xff]  }
 0x713   : > { %v17000_v20 = vadd.f32 %v13901_v41, %v9023_v15  ;;  %14218 = vmatpush1.bf16.msra.mxu1 %v18050_v14  ;;  %v13903_v45 = vpop.f32.mrb[15].mxu1  ;;  %14063 = vmatprep.subr.bf16.mxu0 %v18055_v50  ;;  %v18101_v15 = vld [vmem:[#allocation11 + $0x2c0] ss:$56 sps:$4 sm:$0xff]   ;;  %v18112_v14 = vld [vmem:[#allocation11 + $0x1bac] ss:$56 sps:$4 sm:$0xff]  }
 0x714   : > { %v16977_v25 = vpack.c.bf16 %v16999_v34, %v16998_v62  ;;  %v17001_v33 = vadd.f32 %v13903_v45, %v9027_v26  ;;  %14219 = vmatprep.subr.bf16.mxu1 %v18058_v31  ;;  %v18109_v26 = vld [vmem:[#allocation11 + $0x334] ss:$56 sps:$4 sm:$0xff]   ;;  %v18107_v50 = vld [vmem:[#allocation11 + $0x330] ss:$56 sps:$4 sm:$0xff]   ;;  %v18115_v31 = vld [vmem:[#allocation11 + $0x3a4] ss:$56 sps:$4 sm:$0xff]  }
 0x715   : > { %v18118_v62 = vld [vmem:[#allocation11 + $0x2c] ss:$56 sps:$4 sm:$0xff]   ;;  %v18113_v24 = vld [vmem:[#allocation11 + $0x3a0] ss:$56 sps:$4 sm:$0xff]  }
 0x716   : > { %14851 = vst [vmem:[%s19516_s30 + $0x8] sm:$0xff] %v16977_v25  ;;  %v16984_v36 = vpack.c.bf16 %v17001_v33, %v17000_v20  ;;  %14064 = vmatpush1.bf16.msra.mxu0 %v18053_v42  ;;  %v18116_v34 = vld [vmem:[#allocation11 + $0x28] ss:$56 sps:$4 sm:$0xff]   ;;  %v18121_v41 = vld [vmem:[#allocation11 + $0x414] ss:$56 sps:$4 sm:$0xff]  }
 0x717   : > { %14220 = vmatpush1.bf16.msra.mxu1 %v18056_v13  ;;  %14065 = vmatprep.subr.bf16.mxu0 %v18061_v44  ;;  %v18124_v42 = vld [vmem:[#allocation11 + $0x9c] ss:$56 sps:$4 sm:$0xff]   ;;  %v18119_v20 = vld [vmem:[#allocation11 + $0x410] ss:$56 sps:$4 sm:$0xff]   ;;  %v18130_v44 = vld [vmem:[#allocation11 + $0x10c] ss:$56 sps:$4 sm:$0xff]  }
 0x718   : > { %14858 = vst [vmem:[%s19516_s30 + $0x40] sm:$0xff] %v16984_v36  ;;  %14221 = vmatprep.subr.bf16.mxu1 %v18064_v23  ;;  %v18122_v45 = vld [vmem:[#allocation11 + $0x98] ss:$56 sps:$4 sm:$0xff]   ;;  %v18127_v13 = vld [vmem:[#allocation11 + $0x484] ss:$56 sps:$4 sm:$0xff]  }
 0x719   : > { %v18125_v25 = vld [vmem:[#allocation11 + $0x480] ss:$56 sps:$4 sm:$0xff]   ;;  %v18133_v23 = vld [vmem:[#allocation11 + $0x4f4] ss:$56 sps:$4 sm:$0xff]  }
 0x71a   : > { %14066 = vmatpush1.bf16.msra.mxu0 %v18059_v58  ;;  %v18128_v33 = vld [vmem:[#allocation11 + $0x108] ss:$56 sps:$4 sm:$0xff]   ;;  %v18136_v36 = vld [vmem:[#allocation11 + $0x17c] ss:$56 sps:$4 sm:$0xff]  }
 0x71b   : > { %14222 = vmatpush1.bf16.msra.mxu1 %v18062_v22  ;;  %14250 = vmatprep.subr.bf16.mxu0 %v18067_v38  ;;  %v18131_v58 = vld [vmem:[#allocation11 + $0x4f0] ss:$56 sps:$4 sm:$0xff]   ;;  %v18139_v38 = vld [vmem:[#allocation11 + $0x564] ss:$56 sps:$4 sm:$0xff]  }
 0x71c   : > { %14223 = vmatprep.subr.bf16.mxu1 %v18070_v16  ;;  %v18134_v22 = vld [vmem:[#allocation11 + $0x178] ss:$56 sps:$4 sm:$0xff]   ;;  %v18142_v16 = vld [vmem:[#allocation11 + $0x1ec] ss:$56 sps:$4 sm:$0xff]  }
 0x71d   : > { %14068 = vmatmul.mubr.bf16.vlgmr.msra.gmra.mrb[12].mxu0 %v19489_v55 }
 0x71e   : > { %14251 = vmatpush1.bf16.msra.mxu0 %v18065_v39  ;;  %14282 = vmatprep.mubr.bf16.mxu0 %v19399_v17  ;;  %v18137_v39 = vld [vmem:[#allocation11 + $0x560] ss:$56 sps:$4 sm:$0xff]  }
 0x71f   : > { %14224 = vmatpush1.bf16.msra.mxu1 %v18068_v40  ;;  %14252 = vmatprep.subr.bf16.mxu0 %v18073_v43  ;;  %v18140_v40 = vld [vmem:[#allocation11 + $0x1e8] ss:$56 sps:$4 sm:$0xff]   ;;  %v18145_v43 = vld [vmem:[#allocation11 + $0x5d4] ss:$56 sps:$4 sm:$0xff]  }
 0x720   : > { %14225 = vmatprep.subr.bf16.mxu1 %v18076_v46  ;;  %v18148_v46 = vld [vmem:[#allocation11 + $0x25c] ss:$56 sps:$4 sm:$0xff]  }
 0x722   : > { %14253 = vmatpush1.bf16.msra.mxu0 %v18071_v19  ;;  %v18143_v19 = vld [vmem:[#allocation11 + $0x5d0] ss:$56 sps:$4 sm:$0xff]  }
 0x723   : > { %14226 = vmatpush1.bf16.msra.mxu1 %v18074_v51  ;;  %14254 = vmatprep.subr.bf16.mxu0 %v18079_v52  ;;  %v18146_v51 = vld [vmem:[#allocation11 + $0x258] ss:$56 sps:$4 sm:$0xff]   ;;  %v18151_v52 = vld [vmem:[#allocation11 + $0x644] ss:$56 sps:$4 sm:$0xff]  }
 0x724   : > { %14227 = vmatprep.subr.bf16.mxu1 %v18082_v30  ;;  %v18154_v30 = vld [vmem:[#allocation11 + $0x2cc] ss:$56 sps:$4 sm:$0xff]  }
 0x726   : > { %14255 = vmatpush1.bf16.msra.mxu0 %v18077_v61  ;;  %v18149_v61 = vld [vmem:[#allocation11 + $0x640] ss:$56 sps:$4 sm:$0xff]  }
 0x727   : > { %14228 = vmatpush1.bf16.msra.mxu1 %v18080_v21  ;;  %14256 = vmatprep.subr.bf16.mxu0 %v18085_v12  ;;  %v18152_v21 = vld [vmem:[#allocation11 + $0x2c8] ss:$56 sps:$4 sm:$0xff]   ;;  %v18157_v12 = vld [vmem:[#allocation11 + $0x6b4] ss:$56 sps:$4 sm:$0xff]  }
 0x728   : > { %14229 = vmatprep.subr.bf16.mxu1 %v18088_v27  ;;  %v18160_v27 = vld [vmem:[#allocation11 + $0x33c] ss:$56 sps:$4 sm:$0xff]  }
 0x72a   : > { %14257 = vmatpush1.bf16.msra.mxu0 %v18083_v63  ;;  %v18155_v63 = vld [vmem:[#allocation11 + $0x6b0] ss:$56 sps:$4 sm:$0xff]  }
 0x72b   : > { %14230 = vmatpush1.bf16.msra.mxu1 %v18086_v1  ;;  %14258 = vmatprep.subr.bf16.mxu0 %v18091_v59  ;;  %v18158_v1 = vld [vmem:[#allocation11 + $0x338] ss:$56 sps:$4 sm:$0xff]   ;;  %v18163_v59 = vld [vmem:[#allocation11 + $0x724] ss:$56 sps:$4 sm:$0xff]  }
 0x72c   : > { %14231 = vmatprep.subr.bf16.mxu1 %v18094_v2  ;;  %v18166_v2 = vld [vmem:[#allocation11 + $0x3ac] ss:$56 sps:$4 sm:$0xff]  }
 0x72e   : > { %14259 = vmatpush1.bf16.msra.mxu0 %v18089_v3  ;;  %v18161_v3 = vld [vmem:[#allocation11 + $0x720] ss:$56 sps:$4 sm:$0xff]  }
 0x72f   : > { %14232 = vmatpush1.bf16.msra.mxu1 %v18092_v4  ;;  %14260 = vmatprep.subr.bf16.mxu0 %v18097_v5  ;;  %v18164_v4 = vld [vmem:[#allocation11 + $0x3a8] ss:$56 sps:$4 sm:$0xff]   ;;  %v18169_v5 = vld [vmem:[#allocation11 + $0x794] ss:$56 sps:$4 sm:$0xff]  }
 0x730   : > { %14233 = vmatprep.subr.bf16.mxu1 %v18100_v32  ;;  %v18172_v32 = vld [vmem:[#allocation11 + $0x41c] ss:$56 sps:$4 sm:$0xff]  }
 0x732   : > { %14261 = vmatpush1.bf16.msra.mxu0 %v18095_v29  ;;  %v18167_v29 = vld [vmem:[#allocation11 + $0x790] ss:$56 sps:$4 sm:$0xff]  }
 0x733   : > { %14234 = vmatpush1.bf16.msra.mxu1 %v18098_v6  ;;  %14262 = vmatprep.subr.bf16.mxu0 %v18103_v8  ;;  %v18170_v6 = vld [vmem:[#allocation11 + $0x418] ss:$56 sps:$4 sm:$0xff]   ;;  %v18175_v8 = vld [vmem:[#allocation11 + $0x804] ss:$56 sps:$4 sm:$0xff]  }
 0x734   : > { %14235 = vmatprep.subr.bf16.mxu1 %v18106_v11  ;;  %v18178_v11 = vld [vmem:[#allocation11 + $0x48c] ss:$56 sps:$4 sm:$0xff]  }
 0x736   : > { %14263 = vmatpush1.bf16.msra.mxu0 %v18101_v15  ;;  %v18173_v15 = vld [vmem:[#allocation11 + $0x800] ss:$56 sps:$4 sm:$0xff]  }
 0x737   : > { %14236 = vmatpush1.bf16.msra.mxu1 %v18104_v18  ;;  %14264 = vmatprep.subr.bf16.mxu0 %v18109_v26  ;;  %v18176_v18 = vld [vmem:[#allocation11 + $0x488] ss:$56 sps:$4 sm:$0xff]   ;;  %v18181_v26 = vld [vmem:[#allocation11 + $0x874] ss:$56 sps:$4 sm:$0xff]  }
 0x738   : > { %14237 = vmatprep.subr.bf16.mxu1 %v18112_v14  ;;  %v18184_v14 = vld [vmem:[#allocation11 + $0x4fc] ss:$56 sps:$4 sm:$0xff]  }
 0x73a   : > { %14265 = vmatpush1.bf16.msra.mxu0 %v18107_v50  ;;  %v18179_v50 = vld [vmem:[#allocation11 + $0x870] ss:$56 sps:$4 sm:$0xff]  }
 0x73b   : > { %14238 = vmatpush1.bf16.msra.mxu1 %v18110_v53  ;;  %14266 = vmatprep.subr.bf16.mxu0 %v18115_v31  ;;  %v18182_v53 = vld [vmem:[#allocation11 + $0x4f8] ss:$56 sps:$4 sm:$0xff]   ;;  %v18187_v31 = vld [vmem:[#allocation11 + $0x8e4] ss:$56 sps:$4 sm:$0xff]  }
 0x73c   : > { %14422 = vmatprep.subr.bf16.mxu1 %v18118_v62  ;;  %v18190_v62 = vld [vmem:[#allocation11 + $0x56c] ss:$56 sps:$4 sm:$0xff]  }
 0x73e   : > { %14240 = vmatmul.mubr.bf16.vlgmr.msra.gmra.mrb[16].mxu1 %v19489_v55  ;;  %14267 = vmatpush1.bf16.msra.mxu0 %v18113_v24  ;;  %v18185_v24 = vld [vmem:[#allocation11 + $0x8e0] ss:$56 sps:$4 sm:$0xff]  }
 0x73f   : > { %14423 = vmatpush1.bf16.msra.mxu1 %v18116_v34  ;;  %14454 = vmatprep.mubr.bf16.mxu1 %v19399_v17  ;;  %v18188_v34 = vld [vmem:[#allocation11 + $0x568] ss:$56 sps:$4 sm:$0xff]  }
 0x740   : > { %14268 = vmatprep.subr.bf16.mxu0 %v18121_v41  ;;  %14424 = vmatprep.subr.bf16.mxu1 %v18124_v42  ;;  %v18193_v41 = vld [vmem:[#allocation11 + $0x954] ss:$56 sps:$4 sm:$0xff]  }
 0x741   : > { %v18196_v42 = vld [vmem:[#allocation11 + $0x5dc] ss:$56 sps:$4 sm:$0xff]  }
 0x742   : > { %14269 = vmatpush1.bf16.msra.mxu0 %v18119_v20  ;;  %v18191_v20 = vld [vmem:[#allocation11 + $0x950] ss:$56 sps:$4 sm:$0xff]  }
 0x743   : > { %14425 = vmatpush1.bf16.msra.mxu1 %v18122_v45  ;;  %14270 = vmatprep.subr.bf16.mxu0 %v18127_v13  ;;  %v18194_v45 = vld [vmem:[#allocation11 + $0x5d8] ss:$56 sps:$4 sm:$0xff]   ;;  %v18199_v13 = vld [vmem:[#allocation11 + $0x9c4] ss:$56 sps:$4 sm:$0xff]  }
 0x744   : > { %14426 = vmatprep.subr.bf16.mxu1 %v18130_v44  ;;  %v18202_v44 = vld [vmem:[#allocation11 + $0x64c] ss:$56 sps:$4 sm:$0xff]  }
 0x746   : > { %14271 = vmatpush1.bf16.msra.mxu0 %v18125_v25  ;;  %v18197_v25 = vld [vmem:[#allocation11 + $0x9c0] ss:$56 sps:$4 sm:$0xff]  }
 0x747   : > { %14427 = vmatpush1.bf16.msra.mxu1 %v18128_v33  ;;  %14272 = vmatprep.subr.bf16.mxu0 %v18133_v23  ;;  %v18200_v33 = vld [vmem:[#allocation11 + $0x648] ss:$56 sps:$4 sm:$0xff]   ;;  %v18205_v23 = vld [vmem:[#allocation11 + $0xa34] ss:$56 sps:$4 sm:$0xff]  }
 0x748   : > { %14428 = vmatprep.subr.bf16.mxu1 %v18136_v36  ;;  %v18208_v36 = vld [vmem:[#allocation11 + $0x6bc] ss:$56 sps:$4 sm:$0xff]  }
 0x74a   : > { %14273 = vmatpush1.bf16.msra.mxu0 %v18131_v58  ;;  %v18203_v58 = vld [vmem:[#allocation11 + $0xa30] ss:$56 sps:$4 sm:$0xff]  }
 0x74b   : > { %14429 = vmatpush1.bf16.msra.mxu1 %v18134_v22  ;;  %14274 = vmatprep.subr.bf16.mxu0 %v18139_v38  ;;  %v18206_v22 = vld [vmem:[#allocation11 + $0x6b8] ss:$56 sps:$4 sm:$0xff]   ;;  %v18211_v38 = vld [vmem:[#allocation11 + $0xaa4] ss:$56 sps:$4 sm:$0xff]  }
 0x74c   : > { %14430 = vmatprep.subr.bf16.mxu1 %v18142_v16  ;;  %v18214_v16 = vld [vmem:[#allocation11 + $0x72c] ss:$56 sps:$4 sm:$0xff]  }
 0x74e   : > { %14275 = vmatpush1.bf16.msra.mxu0 %v18137_v39  ;;  %v18209_v39 = vld [vmem:[#allocation11 + $0xaa0] ss:$56 sps:$4 sm:$0xff]  }
 0x74f   : > { %14431 = vmatpush1.bf16.msra.mxu1 %v18140_v40  ;;  %14276 = vmatprep.subr.bf16.mxu0 %v18145_v43  ;;  %v18212_v40 = vld [vmem:[#allocation11 + $0x728] ss:$56 sps:$4 sm:$0xff]   ;;  %v18217_v43 = vld [vmem:[#allocation11 + $0xb14] ss:$56 sps:$4 sm:$0xff]  }
 0x750   : > { %14432 = vmatprep.subr.bf16.mxu1 %v18148_v46  ;;  %v18220_v46 = vld [vmem:[#allocation11 + $0x79c] ss:$56 sps:$4 sm:$0xff]  }
 0x752   : > { %14277 = vmatpush1.bf16.msra.mxu0 %v18143_v19  ;;  %v18215_v19 = vld [vmem:[#allocation11 + $0xb10] ss:$56 sps:$4 sm:$0xff]  }
 0x753   : > { %14433 = vmatpush1.bf16.msra.mxu1 %v18146_v51  ;;  %14278 = vmatprep.subr.bf16.mxu0 %v18151_v52  ;;  %v18218_v51 = vld [vmem:[#allocation11 + $0x798] ss:$56 sps:$4 sm:$0xff]   ;;  %v18223_v52 = vld [vmem:[#allocation11 + $0xb84] ss:$56 sps:$4 sm:$0xff]  }
 0x754   : > { %14434 = vmatprep.subr.bf16.mxu1 %v18154_v30  ;;  %v18226_v30 = vld [vmem:[#allocation11 + $0x80c] ss:$56 sps:$4 sm:$0xff]  }
 0x756   : > { %14279 = vmatpush1.bf16.msra.mxu0 %v18149_v61  ;;  %v18221_v61 = vld [vmem:[#allocation11 + $0xb80] ss:$56 sps:$4 sm:$0xff]  }
 0x757   : > { %14435 = vmatpush1.bf16.msra.mxu1 %v18152_v21  ;;  %14280 = vmatprep.subr.bf16.mxu0 %v18157_v12  ;;  %v18224_v21 = vld [vmem:[#allocation11 + $0x808] ss:$56 sps:$4 sm:$0xff]   ;;  %v18229_v12 = vld [vmem:[#allocation11 + $0xbf4] ss:$56 sps:$4 sm:$0xff]  }
 0x758   : > { %14436 = vmatprep.subr.bf16.mxu1 %v18160_v27  ;;  %v18232_v27 = vld [vmem:[#allocation11 + $0x87c] ss:$56 sps:$4 sm:$0xff]  }
 0x75a   : > { %14281 = vmatpush1.bf16.msra.mxu0 %v18155_v63  ;;  %v18227_v63 = vld [vmem:[#allocation11 + $0xbf0] ss:$56 sps:$4 sm:$0xff]  }
 0x75b   : > { %14437 = vmatpush1.bf16.msra.mxu1 %v18158_v1  ;;  %14293 = vmatprep.subr.bf16.mxu0 %v18163_v59  ;;  %v18230_v1 = vld [vmem:[#allocation11 + $0x878] ss:$56 sps:$4 sm:$0xff]   ;;  %v18235_v59 = vld [vmem:[#allocation11 + $0xc64] ss:$56 sps:$4 sm:$0xff]  }
 0x75c   : > { %14438 = vmatprep.subr.bf16.mxu1 %v18166_v2  ;;  %v18238_v2 = vld [vmem:[#allocation11 + $0x8ec] ss:$56 sps:$4 sm:$0xff]  }
 0x75d   : > { %14283 = vmatmul.mubr.bf16.vlgmr.msra.gmra.mrb[16].mxu0 %v19397_v9 }
 0x75e   : > { %14294 = vmatpush1.bf16.msra.mxu0 %v18161_v3  ;;  %14325 = vmatprep.mubr.bf16.mxu0 %v19429_v56  ;;  %v18233_v3 = vld [vmem:[#allocation11 + $0xc60] ss:$56 sps:$4 sm:$0xff]  }
 0x75f   : > { %14439 = vmatpush1.bf16.msra.mxu1 %v18164_v4  ;;  %14295 = vmatprep.subr.bf16.mxu0 %v18169_v5  ;;  %v18236_v4 = vld [vmem:[#allocation11 + $0x8e8] ss:$56 sps:$4 sm:$0xff]   ;;  %v18241_v5 = vld [vmem:[#allocation11 + $0xcd4] ss:$56 sps:$4 sm:$0xff]  }
 0x760   : > { %14440 = vmatprep.subr.bf16.mxu1 %v18172_v32  ;;  %v18244_v32 = vld [vmem:[#allocation11 + $0x95c] ss:$56 sps:$4 sm:$0xff]  }
 0x762   : > { %14296 = vmatpush1.bf16.msra.mxu0 %v18167_v29  ;;  %v18239_v29 = vld [vmem:[#allocation11 + $0xcd0] ss:$56 sps:$4 sm:$0xff]  }
 0x763   : > { %14441 = vmatpush1.bf16.msra.mxu1 %v18170_v6  ;;  %14297 = vmatprep.subr.bf16.mxu0 %v18175_v8  ;;  %v18242_v6 = vld [vmem:[#allocation11 + $0x958] ss:$56 sps:$4 sm:$0xff]   ;;  %v18247_v8 = vld [vmem:[#allocation11 + $0xd44] ss:$56 sps:$4 sm:$0xff]  }
 0x764   : > { %14442 = vmatprep.subr.bf16.mxu1 %v18178_v11  ;;  %v18250_v11 = vld [vmem:[#allocation11 + $0x9cc] ss:$56 sps:$4 sm:$0xff]  }
 0x766   : > { %14298 = vmatpush1.bf16.msra.mxu0 %v18173_v15  ;;  %v18245_v15 = vld [vmem:[#allocation11 + $0xd40] ss:$56 sps:$4 sm:$0xff]  }
 0x767   : > { %14443 = vmatpush1.bf16.msra.mxu1 %v18176_v18  ;;  %14299 = vmatprep.subr.bf16.mxu0 %v18181_v26  ;;  %v18248_v18 = vld [vmem:[#allocation11 + $0x9c8] ss:$56 sps:$4 sm:$0xff]   ;;  %v18253_v26 = vld [vmem:[#allocation11 + $0xdb4] ss:$56 sps:$4 sm:$0xff]  }
 0x768   : > { %14444 = vmatprep.subr.bf16.mxu1 %v18184_v14  ;;  %v18256_v14 = vld [vmem:[#allocation11 + $0xa3c] ss:$56 sps:$4 sm:$0xff]  }
 0x76a   : > { %14300 = vmatpush1.bf16.msra.mxu0 %v18179_v50  ;;  %v18251_v50 = vld [vmem:[#allocation11 + $0xdb0] ss:$56 sps:$4 sm:$0xff]  }
 0x76b   : > { %14445 = vmatpush1.bf16.msra.mxu1 %v18182_v53  ;;  %14301 = vmatprep.subr.bf16.mxu0 %v18187_v31  ;;  %v18254_v53 = vld [vmem:[#allocation11 + $0xa38] ss:$56 sps:$4 sm:$0xff]   ;;  %v18259_v31 = vld [vmem:[#allocation11 + $0xe24] ss:$56 sps:$4 sm:$0xff]  }
 0x76c   : > { %14446 = vmatprep.subr.bf16.mxu1 %v18190_v62  ;;  %v18262_v62 = vld [vmem:[#allocation11 + $0xaac] ss:$56 sps:$4 sm:$0xff]  }
 0x76e   : > { %14302 = vmatpush1.bf16.msra.mxu0 %v18185_v24  ;;  %v18257_v24 = vld [vmem:[#allocation11 + $0xe20] ss:$56 sps:$4 sm:$0xff]  }
 0x76f   : > { %14447 = vmatpush1.bf16.msra.mxu1 %v18188_v34  ;;  %14303 = vmatprep.subr.bf16.mxu0 %v18193_v41  ;;  %v18260_v34 = vld [vmem:[#allocation11 + $0xaa8] ss:$56 sps:$4 sm:$0xff]   ;;  %v18265_v41 = vld [vmem:[#allocation11 + $0xe94] ss:$56 sps:$4 sm:$0xff]  }
 0x770   : > { %14448 = vmatprep.subr.bf16.mxu1 %v18196_v42  ;;  %v18268_v42 = vld [vmem:[#allocation11 + $0xb1c] ss:$56 sps:$4 sm:$0xff]  }
 0x772   : > { %14304 = vmatpush1.bf16.msra.mxu0 %v18191_v20  ;;  %v18263_v20 = vld [vmem:[#allocation11 + $0xe90] ss:$56 sps:$4 sm:$0xff]  }
 0x773   : > { %14449 = vmatpush1.bf16.msra.mxu1 %v18194_v45  ;;  %14305 = vmatprep.subr.bf16.mxu0 %v18199_v13  ;;  %v18266_v45 = vld [vmem:[#allocation11 + $0xb18] ss:$56 sps:$4 sm:$0xff]   ;;  %v18271_v13 = vld [vmem:[#allocation11 + $0xf04] ss:$56 sps:$4 sm:$0xff]  }
 0x774   : > { %14450 = vmatprep.subr.bf16.mxu1 %v18202_v44  ;;  %v18274_v44 = vld [vmem:[#allocation11 + $0xb8c] ss:$56 sps:$4 sm:$0xff]  }
 0x776   : > { %14306 = vmatpush1.bf16.msra.mxu0 %v18197_v25  ;;  %v18269_v25 = vld [vmem:[#allocation11 + $0xf00] ss:$56 sps:$4 sm:$0xff]  }
 0x777   : > { %14451 = vmatpush1.bf16.msra.mxu1 %v18200_v33  ;;  %14307 = vmatprep.subr.bf16.mxu0 %v18205_v23  ;;  %v18272_v33 = vld [vmem:[#allocation11 + $0xb88] ss:$56 sps:$4 sm:$0xff]   ;;  %v18277_v23 = vld [vmem:[#allocation11 + $0xf74] ss:$56 sps:$4 sm:$0xff]  }
 0x778   : > { %14452 = vmatprep.subr.bf16.mxu1 %v18208_v36  ;;  %v18280_v36 = vld [vmem:[#allocation11 + $0xbfc] ss:$56 sps:$4 sm:$0xff]  }
 0x77a   : > { %14308 = vmatpush1.bf16.msra.mxu0 %v18203_v58  ;;  %v18275_v58 = vld [vmem:[#allocation11 + $0xf70] ss:$56 sps:$4 sm:$0xff]  }
 0x77b   : > { %14453 = vmatpush1.bf16.msra.mxu1 %v18206_v22  ;;  %14309 = vmatprep.subr.bf16.mxu0 %v18211_v38  ;;  %v18278_v22 = vld [vmem:[#allocation11 + $0xbf8] ss:$56 sps:$4 sm:$0xff]   ;;  %v18283_v38 = vld [vmem:[#allocation11 + $0xfe4] ss:$56 sps:$4 sm:$0xff]  }
 0x77c   : > { %14465 = vmatprep.subr.bf16.mxu1 %v18214_v16  ;;  %v18286_v16 = vld [vmem:[#allocation11 + $0xc6c] ss:$56 sps:$4 sm:$0xff]  }
 0x77e   : > { %14310 = vmatpush1.bf16.msra.mxu0 %v18209_v39  ;;  %14455 = vmatmul.mubr.bf16.vlgmr.msra.gmra.mrb[20].mxu1 %v19397_v9  ;;  %v18281_v39 = vld [vmem:[#allocation11 + $0xfe0] ss:$56 sps:$4 sm:$0xff]  }
 0x77f   : > { %14466 = vmatpush1.bf16.msra.mxu1 %v18212_v40  ;;  %14497 = vmatprep.mubr.bf16.mxu1 %v19429_v56  ;;  %v18284_v40 = vld [vmem:[#allocation11 + $0xc68] ss:$56 sps:$4 sm:$0xff]  }
 0x780   : > { %14311 = vmatprep.subr.bf16.mxu0 %v18217_v43  ;;  %14467 = vmatprep.subr.bf16.mxu1 %v18220_v46  ;;  %v18289_v43 = vld [vmem:[#allocation11 + $0x1054] ss:$56 sps:$4 sm:$0xff]  }
 0x781   : > { %v18292_v46 = vld [vmem:[#allocation11 + $0xcdc] ss:$56 sps:$4 sm:$0xff]  }
 0x782   : > { %14312 = vmatpush1.bf16.msra.mxu0 %v18215_v19  ;;  %v18287_v19 = vld [vmem:[#allocation11 + $0x1050] ss:$56 sps:$4 sm:$0xff]  }
 0x783   : > { %14468 = vmatpush1.bf16.msra.mxu1 %v18218_v51  ;;  %14313 = vmatprep.subr.bf16.mxu0 %v18223_v52  ;;  %v18290_v51 = vld [vmem:[#allocation11 + $0xcd8] ss:$56 sps:$4 sm:$0xff]   ;;  %v18295_v52 = vld [vmem:[#allocation11 + $0x10c4] ss:$56 sps:$4 sm:$0xff]  }
 0x784   : > { %14469 = vmatprep.subr.bf16.mxu1 %v18226_v30  ;;  %v18298_v30 = vld [vmem:[#allocation11 + $0xd4c] ss:$56 sps:$4 sm:$0xff]  }
 0x786   : > { %14314 = vmatpush1.bf16.msra.mxu0 %v18221_v61  ;;  %v18293_v61 = vld [vmem:[#allocation11 + $0x10c0] ss:$56 sps:$4 sm:$0xff]  }
 0x787   : > { %14470 = vmatpush1.bf16.msra.mxu1 %v18224_v21  ;;  %14315 = vmatprep.subr.bf16.mxu0 %v18229_v12  ;;  %v18296_v21 = vld [vmem:[#allocation11 + $0xd48] ss:$56 sps:$4 sm:$0xff]   ;;  %v18301_v12 = vld [vmem:[#allocation11 + $0x1134] ss:$56 sps:$4 sm:$0xff]  }
 0x788   : > { %14471 = vmatprep.subr.bf16.mxu1 %v18232_v27  ;;  %v18304_v27 = vld [vmem:[#allocation11 + $0xdbc] ss:$56 sps:$4 sm:$0xff]  }
 0x78a   : > { %14316 = vmatpush1.bf16.msra.mxu0 %v18227_v63  ;;  %v18299_v63 = vld [vmem:[#allocation11 + $0x1130] ss:$56 sps:$4 sm:$0xff]  }
 0x78b   : > { %14472 = vmatpush1.bf16.msra.mxu1 %v18230_v1  ;;  %14317 = vmatprep.subr.bf16.mxu0 %v18235_v59  ;;  %v18302_v1 = vld [vmem:[#allocation11 + $0xdb8] ss:$56 sps:$4 sm:$0xff]   ;;  %v18307_v59 = vld [vmem:[#allocation11 + $0x11a4] ss:$56 sps:$4 sm:$0xff]  }
 0x78c   : > { %14473 = vmatprep.subr.bf16.mxu1 %v18238_v2  ;;  %v18310_v2 = vld [vmem:[#allocation11 + $0xe2c] ss:$56 sps:$4 sm:$0xff]  }
 0x78e   : > { %14318 = vmatpush1.bf16.msra.mxu0 %v18233_v3  ;;  %v18305_v3 = vld [vmem:[#allocation11 + $0x11a0] ss:$56 sps:$4 sm:$0xff]  }
 0x78f   : > { %14474 = vmatpush1.bf16.msra.mxu1 %v18236_v4  ;;  %14319 = vmatprep.subr.bf16.mxu0 %v18241_v5  ;;  %v18308_v4 = vld [vmem:[#allocation11 + $0xe28] ss:$56 sps:$4 sm:$0xff]   ;;  %v18313_v5 = vld [vmem:[#allocation11 + $0x1214] ss:$56 sps:$4 sm:$0xff]  }
 0x790   : > { %14475 = vmatprep.subr.bf16.mxu1 %v18244_v32  ;;  %v18316_v32 = vld [vmem:[#allocation11 + $0xe9c] ss:$56 sps:$4 sm:$0xff]  }
 0x792   : > { %14320 = vmatpush1.bf16.msra.mxu0 %v18239_v29  ;;  %v18311_v29 = vld [vmem:[#allocation11 + $0x1210] ss:$56 sps:$4 sm:$0xff]  }
 0x793   : > { %14476 = vmatpush1.bf16.msra.mxu1 %v18242_v6  ;;  %14321 = vmatprep.subr.bf16.mxu0 %v18247_v8  ;;  %v18314_v6 = vld [vmem:[#allocation11 + $0xe98] ss:$56 sps:$4 sm:$0xff]   ;;  %v18319_v8 = vld [vmem:[#allocation11 + $0x1284] ss:$56 sps:$4 sm:$0xff]  }
 0x794   : > { %14477 = vmatprep.subr.bf16.mxu1 %v18250_v11  ;;  %v18322_v11 = vld [vmem:[#allocation11 + $0xf0c] ss:$56 sps:$4 sm:$0xff]  }
 0x796   : > { %14322 = vmatpush1.bf16.msra.mxu0 %v18245_v15  ;;  %v18317_v15 = vld [vmem:[#allocation11 + $0x1280] ss:$56 sps:$4 sm:$0xff]  }
 0x797   : > { %14478 = vmatpush1.bf16.msra.mxu1 %v18248_v18  ;;  %14323 = vmatprep.subr.bf16.mxu0 %v18253_v26  ;;  %v18320_v18 = vld [vmem:[#allocation11 + $0xf08] ss:$56 sps:$4 sm:$0xff]   ;;  %v18325_v26 = vld [vmem:[#allocation11 + $0x12f4] ss:$56 sps:$4 sm:$0xff]  }
 0x798   : > { %14479 = vmatprep.subr.bf16.mxu1 %v18256_v14  ;;  %v18328_v14 = vld [vmem:[#allocation11 + $0xf7c] ss:$56 sps:$4 sm:$0xff]  }
 0x79a   : > { %14324 = vmatpush1.bf16.msra.mxu0 %v18251_v50  ;;  %v18323_v50 = vld [vmem:[#allocation11 + $0x12f0] ss:$56 sps:$4 sm:$0xff]  }
 0x79b   : > { %14480 = vmatpush1.bf16.msra.mxu1 %v18254_v53  ;;  %14336 = vmatprep.subr.bf16.mxu0 %v18259_v31  ;;  %v18326_v53 = vld [vmem:[#allocation11 + $0xf78] ss:$56 sps:$4 sm:$0xff]   ;;  %v18331_v31 = vld [vmem:[#allocation11 + $0x1364] ss:$56 sps:$4 sm:$0xff]  }
 0x79c   : > { %14481 = vmatprep.subr.bf16.mxu1 %v18262_v62  ;;  %v18334_v62 = vld [vmem:[#allocation11 + $0xfec] ss:$56 sps:$4 sm:$0xff]  }
 0x79d   : > { %14326 = vmatmul.mubr.bf16.vlgmr.msra.gmra.mrb[16].mxu0 %v19427_v54 }
 0x79e   : > { %14337 = vmatpush1.bf16.msra.mxu0 %v18257_v24  ;;  %14368 = vmatprep.mubr.bf16.mxu0 %v19464_v10  ;;  %v18329_v24 = vld [vmem:[#allocation11 + $0x1360] ss:$56 sps:$4 sm:$0xff]  }
 0x79f   : > { %14482 = vmatpush1.bf16.msra.mxu1 %v18260_v34  ;;  %14338 = vmatprep.subr.bf16.mxu0 %v18265_v41  ;;  %v18332_v34 = vld [vmem:[#allocation11 + $0xfe8] ss:$56 sps:$4 sm:$0xff]   ;;  %v18337_v41 = vld [vmem:[#allocation11 + $0x13d4] ss:$56 sps:$4 sm:$0xff]  }
 0x7a0   : > { %14483 = vmatprep.subr.bf16.mxu1 %v18268_v42  ;;  %v18340_v42 = vld [vmem:[#allocation11 + $0x105c] ss:$56 sps:$4 sm:$0xff]  }
 0x7a2   : > { %14339 = vmatpush1.bf16.msra.mxu0 %v18263_v20  ;;  %v18335_v20 = vld [vmem:[#allocation11 + $0x13d0] ss:$56 sps:$4 sm:$0xff]  }
 0x7a3   : > { %14484 = vmatpush1.bf16.msra.mxu1 %v18266_v45  ;;  %14340 = vmatprep.subr.bf16.mxu0 %v18271_v13  ;;  %v18338_v45 = vld [vmem:[#allocation11 + $0x1058] ss:$56 sps:$4 sm:$0xff]   ;;  %v18343_v13 = vld [vmem:[#allocation11 + $0x1444] ss:$56 sps:$4 sm:$0xff]  }
 0x7a4   : > { %14485 = vmatprep.subr.bf16.mxu1 %v18274_v44  ;;  %v18346_v44 = vld [vmem:[#allocation11 + $0x10cc] ss:$56 sps:$4 sm:$0xff]  }
 0x7a6   : > { %14341 = vmatpush1.bf16.msra.mxu0 %v18269_v25  ;;  %v18341_v25 = vld [vmem:[#allocation11 + $0x1440] ss:$56 sps:$4 sm:$0xff]  }
 0x7a7   : > { %14486 = vmatpush1.bf16.msra.mxu1 %v18272_v33  ;;  %14342 = vmatprep.subr.bf16.mxu0 %v18277_v23  ;;  %v18344_v33 = vld [vmem:[#allocation11 + $0x10c8] ss:$56 sps:$4 sm:$0xff]   ;;  %v18349_v23 = vld [vmem:[#allocation11 + $0x14b4] ss:$56 sps:$4 sm:$0xff]  }
 0x7a8   : > { %14487 = vmatprep.subr.bf16.mxu1 %v18280_v36  ;;  %v18352_v36 = vld [vmem:[#allocation11 + $0x113c] ss:$56 sps:$4 sm:$0xff]  }
 0x7aa   : > { %14343 = vmatpush1.bf16.msra.mxu0 %v18275_v58  ;;  %v18347_v58 = vld [vmem:[#allocation11 + $0x14b0] ss:$56 sps:$4 sm:$0xff]  }
 0x7ab   : > { %14488 = vmatpush1.bf16.msra.mxu1 %v18278_v22  ;;  %14344 = vmatprep.subr.bf16.mxu0 %v18283_v38  ;;  %v18350_v22 = vld [vmem:[#allocation11 + $0x1138] ss:$56 sps:$4 sm:$0xff]   ;;  %v18355_v38 = vld [vmem:[#allocation11 + $0x1524] ss:$56 sps:$4 sm:$0xff]  }
 0x7ac   : > { %14489 = vmatprep.subr.bf16.mxu1 %v18286_v16  ;;  %v18358_v16 = vld [vmem:[#allocation11 + $0x11ac] ss:$56 sps:$4 sm:$0xff]  }
 0x7ae   : > { %14345 = vmatpush1.bf16.msra.mxu0 %v18281_v39  ;;  %v18353_v39 = vld [vmem:[#allocation11 + $0x1520] ss:$56 sps:$4 sm:$0xff]  }
 0x7af   : > { %14490 = vmatpush1.bf16.msra.mxu1 %v18284_v40  ;;  %14346 = vmatprep.subr.bf16.mxu0 %v18289_v43  ;;  %v18356_v40 = vld [vmem:[#allocation11 + $0x11a8] ss:$56 sps:$4 sm:$0xff]   ;;  %v18361_v43 = vld [vmem:[#allocation11 + $0x1594] ss:$56 sps:$4 sm:$0xff]  }
 0x7b0   : > { %14491 = vmatprep.subr.bf16.mxu1 %v18292_v46  ;;  %v18364_v46 = vld [vmem:[#allocation11 + $0x121c] ss:$56 sps:$4 sm:$0xff]  }
 0x7b2   : > { %14347 = vmatpush1.bf16.msra.mxu0 %v18287_v19  ;;  %v18359_v19 = vld [vmem:[#allocation11 + $0x1590] ss:$56 sps:$4 sm:$0xff]  }
 0x7b3   : > { %14492 = vmatpush1.bf16.msra.mxu1 %v18290_v51  ;;  %14348 = vmatprep.subr.bf16.mxu0 %v18295_v52  ;;  %v18362_v51 = vld [vmem:[#allocation11 + $0x1218] ss:$56 sps:$4 sm:$0xff]   ;;  %v18367_v52 = vld [vmem:[#allocation11 + $0x1604] ss:$56 sps:$4 sm:$0xff]  }
 0x7b4   : > { %14493 = vmatprep.subr.bf16.mxu1 %v18298_v30  ;;  %v18370_v30 = vld [vmem:[#allocation11 + $0x128c] ss:$56 sps:$4 sm:$0xff]  }
 0x7b6   : > { %14349 = vmatpush1.bf16.msra.mxu0 %v18293_v61  ;;  %v18365_v61 = vld [vmem:[#allocation11 + $0x1600] ss:$56 sps:$4 sm:$0xff]  }
 0x7b7   : > { %14494 = vmatpush1.bf16.msra.mxu1 %v18296_v21  ;;  %14350 = vmatprep.subr.bf16.mxu0 %v18301_v12  ;;  %v18368_v21 = vld [vmem:[#allocation11 + $0x1288] ss:$56 sps:$4 sm:$0xff]   ;;  %v18373_v12 = vld [vmem:[#allocation11 + $0x1674] ss:$56 sps:$4 sm:$0xff]  }
 0x7b8   : > { %14495 = vmatprep.subr.bf16.mxu1 %v18304_v27  ;;  %v18376_v27 = vld [vmem:[#allocation11 + $0x12fc] ss:$56 sps:$4 sm:$0xff]  }
 0x7ba   : > { %14351 = vmatpush1.bf16.msra.mxu0 %v18299_v63  ;;  %v18371_v63 = vld [vmem:[#allocation11 + $0x1670] ss:$56 sps:$4 sm:$0xff]  }
 0x7bb   : > { %14496 = vmatpush1.bf16.msra.mxu1 %v18302_v1  ;;  %14352 = vmatprep.subr.bf16.mxu0 %v18307_v59  ;;  %v18374_v1 = vld [vmem:[#allocation11 + $0x12f8] ss:$56 sps:$4 sm:$0xff]   ;;  %v18379_v59 = vld [vmem:[#allocation11 + $0x16e4] ss:$56 sps:$4 sm:$0xff]  }
 0x7bc   : > { %14508 = vmatprep.subr.bf16.mxu1 %v18310_v2  ;;  %v18382_v2 = vld [vmem:[#allocation11 + $0x136c] ss:$56 sps:$4 sm:$0xff]  }
 0x7be   : > { %14353 = vmatpush1.bf16.msra.mxu0 %v18305_v3  ;;  %14498 = vmatmul.mubr.bf16.vlgmr.msra.gmra.mrb[20].mxu1 %v19427_v54  ;;  %v18377_v3 = vld [vmem:[#allocation11 + $0x16e0] ss:$56 sps:$4 sm:$0xff]  }
 0x7bf   : > { %14509 = vmatpush1.bf16.msra.mxu1 %v18308_v4  ;;  %14540 = vmatprep.mubr.bf16.mxu1 %v19464_v10  ;;  %v18380_v4 = vld [vmem:[#allocation11 + $0x1368] ss:$56 sps:$4 sm:$0xff]  }
 0x7c0   : > { %14354 = vmatprep.subr.bf16.mxu0 %v18313_v5  ;;  %14510 = vmatprep.subr.bf16.mxu1 %v18316_v32  ;;  %v18385_v5 = vld [vmem:[#allocation11 + $0x1754] ss:$56 sps:$4 sm:$0xff]  }
 0x7c1   : > { %v18388_v32 = vld [vmem:[#allocation11 + $0x13dc] ss:$56 sps:$4 sm:$0xff]  }
 0x7c2   : > { %14355 = vmatpush1.bf16.msra.mxu0 %v18311_v29  ;;  %v19542_v29 = vld [vmem:[#allocation12] sm:$0xff] }
 0x7c3   : > { %14511 = vmatpush1.bf16.msra.mxu1 %v18314_v6  ;;  %14356 = vmatprep.subr.bf16.mxu0 %v18319_v8  ;;  %v9031_v6 = vrot.slane %v19542_v29, %v19445_v35  ;;  %v9035_v8 = vrot.slane %v19542_v29, %v19448_v7 }
 0x7c4   : > { %14512 = vmatprep.subr.bf16.mxu1 %v18322_v11  ;;  %v18383_v11 = vld [vmem:[#allocation11 + $0x1750] ss:$56 sps:$4 sm:$0xff]  }
 0x7c6   : > { %14357 = vmatpush1.bf16.msra.mxu0 %v18317_v15  ;;  %v18386_v15 = vld [vmem:[#allocation11 + $0x13d8] ss:$56 sps:$4 sm:$0xff]  }
 0x7c7   : > { %14513 = vmatpush1.bf16.msra.mxu1 %v18320_v18  ;;  %14358 = vmatprep.subr.bf16.mxu0 %v18325_v26  ;;  %v18391_v18 = vld [vmem:[#allocation11 + $0x17c4] ss:$56 sps:$4 sm:$0xff]  }
 0x7c8   : > { %14514 = vmatprep.subr.bf16.mxu1 %v18328_v14  ;;  %v18394_v14 = vld [vmem:[#allocation11 + $0x144c] ss:$56 sps:$4 sm:$0xff]  }
 0x7ca   : > { %14359 = vmatpush1.bf16.msra.mxu0 %v18323_v50 }
 0x7cb   : > { %14515 = vmatpush1.bf16.msra.mxu1 %v18326_v53  ;;  %14360 = vmatprep.subr.bf16.mxu0 %v18331_v31 }
 0x7cc   : > { %14516 = vmatprep.subr.bf16.mxu1 %v18334_v62 }
 0x7ce   : > { %14361 = vmatpush1.bf16.msra.mxu0 %v18329_v24  ;;  %v18389_v24 = vld [vmem:[#allocation11 + $0x17c0] ss:$56 sps:$4 sm:$0xff]  }
 0x7cf   : > { %14517 = vmatpush1.bf16.msra.mxu1 %v18332_v34  ;;  %14362 = vmatprep.subr.bf16.mxu0 %v18337_v41 }
 0x7d0   : > { %14518 = vmatprep.subr.bf16.mxu1 %v18340_v42  ;;  %v18392_v42 = vld [vmem:[#allocation11 + $0x1448] ss:$56 sps:$4 sm:$0xff]  }
 0x7d2   : > { %14363 = vmatpush1.bf16.msra.mxu0 %v18335_v20  ;;  %v18397_v20 = vld [vmem:[#allocation11 + $0x1834] ss:$56 sps:$4 sm:$0xff]  }
 0x7d3   : > { %14519 = vmatpush1.bf16.msra.mxu1 %v18338_v45  ;;  %14364 = vmatprep.subr.bf16.mxu0 %v18343_v13 }
 0x7d4   : > { %14520 = vmatprep.subr.bf16.mxu1 %v18346_v44  ;;  %v18400_v44 = vld [vmem:[#allocation11 + $0x14bc] ss:$56 sps:$4 sm:$0xff]  }
 0x7d6   : > { %14365 = vmatpush1.bf16.msra.mxu0 %v18341_v25 }
 0x7d7   : > { %14521 = vmatpush1.bf16.msra.mxu1 %v18344_v33  ;;  %14366 = vmatprep.subr.bf16.mxu0 %v18349_v23  ;;  %v18395_v33 = vld [vmem:[#allocation11 + $0x1830] ss:$56 sps:$4 sm:$0xff]  }
 0x7d8   : > { %14522 = vmatprep.subr.bf16.mxu1 %v18352_v36  ;;  %v18398_v23 = vld [vmem:[#allocation11 + $0x14b8] ss:$56 sps:$4 sm:$0xff]   ;;  %v18403_v36 = vld [vmem:[#allocation11 + $0x18a4] ss:$56 sps:$4 sm:$0xff]  }
 0x7da   : > { %14367 = vmatpush1.bf16.msra.mxu0 %v18347_v58  ;;  %v18406_v58 = vld [vmem:[#allocation11 + $0x152c] ss:$56 sps:$4 sm:$0xff]  }
 0x7db   : > { %14523 = vmatpush1.bf16.msra.mxu1 %v18350_v22  ;;  %14379 = vmatprep.subr.bf16.mxu0 %v18355_v38  ;;  %v18401_v22 = vld [vmem:[#allocation11 + $0x18a0] ss:$56 sps:$4 sm:$0xff]  }
 0x7dc   : > { %14524 = vmatprep.subr.bf16.mxu1 %v18358_v16  ;;  %v18404_v38 = vld [vmem:[#allocation11 + $0x1528] ss:$56 sps:$4 sm:$0xff]   ;;  %v18409_v16 = vld [vmem:[#allocation11 + $0x1914] ss:$56 sps:$4 sm:$0xff]  }
 0x7dd   : > { %14369 = vmatmul.mubr.bf16.vlgmr.msra.gmra.mrb[16].mxu0 %v19462_v0 }
 0x7de   : > { %14380 = vmatpush1.bf16.msra.mxu0 %v18353_v39  ;;  %14411 = vmatprep.mubr.bf16.mxu0 %v19491_v57  ;;  %v18412_v39 = vld [vmem:[#allocation11 + $0x159c] ss:$56 sps:$4 sm:$0xff]  }
 0x7df   : > { %14525 = vmatpush1.bf16.msra.mxu1 %v18356_v40  ;;  %14381 = vmatprep.subr.bf16.mxu0 %v18361_v43  ;;  %v18407_v40 = vld [vmem:[#allocation11 + $0x1910] ss:$56 sps:$4 sm:$0xff]  }
 0x7e0   : > { %14526 = vmatprep.subr.bf16.mxu1 %v18364_v46  ;;  %v18410_v43 = vld [vmem:[#allocation11 + $0x1598] ss:$56 sps:$4 sm:$0xff]   ;;  %v18415_v46 = vld [vmem:[#allocation11 + $0x1984] ss:$56 sps:$4 sm:$0xff]  }
 0x7e2   : > { %14382 = vmatpush1.bf16.msra.mxu0 %v18359_v19  ;;  %v18418_v19 = vld [vmem:[#allocation11 + $0x160c] ss:$56 sps:$4 sm:$0xff]  }
 0x7e3   : > { %14527 = vmatpush1.bf16.msra.mxu1 %v18362_v51  ;;  %14383 = vmatprep.subr.bf16.mxu0 %v18367_v52  ;;  %v18413_v51 = vld [vmem:[#allocation11 + $0x1980] ss:$56 sps:$4 sm:$0xff]  }
 0x7e4   : > { %14528 = vmatprep.subr.bf16.mxu1 %v18370_v30  ;;  %v18416_v52 = vld [vmem:[#allocation11 + $0x1608] ss:$56 sps:$4 sm:$0xff]   ;;  %v18421_v30 = vld [vmem:[#allocation11 + $0x19f4] ss:$56 sps:$4 sm:$0xff]  }
 0x7e6   : > { %14384 = vmatpush1.bf16.msra.mxu0 %v18365_v61  ;;  %v18424_v61 = vld [vmem:[#allocation11 + $0x167c] ss:$56 sps:$4 sm:$0xff]  }
 0x7e7   : > { %14529 = vmatpush1.bf16.msra.mxu1 %v18368_v21  ;;  %14385 = vmatprep.subr.bf16.mxu0 %v18373_v12  ;;  %v18419_v21 = vld [vmem:[#allocation11 + $0x19f0] ss:$56 sps:$4 sm:$0xff]  }
 0x7e8   : > { %14530 = vmatprep.subr.bf16.mxu1 %v18376_v27  ;;  %v18422_v12 = vld [vmem:[#allocation11 + $0x1678] ss:$56 sps:$4 sm:$0xff]   ;;  %v18427_v27 = vld [vmem:[#allocation11 + $0x1a64] ss:$56 sps:$4 sm:$0xff]  }
 0x7ea   : > { %14386 = vmatpush1.bf16.msra.mxu0 %v18371_v63  ;;  %v18430_v63 = vld [vmem:[#allocation11 + $0x16ec] ss:$56 sps:$4 sm:$0xff]  }
 0x7eb   : > { %14531 = vmatpush1.bf16.msra.mxu1 %v18374_v1  ;;  %14387 = vmatprep.subr.bf16.mxu0 %v18379_v59  ;;  %v18425_v1 = vld [vmem:[#allocation11 + $0x1a60] ss:$56 sps:$4 sm:$0xff]  }
 0x7ec   : > { %14532 = vmatprep.subr.bf16.mxu1 %v18382_v2  ;;  %v18428_v59 = vld [vmem:[#allocation11 + $0x16e8] ss:$56 sps:$4 sm:$0xff]   ;;  %v18433_v2 = vld [vmem:[#allocation11 + $0x1ad4] ss:$56 sps:$4 sm:$0xff]  }
 0x7ee   : > { %14388 = vmatpush1.bf16.msra.mxu0 %v18377_v3  ;;  %v18436_v3 = vld [vmem:[#allocation11 + $0x175c] ss:$56 sps:$4 sm:$0xff]  }
 0x7ef   : > { %14533 = vmatpush1.bf16.msra.mxu1 %v18380_v4  ;;  %14389 = vmatprep.subr.bf16.mxu0 %v18385_v5  ;;  %v9039_v4 = vrot.slane %v19542_v29, %v19476_v49  ;;  %v18431_v5 = vld [vmem:[#allocation11 + $0x1ad0] ss:$56 sps:$4 sm:$0xff]  }
 0x7f0   : > { %v14069_v26 = vpop.f32.mrb[12].mxu0  ;;  %14534 = vmatprep.subr.bf16.mxu1 %v18388_v32  ;;  %v9043_v32 = vrot.slane %v19542_v29, %v19479_v47  ;;  %v18440_v49 = vld [vmem:[#allocation11 + $0x17c8] ss:$56 sps:$4 sm:$0xff]   ;;  %v18448_v47 = vld [vmem:[#allocation11 + $0x183c] ss:$56 sps:$4 sm:$0xff]  }
 0x7f1   : > { %v17002_v50 = vadd.f32 %v14069_v26, %v9031_v6  ;;  %v14071_v53 = vpop.f32.mrb[13].mxu0 }
 0x7f2   : > { %v17003_v31 = vadd.f32 %v14071_v53, %v9035_v8  ;;  %v14073_v62 = vpop.f32.mrb[14].mxu0  ;;  %14390 = vmatpush1.bf16.msra.mxu0 %v18383_v11  ;;  %v18442_v11 = vld [vmem:[#allocation11 + $0x17cc] ss:$56 sps:$4 sm:$0xff]  }
 0x7f3   : > { %v17004_v34 = vadd.f32 %v14073_v62, %v9031_v6  ;;  %v14075_v41 = vpop.f32.mrb[15].mxu0  ;;  %14535 = vmatpush1.bf16.msra.mxu1 %v18386_v15  ;;  %14391 = vmatprep.subr.bf16.mxu0 %v18391_v18  ;;  %v18434_v6 = vld [vmem:[#allocation11 + $0x1758] ss:$56 sps:$4 sm:$0xff]  }
 0x7f4   : > { %v16978_v45 = vpack.c.bf16 %v17003_v31, %v17002_v50  ;;  %v17005_v13 = vadd.f32 %v14075_v41, %v9035_v8  ;;  %14536 = vmatprep.subr.bf16.mxu1 %v18394_v14  ;;  %v18439_v8 = vld [vmem:[#allocation11 + $0x1b44] ss:$56 sps:$4 sm:$0xff]   ;;  %v18437_v14 = vld [vmem:[#allocation11 + $0x1b40] ss:$56 sps:$4 sm:$0xff]   ;;  %v18445_v31 = vld [vmem:[#allocation11 + $0x1bb4] ss:$56 sps:$4 sm:$0xff]  }
 0x7f5   : > { %v18443_v41 = vld [vmem:[#allocation11 + $0x1bb0] ss:$56 sps:$4 sm:$0xff]  }
 0x7f6   : > { %14852 = vst [vmem:[%s19516_s30 + $0x10] sm:$0xff] %v16978_v45  ;;  %v16985_v25 = vpack.c.bf16 %v17005_v13, %v17004_v34  ;;  %14392 = vmatpush1.bf16.msra.mxu0 %v18389_v24  ;;  %v18451_v45 = vld [vmem:[#allocation11 + $0x34] ss:$56 sps:$4 sm:$0xff]  }
 0x7f7   : > { %14537 = vmatpush1.bf16.msra.mxu1 %v18392_v42  ;;  %14393 = vmatprep.subr.bf16.mxu0 %v18397_v20  ;;  %v18446_v20 = vld [vmem:[#allocation11 + $0x1838] ss:$56 sps:$4 sm:$0xff]   ;;  %v18454_v13 = vld [vmem:[#allocation11 + $0x18ac] ss:$56 sps:$4 sm:$0xff]  }
 0x7f8   : > { %14859 = vst [vmem:[%s19516_s30 + $0x48] sm:$0xff] %v16985_v25  ;;  %14538 = vmatprep.subr.bf16.mxu1 %v18400_v44  ;;  %v18449_v44 = vld [vmem:[#allocation11 + $0x30] ss:$56 sps:$4 sm:$0xff]  }
 0x7f9   : > { %v18452_v25 = vld [vmem:[#allocation11 + $0x18a8] ss:$56 sps:$4 sm:$0xff]  }
 0x7fa   : > { %14394 = vmatpush1.bf16.msra.mxu0 %v18395_v33  ;;  %v18457_v33 = vld [vmem:[#allocation11 + $0xa4] ss:$56 sps:$4 sm:$0xff]  }
 0x7fb   : > { %14539 = vmatpush1.bf16.msra.mxu1 %v18398_v23  ;;  %14395 = vmatprep.subr.bf16.mxu0 %v18403_v36  ;;  %v18460_v23 = vld [vmem:[#allocation11 + $0x191c] ss:$56 sps:$4 sm:$0xff]   ;;  %v18455_v36 = vld [vmem:[#allocation11 + $0xa0] ss:$56 sps:$4 sm:$0xff]  }
 0x7fc   : > { %14551 = vmatprep.subr.bf16.mxu1 %v18406_v58  ;;  %v18458_v58 = vld [vmem:[#allocation11 + $0x1918] ss:$56 sps:$4 sm:$0xff]  }
 0x7fe   : > { %14396 = vmatpush1.bf16.msra.mxu0 %v18401_v22  ;;  %14541 = vmatmul.mubr.bf16.vlgmr.msra.gmra.mrb[20].mxu1 %v19462_v0  ;;  %v18463_v22 = vld [vmem:[#allocation11 + $0x114] ss:$56 sps:$4 sm:$0xff]  }
 0x7ff   : > { %14552 = vmatpush1.bf16.msra.mxu1 %v18404_v38  ;;  %14583 = vmatprep.mubr.bf16.mxu1 %v19491_v57  ;;  %v18466_v38 = vld [vmem:[#allocation11 + $0x198c] ss:$56 sps:$4 sm:$0xff]  }
 0x800   : > { %14397 = vmatprep.subr.bf16.mxu0 %v18409_v16  ;;  %14553 = vmatprep.subr.bf16.mxu1 %v18412_v39  ;;  %v18461_v16 = vld [vmem:[#allocation11 + $0x110] ss:$56 sps:$4 sm:$0xff]  }
 0x801   : > { %v18464_v39 = vld [vmem:[#allocation11 + $0x1988] ss:$56 sps:$4 sm:$0xff]  }
 0x802   : > { %14398 = vmatpush1.bf16.msra.mxu0 %v18407_v40  ;;  %v18469_v40 = vld [vmem:[#allocation11 + $0x184] ss:$56 sps:$4 sm:$0xff]  }
 0x803   : > { %14554 = vmatpush1.bf16.msra.mxu1 %v18410_v43  ;;  %14399 = vmatprep.subr.bf16.mxu0 %v18415_v46  ;;  %v18472_v43 = vld [vmem:[#allocation11 + $0x19fc] ss:$56 sps:$4 sm:$0xff]   ;;  %v18467_v46 = vld [vmem:[#allocation11 + $0x180] ss:$56 sps:$4 sm:$0xff]  }
 0x804   : > { %14555 = vmatprep.subr.bf16.mxu1 %v18418_v19  ;;  %v18475_v19 = vld [vmem:[#allocation11 + $0x1f4] ss:$56 sps:$4 sm:$0xff]  }
 0x806   : > { %14400 = vmatpush1.bf16.msra.mxu0 %v18413_v51  ;;  %v18478_v51 = vld [vmem:[#allocation11 + $0x1a6c] ss:$56 sps:$4 sm:$0xff]  }
 0x807   : > { %14556 = vmatpush1.bf16.msra.mxu1 %v18416_v52  ;;  %14401 = vmatprep.subr.bf16.mxu0 %v18421_v30  ;;  %v18473_v52 = vld [vmem:[#allocation11 + $0x1f0] ss:$56 sps:$4 sm:$0xff]  }
 0x808   : > { %14557 = vmatprep.subr.bf16.mxu1 %v18424_v61  ;;  %v18476_v30 = vld [vmem:[#allocation11 + $0x1a68] ss:$56 sps:$4 sm:$0xff]   ;;  %v18481_v61 = vld [vmem:[#allocation11 + $0x264] ss:$56 sps:$4 sm:$0xff]  }
 0x80a   : > { %14402 = vmatpush1.bf16.msra.mxu0 %v18419_v21  ;;  %v18484_v21 = vld [vmem:[#allocation11 + $0x1adc] ss:$56 sps:$4 sm:$0xff]  }
 0x80b   : > { %14558 = vmatpush1.bf16.msra.mxu1 %v18422_v12  ;;  %14403 = vmatprep.subr.bf16.mxu0 %v18427_v27  ;;  %v18479_v12 = vld [vmem:[#allocation11 + $0x260] ss:$56 sps:$4 sm:$0xff]  }
 0x80c   : > { %14559 = vmatprep.subr.bf16.mxu1 %v18430_v63  ;;  %v18482_v27 = vld [vmem:[#allocation11 + $0x1ad8] ss:$56 sps:$4 sm:$0xff]   ;;  %v18487_v63 = vld [vmem:[#allocation11 + $0x2d4] ss:$56 sps:$4 sm:$0xff]  }
 0x80e   : > { %14404 = vmatpush1.bf16.msra.mxu0 %v18425_v1  ;;  %v18490_v1 = vld [vmem:[#allocation11 + $0x1b4c] ss:$56 sps:$4 sm:$0xff]  }
 0x80f   : > { %14560 = vmatpush1.bf16.msra.mxu1 %v18428_v59  ;;  %14405 = vmatprep.subr.bf16.mxu0 %v18433_v2  ;;  %v18485_v59 = vld [vmem:[#allocation11 + $0x2d0] ss:$56 sps:$4 sm:$0xff]  }
 0x810   : > { %14561 = vmatprep.subr.bf16.mxu1 %v18436_v3  ;;  %v18488_v2 = vld [vmem:[#allocation11 + $0x1b48] ss:$56 sps:$4 sm:$0xff]   ;;  %v18493_v3 = vld [vmem:[#allocation11 + $0x344] ss:$56 sps:$4 sm:$0xff]  }
 0x811   : > { %v14241_v15 = vpop.f32.mrb[16].mxu1 }
 0x812   : > { %v17006_v18 = vadd.f32 %v14241_v15, %v9039_v4  ;;  %v14243_v26 = vpop.f32.mrb[17].mxu1  ;;  %14406 = vmatpush1.bf16.msra.mxu0 %v18431_v5  ;;  %v18491_v5 = vld [vmem:[#allocation11 + $0x340] ss:$56 sps:$4 sm:$0xff]  }
 0x813   : > { %v17007_v50 = vadd.f32 %v14243_v26, %v9043_v32  ;;  %v14245_v53 = vpop.f32.mrb[18].mxu1  ;;  %14562 = vmatpush1.bf16.msra.mxu1 %v18434_v6  ;;  %14407 = vmatprep.subr.bf16.mxu0 %v18439_v8  ;;  %v18499_v6 = vld [vmem:[#allocation11 + $0x3b4] ss:$56 sps:$4 sm:$0xff]   ;;  %v18497_v8 = vld [vmem:[#allocation11 + $0x3b0] ss:$56 sps:$4 sm:$0xff]  }
 0x814   : > { %v17008_v62 = vadd.f32 %v14245_v53, %v9039_v4  ;;  %v14247_v24 = vpop.f32.mrb[19].mxu1  ;;  %14563 = vmatprep.subr.bf16.mxu1 %v18442_v11  ;;  %v18496_v4 = vld [vmem:[#allocation11 + $0x1bbc] ss:$56 sps:$4 sm:$0xff]   ;;  %v18500_v15 = vld [vmem:[#allocation11 + $0x420] ss:$56 sps:$4 sm:$0xff]  }
 0x815   : > { %v16979_v29 = vpack.c.bf16 %v17007_v50, %v17006_v18  ;;  %v17009_v34 = vadd.f32 %v14247_v24, %v9043_v32  ;;  %v18494_v32 = vld [vmem:[#allocation11 + $0x1bb8] ss:$56 sps:$4 sm:$0xff]   ;;  %v18502_v11 = vld [vmem:[#allocation11 + $0x424] ss:$56 sps:$4 sm:$0xff]   ;;  %v18505_v18 = vld [vmem:[#allocation11 + $0x494] ss:$56 sps:$4 sm:$0xff]  }
 0x816   : > { %14408 = vmatpush1.bf16.msra.mxu0 %v18437_v14  ;;  %v18503_v26 = vld [vmem:[#allocation11 + $0x490] ss:$56 sps:$4 sm:$0xff]   ;;  %v18508_v14 = vld [vmem:[#allocation11 + $0x504] ss:$56 sps:$4 sm:$0xff]   ;;  %v18506_v50 = vld [vmem:[#allocation11 + $0x500] ss:$56 sps:$4 sm:$0xff]  }
 0x817   : > { %14853 = vst [vmem:[%s19516_s30 + $0x18] sm:$0xff] %v16979_v29  ;;  %v16986_v42 = vpack.c.bf16 %v17009_v34, %v17008_v62  ;;  %14564 = vmatpush1.bf16.msra.mxu1 %v18440_v49  ;;  %14409 = vmatprep.subr.bf16.mxu0 %v18445_v31  ;;  %v18511_v53 = vld [vmem:[#allocation11 + $0x574] ss:$56 sps:$4 sm:$0xff]   ;;  %v18509_v49 = vld [vmem:[#allocation11 + $0x570] ss:$56 sps:$4 sm:$0xff]  }
 0x818   : > { %14565 = vmatprep.subr.bf16.mxu1 %v18448_v47  ;;  %v18514_v31 = vld [vmem:[#allocation11 + $0x5e4] ss:$56 sps:$4 sm:$0xff]   ;;  %v18512_v62 = vld [vmem:[#allocation11 + $0x5e0] ss:$56 sps:$4 sm:$0xff]   ;;  %v18517_v24 = vld [vmem:[#allocation11 + $0x654] ss:$56 sps:$4 sm:$0xff]  }
 0x819   : > { %14860 = vst [vmem:[%s19516_s30 + $0x50] sm:$0xff] %v16986_v42  ;;  %v18515_v47 = vld [vmem:[#allocation11 + $0x650] ss:$56 sps:$4 sm:$0xff]   ;;  %v18520_v29 = vld [vmem:[#allocation11 + $0x6c4] ss:$56 sps:$4 sm:$0xff]  }
 0x81a   : > { %14410 = vmatpush1.bf16.msra.mxu0 %v18443_v41  ;;  %v18518_v34 = vld [vmem:[#allocation11 + $0x6c0] ss:$56 sps:$4 sm:$0xff]   ;;  %v18523_v41 = vld [vmem:[#allocation11 + $0x734] ss:$56 sps:$4 sm:$0xff]   ;;  %v18521_v42 = vld [vmem:[#allocation11 + $0x730] ss:$56 sps:$4 sm:$0xff]  }
 0x81b   : > { %14566 = vmatpush1.bf16.msra.mxu1 %v18446_v20  ;;  %14594 = vmatprep.subr.bf16.mxu0 %v18451_v45  ;;  %v18526_v20 = vld [vmem:[#allocation11 + $0x7a4] ss:$56 sps:$4 sm:$0xff]   ;;  %v18524_v45 = vld [vmem:[#allocation11 + $0x7a0] ss:$56 sps:$4 sm:$0xff]  }
 0x81c   : > { %14567 = vmatprep.subr.bf16.mxu1 %v18454_v13  ;;  %v18529_v13 = vld [vmem:[#allocation11 + $0x814] ss:$56 sps:$4 sm:$0xff]  }
 0x81d   : > { %14412 = vmatmul.mubr.bf16.vlgmr.msra.gmra.mrb[16].mxu0 %v19489_v55 }
 0x81e   : > { %14595 = vmatpush1.bf16.msra.mxu0 %v18449_v44  ;;  %14626 = vmatprep.mubr.bf16.mxu0 %v19399_v17  ;;  %v18470_v17 = vld [vmem:[#allocation11 + $0x19f8] ss:$56 sps:$4 sm:$0xff]  }
 0x81f   : > { %14568 = vmatpush1.bf16.msra.mxu1 %v18452_v25  ;;  %14596 = vmatprep.subr.bf16.mxu0 %v18457_v33  ;;  %v18527_v44 = vld [vmem:[#allocation11 + $0x810] ss:$56 sps:$4 sm:$0xff]   ;;  %v18532_v25 = vld [vmem:[#allocation11 + $0x884] ss:$56 sps:$4 sm:$0xff]   ;;  %v18530_v33 = vld [vmem:[#allocation11 + $0x880] ss:$56 sps:$4 sm:$0xff]  }
 0x820   : > { %14569 = vmatprep.subr.bf16.mxu1 %v18460_v23  ;;  %v18535_v23 = vld [vmem:[#allocation11 + $0x8f4] ss:$56 sps:$4 sm:$0xff]  }
 0x822   : > { %14597 = vmatpush1.bf16.msra.mxu0 %v18455_v36  ;;  %v18533_v36 = vld [vmem:[#allocation11 + $0x8f0] ss:$56 sps:$4 sm:$0xff]  }
 0x823   : > { %14570 = vmatpush1.bf16.msra.mxu1 %v18458_v58  ;;  %14598 = vmatprep.subr.bf16.mxu0 %v18463_v22  ;;  %v18538_v58 = vld [vmem:[#allocation11 + $0x964] ss:$56 sps:$4 sm:$0xff]   ;;  %v18541_v22 = vld [vmem:[#allocation11 + $0x9d4] ss:$56 sps:$4 sm:$0xff]  }
 0x824   : > { %14571 = vmatprep.subr.bf16.mxu1 %v18466_v38  ;;  %v18544_v38 = vld [vmem:[#allocation11 + $0xa44] ss:$56 sps:$4 sm:$0xff]  }
 0x826   : > { %14599 = vmatpush1.bf16.msra.mxu0 %v18461_v16  ;;  %v18542_v16 = vld [vmem:[#allocation11 + $0xa40] ss:$56 sps:$4 sm:$0xff]  }
 0x827   : > { %14572 = vmatpush1.bf16.msra.mxu1 %v18464_v39  ;;  %14600 = vmatprep.subr.bf16.mxu0 %v18469_v40  ;;  %v18547_v39 = vld [vmem:[#allocation11 + $0xab4] ss:$56 sps:$4 sm:$0xff]   ;;  %v18545_v40 = vld [vmem:[#allocation11 + $0xab0] ss:$56 sps:$4 sm:$0xff]  }
 0x828   : > { %14573 = vmatprep.subr.bf16.mxu1 %v18472_v43  ;;  %v18550_v43 = vld [vmem:[#allocation11 + $0xb24] ss:$56 sps:$4 sm:$0xff]  }
 0x82a   : > { %14601 = vmatpush1.bf16.msra.mxu0 %v18467_v46  ;;  %v18548_v46 = vld [vmem:[#allocation11 + $0xb20] ss:$56 sps:$4 sm:$0xff]  }
 0x82b   : > { %14574 = vmatpush1.bf16.msra.mxu1 %v18470_v17  ;;  %14602 = vmatprep.subr.bf16.mxu0 %v18475_v19  ;;  %v18553_v17 = vld [vmem:[#allocation11 + $0xb94] ss:$56 sps:$4 sm:$0xff]   ;;  %v18551_v19 = vld [vmem:[#allocation11 + $0xb90] ss:$56 sps:$4 sm:$0xff]  }
 0x82c   : > { %14575 = vmatprep.subr.bf16.mxu1 %v18478_v51  ;;  %v18556_v51 = vld [vmem:[#allocation11 + $0xc04] ss:$56 sps:$4 sm:$0xff]  }
 0x82e   : > { %14603 = vmatpush1.bf16.msra.mxu0 %v18473_v52  ;;  %v18554_v52 = vld [vmem:[#allocation11 + $0xc00] ss:$56 sps:$4 sm:$0xff]  }
 0x82f   : > { %14576 = vmatpush1.bf16.msra.mxu1 %v18476_v30  ;;  %14604 = vmatprep.subr.bf16.mxu0 %v18481_v61  ;;  %v18559_v30 = vld [vmem:[#allocation11 + $0xc74] ss:$56 sps:$4 sm:$0xff]   ;;  %v18557_v61 = vld [vmem:[#allocation11 + $0xc70] ss:$56 sps:$4 sm:$0xff]  }
 0x830   : > { %14577 = vmatprep.subr.bf16.mxu1 %v18484_v21  ;;  %v18562_v21 = vld [vmem:[#allocation11 + $0xce4] ss:$56 sps:$4 sm:$0xff]  }
 0x832   : > { %14605 = vmatpush1.bf16.msra.mxu0 %v18479_v12  ;;  %v18560_v12 = vld [vmem:[#allocation11 + $0xce0] ss:$56 sps:$4 sm:$0xff]  }
 0x833   : > { %14578 = vmatpush1.bf16.msra.mxu1 %v18482_v27  ;;  %14606 = vmatprep.subr.bf16.mxu0 %v18487_v63  ;;  %v18565_v27 = vld [vmem:[#allocation11 + $0xd54] ss:$56 sps:$4 sm:$0xff]   ;;  %v18563_v63 = vld [vmem:[#allocation11 + $0xd50] ss:$56 sps:$4 sm:$0xff]  }
 0x834   : > { %14579 = vmatprep.subr.bf16.mxu1 %v18490_v1  ;;  %v18568_v1 = vld [vmem:[#allocation11 + $0xdc4] ss:$56 sps:$4 sm:$0xff]  }
 0x836   : > { %14607 = vmatpush1.bf16.msra.mxu0 %v18485_v59  ;;  %v18566_v59 = vld [vmem:[#allocation11 + $0xdc0] ss:$56 sps:$4 sm:$0xff]  }
 0x837   : > { %14580 = vmatpush1.bf16.msra.mxu1 %v18488_v2  ;;  %14608 = vmatprep.subr.bf16.mxu0 %v18493_v3  ;;  %v18571_v2 = vld [vmem:[#allocation11 + $0xe34] ss:$56 sps:$4 sm:$0xff]   ;;  %v18569_v3 = vld [vmem:[#allocation11 + $0xe30] ss:$56 sps:$4 sm:$0xff]  }
 0x838   : > { %14581 = vmatprep.subr.bf16.mxu1 %v18496_v4  ;;  %v18574_v4 = vld [vmem:[#allocation11 + $0xea4] ss:$56 sps:$4 sm:$0xff]  }
 0x83a   : > { %14609 = vmatpush1.bf16.msra.mxu0 %v18491_v5  ;;  %v18572_v5 = vld [vmem:[#allocation11 + $0xea0] ss:$56 sps:$4 sm:$0xff]  }
 0x83b   : > { %14582 = vmatpush1.bf16.msra.mxu1 %v18494_v32  ;;  %14610 = vmatprep.subr.bf16.mxu0 %v18499_v6  ;;  %v18577_v32 = vld [vmem:[#allocation11 + $0xf14] ss:$56 sps:$4 sm:$0xff]   ;;  %v18575_v6 = vld [vmem:[#allocation11 + $0xf10] ss:$56 sps:$4 sm:$0xff]  }
 0x83e   : > { %14584 = vmatmul.mubr.bf16.vlgmr.msra.gmra.mrb[20].mxu1 %v19489_v55  ;;  %14611 = vmatpush1.bf16.msra.mxu0 %v18497_v8  ;;  %v18580_v8 = vld [vmem:[#allocation11 + $0xf84] ss:$56 sps:$4 sm:$0xff]  }
 0x83f   : > { %14612 = vmatprep.subr.bf16.mxu0 %v18502_v11  ;;  %v18578_v11 = vld [vmem:[#allocation11 + $0xf80] ss:$56 sps:$4 sm:$0xff]  }
 0x842   : > { %14613 = vmatpush1.bf16.msra.mxu0 %v18500_v15  ;;  %v18583_v15 = vld [vmem:[#allocation11 + $0xff4] ss:$56 sps:$4 sm:$0xff]  }
 0x843   : > { %14614 = vmatprep.subr.bf16.mxu0 %v18505_v18  ;;  %v18581_v18 = vld [vmem:[#allocation11 + $0xff0] ss:$56 sps:$4 sm:$0xff]  }
 0x846   : > { %14615 = vmatpush1.bf16.msra.mxu0 %v18503_v26  ;;  %v18586_v26 = vld [vmem:[#allocation11 + $0x1064] ss:$56 sps:$4 sm:$0xff]  }
 0x847   : > { %14616 = vmatprep.subr.bf16.mxu0 %v18508_v14  ;;  %v18589_v14 = vld [vmem:[#allocation11 + $0x10d4] ss:$56 sps:$4 sm:$0xff]  }
 0x84a   : > { %14617 = vmatpush1.bf16.msra.mxu0 %v18506_v50  ;;  %v18592_v50 = vld [vmem:[#allocation11 + $0x1144] ss:$56 sps:$4 sm:$0xff]  }
 0x84b   : > { %14618 = vmatprep.subr.bf16.mxu0 %v18511_v53  ;;  %v18590_v53 = vld [vmem:[#allocation11 + $0x1140] ss:$56 sps:$4 sm:$0xff]  }
 0x84e   : > { %14619 = vmatpush1.bf16.msra.mxu0 %v18509_v49  ;;  %v18595_v49 = vld [vmem:[#allocation11 + $0x11b4] ss:$56 sps:$4 sm:$0xff]  }
 0x84f   : > { %14620 = vmatprep.subr.bf16.mxu0 %v18514_v31  ;;  %v18593_v31 = vld [vmem:[#allocation11 + $0x11b0] ss:$56 sps:$4 sm:$0xff]  }
 0x852   : > { %14621 = vmatpush1.bf16.msra.mxu0 %v18512_v62  ;;  %v18598_v62 = vld [vmem:[#allocation11 + $0x1224] ss:$56 sps:$4 sm:$0xff]  }
 0x853   : > { %14622 = vmatprep.subr.bf16.mxu0 %v18517_v24  ;;  %v18596_v24 = vld [vmem:[#allocation11 + $0x1220] ss:$56 sps:$4 sm:$0xff]  }
 0x856   : > { %14623 = vmatpush1.bf16.msra.mxu0 %v18515_v47  ;;  %v18601_v47 = vld [vmem:[#allocation11 + $0x1294] ss:$56 sps:$4 sm:$0xff]  }
 0x857   : > { %14624 = vmatprep.subr.bf16.mxu0 %v18520_v29  ;;  %v18599_v29 = vld [vmem:[#allocation11 + $0x1290] ss:$56 sps:$4 sm:$0xff]  }
 0x85a   : > { %14625 = vmatpush1.bf16.msra.mxu0 %v18518_v34  ;;  %v18604_v34 = vld [vmem:[#allocation11 + $0x1304] ss:$56 sps:$4 sm:$0xff]  }
 0x85b   : > { %14637 = vmatprep.subr.bf16.mxu0 %v18523_v41  ;;  %v18602_v41 = vld [vmem:[#allocation11 + $0x1300] ss:$56 sps:$4 sm:$0xff]  }
 0x85d   : > { %14627 = vmatmul.mubr.bf16.vlgmr.msra.gmra.mrb[20].mxu0 %v19397_v9  ;;  %v18536_v9 = vld [vmem:[#allocation11 + $0x960] ss:$56 sps:$4 sm:$0xff]  }
 0x85e   : > { %14638 = vmatpush1.bf16.msra.mxu0 %v18521_v42  ;;  %14669 = vmatprep.mubr.bf16.mxu0 %v19429_v56  ;;  %v18539_v56 = vld [vmem:[#allocation11 + $0x9d0] ss:$56 sps:$4 sm:$0xff]   ;;  %v18607_v42 = vld [vmem:[#allocation11 + $0x1374] ss:$56 sps:$4 sm:$0xff]  }
 0x85f   : > { %14639 = vmatprep.subr.bf16.mxu0 %v18526_v20  ;;  %v18605_v20 = vld [vmem:[#allocation11 + $0x1370] ss:$56 sps:$4 sm:$0xff]  }
 0x862   : > { %14640 = vmatpush1.bf16.msra.mxu0 %v18524_v45  ;;  %v18610_v45 = vld [vmem:[#allocation11 + $0x13e4] ss:$56 sps:$4 sm:$0xff]  }
 0x863   : > { %14641 = vmatprep.subr.bf16.mxu0 %v18529_v13  ;;  %v18608_v13 = vld [vmem:[#allocation11 + $0x13e0] ss:$56 sps:$4 sm:$0xff]  }
 0x866   : > { %14642 = vmatpush1.bf16.msra.mxu0 %v18527_v44  ;;  %v18613_v44 = vld [vmem:[#allocation11 + $0x1454] ss:$56 sps:$4 sm:$0xff]  }
 0x867   : > { %14643 = vmatprep.subr.bf16.mxu0 %v18532_v25  ;;  %v18611_v25 = vld [vmem:[#allocation11 + $0x1450] ss:$56 sps:$4 sm:$0xff]  }
 0x86a   : > { %14644 = vmatpush1.bf16.msra.mxu0 %v18530_v33  ;;  %v18616_v33 = vld [vmem:[#allocation11 + $0x14c4] ss:$56 sps:$4 sm:$0xff]  }
 0x86b   : > { %14645 = vmatprep.subr.bf16.mxu0 %v18535_v23  ;;  %v18614_v23 = vld [vmem:[#allocation11 + $0x14c0] ss:$56 sps:$4 sm:$0xff]  }
 0x86e   : > { %14646 = vmatpush1.bf16.msra.mxu0 %v18533_v36  ;;  %v18619_v36 = vld [vmem:[#allocation11 + $0x1534] ss:$56 sps:$4 sm:$0xff]  }
 0x86f   : > { %14647 = vmatprep.subr.bf16.mxu0 %v18538_v58  ;;  %v18617_v58 = vld [vmem:[#allocation11 + $0x1530] ss:$56 sps:$4 sm:$0xff]  }
 0x872   : > { %14648 = vmatpush1.bf16.msra.mxu0 %v18536_v9  ;;  %v18622_v9 = vld [vmem:[#allocation11 + $0x15a4] ss:$56 sps:$4 sm:$0xff]  }
 0x873   : > { %14649 = vmatprep.subr.bf16.mxu0 %v18541_v22  ;;  %v18620_v22 = vld [vmem:[#allocation11 + $0x15a0] ss:$56 sps:$4 sm:$0xff]  }
 0x876   : > { %14650 = vmatpush1.bf16.msra.mxu0 %v18539_v56  ;;  %v18625_v56 = vld [vmem:[#allocation11 + $0x1614] ss:$56 sps:$4 sm:$0xff]  }
 0x877   : > { %14651 = vmatprep.subr.bf16.mxu0 %v18544_v38  ;;  %v18623_v38 = vld [vmem:[#allocation11 + $0x1610] ss:$56 sps:$4 sm:$0xff]  }
 0x87a   : > { %14652 = vmatpush1.bf16.msra.mxu0 %v18542_v16  ;;  %v18628_v16 = vld [vmem:[#allocation11 + $0x1684] ss:$56 sps:$4 sm:$0xff]  }
 0x87b   : > { %14653 = vmatprep.subr.bf16.mxu0 %v18547_v39  ;;  %v18626_v39 = vld [vmem:[#allocation11 + $0x1680] ss:$56 sps:$4 sm:$0xff]  }
 0x87e   : > { %14654 = vmatpush1.bf16.msra.mxu0 %v18545_v40  ;;  %v18631_v40 = vld [vmem:[#allocation11 + $0x16f4] ss:$56 sps:$4 sm:$0xff]  }
 0x87f   : > { %14655 = vmatprep.subr.bf16.mxu0 %v18550_v43  ;;  %v18629_v43 = vld [vmem:[#allocation11 + $0x16f0] ss:$56 sps:$4 sm:$0xff]  }
 0x882   : > { %14656 = vmatpush1.bf16.msra.mxu0 %v18548_v46  ;;  %v19567_v46 = vld [vmem:[#allocation12 + $0x8] sm:$0x3f] }
 0x883   : > { %14657 = vmatprep.subr.bf16.mxu0 %v18553_v17  ;;  %v9051_v17 = vrot.slane %v19567_v46, %v19387_v28 }
 0x886   : > { %14658 = vmatpush1.bf16.msra.mxu0 %v18551_v19  ;;  %v18632_v19 = vld [vmem:[#allocation11 + $0x1760] ss:$56 sps:$4 sm:$0xff]  }
 0x887   : > { %14659 = vmatprep.subr.bf16.mxu0 %v18556_v51  ;;  %v18637_v51 = vld [vmem:[#allocation11 + $0x17d4] ss:$56 sps:$4 sm:$0xff]  }
 0x88a   : > { %14660 = vmatpush1.bf16.msra.mxu0 %v18554_v52 }
 0x88b   : > { %14661 = vmatprep.subr.bf16.mxu0 %v18559_v30 }
 0x88e   : > { %14662 = vmatpush1.bf16.msra.mxu0 %v18557_v61 }
 0x88f   : > { %14663 = vmatprep.subr.bf16.mxu0 %v18562_v21 }
 0x892   : > { %14664 = vmatpush1.bf16.msra.mxu0 %v18560_v12 }
 0x893   : > { %14665 = vmatprep.subr.bf16.mxu0 %v18565_v27  ;;  %v18635_v27 = vld [vmem:[#allocation11 + $0x17d0] ss:$56 sps:$4 sm:$0xff]  }
 0x896   : > { %14666 = vmatpush1.bf16.msra.mxu0 %v18563_v63 }
 0x897   : > { %14667 = vmatprep.subr.bf16.mxu0 %v18568_v1 }
 0x89a   : > { %14668 = vmatpush1.bf16.msra.mxu0 %v18566_v59 }
 0x89b   : > { %14680 = vmatprep.subr.bf16.mxu0 %v18571_v2 }
 0x89d   : > { %14670 = vmatmul.mubr.bf16.vlgmr.msra.gmra.mrb[20].mxu0 %v19427_v54  ;;  %v18584_v54 = vld [vmem:[#allocation11 + $0x1060] ss:$56 sps:$4 sm:$0xff]  }
 0x89e   : > { %14681 = vmatpush1.bf16.msra.mxu0 %v18569_v3  ;;  %14712 = vmatprep.mubr.bf16.mxu0 %v19464_v10  ;;  %v18587_v10 = vld [vmem:[#allocation11 + $0x10d0] ss:$56 sps:$4 sm:$0xff]   ;;  %v18638_v3 = vld [vmem:[#allocation11 + $0x1840] ss:$56 sps:$4 sm:$0xff]  }
 0x89f   : > { %14682 = vmatprep.subr.bf16.mxu0 %v18574_v4  ;;  %v18643_v4 = vld [vmem:[#allocation11 + $0x18b4] ss:$56 sps:$4 sm:$0xff]  }
 0x8a2   : > { %14683 = vmatpush1.bf16.msra.mxu0 %v18572_v5  ;;  %v18641_v5 = vld [vmem:[#allocation11 + $0x18b0] ss:$56 sps:$4 sm:$0xff]  }
 0x8a3   : > { %14684 = vmatprep.subr.bf16.mxu0 %v18577_v32  ;;  %v18646_v32 = vld [vmem:[#allocation11 + $0x1924] ss:$56 sps:$4 sm:$0xff]  }
 0x8a6   : > { %14685 = vmatpush1.bf16.msra.mxu0 %v18575_v6  ;;  %v18644_v6 = vld [vmem:[#allocation11 + $0x1920] ss:$56 sps:$4 sm:$0xff]  }
 0x8a7   : > { %14686 = vmatprep.subr.bf16.mxu0 %v18580_v8  ;;  %v18649_v8 = vld [vmem:[#allocation11 + $0x1994] ss:$56 sps:$4 sm:$0xff]  }
 0x8aa   : > { %14687 = vmatpush1.bf16.msra.mxu0 %v18578_v11  ;;  %v18647_v11 = vld [vmem:[#allocation11 + $0x1990] ss:$56 sps:$4 sm:$0xff]  }
 0x8ab   : > { %14688 = vmatprep.subr.bf16.mxu0 %v18583_v15  ;;  %v18652_v15 = vld [vmem:[#allocation11 + $0x1a04] ss:$56 sps:$4 sm:$0xff]  }
 0x8ae   : > { %14689 = vmatpush1.bf16.msra.mxu0 %v18581_v18  ;;  %v18650_v18 = vld [vmem:[#allocation11 + $0x1a00] ss:$56 sps:$4 sm:$0xff]  }
 0x8af   : > { %14690 = vmatprep.subr.bf16.mxu0 %v18586_v26  ;;  %v18655_v26 = vld [vmem:[#allocation11 + $0x1a74] ss:$56 sps:$4 sm:$0xff]  }
 0x8b2   : > { %14691 = vmatpush1.bf16.msra.mxu0 %v18584_v54  ;;  %v18653_v54 = vld [vmem:[#allocation11 + $0x1a70] ss:$56 sps:$4 sm:$0xff]  }
 0x8b3   : > { %14692 = vmatprep.subr.bf16.mxu0 %v18589_v14  ;;  %v18658_v14 = vld [vmem:[#allocation11 + $0x1ae4] ss:$56 sps:$4 sm:$0xff]  }
 0x8b6   : > { %14693 = vmatpush1.bf16.msra.mxu0 %v18587_v10  ;;  %v9055_v10 = vrot.slane %v19567_v46, %v19418_v37 }
 0x8b7   : > { %14694 = vmatprep.subr.bf16.mxu0 %v18592_v50  ;;  %v18656_v50 = vld [vmem:[#allocation11 + $0x1ae0] ss:$56 sps:$4 sm:$0xff]  }
 0x8ba   : > { %14695 = vmatpush1.bf16.msra.mxu0 %v18590_v53  ;;  %v9059_v53 = vrot.slane %v19567_v46, %v19421_v48  ;;  %v18662_v48 = vld [vmem:[#allocation11 + $0x1bc0] ss:$56 sps:$4 sm:$0xff]  }
 0x8bb   : > { %14696 = vmatprep.subr.bf16.mxu0 %v18595_v49  ;;  %v18661_v49 = vld [vmem:[#allocation11 + $0x1b54] ss:$56 sps:$4 sm:$0xff]  }
 0x8be   : > { %14697 = vmatpush1.bf16.msra.mxu0 %v18593_v31 }
 0x8bf   : > { %14698 = vmatprep.subr.bf16.mxu0 %v18598_v62 }
 0x8c2   : > { %14699 = vmatpush1.bf16.msra.mxu0 %v18596_v24 }
 0x8c3   : > { %14700 = vmatprep.subr.bf16.mxu0 %v18601_v47  ;;  %v18659_v47 = vld [vmem:[#allocation11 + $0x1b50] ss:$56 sps:$4 sm:$0xff]  }
 0x8c6   : > { %14701 = vmatpush1.bf16.msra.mxu0 %v18599_v29 }
 0x8c7   : > { %14702 = vmatprep.subr.bf16.mxu0 %v18604_v34 }
 0x8ca   : > { %14703 = vmatpush1.bf16.msra.mxu0 %v18602_v41  ;;  %v18664_v41 = vld [vmem:[#allocation11 + $0x1bc4] ss:$56 sps:$4 sm:$0xff]  }
 0x8cb   : > { %14704 = vmatprep.subr.bf16.mxu0 %v18607_v42 }
 0x8ce   : > { %14705 = vmatpush1.bf16.msra.mxu0 %v18605_v20 }
 0x8cf   : > { %14706 = vmatprep.subr.bf16.mxu0 %v18610_v45 }
 0x8d2   : > { %14707 = vmatpush1.bf16.msra.mxu0 %v18608_v13 }
 0x8d3   : > { %14708 = vmatprep.subr.bf16.mxu0 %v18613_v44  ;;  %v9063_v44 = vrot.slane %v19567_v46, %v19445_v35 }
 0x8d6   : > { %14709 = vmatpush1.bf16.msra.mxu0 %v18611_v25  ;;  %v9067_v25 = vrot.slane %v19567_v46, %v19448_v7 }
 0x8d7   : > { %14710 = vmatprep.subr.bf16.mxu0 %v18616_v33 }
 0x8da   : > { %14711 = vmatpush1.bf16.msra.mxu0 %v18614_v23 }
 0x8db   : > { %14723 = vmatprep.subr.bf16.mxu0 %v18619_v36 }
 0x8dd   : > { %14713 = vmatmul.mubr.bf16.vlgmr.msra.gmra.mrb[20].mxu0 %v19462_v0  ;;  %v18634_v0 = vld [vmem:[#allocation11 + $0x1764] ss:$56 sps:$4 sm:$0xff]  }
 0x8de   : > { %14724 = vmatpush1.bf16.msra.mxu0 %v18617_v58  ;;  %14755 = vmatprep.mubr.bf16.mxu0 %v19491_v57  ;;  %v9047_v57 = vrot.slane %v19567_v46, %v19384_v60  ;;  %v18640_v60 = vld [vmem:[#allocation11 + $0x1844] ss:$56 sps:$4 sm:$0xff]  }
 0x8df   : > { %14725 = vmatprep.subr.bf16.mxu0 %v18622_v9 }
 0x8e2   : > { %14726 = vmatpush1.bf16.msra.mxu0 %v18620_v22 }
 0x8e3   : > { %14727 = vmatprep.subr.bf16.mxu0 %v18625_v56 }
 0x8e6   : > { %14728 = vmatpush1.bf16.msra.mxu0 %v18623_v38 }
 0x8e7   : > { %14729 = vmatprep.subr.bf16.mxu0 %v18628_v16 }
 0x8ea   : > { %14730 = vmatpush1.bf16.msra.mxu0 %v18626_v39 }
 0x8eb   : > { %14731 = vmatprep.subr.bf16.mxu0 %v18631_v40 }
 0x8ee   : > { %14732 = vmatpush1.bf16.msra.mxu0 %v18629_v43 }
 0x8ef   : > { %14733 = vmatprep.subr.bf16.mxu0 %v18634_v0 }
 0x8f0   : > { %v14413_v52 = vpop.f32.mrb[16].mxu0 }
 0x8f1   : > { %v17010_v30 = vadd.f32 %v14413_v52, %v9047_v57  ;;  %v14415_v61 = vpop.f32.mrb[17].mxu0 }
 0x8f2   : > { %v17011_v21 = vadd.f32 %v14415_v61, %v9051_v17  ;;  %v14417_v12 = vpop.f32.mrb[18].mxu0  ;;  %14734 = vmatpush1.bf16.msra.mxu0 %v18632_v19 }
 0x8f3   : > { %v17012_v63 = vadd.f32 %v14417_v12, %v9047_v57  ;;  %v14419_v1 = vpop.f32.mrb[19].mxu0  ;;  %14735 = vmatprep.subr.bf16.mxu0 %v18637_v51 }
 0x8f4   : > { %v16980_v59 = vpack.c.bf16 %v17011_v21, %v17010_v30  ;;  %v17013_v2 = vadd.f32 %v14419_v1, %v9051_v17 }
 0x8f6   : > { %14854 = vst [vmem:[%s19516_s30 + $0x20] sm:$0xff] %v16980_v59  ;;  %v16987_v28 = vpack.c.bf16 %v17013_v2, %v17012_v63  ;;  %14736 = vmatpush1.bf16.msra.mxu0 %v18635_v27 }
 0x8f7   : > { %14737 = vmatprep.subr.bf16.mxu0 %v18640_v60 }
 0x8f8   : > { %14861 = vst [vmem:[%s19516_s30 + $0x58] sm:$0xff] %v16987_v28 }
 0x8fa   : > { %14738 = vmatpush1.bf16.msra.mxu0 %v18638_v3 }
 0x8fb   : > { %14739 = vmatprep.subr.bf16.mxu0 %v18643_v4 }
 0x8fe   : > { %14740 = vmatpush1.bf16.msra.mxu0 %v18641_v5 }
 0x8ff   : > { %14741 = vmatprep.subr.bf16.mxu0 %v18646_v32 }
 0x902   : > { %14742 = vmatpush1.bf16.msra.mxu0 %v18644_v6 }
 0x903   : > { %14743 = vmatprep.subr.bf16.mxu0 %v18649_v8 }
 0x906   : > { %14744 = vmatpush1.bf16.msra.mxu0 %v18647_v11 }
 0x907   : > { %14745 = vmatprep.subr.bf16.mxu0 %v18652_v15 }
 0x90a   : > { %14746 = vmatpush1.bf16.msra.mxu0 %v18650_v18 }
 0x90b   : > { %14747 = vmatprep.subr.bf16.mxu0 %v18655_v26 }
 0x90e   : > { %14748 = vmatpush1.bf16.msra.mxu0 %v18653_v54 }
 0x90f   : > { %14749 = vmatprep.subr.bf16.mxu0 %v18658_v14 }
 0x911   : > { %v14585_v31 = vpop.f32.mrb[20].mxu1 }
 0x912   : > { %v17014_v62 = vadd.f32 %v14585_v31, %v9055_v10  ;;  %v14587_v24 = vpop.f32.mrb[21].mxu1  ;;  %14750 = vmatpush1.bf16.msra.mxu0 %v18656_v50 }
 0x913   : > { %v17015_v29 = vadd.f32 %v14587_v24, %v9059_v53  ;;  %v14589_v34 = vpop.f32.mrb[22].mxu1  ;;  %14751 = vmatprep.subr.bf16.mxu0 %v18661_v49 }
 0x914   : > { %v17016_v42 = vadd.f32 %v14589_v34, %v9055_v10  ;;  %v14591_v20 = vpop.f32.mrb[23].mxu1 }
 0x915   : > { %v16981_v37 = vpack.c.bf16 %v17015_v29, %v17014_v62  ;;  %v17017_v45 = vadd.f32 %v14591_v20, %v9059_v53 }
 0x916   : > { %14752 = vmatpush1.bf16.msra.mxu0 %v18659_v47 }
 0x917   : > { %14855 = vst [vmem:[%s19516_s30 + $0x28] sm:$0xff] %v16981_v37  ;;  %v16988_v13 = vpack.c.bf16 %v17017_v45, %v17016_v42  ;;  %14753 = vmatprep.subr.bf16.mxu0 %v18664_v41 }
 0x919   : > { %14862 = vst [vmem:[%s19516_s30 + $0x60] sm:$0xff] %v16988_v13 }
 0x91a   : > { %14754 = vmatpush1.bf16.msra.mxu0 %v18662_v48 }
 0x91d   : > { %14756 = vmatmul.mubr.bf16.vlgmr.msra.gmra.mrb[20].mxu0 %v19489_v55 }
 0x9f0   : > { %v14757_v33 = vpop.f32.mrb[20].mxu0 }
 0x9f1   : > { %v17018_v23 = vadd.f32 %v14757_v33, %v9063_v44  ;;  %v14759_v36 = vpop.f32.mrb[21].mxu0 }
 0x9f2   : > { %v17019_v58 = vadd.f32 %v14759_v36, %v9067_v25  ;;  %v14761_v9 = vpop.f32.mrb[22].mxu0 }
 0x9f3   : > { %v17020_v22 = vadd.f32 %v14761_v9, %v9063_v44  ;;  %v14763_v56 = vpop.f32.mrb[23].mxu0 }
 0x9f4   : > { %v16982_v55 = vpack.c.bf16 %v17019_v58, %v17018_v23  ;;  %v17021_v38 = vadd.f32 %v14763_v56, %v9067_v25 }
 0x9f6   : > { %14856 = vst [vmem:[%s19516_s30 + $0x30] sm:$0xff] %v16982_v55  ;;  %v16989_v35 = vpack.c.bf16 %v17021_v38, %v17020_v22 }
 0x9f8   : > { %14863 = vst [vmem:[%s19516_s30 + $0x68] sm:$0xff] %v16989_v35 }
 0x9f9   : > { %18853 = shalt.err (!%p18850_p8)
}
 0x9fa   : > { %s18854_s17 = scalar_lea.hbm %s19591_s19, 1792  ;;  %s18858_s28 = scalar_lea.hbm %s19645_s6, 3584 }
 0x9fb   : > { %p18855_p6 = scmp.ne.s32.totalorder %s19591_s19, %s18854_s17  ;;  %p18859_p3 = scmp.lt.u32.totalorder %s19591_s19, %s19645_s6 }
 0x9fc   : > { %p18860_p5 = scmp.lt.u32.totalorder %s18858_s28, %s18854_s17  ;;  %p18862_p7 = scmp.lt.u32.totalorder %s18854_s17, %s19591_s19 }
 0x9fd   : > { %p18856_p10 = pnand %p18855_p6, %p19664_p4 }
 0x9fe   : > { %p18861_p9 = por %p18860_p5, %p18859_p3 }
 0x9ff   : > { %p18857_p11 = pneg %p18856_p10 }
 0xa00   : > { %p18863_p12 = por %p18862_p7, %p18861_p9 }
 0xa02   : > { %p18864_p1 = pnand %p18863_p12, %p18857_p11 }
 0xa04   : > { %18867 = shalt.err (!%p18864_p1)
}
 0xa05   : > { %s18933_s29 = smov 896   ;;  %s18934_s9 = smov 56  }
 0xa06   : > { %17238 = dma.vmem_to_hbm [thread:$0]  (%p19664_p4), %s19593_s16, 1792, %s19591_s19, %s14865_s27, %s18933_s29, %s18933_s29, %s18934_s9  }
 0xa07 PF: > { %s14894_s25 = sand.u32 1, %s18906_s21   ;;  %p19665_p13 = scmp.ne.s32.totalorder %s19655_s14, 0 }
 0xa08   : > { %p19666_p0 = scmp.ge.s32.totalorder %s18918_s24, 2  ;;  %s14895_s8 = scalar_lea.sflag [#allocation5], %s14894_s25 }
 0xa0a   : > { %p17261_p2 = pnand %p19666_p0, %p19665_p13 }
 0xa0c   : > { %18901 = dma.done.wait (!%p17261_p2), %s14895_s8, 1792  }
 0xa0d   : > { %18903 = vsyncadd (!%p17261_p2), %s14895_s8, 4294965504  ;;  %p22_p8 = scmp.ge.s32.totalorder %s19128_s7, 4   ;;  %s19667_s21 = smov %s18910_s22 }
 0xa0e   : > { %s19668_s22 = smov %s18914_s23  ;;  %s19669_s23 = smov %s19140_s11 }
 0xa0f   : > { %s19670_s24 = smov %s19128_s7  ;;  %24 = sbr.rel (!%p22_p8) target bundleno = 8 (0x8), region = 109 }
 0xa16   :  { %14900 = vsyncpa [#allocation4], 1 }
 0xa17   :  { %14902 = vsyncpa [#allocation4 + $0x1], 1 }
 0xa18   :  { %14903 = vsyncpa [#allocation7], 1 }
 0xa19   :  { %14904 = vsyncpa [#allocation10], 1 }
 0xa1a   :  { %14905 = vsyncpa [#allocation13], 1 }
 0xa1b   :  { %14906 = vsyncpa [#allocation5], 1 }
 0xa1c   :  { %14908 = vsyncpa [#allocation5 + $0x1], 1 }

</bundles_post_ra>
